<compile_context>
chip_gen: v7x
topology: tpu7x:2x2x1
jax: 0.10.0
libtpu: 0.0.40
codegen_flags: <defaults>
</compile_context>

<pallas_src>
import functools
import numpy as np
import jax
import jax.numpy as jnp
from jax.experimental import pallas as pl
from jax.experimental.pallas import tpu as pltpu


def _round_up(x, m):
    return ((x + m - 1) // m) * m


# ---------------------------------------------------------------------------
# Fused SPPF kernel (one grid step == one batch element, full H x W in VMEM)
# ---------------------------------------------------------------------------
def _sppf_kernel(x_ref, w1_ref, b1_ref, w2_ref, b2_ref, o_ref, pad_ref, acc_ref,
                 *, k, col0):
    H, W = x_ref.shape[1], x_ref.shape[2]
    C1p = x_ref.shape[3]
    Cp = pad_ref.shape[-1]
    Wtot = pad_ref.shape[1]
    pad = k // 2

    def silu(v):                      # v * sigmoid(v); reciprocal on the EUP slot
        return v * pl.reciprocal(1.0 + jnp.exp(-v), approx=True)

    # ---- border-only -inf refresh of the pooling scratch (interior is overwritten
    #      every chunk; borders are never touched by data stores) ----
    pad_ref[0:pad, :, :] = jnp.full((pad, Wtot, Cp), -jnp.inf, jnp.bfloat16)
    pad_ref[pad + H:pad + H + pad, :, :] = jnp.full((pad, Wtot, Cp), -jnp.inf,
                                                    jnp.bfloat16)
    pad_ref[:, 0:col0, :] = jnp.full((H + 2 * pad, col0, Cp), -jnp.inf, jnp.bfloat16)
    pad_ref[:, col0 + W:Wtot, :] = jnp.full((H + 2 * pad, Wtot - col0 - W, Cp),
                                            -jnp.inf, jnp.bfloat16)

    # ---- cv1: 1x1 conv as a (H*W, C1p) x (C1p, Cp) bf16 matmul, f32 accumulate ----
    x2d = x_ref[0].reshape(H * W, C1p)                               # bf16
    t = jnp.dot(x2d, w1_ref[...], preferred_element_type=jnp.float32) + b1_ref[...]
    t = silu(t)                                                      # f32 (H*W, Cp)
    t_bf = t.astype(jnp.bfloat16)                                    # single cast

    # ---- cv2 over the channel concat == sum of 4 per-chunk matmuls, f32 scratch acc
    acc_ref[...] = jnp.dot(t_bf, w2_ref[0], preferred_element_type=jnp.float32)

    # ---- three chained k x k max pools, separable, bf16, over a -inf padded scratch
    cur = t_bf.reshape(H, W, Cp)
    for chunk in (1, 2, 3):                                          # y1, y2, y3
        # aligned store of the current feature map into the scratch interior
        pad_ref[pad:pad + H, col0:col0 + W, :] = cur
        # horizontal pass: k shifted column windows
        rowmax = pad_ref[:, col0 - pad:col0 - pad + W, :]
        for dx in range(1, k):
            rowmax = jnp.maximum(
                rowmax, pad_ref[:, col0 - pad + dx:col0 - pad + dx + W, :])
        # vertical pass: k shifted row windows (free slices along the leading axis)
        pooled = rowmax[0:H]
        for dy in range(1, k):
            pooled = jnp.maximum(pooled, rowmax[dy:dy + H])
        acc_ref[...] += jnp.dot(pooled.reshape(H * W, Cp), w2_ref[chunk],
                                preferred_element_type=jnp.float32)
        cur = pooled

    y = silu(acc_ref[...] + b2_ref[...])
    o_ref[0] = y.reshape(H, W, o_ref.shape[-1]).astype(o_ref.dtype)


# ---------------------------------------------------------------------------
# Host-side wrapper: layout / channel padding glue + pallas_call
# ---------------------------------------------------------------------------
def sppf_forward_pallas(x_nchw, params, out_dtype=None):
    N, c1, H, W = x_nchw.shape
    k = int(params["k"])
    assert k % 2 == 1, "SPPF maxpool kernel size must be odd"
    pad = k // 2
    w1, b1 = params["cv1"]                      # (c1, c_), (c_,)
    w2, b2 = params["cv2"]                      # (4*c_, c2), (c2,)
    c_ = w1.shape[1]
    c2 = w2.shape[1]
    assert w2.shape[0] == 4 * c_
    if out_dtype is None:
        out_dtype = x_nchw.dtype

    # lane-dense channel padding (carried through the whole chain)
    C1p = _round_up(c1, 128)
    Cp = _round_up(c_, 128)
    C2p = _round_up(c2, 128)
    # bf16 sublane tile is 16 rows -> align interior store column for unmasked stores
    col0 = _round_up(pad, 16)
    assert pad <= col0
    scratch_rows = H + 2 * pad
    scratch_cols = _round_up(col0 + W + pad, 8)

    # NCHW -> NHWC, bf16 cast first (halves transpose/pad traffic), zero-pad channels
    x_p = jnp.pad(jnp.transpose(x_nchw.astype(jnp.bfloat16), (0, 2, 3, 1)),
                  ((0, 0), (0, 0), (0, 0), (0, C1p - c1)))

    w1p = jnp.zeros((C1p, Cp), jnp.float32).at[:c1, :c_].set(w1).astype(jnp.bfloat16)
    b1p = jnp.zeros((1, Cp), jnp.float32).at[0, :c_].set(b1)
    # split cv2's weight over the 4 concatenated chunks (x', y1, y2, y3)
    w2c = jnp.zeros((4, Cp, C2p), jnp.float32)
    for i in range(4):
        w2c = w2c.at[i, :c_, :c2].set(w2[i * c_:(i + 1) * c_, :])
    w2c = w2c.astype(jnp.bfloat16)
    b2p = jnp.zeros((1, C2p), jnp.float32).at[0, :c2].set(b2)

    out_bytes = int(np.dtype(out_dtype).itemsize)
    flops = 2 * N * H * W * (C1p * Cp + 4 * Cp * C2p)
    transcendentals = N * H * W * (Cp + C2p)
    bytes_accessed = (N * H * W * C1p * 2 + N * H * W * C2p * out_bytes
                      + (C1p * Cp + 4 * Cp * C2p) * 2 + (Cp + C2p) * 4)

    # explicit VMEM budget: blocks (double-buffered) + scratch + temporary headroom
    vmem_est = (2 * H * W * C1p * 2                       # x block, bf16
                + 2 * H * W * C2p * out_bytes             # out block
                + 2 * (C1p * Cp + 4 * Cp * C2p) * 2       # weights, bf16
                + 2 * (Cp + C2p) * 4                      # biases
                + scratch_rows * scratch_cols * Cp * 2    # bf16 pad scratch
                + H * W * C2p * 4                         # f32 accumulator scratch
                + 12 * H * W * Cp * 4)                    # temporaries / spill headroom
    vmem_limit = int(min(vmem_est + (8 << 20), 56 * 1024 * 1024))

    out = pl.pallas_call(
        functools.partial(_sppf_kernel, k=k, col0=col0),
        out_shape=jax.ShapeDtypeStruct((N, H, W, C2p), out_dtype),
        grid=(N,),
        in_specs=[
            pl.BlockSpec((1, H, W, C1p), lambda b: (b, 0, 0, 0)),   # activations
            pl.BlockSpec((C1p, Cp), lambda b: (0, 0)),              # cv1 weight (resident)
            pl.BlockSpec((1, Cp), lambda b: (0, 0)),                # cv1 bias
            pl.BlockSpec((4, Cp, C2p), lambda b: (0, 0, 0)),        # cv2 weight chunks
            pl.BlockSpec((1, C2p), lambda b: (0, 0)),               # cv2 bias
        ],
        out_specs=pl.BlockSpec((1, H, W, C2p), lambda b: (b, 0, 0, 0)),
        scratch_shapes=[
            pltpu.VMEM((scratch_rows, scratch_cols, Cp), jnp.bfloat16),  # pooling pad
            pltpu.VMEM((H * W, C2p), jnp.float32),                       # cv2 accumulator
        ],
        compiler_params=pltpu.CompilerParams(
            dimension_semantics=("parallel",),
            vmem_limit_bytes=vmem_limit),
        cost_estimate=pl.CostEstimate(flops=flops,
                                      transcendentals=transcendentals,
                                      bytes_accessed=bytes_accessed),
    )(x_p, w1p, b1p, w2c, b2p)

    out = out[..., :c2]                                             # drop channel padding
    return jnp.transpose(out, (0, 3, 1, 2))                         # NHWC -> NCHW


# ---------------------------------------------------------------------------
# Pure-JAX reference (f32, highest precision) of the same SPPF math
# ---------------------------------------------------------------------------
def sppf_reference(x_nchw, params):
    x = jnp.transpose(x_nchw, (0, 2, 3, 1)).astype(jnp.float32)
    w1, b1 = params["cv1"]
    w2, b2 = params["cv2"]
    k = int(params["k"])
    pad = k // 2

    def conv1x1_silu(z, w, b):
        y = jnp.einsum("nhwc,cd->nhwd", z, w,
                       precision=jax.lax.Precision.HIGHEST) + b
        return y * jax.nn.sigmoid(y)

    def maxpool(z):
        return jax.lax.reduce_window(
            z, -jnp.inf, jax.lax.max,
            window_dimensions=(1, k, k, 1), window_strides=(1, 1, 1, 1),
            padding=((0, 0), (pad, pad), (pad, pad), (0, 0)))

    t = conv1x1_silu(x, w1, b1)
    y1 = maxpool(t)
    y2 = maxpool(y1)
    y3 = maxpool(y2)
    cat = jnp.concatenate([t, y1, y2, y3], axis=-1)
    out = conv1x1_silu(cat, w2, b2)
    return jnp.transpose(out, (0, 3, 1, 2))


# ---------------------------------------------------------------------------
# Deterministic parameter construction (Conv2d 1x1 weight + BN folded, eps=1e-3)
# ---------------------------------------------------------------------------
def make_conv_bn_1x1(key, cin, cout):
    kw, kb = jax.random.split(key)
    w = jax.random.normal(kw, (cin, cout), jnp.float32) / np.sqrt(cin)
    kg, kbeta, kmean, kvar = jax.random.split(kb, 4)
    gamma = 1.0 + 0.1 * jax.random.normal(kg, (cout,), jnp.float32)
    beta = 0.1 * jax.random.normal(kbeta, (cout,), jnp.float32)
    mean = 0.1 * jax.random.normal(kmean, (cout,), jnp.float32)
    var = 0.5 + 0.1 * jnp.abs(jax.random.normal(kvar, (cout,), jnp.float32))
    eps = 1e-3                                   # ultralytics BatchNorm2d eps
    scale = gamma / jnp.sqrt(var + eps)
    return w * scale, beta - mean * scale


def init_sppf_params(key, c1, c2, k=5):
    c_ = c1 // 2
    k1, k2 = jax.random.split(key)
    return {
        "k": k,
        "c_": c_,
        "cv1": make_conv_bn_1x1(k1, c1, c_),
        "cv2": make_conv_bn_1x1(k2, 4 * c_, c2),
    }


if __name__ == "__main__":
    key = jax.random.PRNGKey(0)
    kx, kp = jax.random.split(key)

    # SPPF(c1=4, c2=4, k=5) on x: (N=2, C=4, H=16, W=16)
    N, c1, H, W = 2, 4, 16, 16
    c2 = 4
    x = jax.random.normal(kx, (N, c1, H, W), jnp.float32)
    params = init_sppf_params(kp, c1, c2, k=5)

    # jit so the NCHW->NHWC / pad / cast glue fuses around the fused kernel
    fwd = jax.jit(lambda xx: sppf_forward_pallas(xx, params))
    out = jax.block_until_ready(fwd(x))
    assert out.shape == (N, c2, H, W), out.shape

    ref = jax.block_until_ready(sppf_reference(x, params))
    # bf16 MXU operands + approx reciprocal vs f32 HIGHEST reference
    np.testing.assert_allclose(np.asarray(out), np.asarray(ref), rtol=3e-2, atol=3e-2)

    print("KERNEL_OK")
</pallas_src>

<mosaic_0001>
module attributes {stable_mosaic.version = 11 : i64} {
  func.func @_sppf_kernel(%arg0: i32, %arg1: memref<1x16x16x128xbf16, #tpu.memory_space<vmem>>, %arg2: memref<128x128xbf16, #tpu.memory_space<vmem>>, %arg3: memref<1x128xf32, #tpu.memory_space<vmem>>, %arg4: memref<4x128x128xbf16, #tpu.memory_space<vmem>>, %arg5: memref<1x128xf32, #tpu.memory_space<vmem>>, %arg6: memref<1x16x16x128xf32, #tpu.memory_space<vmem>>, %arg7: memref<20x40x128xbf16, #tpu.memory_space<vmem>>, %arg8: memref<256x128xf32, #tpu.memory_space<vmem>>) attributes {dimension_semantics = [#tpu.dimension_semantics<parallel>], iteration_bounds = array<i64: 2>, scalar_prefetch = 0 : i64, scratch_operands = 2 : i64, tpu.core_type = #tpu.core_type<tc>, window_params = [{transform_indices = @transform_0, window_bounds = array<i64: 1, 16, 16, 128>}, {pipeline_mode = #tpu.pipeline_mode<synchronous>, transform_indices = @transform_1, window_bounds = array<i64: 128, 128>}, {pipeline_mode = #tpu.pipeline_mode<synchronous>, transform_indices = @transform_2, window_bounds = array<i64: 1, 128>}, {pipeline_mode = #tpu.pipeline_mode<synchronous>, transform_indices = @transform_3, window_bounds = array<i64: 4, 128, 128>}, {pipeline_mode = #tpu.pipeline_mode<synchronous>, transform_indices = @transform_4, window_bounds = array<i64: 1, 128>}, {transform_indices = @transform_5, window_bounds = array<i64: 1, 16, 16, 128>}]} {
    %cst = arith.constant 0xFF80 : bf16
    %0 = vector.broadcast %cst : bf16 to vector<2x40x128xbf16>
    %c0 = arith.constant 0 : index
    %c0_0 = arith.constant 0 : index
    %c0_1 = arith.constant 0 : index
    %1 = vector.load %arg7[%c0, %c0_0, %c0_1] : memref<20x40x128xbf16, #tpu.memory_space<vmem>>, vector<2x40x128xbf16>
    tpu.vector_store %arg7[%c0, %c0_0, %c0_1], %0 {strides = array<i32>} : memref<20x40x128xbf16, #tpu.memory_space<vmem>>, vector<2x40x128xbf16>,
    %cst_2 = arith.constant 0xFF80 : bf16
    %2 = vector.broadcast %cst_2 : bf16 to vector<2x40x128xbf16>
    %c18 = arith.constant 18 : index
    %c0_3 = arith.constant 0 : index
    %c0_4 = arith.constant 0 : index
    %3 = vector.load %arg7[%c18, %c0_3, %c0_4] : memref<20x40x128xbf16, #tpu.memory_space<vmem>>, vector<2x40x128xbf16>
    tpu.vector_store %arg7[%c18, %c0_3, %c0_4], %2 {strides = array<i32>} : memref<20x40x128xbf16, #tpu.memory_space<vmem>>, vector<2x40x128xbf16>,
    %cst_5 = arith.constant 0xFF80 : bf16
    %4 = vector.broadcast %cst_5 : bf16 to vector<20x16x128xbf16>
    %c0_6 = arith.constant 0 : index
    %c0_7 = arith.constant 0 : index
    %c0_8 = arith.constant 0 : index
    %5 = vector.load %arg7[%c0_6, %c0_7, %c0_8] : memref<20x40x128xbf16, #tpu.memory_space<vmem>>, vector<20x16x128xbf16>
    tpu.vector_store %arg7[%c0_6, %c0_7, %c0_8], %4 {strides = array<i32>} : memref<20x40x128xbf16, #tpu.memory_space<vmem>>, vector<20x16x128xbf16>,
    %cst_9 = arith.constant 0xFF80 : bf16
    %6 = vector.broadcast %cst_9 : bf16 to vector<20x8x128xbf16>
    %c0_10 = arith.constant 0 : index
    %c32 = arith.constant 32 : index
    %c0_11 = arith.constant 0 : index
    %7 = vector.load %arg7[%c0_10, %c32, %c0_11] : memref<20x40x128xbf16, #tpu.memory_space<vmem>>, vector<20x8x128xbf16>
    tpu.vector_store %arg7[%c0_10, %c32, %c0_11], %6 {strides = array<i32>} : memref<20x40x128xbf16, #tpu.memory_space<vmem>>, vector<20x8x128xbf16>,
    %c0_12 = arith.constant 0 : index
    %c0_13 = arith.constant 0 : index
    %c0_14 = arith.constant 0 : index
    %c0_15 = arith.constant 0 : index
    %8 = vector.load %arg1[%c0_12, %c0_13, %c0_14, %c0_15] : memref<1x16x16x128xbf16, #tpu.memory_space<vmem>>, vector<1x16x16x128xbf16>
    %9 = vector.shape_cast %8 : vector<1x16x16x128xbf16> to vector<16x16x128xbf16>
    %10 = vector.shape_cast %9 : vector<16x16x128xbf16> to vector<256x128xbf16>
    %c0_16 = arith.constant 0 : index
    %c0_17 = arith.constant 0 : index
    %11 = vector.load %arg2[%c0_16, %c0_17] : memref<128x128xbf16, #tpu.memory_space<vmem>>, vector<128x128xbf16>
    %cst_18 = arith.constant dense<0.000000e+00> : vector<256x128xf32>
    %12 = tpu.matmul %10, %11, %cst_18 {dimension_numbers = #tpu.dot_dimension_numbers<[1], [0], [0], [1], [0, 0, 1, 1], [], []>} : vector<256x128xbf16>, vector<128x128xbf16>, vector<256x128xf32> -> vector<256x128xf32>
    %c0_19 = arith.constant 0 : index
    %c0_20 = arith.constant 0 : index
    %13 = vector.load %arg3[%c0_19, %c0_20] : memref<1x128xf32, #tpu.memory_space<vmem>>, vector<1x128xf32>
    %14 = vector.broadcast %13 : vector<1x128xf32> to vector<256x128xf32>
    %15 = arith.addf %12, %14 : vector<256x128xf32>
    %cst_21 = arith.constant 0.000000e+00 : f32
    %16 = vector.broadcast %cst_21 : f32 to vector<256x128xf32>
    %17 = arith.subf %16, %15 : vector<256x128xf32>
    %18 = math.exp %17 : vector<256x128xf32>
    %cst_22 = arith.constant 1.000000e+00 : f32
    %19 = vector.broadcast %cst_22 : f32 to vector<256x128xf32>
    %20 = arith.addf %19, %18 : vector<256x128xf32>
    %21 = tpu.reciprocal %20 {approx = true} : vector<256x128xf32> -> vector<256x128xf32>
    %22 = arith.mulf %15, %21 : vector<256x128xf32>
    %23 = arith.truncf %22 : vector<256x128xf32> to vector<256x128xbf16>
    %c0_23 = arith.constant 0 : index
    %c0_24 = arith.constant 0 : index
    %c0_25 = arith.constant 0 : index
    %24 = vector.load %arg4[%c0_23, %c0_24, %c0_25] : memref<4x128x128xbf16, #tpu.memory_space<vmem>>, vector<1x128x128xbf16>
    %25 = vector.shape_cast %24 : vector<1x128x128xbf16> to vector<128x128xbf16>
    %cst_26 = arith.constant dense<0.000000e+00> : vector<256x128xf32>
    %26 = tpu.matmul %23, %25, %cst_26 {dimension_numbers = #tpu.dot_dimension_numbers<[1], [0], [0], [1], [0, 0, 1, 1], [], []>} : vector<256x128xbf16>, vector<128x128xbf16>, vector<256x128xf32> -> vector<256x128xf32>
    %c0_27 = arith.constant 0 : index
    %c0_28 = arith.constant 0 : index
    %27 = vector.load %arg8[%c0_27, %c0_28] : memref<256x128xf32, #tpu.memory_space<vmem>>, vector<256x128xf32>
    tpu.vector_store %arg8[%c0_27, %c0_28], %26 {strides = array<i32>} : memref<256x128xf32, #tpu.memory_space<vmem>>, vector<256x128xf32>,
    %28 = vector.shape_cast %23 : vector<256x128xbf16> to vector<16x16x128xbf16>
    %c2 = arith.constant 2 : index
    %c16 = arith.constant 16 : index
    %c0_29 = arith.constant 0 : index
    %29 = vector.load %arg7[%c2, %c16, %c0_29] : memref<20x40x128xbf16, #tpu.memory_space<vmem>>, vector<16x16x128xbf16>
    tpu.vector_store %arg7[%c2, %c16, %c0_29], %28 {strides = array<i32>} : memref<20x40x128xbf16, #tpu.memory_space<vmem>>, vector<16x16x128xbf16>,
    %c0_30 = arith.constant 0 : index
    %c14 = arith.constant 14 : index
    %c0_31 = arith.constant 0 : index
    %30 = vector.load %arg7[%c0_30, %c14, %c0_31] : memref<20x40x128xbf16, #tpu.memory_space<vmem>>, vector<20x16x128xbf16>
    %c0_32 = arith.constant 0 : index
    %c15 = arith.constant 15 : index
    %c0_33 = arith.constant 0 : index
    %31 = vector.load %arg7[%c0_32, %c15, %c0_33] : memref<20x40x128xbf16, #tpu.memory_space<vmem>>, vector<20x16x128xbf16>
    %32 = arith.maximumf %30, %31 : vector<20x16x128xbf16>
    %c0_34 = arith.constant 0 : index
    %c16_35 = arith.constant 16 : index
    %c0_36 = arith.constant 0 : index
    %33 = vector.load %arg7[%c0_34, %c16_35, %c0_36] : memref<20x40x128xbf16, #tpu.memory_space<vmem>>, vector<20x16x128xbf16>
    %34 = arith.maximumf %32, %33 : vector<20x16x128xbf16>
    %c0_37 = arith.constant 0 : index
    %c17 = arith.constant 17 : index
    %c0_38 = arith.constant 0 : index
    %35 = vector.load %arg7[%c0_37, %c17, %c0_38] : memref<20x40x128xbf16, #tpu.memory_space<vmem>>, vector<20x16x128xbf16>
    %36 = arith.maximumf %34, %35 : vector<20x16x128xbf16>
    %c0_39 = arith.constant 0 : index
    %c18_40 = arith.constant 18 : index
    %c0_41 = arith.constant 0 : index
    %37 = vector.load %arg7[%c0_39, %c18_40, %c0_41] : memref<20x40x128xbf16, #tpu.memory_space<vmem>>, vector<20x16x128xbf16>
    %38 = arith.maximumf %36, %37 : vector<20x16x128xbf16>
    %39 = vector.extract_strided_slice %38 {offsets = [0, 0, 0], sizes = [16, 16, 128], strides = [1, 1, 1]} : vector<20x16x128xbf16> to vector<16x16x128xbf16>
    %40 = vector.extract_strided_slice %38 {offsets = [1, 0, 0], sizes = [16, 16, 128], strides = [1, 1, 1]} : vector<20x16x128xbf16> to vector<16x16x128xbf16>
    %41 = arith.maximumf %39, %40 : vector<16x16x128xbf16>
    %42 = vector.extract_strided_slice %38 {offsets = [2, 0, 0], sizes = [16, 16, 128], strides = [1, 1, 1]} : vector<20x16x128xbf16> to vector<16x16x128xbf16>
    %43 = arith.maximumf %41, %42 : vector<16x16x128xbf16>
    %44 = vector.extract_strided_slice %38 {offsets = [3, 0, 0], sizes = [16, 16, 128], strides = [1, 1, 1]} : vector<20x16x128xbf16> to vector<16x16x128xbf16>
    %45 = arith.maximumf %43, %44 : vector<16x16x128xbf16>
    %46 = vector.extract_strided_slice %38 {offsets = [4, 0, 0], sizes = [16, 16, 128], strides = [1, 1, 1]} : vector<20x16x128xbf16> to vector<16x16x128xbf16>
    %47 = arith.maximumf %45, %46 : vector<16x16x128xbf16>
    %c0_42 = arith.constant 0 : index
    %c0_43 = arith.constant 0 : index
    %48 = vector.load %arg8[%c0_42, %c0_43] : memref<256x128xf32, #tpu.memory_space<vmem>>, vector<256x128xf32>
    %49 = vector.shape_cast %47 : vector<16x16x128xbf16> to vector<256x128xbf16>
    %c1 = arith.constant 1 : index
    %c0_44 = arith.constant 0 : index
    %c0_45 = arith.constant 0 : index
    %50 = vector.load %arg4[%c1, %c0_44, %c0_45] : memref<4x128x128xbf16, #tpu.memory_space<vmem>>, vector<1x128x128xbf16>
    %51 = vector.shape_cast %50 : vector<1x128x128xbf16> to vector<128x128xbf16>
    %cst_46 = arith.constant dense<0.000000e+00> : vector<256x128xf32>
    %52 = tpu.matmul %49, %51, %cst_46 {dimension_numbers = #tpu.dot_dimension_numbers<[1], [0], [0], [1], [0, 0, 1, 1], [], []>} : vector<256x128xbf16>, vector<128x128xbf16>, vector<256x128xf32> -> vector<256x128xf32>
    %53 = arith.addf %48, %52 : vector<256x128xf32>
    %c0_47 = arith.constant 0 : index
    %c0_48 = arith.constant 0 : index
    %54 = vector.load %arg8[%c0_47, %c0_48] : memref<256x128xf32, #tpu.memory_space<vmem>>, vector<256x128xf32>
    tpu.vector_store %arg8[%c0_47, %c0_48], %53 {strides = array<i32>} : memref<256x128xf32, #tpu.memory_space<vmem>>, vector<256x128xf32>,
    %c2_49 = arith.constant 2 : index
    %c16_50 = arith.constant 16 : index
    %c0_51 = arith.constant 0 : index
    %55 = vector.load %arg7[%c2_49, %c16_50, %c0_51] : memref<20x40x128xbf16, #tpu.memory_space<vmem>>, vector<16x16x128xbf16>
    tpu.vector_store %arg7[%c2_49, %c16_50, %c0_51], %47 {strides = array<i32>} : memref<20x40x128xbf16, #tpu.memory_space<vmem>>, vector<16x16x128xbf16>,
    %c0_52 = arith.constant 0 : index
    %c14_53 = arith.constant 14 : index
    %c0_54 = arith.constant 0 : index
    %56 = vector.load %arg7[%c0_52, %c14_53, %c0_54] : memref<20x40x128xbf16, #tpu.memory_space<vmem>>, vector<20x16x128xbf16>
    %c0_55 = arith.constant 0 : index
    %c15_56 = arith.constant 15 : index
    %c0_57 = arith.constant 0 : index
    %57 = vector.load %arg7[%c0_55, %c15_56, %c0_57] : memref<20x40x128xbf16, #tpu.memory_space<vmem>>, vector<20x16x128xbf16>
    %58 = arith.maximumf %56, %57 : vector<20x16x128xbf16>
    %c0_58 = arith.constant 0 : index
    %c16_59 = arith.constant 16 : index
    %c0_60 = arith.constant 0 : index
    %59 = vector.load %arg7[%c0_58, %c16_59, %c0_60] : memref<20x40x128xbf16, #tpu.memory_space<vmem>>, vector<20x16x128xbf16>
    %60 = arith.maximumf %58, %59 : vector<20x16x128xbf16>
    %c0_61 = arith.constant 0 : index
    %c17_62 = arith.constant 17 : index
    %c0_63 = arith.constant 0 : index
    %61 = vector.load %arg7[%c0_61, %c17_62, %c0_63] : memref<20x40x128xbf16, #tpu.memory_space<vmem>>, vector<20x16x128xbf16>
    %62 = arith.maximumf %60, %61 : vector<20x16x128xbf16>
    %c0_64 = arith.constant 0 : index
    %c18_65 = arith.constant 18 : index
    %c0_66 = arith.constant 0 : index
    %63 = vector.load %arg7[%c0_64, %c18_65, %c0_66] : memref<20x40x128xbf16, #tpu.memory_space<vmem>>, vector<20x16x128xbf16>
    %64 = arith.maximumf %62, %63 : vector<20x16x128xbf16>
    %65 = vector.extract_strided_slice %64 {offsets = [0, 0, 0], sizes = [16, 16, 128], strides = [1, 1, 1]} : vector<20x16x128xbf16> to vector<16x16x128xbf16>
    %66 = vector.extract_strided_slice %64 {offsets = [1, 0, 0], sizes = [16, 16, 128], strides = [1, 1, 1]} : vector<20x16x128xbf16> to vector<16x16x128xbf16>
    %67 = arith.maximumf %65, %66 : vector<16x16x128xbf16>
    %68 = vector.extract_strided_slice %64 {offsets = [2, 0, 0], sizes = [16, 16, 128], strides = [1, 1, 1]} : vector<20x16x128xbf16> to vector<16x16x128xbf16>
    %69 = arith.maximumf %67, %68 : vector<16x16x128xbf16>
    %70 = vector.extract_strided_slice %64 {offsets = [3, 0, 0], sizes = [16, 16, 128], strides = [1, 1, 1]} : vector<20x16x128xbf16> to vector<16x16x128xbf16>
    %71 = arith.maximumf %69, %70 : vector<16x16x128xbf16>
    %72 = vector.extract_strided_slice %64 {offsets = [4, 0, 0], sizes = [16, 16, 128], strides = [1, 1, 1]} : vector<20x16x128xbf16> to vector<16x16x128xbf16>
    %73 = arith.maximumf %71, %72 : vector<16x16x128xbf16>
    %c0_67 = arith.constant 0 : index
    %c0_68 = arith.constant 0 : index
    %74 = vector.load %arg8[%c0_67, %c0_68] : memref<256x128xf32, #tpu.memory_space<vmem>>, vector<256x128xf32>
    %75 = vector.shape_cast %73 : vector<16x16x128xbf16> to vector<256x128xbf16>
    %c2_69 = arith.constant 2 : index
    %c0_70 = arith.constant 0 : index
    %c0_71 = arith.constant 0 : index
    %76 = vector.load %arg4[%c2_69, %c0_70, %c0_71] : memref<4x128x128xbf16, #tpu.memory_space<vmem>>, vector<1x128x128xbf16>
    %77 = vector.shape_cast %76 : vector<1x128x128xbf16> to vector<128x128xbf16>
    %cst_72 = arith.constant dense<0.000000e+00> : vector<256x128xf32>
    %78 = tpu.matmul %75, %77, %cst_72 {dimension_numbers = #tpu.dot_dimension_numbers<[1], [0], [0], [1], [0, 0, 1, 1], [], []>} : vector<256x128xbf16>, vector<128x128xbf16>, vector<256x128xf32> -> vector<256x128xf32>
    %79 = arith.addf %74, %78 : vector<256x128xf32>
    %c0_73 = arith.constant 0 : index
    %c0_74 = arith.constant 0 : index
    %80 = vector.load %arg8[%c0_73, %c0_74] : memref<256x128xf32, #tpu.memory_space<vmem>>, vector<256x128xf32>
    tpu.vector_store %arg8[%c0_73, %c0_74], %79 {strides = array<i32>} : memref<256x128xf32, #tpu.memory_space<vmem>>, vector<256x128xf32>,
    %c2_75 = arith.constant 2 : index
    %c16_76 = arith.constant 16 : index
    %c0_77 = arith.constant 0 : index
    %81 = vector.load %arg7[%c2_75, %c16_76, %c0_77] : memref<20x40x128xbf16, #tpu.memory_space<vmem>>, vector<16x16x128xbf16>
    tpu.vector_store %arg7[%c2_75, %c16_76, %c0_77], %73 {strides = array<i32>} : memref<20x40x128xbf16, #tpu.memory_space<vmem>>, vector<16x16x128xbf16>,
    %c0_78 = arith.constant 0 : index
    %c14_79 = arith.constant 14 : index
    %c0_80 = arith.constant 0 : index
    %82 = vector.load %arg7[%c0_78, %c14_79, %c0_80] : memref<20x40x128xbf16, #tpu.memory_space<vmem>>, vector<20x16x128xbf16>
    %c0_81 = arith.constant 0 : index
    %c15_82 = arith.constant 15 : index
    %c0_83 = arith.constant 0 : index
    %83 = vector.load %arg7[%c0_81, %c15_82, %c0_83] : memref<20x40x128xbf16, #tpu.memory_space<vmem>>, vector<20x16x128xbf16>
    %84 = arith.maximumf %82, %83 : vector<20x16x128xbf16>
    %c0_84 = arith.constant 0 : index
    %c16_85 = arith.constant 16 : index
    %c0_86 = arith.constant 0 : index
    %85 = vector.load %arg7[%c0_84, %c16_85, %c0_86] : memref<20x40x128xbf16, #tpu.memory_space<vmem>>, vector<20x16x128xbf16>
    %86 = arith.maximumf %84, %85 : vector<20x16x128xbf16>
    %c0_87 = arith.constant 0 : index
    %c17_88 = arith.constant 17 : index
    %c0_89 = arith.constant 0 : index
    %87 = vector.load %arg7[%c0_87, %c17_88, %c0_89] : memref<20x40x128xbf16, #tpu.memory_space<vmem>>, vector<20x16x128xbf16>
    %88 = arith.maximumf %86, %87 : vector<20x16x128xbf16>
    %c0_90 = arith.constant 0 : index
    %c18_91 = arith.constant 18 : index
    %c0_92 = arith.constant 0 : index
    %89 = vector.load %arg7[%c0_90, %c18_91, %c0_92] : memref<20x40x128xbf16, #tpu.memory_space<vmem>>, vector<20x16x128xbf16>
    %90 = arith.maximumf %88, %89 : vector<20x16x128xbf16>
    %91 = vector.extract_strided_slice %90 {offsets = [0, 0, 0], sizes = [16, 16, 128], strides = [1, 1, 1]} : vector<20x16x128xbf16> to vector<16x16x128xbf16>
    %92 = vector.extract_strided_slice %90 {offsets = [1, 0, 0], sizes = [16, 16, 128], strides = [1, 1, 1]} : vector<20x16x128xbf16> to vector<16x16x128xbf16>
    %93 = arith.maximumf %91, %92 : vector<16x16x128xbf16>
    %94 = vector.extract_strided_slice %90 {offsets = [2, 0, 0], sizes = [16, 16, 128], strides = [1, 1, 1]} : vector<20x16x128xbf16> to vector<16x16x128xbf16>
    %95 = arith.maximumf %93, %94 : vector<16x16x128xbf16>
    %96 = vector.extract_strided_slice %90 {offsets = [3, 0, 0], sizes = [16, 16, 128], strides = [1, 1, 1]} : vector<20x16x128xbf16> to vector<16x16x128xbf16>
    %97 = arith.maximumf %95, %96 : vector<16x16x128xbf16>
    %98 = vector.extract_strided_slice %90 {offsets = [4, 0, 0], sizes = [16, 16, 128], strides = [1, 1, 1]} : vector<20x16x128xbf16> to vector<16x16x128xbf16>
    %99 = arith.maximumf %97, %98 : vector<16x16x128xbf16>
    %c0_93 = arith.constant 0 : index
    %c0_94 = arith.constant 0 : index
    %100 = vector.load %arg8[%c0_93, %c0_94] : memref<256x128xf32, #tpu.memory_space<vmem>>, vector<256x128xf32>
    %101 = vector.shape_cast %99 : vector<16x16x128xbf16> to vector<256x128xbf16>
    %c3 = arith.constant 3 : index
    %c0_95 = arith.constant 0 : index
    %c0_96 = arith.constant 0 : index
    %102 = vector.load %arg4[%c3, %c0_95, %c0_96] : memref<4x128x128xbf16, #tpu.memory_space<vmem>>, vector<1x128x128xbf16>
    %103 = vector.shape_cast %102 : vector<1x128x128xbf16> to vector<128x128xbf16>
    %cst_97 = arith.constant dense<0.000000e+00> : vector<256x128xf32>
    %104 = tpu.matmul %101, %103, %cst_97 {dimension_numbers = #tpu.dot_dimension_numbers<[1], [0], [0], [1], [0, 0, 1, 1], [], []>} : vector<256x128xbf16>, vector<128x128xbf16>, vector<256x128xf32> -> vector<256x128xf32>
    %105 = arith.addf %100, %104 : vector<256x128xf32>
    %c0_98 = arith.constant 0 : index
    %c0_99 = arith.constant 0 : index
    %106 = vector.load %arg8[%c0_98, %c0_99] : memref<256x128xf32, #tpu.memory_space<vmem>>, vector<256x128xf32>
    tpu.vector_store %arg8[%c0_98, %c0_99], %105 {strides = array<i32>} : memref<256x128xf32, #tpu.memory_space<vmem>>, vector<256x128xf32>,
    %c0_100 = arith.constant 0 : index
    %c0_101 = arith.constant 0 : index
    %107 = vector.load %arg8[%c0_100, %c0_101] : memref<256x128xf32, #tpu.memory_space<vmem>>, vector<256x128xf32>
    %c0_102 = arith.constant 0 : index
    %c0_103 = arith.constant 0 : index
    %108 = vector.load %arg5[%c0_102, %c0_103] : memref<1x128xf32, #tpu.memory_space<vmem>>, vector<1x128xf32>
    %109 = vector.broadcast %108 : vector<1x128xf32> to vector<256x128xf32>
    %110 = arith.addf %107, %109 : vector<256x128xf32>
    %cst_104 = arith.constant 0.000000e+00 : f32
    %111 = vector.broadcast %cst_104 : f32 to vector<256x128xf32>
    %112 = arith.subf %111, %110 : vector<256x128xf32>
    %113 = math.exp %112 : vector<256x128xf32>
    %cst_105 = arith.constant 1.000000e+00 : f32
    %114 = vector.broadcast %cst_105 : f32 to vector<256x128xf32>
    %115 = arith.addf %114, %113 : vector<256x128xf32>
    %116 = tpu.reciprocal %115 {approx = true} : vector<256x128xf32> -> vector<256x128xf32>
    %117 = arith.mulf %110, %116 : vector<256x128xf32>
    %118 = vector.shape_cast %117 : vector<256x128xf32> to vector<16x16x128xf32>
    %c0_106 = arith.constant 0 : index
    %c0_107 = arith.constant 0 : index
    %c0_108 = arith.constant 0 : index
    %c0_109 = arith.constant 0 : index
    %119 = vector.load %arg6[%c0_106, %c0_107, %c0_108, %c0_109] : memref<1x16x16x128xf32, #tpu.memory_space<vmem>>, vector<1x16x16x128xf32>
    %120 = vector.shape_cast %119 : vector<1x16x16x128xf32> to vector<16x16x128xf32>
    %121 = vector.shape_cast %118 : vector<16x16x128xf32> to vector<1x16x16x128xf32>
    tpu.vector_store %arg6[%c0_106, %c0_107, %c0_108, %c0_109], %121 {strides = array<i32>} : memref<1x16x16x128xf32, #tpu.memory_space<vmem>>, vector<1x16x16x128xf32>,
    return
  }
  func.func @transform_0(%arg0: i32) -> (i32, i32, i32, i32) {
    %c0_i32 = arith.constant 0 : i32
    %c0_i32_0 = arith.constant 0 : i32
    %c0_i32_1 = arith.constant 0 : i32
    %c0_i32_2 = arith.constant 0 : i32
    return %arg0, %c0_i32, %c0_i32_0, %c0_i32_1 : i32, i32, i32, i32
  }
  func.func @transform_1(%arg0: i32) -> (i32, i32) {
    %c0_i32 = arith.constant 0 : i32
    %c0_i32_0 = arith.constant 0 : i32
    %c0_i32_1 = arith.constant 0 : i32
    return %c0_i32, %c0_i32_0 : i32, i32
  }
  func.func @transform_2(%arg0: i32) -> (i32, i32) {
    %c0_i32 = arith.constant 0 : i32
    %c0_i32_0 = arith.constant 0 : i32
    %c0_i32_1 = arith.constant 0 : i32
    return %c0_i32, %c0_i32_0 : i32, i32
  }
  func.func @transform_3(%arg0: i32) -> (i32, i32, i32) {
    %c0_i32 = arith.constant 0 : i32
    %c0_i32_0 = arith.constant 0 : i32
    %c0_i32_1 = arith.constant 0 : i32
    %c0_i32_2 = arith.constant 0 : i32
    return %c0_i32, %c0_i32_0, %c0_i32_1 : i32, i32, i32
  }
  func.func @transform_4(%arg0: i32) -> (i32, i32) {
    %c0_i32 = arith.constant 0 : i32
    %c0_i32_0 = arith.constant 0 : i32
    %c0_i32_1 = arith.constant 0 : i32
    return %c0_i32, %c0_i32_0 : i32, i32
  }
  func.func @transform_5(%arg0: i32) -> (i32, i32, i32, i32) {
    %c0_i32 = arith.constant 0 : i32
    %c0_i32_0 = arith.constant 0 : i32
    %c0_i32_1 = arith.constant 0 : i32
    %c0_i32_2 = arith.constant 0 : i32
    return %arg0, %c0_i32, %c0_i32_0, %c0_i32_1 : i32, i32, i32, i32
  }
}

</mosaic_0001>

<bundles_post_ra>
// kernel: _lambda_.1
= control target key start
LH: loop header
LB: loop body
LE: loop exit
PB: predicated region body
PF: predicated region fallthrough
CT: control target
= control target key end

     0   :  { %s11092_s18 = smov 0   ;;  %s14932_s0 = inlined_call_operand.vmem [shape: bf16[2,16,16,128], index: 0, kind: input, shape index: {}]   ;;  %s14933_s1 = inlined_call_operand.vmem [shape: bf16[128,128], index: 1, kind: input, shape index: {}]   ;;  %s14934_s2 = inlined_call_operand.vmem [shape: f32[1,128], index: 2, kind: input, shape index: {}]   ;;  %s14935_s3 = inlined_call_operand.vmem [shape: bf16[4,128,128], index: 3, kind: input, shape index: {}]   ;;  %s14936_s4 = inlined_call_operand.vmem [shape: f32[1,128], index: 4, kind: input, shape index: {}]   ;;  %s14937_s5 = inlined_call_operand.vmem [shape: f32[2,16,16,128], index: 5, kind: output, shape index: {}]  }
   0x1 LB: > { %s9865_s19 = sadd.s32 4294967295, %s11059_s18   ;;  %p9869_p0 = scmp.ge.s32.totalorder %s11059_s18, 1  ;;  %s11059_s18 = sphi %s11092_s18, %s15_s18  }
   0x2   : > { %p187_p1 = scmp.lt.s32.totalorder %s11059_s18, 3 }
   0x4   : > { %p188_p2 = pnand %p9869_p0, %p187_p1 }
   0x6   : > { %191 = sbr.rel (%p188_p2) target bundleno = 1616 (0x650), region = 40 }
   0xd   : > { %v10733_v0 = vld [vmem:[%s14933_s1] sm:$0xff]   ;;  %p215_p3 = scmp.lt.s32.totalorder %s9865_s19, 1  ;;  %v10734_v1 = vld [vmem:[%s14933_s1 + $0x8] sm:$0xff]   ;;  %v10735_v2 = vld [vmem:[%s14933_s1 + $0x10] sm:$0xff]   ;;  %v11061_v32 = vmov 4286644096  }
   0xe   : > { %10372 = vmatprep.subr.bf16.mxu0 %v10733_v0  ;;  %v10736_v3 = vld [vmem:[%s14933_s1 + $0x18] sm:$0xff]   ;;  %v10737_v5 = vld [vmem:[%s14933_s1 + $0x20] sm:$0xff]   ;;  %v10738_v6 = vld [vmem:[%s14933_s1 + $0x28] sm:$0xff]   ;;  %228 = vst [vmem:[#allocation2 + $0x4] sm:$0xf] %v11061_v32  ;;  %vm2021_vm3 = vcmask 1042432  }
   0xf   : > { %s15060_s19 = smov (!%p215_p3, %s9865_s19), 1  ;;  %10373 = vmatpush3.bf16.msra.mxu0 %v10733_v0  ;;  %v10739_v7 = vld [vmem:[%s14933_s1 + $0x30] sm:$0xff]   ;;  %v10740_v8 = vld [vmem:[%s14933_s1 + $0x38] sm:$0xff]   ;;  %v10757_v24 = vld [vmem:[%s14935_s3] sm:$0xff]   ;;  %229 = vst [vmem:[#allocation2 + $0x8] sm:$0xf] %v11061_v32 }
  0x10   : > { %10374 = vmatprep.subr.bf16.mxu0 %v10734_v1  ;;  %s10170_s26 = sshll.u32 %s15060_s19, 7  ;;  %v10758_v25 = vld [vmem:[%s14935_s3 + $0x8] sm:$0xff]   ;;  %v10759_v26 = vld [vmem:[%s14935_s3 + $0x10] sm:$0xff]   ;;  %v10760_v27 = vld [vmem:[%s14935_s3 + $0x18] sm:$0xff]   ;;  %230 = vst [vmem:[#allocation2 + $0xc] sm:$0xf] %v11061_v32 }
  0x11   : > { %s11115_s29 = scalar_lea.vmem %s14932_s0, %s10170_s26  ;;  %v10761_v28 = vld [vmem:[%s14935_s3 + $0x20] sm:$0xff]   ;;  %v10762_v29 = vld [vmem:[%s14935_s3 + $0x28] sm:$0xff]   ;;  %v10763_v30 = vld [vmem:[%s14935_s3 + $0x30] sm:$0xff]   ;;  %231 = vst [vmem:[#allocation2 + $0x10] sm:$0xf] %v11061_v32  ;;  %vm2022_vm4 = vcmask 1046532  }
  0x12   : > { %v10741_v4 = vld [vmem:[%s11115_s29] sm:$0xff]   ;;  %v10742_v9 = vld [vmem:[%s11115_s29 + $0x8] sm:$0xff]   ;;  %v10743_v10 = vld [vmem:[%s11115_s29 + $0x10] sm:$0xff]   ;;  %233 = vst [vmem:[#allocation2 + $0x18] sm:$0xf] %v11061_v32  ;;  %vm2987_vm9 = vcmask 1041408  }
  0x13   : > { %10375 = vmatpush3.bf16.msra.mxu0 %v10734_v1  ;;  %10388 = vmatprep.mubr.bf16.mxu0 %v10741_v4  ;;  %v10744_v11 = vld [vmem:[%s11115_s29 + $0x18] sm:$0xff]   ;;  %v10745_v12 = vld [vmem:[%s11115_s29 + $0x20] sm:$0xff]   ;;  %v10746_v13 = vld [vmem:[%s11115_s29 + $0x28] sm:$0xff]   ;;  %234 = vst [vmem:[#allocation2 + $0x1c] sm:$0xf] %v11061_v32  ;;  %vm2988_vm10 = vcmask 1045508  }
  0x14   : > { %10376 = vmatprep.subr.bf16.mxu0 %v10735_v2  ;;  %v10747_v14 = vld [vmem:[%s11115_s29 + $0x30] sm:$0xff]   ;;  %v10748_v15 = vld [vmem:[%s11115_s29 + $0x38] sm:$0xff]   ;;  %v10749_v16 = vld [vmem:[%s11115_s29 + $0x40] sm:$0xff]   ;;  %235 = vst [vmem:[#allocation2 + $0x20] sm:$0xf] %v11061_v32  ;;  %vm3522_vm12 = vcmask 1040384  }
  0x15   : > { %v10750_v17 = vld [vmem:[%s11115_s29 + $0x48] sm:$0xff]   ;;  %v10751_v18 = vld [vmem:[%s11115_s29 + $0x50] sm:$0xff]   ;;  %v10752_v19 = vld [vmem:[%s11115_s29 + $0x58] sm:$0xff]   ;;  %236 = vst [vmem:[#allocation2 + $0x24] sm:$0xf] %v11061_v32  ;;  %vm3523_vm13 = vcmask 1044484  }
  0x16   : > { %v10753_v20 = vld [vmem:[%s11115_s29 + $0x60] sm:$0xff]   ;;  %v10754_v21 = vld [vmem:[%s11115_s29 + $0x68] sm:$0xff]   ;;  %v10755_v22 = vld [vmem:[%s11115_s29 + $0x70] sm:$0xff]   ;;  %253 = vst [vmem:[#allocation2 + $0x2c] sm:$0xf] %v11061_v32  ;;  %s10171_s20 = sshll.u32 %s15060_s19, 8 }
  0x17   : > { %10377 = vmatpush3.bf16.msra.mxu0 %v10735_v2  ;;  %v10756_v23 = vld [vmem:[%s11115_s29 + $0x78] sm:$0xff]   ;;  %255 = vst [vmem:[#allocation2 + $0x40] sm:$0xf] %v11061_v32  ;;  %257 = vst [vmem:[#allocation2 + $0x54] sm:$0xf] %v11061_v32  ;;  %v11175_v33 = vld [vmem:[%s14935_s3 + $0x40] sm:$0xff]   ;;  %s14840_s23 = scalar_lea.vmem %s14937_s5, %s10171_s20 }
  0x18   : > { %10378 = vmatprep.subr.bf16.mxu0 %v10736_v3  ;;  %v10764_v31 = vld [vmem:[%s14935_s3 + $0x38] sm:$0xff]   ;;  %290 = vst [vmem:[#allocation2 + $0x38] sm:$0xf] %v11061_v32  ;;  %291 = vst [vmem:[#allocation2 + $0x4c] sm:$0xf] %v11061_v32  ;;  %10612 = vmatprep.subr.bf16.mxu1 %v11175_v33  ;;  %v11183_v34 = vld [vmem:[%s14935_s3 + $0x48] sm:$0xff]  }
  0x19   : > { %292 = vst [vmem:[#allocation2 + $0x60] sm:$0xf] %v11061_v32  ;;  %239 = vst [vmem:[#allocation2 + $0x16c] sm:$0xf] %v11061_v32  ;;  %10620 = vmatpush3.bf16.msra.mxu1 %v11175_v33  ;;  %v11190_v35 = vld [vmem:[%s14935_s3 + $0x50] sm:$0xff]   ;;  %v11197_v36 = vld [vmem:[%s14935_s3 + $0x58] sm:$0xff]  }
  0x1a   : > { %240 = vst [vmem:[#allocation2 + $0x170] sm:$0xf] %v11061_v32  ;;  %241 = vst [vmem:[#allocation2 + $0x174] sm:$0xf] %v11061_v32  ;;  %10613 = vmatprep.subr.bf16.mxu1 %v11183_v34  ;;  %v11204_v37 = vld [vmem:[%s14935_s3 + $0x60] sm:$0xff]   ;;  %v11213_v39 = vld [vmem:[%s14935_s3 + $0x68] sm:$0xff]  }
  0x1b   : > { %10379 = vmatpush3.bf16.msra.mxu0 %v10736_v3  ;;  %242 = vst [vmem:[#allocation2 + $0x178] sm:$0xf] %v11061_v32  ;;  %244 = vst [vmem:[#allocation2 + $0x180] sm:$0xf] %v11061_v32  ;;  %v11206_v38 = vld [vmem:[#allocation2 + $0x8] sm:$0xf] }
  0x1c   : > { %10380 = vmatprep.subr.bf16.mxu0 %v10737_v5  ;;  %245 = vst [vmem:[#allocation2 + $0x184] sm:$0xf] %v11061_v32  ;;  %246 = vst [vmem:[#allocation2 + $0x188] sm:$0xf] %v11061_v32  ;;  %v11215_v40 = vld [vmem:[#allocation2 + $0x1c] sm:$0xf] }
  0x1d   : > { %247 = vst [vmem:[#allocation2 + $0x18c] sm:$0xf] %v11061_v32  ;;  %259 = vst [vmem:[#allocation2 + $0x68] sm:$0xf] %v11061_v32  ;;  %10621 = vmatpush3.bf16.msra.mxu1 %v11183_v34  ;;  %v1367_v41 = vshll.u32 %v11206_v38, 16  ;;  %v1371_v42 = vshrl.u32 %v11206_v38, 16 }
  0x1e   : > { %261 = vst [vmem:[#allocation2 + $0x7c] sm:$0xf] %v11061_v32  ;;  %263 = vst [vmem:[#allocation2 + $0x90] sm:$0xf] %v11061_v32  ;;  %10614 = vmatprep.subr.bf16.mxu1 %v11190_v35  ;;  %v11220_v43 = vld [vmem:[#allocation2 + $0xc] sm:$0xf] }
  0x1f   : > { %10381 = vmatpush3.bf16.msra.mxu0 %v10737_v5  ;;  %265 = vst [vmem:[#allocation2 + $0xa4] sm:$0xf] %v11061_v32  ;;  %267 = vst [vmem:[#allocation2 + $0xb8] sm:$0xf] %v11061_v32  ;;  %v11222_v44 = vld [vmem:[#allocation2 + $0x20] sm:$0xf] }
  0x20   : > { %10382 = vmatprep.subr.bf16.mxu0 %v10738_v6  ;;  %269 = vst [vmem:[#allocation2 + $0xcc] sm:$0xf] %v11061_v32  ;;  %271 = vst [vmem:[#allocation2 + $0xe0] sm:$0xf] %v11061_v32  ;;  %v1392_v45 = vshll.u32 %v11215_v40, 16  ;;  %v1396_v46 = vshrl.u32 %v11215_v40, 16 }
  0x21   : > { %273 = vst [vmem:[#allocation2 + $0xf4] sm:$0xf] %v11061_v32  ;;  %275 = vst [vmem:[#allocation2 + $0x108] sm:$0xf] %v11061_v32  ;;  %10622 = vmatpush3.bf16.msra.mxu1 %v11190_v35  ;;  %v11230_v47 = vld [vmem:[%s14935_s3 + $0x70] sm:$0xff]   ;;  %v1369_v48 = vrot.slane %v1367_v41, 5 }
  0x22   : > { %277 = vst [vmem:[#allocation2 + $0x11c] sm:$0xf] %v11061_v32  ;;  %279 = vst [vmem:[#allocation2 + $0x130] sm:$0xf] %v11061_v32  ;;  %10615 = vmatprep.subr.bf16.mxu1 %v11197_v36  ;;  %v1373_v49 = vrot.slane %v1371_v42, 4  ;;  %v1377_v50 = vshll.u32 %v11220_v43, 16 }
  0x23   : > { %10383 = vmatpush3.bf16.msra.mxu0 %v10738_v6  ;;  %281 = vst [vmem:[#allocation2 + $0x144] sm:$0xf] %v11061_v32  ;;  %283 = vst [vmem:[#allocation2 + $0x158] sm:$0xf] %v11061_v32  ;;  %v1381_v51 = vshrl.u32 %v11220_v43, 16  ;;  %v1402_v52 = vshll.u32 %v11222_v44, 16 }
  0x24   : > { %10384 = vmatprep.subr.bf16.mxu0 %v10739_v7  ;;  %293 = vst [vmem:[#allocation2 + $0x74] sm:$0xf] %v11061_v32  ;;  %294 = vst [vmem:[#allocation2 + $0x88] sm:$0xf] %v11061_v32  ;;  %v1406_v53 = vshrl.u32 %v11222_v44, 16  ;;  %v1394_v54 = vrot.slane %v1392_v45, 5  ;;  %v1374_v57 = vor.u32 %v1373_v49, %v1369_v48 }
  0x25   : > { %295 = vst [vmem:[#allocation2 + $0x9c] sm:$0xf] %v11061_v32  ;;  %296 = vst [vmem:[#allocation2 + $0xb0] sm:$0xf] %v11061_v32  ;;  %10623 = vmatpush3.bf16.msra.mxu1 %v11197_v36  ;;  %v1398_v55 = vrot.slane %v1396_v46, 4  ;;  %v1379_v59 = vrot.slane %v1377_v50, 5 }
  0x26   : > { %297 = vst [vmem:[#allocation2 + $0xc4] sm:$0xf] %v11061_v32  ;;  %298 = vst [vmem:[#allocation2 + $0xd8] sm:$0xf] %v11061_v32  ;;  %10616 = vmatprep.subr.bf16.mxu1 %v11204_v37  ;;  %vm1358_vm0 = vsmask.f32 3328 }
  0x27   : > { %10385 = vmatpush3.bf16.msra.mxu0 %v10739_v7  ;;  %299 = vst [vmem:[#allocation2 + $0xec] sm:$0xf] %v11061_v32  ;;  %300 = vst [vmem:[#allocation2 + $0x100] sm:$0xf] %v11061_v32  ;;  %vm1359_vm1 = vsmask.f32 7440  ;;  %v1399_v63 = vor.u32 %v1398_v55, %v1394_v54 }
  0x28   : > { %10386 = vmatprep.subr.bf16.mxu0 %v10740_v8  ;;  %301 = vst [vmem:[#allocation2 + $0x114] sm:$0xf] %v11061_v32  ;;  %302 = vst [vmem:[#allocation2 + $0x128] sm:$0xf] %v11061_v32  ;;  %v1383_v60 = vrot.slane %v1381_v51, 4  ;;  %v1404_v61 = vrot.slane %v1402_v52, 5 }
  0x29   : > { %303 = vst [vmem:[#allocation2 + $0x13c] sm:$0xf] %v11061_v32  ;;  %304 = vst [vmem:[#allocation2 + $0x150] sm:$0xf] %v11061_v32  ;;  %10624 = vmatpush3.bf16.msra.mxu1 %v11204_v37  ;;  %v1408_v62 = vrot.slane %v1406_v53, 4  ;;  %v1375_v4 = vrot.slane %v1374_v57, 4 }
  0x2a   : > { %305 = vst [vmem:[#allocation2 + $0x164] sm:$0xf] %v11061_v32  ;;  %249 = vst [vmem:[#allocation2 + $0x4] sm:$0xf] %v11061_v32  ;;  %10617 = vmatprep.subr.bf16.mxu1 %v11213_v39  ;;  %v2244_v1 = vld [vmem:[#allocation2 + $0x8] sm:$0xf]  ;;  %v1384_v7 = vor.u32 %v1383_v60, %v1379_v59 }
  0x2b   : > { %10387 = vmatpush3.bf16.msra.mxu0 %v10740_v8  ;;  %251 = vst [vmem:[#allocation2 + $0x18] sm:$0xf] %v11061_v32  ;;  %288 = vst [vmem:[#allocation2 + $0x10] sm:$0xf] %v11061_v32  ;;  %v11243_v2 = vld [vmem:[#allocation2 + $0x2c] sm:$0x8]  ;;  %v1409_v8 = vor.u32 %v1408_v62, %v1404_v61 }
  0x2c   : > { %10420 = vmatprep.subr.bf16.mxu0 %v10757_v24  ;;  %289 = vst [vmem:[#allocation2 + $0x24] sm:$0xf] %v11061_v32  ;;  %285 = vst [vmem:[#allocation2 + $0x16c] sm:$0xf] %v11061_v32  ;;  %v11250_v6 = vld [vmem:[#allocation2 + $0xc] sm:$0xf] }
  0x2d   : > { %287 = vst [vmem:[#allocation2 + $0x180] sm:$0xf] %v11061_v32  ;;  %306 = vst [vmem:[#allocation2 + $0x178] sm:$0xf] %v11061_v32  ;;  %10625 = vmatpush3.bf16.msra.mxu1 %v11213_v39  ;;  %v2029_v41 = vrot.slane %v11215_v40, 5  ;;  %v2026_v55 = vrot.slane %v11220_v43, 5 }
  0x2e   : > { %10389 = vmatmul.mubr.bf16.vlgmr.msra.gmra.mrb[0].mxu0 %v10742_v9  ;;  %307 = vst [vmem:[#allocation2 + $0x18c] sm:$0xf] %v11061_v32  ;;  %10618 = vmatprep.subr.bf16.mxu1 %v11230_v47  ;;  %vm11245_vm2 = vmor %vm1358_vm0, %vm1359_vm1  ;;  %v2247_v9 = vld [vmem:[#allocation2 + $0x1c] sm:$0xf]  ;;  %v2024_v32 = vrot.slane %v11206_v38, 5  ;;  %v2031_v60 = vrot.slane %v11222_v44, 5 }
  0x2f   : > { %10392 = vmatprep.mubr.bf16.mxu0 %v10743_v10  ;;  %10421 = vmatpush3.bf16.msra.mxu0 %v10757_v24  ;;  %v1400_v10 = vrot.slane %v1399_v63, 4  ;;  %v11265_v24 = vrot.slane %v1409_v8, 4  ;;  %v1283_v46 = vld [vmem:[#allocation2 + $0x20] sm:$0x7]  ;;  %v11278_v53 = vld [vmem:[#allocation2 + $0x54] sm:$0x8]  ;;  %vm11300_vm5 = vmor %vm2021_vm3, %vm2022_vm4 }
  0x30   : > { %10422 = vmatprep.subr.bf16.mxu0 %v10758_v25  ;;  %v2030_v62 = vrot.slane %v2029_v41, 4  ;;  %vm2304_vm6 = vsmask.f32 2304  ;;  %vm2305_vm7 = vsmask.f32 6416  ;;  %vm11417_vm11 = vmor %vm2987_vm9, %vm2988_vm10 }
  0x31   : > { %10626 = vmatpush3.bf16.msra.mxu1 %v11230_v47  ;;  %v11238_v56 = vld [vmem:[#allocation2 + $0x4] sm:$0x8]  ;;  %vm11329_vm8 = vmor %vm2304_vm6, %vm2305_vm7 }
  0x32   : > { %v11240_v58 = vld [vmem:[#allocation2 + $0x18] sm:$0x8]  ;;  %v1362_v0 = vshrl.u32 %v11238_v56, 16  ;;  %v11276_v50 = vld [vmem:[#allocation2 + $0x10] sm:$0x1]  ;;  %vm11875_vm14 = vmor %vm3522_vm12, %vm3523_vm13 }
  0x33   : > { %10423 = vmatpush3.bf16.msra.mxu0 %v10758_v25  ;;  %v1387_v5 = vshrl.u32 %v11240_v58, 16 }
  0x34   : > { %10424 = vmatprep.subr.bf16.mxu0 %v10759_v26 }
  0x36   : > { %10393 = vmatmul.mubr.bf16.gmra.mrb[4].mxu0 %v10744_v11  ;;  %v11252_v11 = vld [vmem:[#allocation2 + $0x20] sm:$0xf] }
  0x37   : > { %10396 = vmatprep.mubr.bf16.mxu0 %v10745_v12  ;;  %10425 = vmatpush3.bf16.msra.mxu0 %v10759_v26  ;;  %v2308_v12 = vshrl.u32 %v2244_v1, 16  ;;  %v2341_v25 = vshrl.u32 %v11252_v11, 16  ;;  %v2344_v26 = vshll.u32 %v11252_v11, 16 }
  0x38   : > { %10426 = vmatprep.subr.bf16.mxu0 %v10760_v27 }
  0x39   : > { %v2343_v57 = vrot.slane %v2341_v25, 5 }
  0x3b   : > { %10427 = vmatpush3.bf16.msra.mxu0 %v10760_v27  ;;  %v1280_v27 = vld [vmem:[#allocation2 + $0xc] sm:$0x7] }
  0x3c   : > { %10428 = vmatprep.subr.bf16.mxu0 %v10761_v28 }
  0x3e   : > { %10397 = vmatmul.mubr.bf16.gmra.mrb[8].mxu0 %v10746_v13  ;;  %v2311_v13 = vshll.u32 %v2244_v1, 16 }
  0x3f   : > { %10400 = vmatprep.mubr.bf16.mxu0 %v10747_v14  ;;  %10429 = vmatpush3.bf16.msra.mxu0 %v10761_v28  ;;  %v11254_v14 = vld [vmem:[#allocation2 + $0x40] sm:$0x8]  ;;  %v1405_v28 = vsel %vm11245_vm2, %v1400_v10, %v1404_v61  ;;  %v11282_v61 = vld [vmem:[#allocation2 + $0x24] sm:$0x1] }
  0x40   : > { %10430 = vmatprep.subr.bf16.mxu0 %v10762_v29  ;;  %v11291_v43 = vmax.bf16 %v1405_v28, %v11215_v40 }
  0x43   : > { %10431 = vmatpush3.bf16.msra.mxu0 %v10762_v29  ;;  %v11497_v29 = vld [vmem:[#allocation2 + $0x90] sm:$0x8] }
  0x44   : > { %10432 = vmatprep.subr.bf16.mxu0 %v10763_v30  ;;  %14965 = vst [vmem:[#allocation10_spill] sm:$0xff] %v11497_v29 }
  0x46   : > { %10401 = vmatmul.mubr.bf16.gmra.mrb[12].mxu0 %v10748_v15  ;;  %v1370_v15 = vsel %vm11245_vm2, %v1362_v0, %v1369_v48  ;;  %v2327_v0 = vshll.u32 %v11276_v50, 16 }
  0x47   : > { %10404 = vmatprep.mubr.bf16.mxu0 %v10749_v16  ;;  %10433 = vmatpush3.bf16.msra.mxu0 %v10763_v30  ;;  %v2310_v30 = vrot.slane %v2308_v12, 5  ;;  %v1921_v48 = vmax.bf16 %v1370_v15, %v11238_v56  ;;  %v11309_v15 = vld [vmem:[#allocation2 + $0x38] sm:$0x1] }
  0x48   : > { %10434 = vmatprep.subr.bf16.mxu0 %v10764_v31 }
  0x4b   : > { %10435 = vmatpush3.bf16.msra.mxu0 %v10764_v31  ;;  %v2313_v31 = vrot.slane %v2311_v13, 6  ;;  %v2032_v13 = vsel %vm11300_vm5, %v2030_v62, %v2031_v60 }
  0x4c   : > { %10468 = vmatprep.subr.bf16.mxu0 %v11175_v33 }
  0x4d   : > { %v11284_v56 = vor.u32 %v2313_v31, %v2310_v30 }
  0x4e   : > { %10405 = vmatmul.mubr.bf16.gmra.mrb[16].mxu0 %v10750_v17  ;;  %v2317_v17 = vshrl.u32 %v11250_v6, 16 }
  0x4f   : > { %10408 = vmatprep.mubr.bf16.mxu0 %v10751_v18  ;;  %v2320_v18 = vshll.u32 %v11250_v6, 16  ;;  %v2315_v40 = vrot.slane %v11284_v56, 4 }
  0x50   : > { %v2319_v42 = vrot.slane %v2317_v17, 5  ;;  %v11311_v17 = vld [vmem:[#allocation2 + $0x4c] sm:$0x1] }
  0x51   : > { %v2322_v45 = vrot.slane %v2320_v18, 6 }
  0x53   : > { %v2323_v63 = vor.u32 %v2322_v45, %v2319_v42  ;;  %v2188_v42 = vmax.bf16 %v2032_v13, %v11291_v43  ;;  %v11372_v43 = vld [vmem:[#allocation2 + $0x1c] sm:$0xe]  ;;  %v2992_v13 = vrot.slane %v11250_v6, 6 }
  0x55   : > { %v2325_v18 = vrot.slane %v2323_v63, 4 }
  0x56   : > { %10409 = vmatmul.mubr.bf16.gmra.mrb[20].mxu0 %v10752_v19  ;;  %v1380_v19 = vsel %vm11245_vm2, %v1375_v4, %v1379_v59  ;;  %v2346_v59 = vrot.slane %v2344_v26, 6  ;;  %v1926_v4 = vmax.bf16 %v11265_v24, %v1283_v46  ;;  %v2399_v24 = vshll.u32 %v11311_v17, 16 }
  0x57   : > { %10412 = vmatprep.mubr.bf16.mxu0 %v10753_v20  ;;  %v1395_v20 = vsel %vm11245_vm2, %v1387_v5, %v1394_v54  ;;  %v11288_v1 = vmax.bf16 %v1380_v19, %v11206_v38  ;;  %v2033_v38 = vrot.slane %v2031_v60, 4  ;;  %v2329_v19 = vrot.slane %v2327_v0, 6  ;;  %v11360_v60 = vld [vmem:[%s14935_s3 + $0x78] sm:$0xff]  }
  0x58   : > { %v1924_v49 = vmax.bf16 %v1395_v20, %v11240_v58  ;;  %v2025_v58 = vrot.slane %v2024_v32, 4  ;;  %v2347_v8 = vor.u32 %v2346_v59, %v2343_v57  ;;  %v11316_v20 = vld [vmem:[%s14934_s2] ss:$0 sm:$0xff]  ;;  %v2324_v46 = vsel %vm11329_vm8, %v2315_v40, %v2323_v63  ;;  %10619 = vmatprep.subr.bf16.mxu1 %v11360_v60 }
  0x59   : > { %v11335_v45 = vmax.bf16 %v2033_v38, %v1926_v4  ;;  %v11355_v59 = vrot.slane %v2399_v24, 6  ;;  %10627 = vmatpush3.bf16.msra.mxu1 %v11360_v60 }
  0x5a   : > { %v2027_v12 = vsel %vm11300_vm5, %v2025_v58, %v2026_v55  ;;  %v11325_v26 = vmax.bf16 %v2029_v41, %v1924_v49  ;;  %v2349_v28 = vrot.slane %v2347_v8, 4  ;;  %v11344_v49 = vsel %vm11329_vm8, %v2325_v18, %v2329_v19 }
  0x5e   : > { %10413 = vmatmul.mubr.bf16.gmra.mrb[24].mxu0 %v10754_v21  ;;  %v2332_v21 = vshrl.u32 %v2247_v9, 16 }
  0x5f   : > { %10416 = vmatprep.mubr.bf16.mxu0 %v10755_v22  ;;  %v2335_v22 = vshll.u32 %v2247_v9, 16  ;;  %v2351_v9 = vshll.u32 %v11282_v61, 16 }
  0x60   : > { %v2334_v51 = vrot.slane %v2332_v21, 5  ;;  %v11318_v21 = vmax.bf16 %v2024_v32, %v1921_v48  ;;  %v2185_v32 = vmax.bf16 %v2027_v12, %v11288_v1 }
  0x61   : > { %v2337_v52 = vrot.slane %v2335_v22, 6  ;;  %v2353_v30 = vrot.slane %v2351_v9, 6 }
  0x62   : > { %v2847_v1 = vmax.bf16 %v11284_v56, %v11318_v21  ;;  %v2997_v21 = vrot.slane %v11372_v43, 6 }
  0x63   : > { %v11294_v5 = vor.u32 %v2337_v52, %v2334_v51  ;;  %v11346_v51 = vld [vmem:[#allocation2 + $0x8] sm:$0xe]  ;;  %v11368_v0 = vsel %vm11329_vm8, %v2349_v28, %v2353_v30 }
  0x64   : > { %v2990_v38 = vrot.slane %v11346_v51, 6  ;;  %v2994_v51 = vrot.slane %v2992_v13, 4 }
  0x65   : > { %v2339_v22 = vrot.slane %v11294_v5, 4  ;;  %v2850_v9 = vmax.bf16 %v11294_v5, %v11325_v26  ;;  %v2999_v5 = vrot.slane %v11252_v11, 6  ;;  %v2995_v11 = vrot.slane %v11276_v50, 6 }
  0x66   : > { %10417 = vmatmul.mubr.bf16.gmra.mrb[28].mxu0 %v10756_v23  ;;  %v1385_v23 = vrot.slane %v1384_v7, 4  ;;  %v2028_v7 = vrot.slane %v2026_v55, 4  ;;  %v2991_v30 = vrot.slane %v2990_v38, 4 }
  0x67   : > { %v2348_v55 = vsel %vm11329_vm8, %v2339_v22, %v2347_v8  ;;  %v11378_v8 = vld [vmem:[#allocation2 + $0x60] sm:$0x1] }
  0x68   : > { %v1923_v54 = vmax.bf16 %v1385_v23, %v1280_v27  ;;  %v2375_v23 = vshll.u32 %v11309_v15, 16  ;;  %v2423_v56 = vshll.u32 %v11378_v8, 16  ;;  %v2851_v6 = vmax.bf16 %v2348_v55, %v2188_v42 }
  0x6a   : > { %v11323_v25 = vmax.bf16 %v2028_v7, %v1923_v54  ;;  %v11353_v57 = vrot.slane %v2375_v23, 6  ;;  %v11391_v23 = vmax.bf16 %v2324_v46, %v2185_v32 }
  0x6c   : > { %v2849_v24 = vmax.bf16 %v11344_v49, %v11323_v25  ;;  %v2852_v25 = vmax.bf16 %v11368_v0, %v11335_v45  ;;  %v2998_v49 = vrot.slane %v2997_v21, 4 }
 0x101   : > { %v10390_v31 = vpop.f32.mrb[0].mxu0 }
 0x102   : > { %v11340_v41 = vadd.f32 %v10390_v31, %v11316_v20  ;;  %v541_v48 = vpop.f32.mrb[1].mxu0 }
 0x103   : > { %v11349_v52 = vadd.f32 %v11316_v20, %v541_v48  ;;  %v10391_v54 = vpop.f32.mrb[2].mxu0 }
 0x104   : > { %v670_v58 = vsub.f32 0.0, %v11340_v41  ;;  %v11364_v62 = vadd.f32 %v10391_v54, %v11316_v20  ;;  %v544_v63 = vpop.f32.mrb[3].mxu0 }
 0x105   : > { %v668_v4 = vsub.f32 0.0, %v11349_v52  ;;  %v11376_v7 = vadd.f32 %v11316_v20, %v544_v63  ;;  %v3002_v63 = vrot.slane %v11282_v61, 6  ;;  %v2993_v61 = vsel %vm11417_vm11, %v2991_v30, %v2992_v13 }
 0x106   : > { %v704_v40 = vmul.f32 1.442695, %v670_v58  ;;  %v671_v12 = vsub.f32 0.0, %v11364_v62  ;;  %v3001_v58 = vrot.slane %v2999_v5, 4 }
 0x107   : > { %v700_v18 = vmul.f32 1.442695, %v668_v4  ;;  %v669_v19 = vsub.f32 0.0, %v11376_v7  ;;  %v11413_v4 = vrot.slane %v2423_v56, 6 }
 0x108   : > { %10789 = vpow2.f32 %v704_v40  ;;  %v706_v22 = vmul.f32 1.442695, %v671_v12 }
 0x109   : > { %10791 = vpow2.f32 %v700_v18  ;;  %v702_v26 = vmul.f32 1.442695, %v669_v19  ;;  %v10394_v28 = vpop.f32.mrb[4].mxu0  ;;  %v2996_v18 = vsel %vm11417_vm11, %v2994_v51, %v2995_v11  ;;  %v3191_v51 = vmax.bf16 %v2993_v61, %v11391_v23 }
 0x10a   : > { %10793 = vpow2.f32 %v706_v22  ;;  %v11396_v31 = vadd.f32 %v10394_v28, %v11316_v20  ;;  %v557_v48 = vpop.f32.mrb[5].mxu0  ;;  %v3000_v22 = vsel %vm11417_vm11, %v2998_v49, %v2999_v5  ;;  %v11436_v11 = vmax.bf16 %v2996_v18, %v2849_v24  ;;  %v11450_v24 = vld [vmem:[#allocation2 + $0x74] sm:$0x1] }
 0x10b   : > { %10795 = vpow2.f32 %v702_v26  ;;  %v11400_v32 = vadd.f32 %v11316_v20, %v557_v48  ;;  %v10395_v46 = vpop.f32.mrb[6].mxu0  ;;  %v3003_v48 = vsel %vm11417_vm11, %v3001_v58, %v3002_v63  ;;  %14961 = vst [vmem:[#allocation6_spill] sm:$0xff] %v11450_v24  ;;  %v11490_v26 = vld [vmem:[#allocation2 + $0x7c] sm:$0x8] }
 0x10c   : > { %v674_v42 = vsub.f32 0.0, %v11396_v31  ;;  %v11406_v54 = vadd.f32 %v10395_v46, %v11316_v20  ;;  %v560_v55 = vpop.f32.mrb[7].mxu0  ;;  %v11433_v46 = vmax.bf16 %v2990_v38, %v2847_v1  ;;  %14960 = vst [vmem:[#allocation5_spill] sm:$0xff] %v11436_v11  ;;  %v11448_v23 = vmax.bf16 %v3003_v48, %v2852_v25 }
 0x10d   : > { %v672_v50 = vsub.f32 0.0, %v11400_v32  ;;  %v11411_v43 = vadd.f32 %v11316_v20, %v560_v55  ;;  %v11441_v55 = vmax.bf16 %v2997_v21, %v2850_v9 }
 0x10e   : > { %v712_v40 = vmul.f32 1.442695, %v674_v42  ;;  %v675_v12 = vsub.f32 0.0, %v11406_v54  ;;  %14959 = vst [vmem:[#allocation4_spill] sm:$0xff] %v11433_v46 }
 0x10f   : > { %v708_v19 = vmul.f32 1.442695, %v672_v50  ;;  %v673_v56 = vsub.f32 0.0, %v11411_v43  ;;  %v11443_v50 = vmax.bf16 %v3000_v22, %v2851_v6  ;;  %v2447_v6 = vshll.u32 %v11450_v24, 16 }
 0x110   : > { %10797 = vpow2.f32 %v712_v40  ;;  %v714_v28 = vmul.f32 1.442695, %v675_v12 }
 0x111   : > { %10799 = vpow2.f32 %v708_v19  ;;  %v710_v13 = vmul.f32 1.442695, %v673_v56  ;;  %v10398_v30 = vpop.f32.mrb[8].mxu0 }
 0x112   : > { %v10790_v42 = vpop.eup %10789  ;;  %10801 = vpow2.f32 %v714_v28  ;;  %v11439_v5 = vadd.f32 %v10398_v30, %v11316_v20  ;;  %v573_v49 = vpop.f32.mrb[9].mxu0 }
 0x113   : > { %v10792_v58 = vpop.eup %10791  ;;  %v766_v1 = vadd.f32 1.0, %v10790_v42  ;;  %10803 = vpow2.f32 %v710_v13  ;;  %v11446_v38 = vadd.f32 %v11316_v20, %v573_v49  ;;  %v10399_v63 = vpop.f32.mrb[10].mxu0  ;;  %v11462_v13 = vld [vmem:[#allocation2 + $0x68] sm:$0x8] }
 0x114   : > { %v10794_v40 = vpop.eup %10793  ;;  %v764_v12 = vadd.f32 1.0, %v10792_v58  ;;  %v678_v61 = vsub.f32 0.0, %v11439_v5  ;;  %v11454_v9 = vadd.f32 %v10399_v63, %v11316_v20  ;;  %v576_v21 = vpop.f32.mrb[11].mxu0  ;;  %14962 = vst [vmem:[#allocation7_spill] sm:$0xff] %v11462_v13  ;;  %v11469_v63 = vmax.bf16 %v11443_v50, %v3191_v51  ;;  %v11480_v51 = vld [vmem:[#allocation2 + $0x88] sm:$0x1] }
 0x115   : > { %v10796_v18 = vpop.eup %10795  ;;  %10805 = vrcp.f32 %v766_v1  ;;  %v767_v19 = vadd.f32 1.0, %v10794_v40  ;;  %v676_v56 = vsub.f32 0.0, %v11446_v38  ;;  %v11459_v25 = vadd.f32 %v11316_v20, %v576_v21 }
 0x116   : > { %10807 = vrcp.f32 %v764_v12  ;;  %v765_v22 = vadd.f32 1.0, %v10796_v18  ;;  %v720_v28 = vmul.f32 1.442695, %v678_v61  ;;  %v679_v48 = vsub.f32 0.0, %v11454_v9  ;;  %14963 = vst [vmem:[#allocation8_spill] sm:$0xff] %v11469_v63 }
 0x117   : > { %10809 = vrcp.f32 %v767_v19  ;;  %v716_v30 = vmul.f32 1.442695, %v676_v56  ;;  %v677_v42 = vsub.f32 0.0, %v11459_v25  ;;  %v2471_v21 = vshll.u32 %v11480_v51, 16 }
 0x118   : > { %10811 = vrcp.f32 %v765_v22  ;;  %v722_v58 = vmul.f32 1.442695, %v679_v48  ;;  %v11477_v22 = vrot.slane %v2447_v6, 6 }
 0x119   : > { %10813 = vpow2.f32 %v720_v28  ;;  %v718_v40 = vmul.f32 1.442695, %v677_v42  ;;  %v10402_v12 = vpop.f32.mrb[12].mxu0  ;;  %v11503_v11 = vrot.slane %v2471_v21, 6 }
 0x11a   : > { %v10798_v18 = vpop.eup %10797  ;;  %10815 = vpow2.f32 %v716_v30  ;;  %v11475_v19 = vadd.f32 %v10402_v12, %v11316_v20  ;;  %v589_v56 = vpop.f32.mrb[13].mxu0  ;;  %14964 = vst [vmem:[#allocation9_spill] sm:$0xff] %v11477_v22 }
 0x11b   : > { %v10800_v28 = vpop.eup %10799  ;;  %v770_v42 = vadd.f32 1.0, %v10798_v18  ;;  %10817 = vpow2.f32 %v722_v58  ;;  %v11483_v1 = vadd.f32 %v11316_v20, %v589_v56  ;;  %v10403_v61 = vpop.f32.mrb[14].mxu0  ;;  %14966 = vst [vmem:[#allocation11_spill] sm:$0xff] %v11503_v11 }
 0x11c   : > { %v10802_v30 = vpop.eup %10801  ;;  %v768_v49 = vadd.f32 1.0, %v10800_v28  ;;  %10819 = vpow2.f32 %v718_v40  ;;  %v682_v12 = vsub.f32 0.0, %v11475_v19  ;;  %v11488_v6 = vadd.f32 %v10403_v61, %v11316_v20  ;;  %v592_v48 = vpop.f32.mrb[15].mxu0 }
 0x11d   : > { %v10804_v0 = vpop.eup %10803  ;;  %10821 = vrcp.f32 %v770_v42  ;;  %v771_v58 = vadd.f32 1.0, %v10802_v30  ;;  %v680_v18 = vsub.f32 0.0, %v11483_v1  ;;  %v11494_v56 = vadd.f32 %v11316_v20, %v592_v48 }
 0x11e   : > { %10823 = vrcp.f32 %v768_v49  ;;  %v769_v44 = vadd.f32 1.0, %v10804_v0  ;;  %v728_v28 = vmul.f32 1.442695, %v682_v12  ;;  %v683_v40 = vsub.f32 0.0, %v11488_v6 }
 0x11f   : > { %v10806_v61 = vpop.eup %10805  ;;  %10825 = vrcp.f32 %v771_v58  ;;  %v724_v16 = vmul.f32 1.442695, %v680_v18  ;;  %v681_v22 = vsub.f32 0.0, %v11494_v56 }
 0x120   : > { %v10808_v30 = vpop.eup %10807  ;;  %v830_v24 = vmul.f32 %v10806_v61, %v11340_v41  ;;  %10827 = vrcp.f32 %v769_v44  ;;  %v730_v48 = vmul.f32 1.442695, %v683_v40 }
 0x121   : > { %v10810_v0 = vpop.eup %10809  ;;  %10829 = vpow2.f32 %v728_v28  ;;  %v726_v12 = vmul.f32 1.442695, %v681_v22  ;;  %v10406_v13 = vpop.f32.mrb[16].mxu0  ;;  %v828_v40 = vmul.f32 %v10808_v30, %v11349_v52 }
 0x122   : > { %v10812_v18 = vpop.eup %10811  ;;  %v10174_v63 = vpack.c.bf16 %v830_v24, %v830_v24  ;;  %v831_v46 = vmul.f32 %v10810_v0, %v11364_v62  ;;  %10831 = vpow2.f32 %v724_v16  ;;  %v11508_v42 = vadd.f32 %v10406_v13, %v11316_v20  ;;  %v605_v44 = vpop.f32.mrb[17].mxu0 }
 0x123   : > { %v10814_v41 = vpop.eup %10813  ;;  %v829_v28 = vmul.f32 %v10812_v18, %v11376_v7  ;;  %10833 = vpow2.f32 %v730_v48  ;;  %v11513_v21 = vadd.f32 %v11316_v20, %v605_v44  ;;  %v10407_v22 = vpop.f32.mrb[18].mxu0 }
 0x124   : > { %v10816_v61 = vpop.eup %10815  ;;  %1248 = vst [vmem:[#allocation2 + $0x44] sm:$0xf] %v10174_v63  ;;  %v861_v58 = vpack.c.bf16 %v831_v46, %v830_v24  ;;  %v10175_v49 = vpack.c.bf16 %v831_v46, %v831_v46  ;;  %v774_v62 = vadd.f32 1.0, %v10814_v41  ;;  %10835 = vpow2.f32 %v726_v12  ;;  %v608_v16 = vpop.f32.mrb[19].mxu0  ;;  %v11523_v24 = vld [vmem:[#allocation2 + $0x9c] sm:$0x1] }
 0x125   : > { %v10818_v13 = vpop.eup %10817  ;;  %v772_v0 = vadd.f32 1.0, %v10816_v61  ;;  %v686_v29 = vsub.f32 0.0, %v11508_v42  ;;  %v684_v52 = vsub.f32 0.0, %v11513_v21  ;;  %v11518_v7 = vadd.f32 %v10407_v22, %v11316_v20 }
 0x126   : > { %v10820_v30 = vpop.eup %10819  ;;  %1249 = vst [vmem:[#allocation2 + $0x48] sm:$0xf] %v10175_v49  ;;  %10837 = vrcp.f32 %v774_v62  ;;  %v775_v48 = vadd.f32 1.0, %v10818_v13  ;;  %v11521_v63 = vadd.f32 %v11316_v20, %v608_v16  ;;  %v860_v46 = vpack.c.bf16 %v829_v28, %v828_v40 }
 0x127   : > { %v10822_v12 = vpop.eup %10821  ;;  %10839 = vrcp.f32 %v772_v0  ;;  %v773_v18 = vadd.f32 1.0, %v10820_v30  ;;  %v736_v44 = vmul.f32 1.442695, %v686_v29  ;;  %v732_v41 = vmul.f32 1.442695, %v684_v52 }
 0x128   : > { %v10824_v61 = vpop.eup %10823  ;;  %v11526_v11 = vmul.f32 %v10822_v12, %v11396_v31  ;;  %10841 = vrcp.f32 %v775_v48  ;;  %v687_v49 = vsub.f32 0.0, %v11518_v7  ;;  %v685_v22 = vsub.f32 0.0, %v11521_v63  ;;  %10436 = vmatprep.mubr.bf16.mxu0 %v860_v46  ;;  %10244 = vst [vmem:[#allocation2 + $0x30] sm:$0xff] %v860_v46  }
 0x129   : > { %v10826_v62 = vpop.eup %10825  ;;  %v832_v40 = vmul.f32 %v10824_v61, %v11400_v32  ;;  %10843 = vrcp.f32 %v773_v18  ;;  %10437 = vmatmul.mubr.bf16.vlgmr.msra.gmra.mrb[32].mxu0 %v861_v58  ;;  %v10410_v28 = vpop.f32.mrb[20].mxu0  ;;  %v2495_v29 = vshll.u32 %v11523_v24, 16 }
 0x12a   : > { %v10828_v13 = vpop.eup %10827  ;;  %v10178_v31 = vpack.c.bf16 %v11526_v11, %v11526_v11  ;;  %v835_v0 = vmul.f32 %v10826_v62, %v11406_v54  ;;  %10845 = vpow2.f32 %v736_v44  ;;  %v738_v52 = vmul.f32 1.442695, %v687_v49  ;;  %v621_v30 = vpop.f32.mrb[21].mxu0  ;;  %10469 = vmatpush3.bf16.msra.mxu0 %v11175_v33 }
 0x12b   : > { %v10830_v48 = vpop.eup %10829  ;;  %v833_v32 = vmul.f32 %v10828_v13, %v11411_v43  ;;  %10847 = vpow2.f32 %v732_v41  ;;  %v734_v58 = vmul.f32 1.442695, %v685_v22  ;;  %v11539_v46 = vadd.f32 %v10410_v28, %v11316_v20  ;;  %v10411_v12 = vpop.f32.mrb[22].mxu0  ;;  %10470 = vmatprep.subr.bf16.mxu0 %v11183_v34 }
 0x12c   : > { %v10832_v18 = vpop.eup %10831  ;;  %1252 = vst [vmem:[#allocation2 + $0x6c] sm:$0xf] %v10178_v31  ;;  %v10179_v61 = vpack.c.bf16 %v835_v0, %v835_v0  ;;  %v778_v54 = vadd.f32 1.0, %v10830_v48  ;;  %10849 = vpow2.f32 %v738_v52  ;;  %v11543_v44 = vadd.f32 %v11316_v20, %v621_v30  ;;  %v624_v33 = vpop.f32.mrb[23].mxu0 }
 0x12d   : > { %v10834_v49 = vpop.eup %10833  ;;  %v776_v62 = vadd.f32 1.0, %v10832_v18  ;;  %10851 = vpow2.f32 %v734_v58  ;;  %v690_v43 = vsub.f32 0.0, %v11539_v46  ;;  %v11547_v41 = vadd.f32 %v10411_v12, %v11316_v20 }
 0x12e   : > { %v10836_v22 = vpop.eup %10835  ;;  %1253 = vst [vmem:[#allocation2 + $0x70] sm:$0xf] %v10179_v61  ;;  %10853 = vrcp.f32 %v778_v54  ;;  %v779_v28 = vadd.f32 1.0, %v10834_v49  ;;  %v688_v13 = vsub.f32 0.0, %v11543_v44  ;;  %v11551_v31 = vadd.f32 %v11316_v20, %v624_v33  ;;  %10471 = vmatpush3.bf16.msra.mxu0 %v11183_v34 }
 0x12f   : > { %10855 = vrcp.f32 %v776_v62  ;;  %v777_v52 = vadd.f32 1.0, %v10836_v22  ;;  %v744_v30 = vmul.f32 1.442695, %v690_v43  ;;  %v691_v48 = vsub.f32 0.0, %v11547_v41  ;;  %10472 = vmatprep.subr.bf16.mxu0 %v11190_v35 }
 0x130   : > { %v10838_v58 = vpop.eup %10837  ;;  %10857 = vrcp.f32 %v779_v28  ;;  %v740_v12 = vmul.f32 1.442695, %v688_v13  ;;  %v689_v18 = vsub.f32 0.0, %v11551_v31  ;;  %v862_v61 = vpack.c.bf16 %v833_v32, %v832_v40 }
 0x131   : > { %v10840_v54 = vpop.eup %10839  ;;  %v11558_v49 = vmul.f32 %v10838_v58, %v11439_v5  ;;  %10859 = vrcp.f32 %v777_v52  ;;  %v746_v33 = vmul.f32 1.442695, %v691_v48  ;;  %v863_v34 = vpack.c.bf16 %v835_v0, %v11526_v11  ;;  %v10414_v62 = vpop.f32.mrb[24].mxu0 }
 0x132   : > { %v10842_v43 = vpop.eup %10841  ;;  %v836_v22 = vmul.f32 %v10840_v54, %v11446_v38  ;;  %10861 = vpow2.f32 %v744_v30  ;;  %v742_v16 = vmul.f32 1.442695, %v689_v18  ;;  %10440 = vmatprep.mubr.bf16.mxu0 %v862_v61  ;;  %10245 = vst [vmem:[#allocation2 + $0x58] sm:$0xff] %v862_v61   ;;  %v11563_v28 = vadd.f32 %v10414_v62, %v11316_v20  ;;  %v637_v40 = vpop.f32.mrb[25].mxu0  ;;  %10473 = vmatpush3.bf16.msra.mxu0 %v11190_v35  ;;  %v11582_v61 = vld [vmem:[#allocation2 + $0x30] sm:$0xf] }
 0x133   : > { %v10844_v5 = vpop.eup %10843  ;;  %v10182_v32 = vpack.c.bf16 %v11558_v49, %v11558_v49  ;;  %v839_v11 = vmul.f32 %v10842_v43, %v11454_v9  ;;  %10863 = vpow2.f32 %v740_v12  ;;  %10441 = vmatmul.mubr.bf16.gmra.mrb[36].mxu0 %v863_v34  ;;  %v11570_v38 = vadd.f32 %v11316_v20, %v637_v40  ;;  %v10415_v0 = vpop.f32.mrb[26].mxu0  ;;  %10474 = vmatprep.subr.bf16.mxu0 %v11197_v36 }
 0x134   : > { %v10846_v13 = vpop.eup %10845  ;;  %v837_v52 = vmul.f32 %v10844_v5, %v11459_v25  ;;  %10865 = vpow2.f32 %v746_v33  ;;  %v694_v35 = vsub.f32 0.0, %v11563_v28  ;;  %v11576_v30 = vadd.f32 %v10415_v0, %v11316_v20  ;;  %v640_v48 = vpop.f32.mrb[27].mxu0 }
 0x135   : > { %v10848_v58 = vpop.eup %10847  ;;  %1256 = vst [vmem:[#allocation2 + $0x94] sm:$0xf] %v10182_v32  ;;  %v10183_v9 = vpack.c.bf16 %v839_v11, %v839_v11  ;;  %10867 = vpow2.f32 %v742_v16  ;;  %v11579_v12 = vadd.f32 %v11316_v20, %v640_v48  ;;  %v865_v18 = vpack.c.bf16 %v839_v11, %v11558_v49 }
 0x136   : > { %v10850_v54 = vpop.eup %10849  ;;  %v782_v25 = vadd.f32 1.0, %v10846_v13  ;;  %v780_v33 = vadd.f32 1.0, %v10848_v58  ;;  %v752_v34 = vmul.f32 1.442695, %v694_v35  ;;  %v692_v62 = vsub.f32 0.0, %v11570_v38  ;;  %10475 = vmatpush3.bf16.msra.mxu0 %v11197_v36 }
 0x137   : > { %v10852_v43 = vpop.eup %10851  ;;  %1257 = vst [vmem:[#allocation2 + $0x98] sm:$0xf] %v10183_v9  ;;  %v783_v40 = vadd.f32 1.0, %v10850_v54  ;;  %v695_v16 = vsub.f32 0.0, %v11576_v30  ;;  %v693_v5 = vsub.f32 0.0, %v11579_v12  ;;  %v864_v32 = vpack.c.bf16 %v837_v52, %v836_v22  ;;  %10476 = vmatprep.subr.bf16.mxu0 %v11204_v37 }
 0x138   : > { %v10854_v49 = vpop.eup %10853  ;;  %10869 = vrcp.f32 %v782_v25  ;;  %v781_v11 = vadd.f32 1.0, %v10852_v43  ;;  %v748_v0 = vmul.f32 1.442695, %v692_v62  ;;  %v1417_v13 = vshll.u32 %v11582_v61, 16 }
 0x139   : > { %v10856_v35 = vpop.eup %10855  ;;  %v11591_v48 = vmul.f32 %v10854_v49, %v11475_v19  ;;  %10871 = vrcp.f32 %v780_v33  ;;  %v754_v36 = vmul.f32 1.442695, %v695_v16  ;;  %v11593_v58 = vmul.f32 1.442695, %v693_v5  ;;  %10444 = vmatprep.mubr.bf16.mxu0 %v864_v32  ;;  %10246 = vst [vmem:[#allocation2 + $0x80] sm:$0xff] %v864_v32   ;;  %v10418_v9 = vpop.f32.mrb[28].mxu0 }
 0x13a   : > { %v10858_v22 = vpop.eup %10857  ;;  %v840_v52 = vmul.f32 %v10856_v35, %v11483_v1  ;;  %10873 = vrcp.f32 %v783_v40  ;;  %v11597_v54 = vadd.f32 %v10418_v9, %v11316_v20  ;;  %v653_v25 = vpop.f32.mrb[29].mxu0  ;;  %10477 = vmatpush3.bf16.msra.mxu0 %v11204_v37  ;;  %v11600_v62 = vrot.slane %v1417_v13, 5 }
 0x13b   : > { %v10860_v19 = vpop.eup %10859  ;;  %v10186_v33 = vpack.c.bf16 %v11591_v48, %v11591_v48  ;;  %v843_v43 = vmul.f32 %v10858_v22, %v11488_v6  ;;  %10875 = vrcp.f32 %v781_v11  ;;  %10445 = vmatmul.mubr.bf16.gmra.mrb[40].mxu0 %v865_v18  ;;  %v11606_v16 = vadd.f32 %v11316_v20, %v653_v25  ;;  %v10419_v1 = vpop.f32.mrb[30].mxu0  ;;  %10478 = vmatprep.subr.bf16.mxu0 %v11213_v39 }
 0x13c   : > { %v10862_v40 = vpop.eup %10861  ;;  %v841_v5 = vmul.f32 %v10860_v19, %v11494_v56  ;;  %10877 = vpow2.f32 %v752_v34  ;;  %v698_v37 = vsub.f32 0.0, %v11597_v54  ;;  %v11612_v32 = vadd.f32 %v10419_v1, %v11316_v20  ;;  %v656_v49 = vpop.f32.mrb[31].mxu0 }
 0x13d   : > { %v10864_v13 = vpop.eup %10863  ;;  %1260 = vst [vmem:[#allocation2 + $0xbc] sm:$0xf] %v10186_v33  ;;  %v10187_v6 = vpack.c.bf16 %v843_v43, %v843_v43  ;;  %v786_v18 = vadd.f32 1.0, %v10862_v40  ;;  %10879 = vpow2.f32 %v748_v0  ;;  %v696_v11 = vsub.f32 0.0, %v11606_v16  ;;  %v11621_v0 = vld [vmem:[#allocation2 + $0x34] sm:$0xf] }
 0x13e   : > { %v10866_v35 = vpop.eup %10865  ;;  %v784_v9 = vadd.f32 1.0, %v10864_v13  ;;  %10881 = vpow2.f32 %v754_v36  ;;  %v760_v22 = vmul.f32 1.442695, %v698_v37  ;;  %v699_v56 = vsub.f32 0.0, %v11612_v32  ;;  %10479 = vmatpush3.bf16.msra.mxu0 %v11213_v39  ;;  %v11623_v37 = vld [vmem:[#allocation2 + $0x44] sm:$0xf] }
 0x13f   : > { %v10868_v34 = vpop.eup %10867  ;;  %1261 = vst [vmem:[#allocation2 + $0xc0] sm:$0xf] %v10187_v6  ;;  %10883 = vrcp.f32 %v786_v18  ;;  %v787_v25 = vadd.f32 1.0, %v10866_v35  ;;  %v756_v19 = vmul.f32 1.442695, %v696_v11  ;;  %v11618_v33 = vadd.f32 %v11316_v20, %v656_v49  ;;  %10480 = vmatprep.subr.bf16.mxu0 %v11230_v47 }
 0x140   : > { %10885 = vrcp.f32 %v784_v9  ;;  %v785_v1 = vadd.f32 1.0, %v10868_v34  ;;  %v762_v36 = vmul.f32 1.442695, %v699_v56  ;;  %v866_v40 = vpack.c.bf16 %v841_v5, %v840_v52 }
 0x141   : > { %10887 = vrcp.f32 %v787_v25  ;;  %v697_v39 = vsub.f32 0.0, %v11618_v33  ;;  %v867_v13 = vpack.c.bf16 %v843_v43, %v11591_v48  ;;  %v14967_v6 = vshrl.u32 %v11243_v2, 16 }
 0x142   : > { %v10870_v49 = vpop.eup %10869  ;;  %10889 = vrcp.f32 %v785_v1  ;;  %10448 = vmatprep.mubr.bf16.mxu0 %v866_v40  ;;  %10247 = vst [vmem:[#allocation2 + $0xa8] sm:$0xff] %v866_v40   ;;  %10481 = vmatpush3.bf16.msra.mxu0 %v11230_v47  ;;  %v1421_v52 = vshrl.u32 %v11582_v61, 16  ;;  %v1427_v5 = vshll.u32 %v11621_v0, 16  ;;  %v1431_v18 = vshrl.u32 %v11621_v0, 16 }
 0x143   : > { %v11632_v20 = vsel %vm11245_vm2, %v14967_v6, %v11600_v62  ;;  %v10872_v48 = vpop.eup %10871  ;;  %v846_v43 = vmul.f32 %v10870_v49, %v11508_v42  ;;  %10891 = vpow2.f32 %v11593_v58  ;;  %v758_v2 = vmul.f32 1.442695, %v697_v39  ;;  %10449 = vmatmul.mubr.bf16.gmra.mrb[44].mxu0 %v867_v13  ;;  %10482 = vmatprep.subr.bf16.mxu0 %v11360_v60 }
 0x144   : > { %v1442_v11 = vshll.u32 %v11623_v37, 16  ;;  %v10874_v35 = vpop.eup %10873  ;;  %v844_v47 = vmul.f32 %v10872_v48, %v11513_v21  ;;  %10893 = vpow2.f32 %v760_v22  ;;  %v1423_v9 = vrot.slane %v1421_v52, 4 }
 0x145   : > { %v11643_v56 = vrot.slane %v1427_v5, 5  ;;  %v10876_v34 = vpop.eup %10875  ;;  %v10190_v25 = vpack.c.bf16 %v846_v43, %v846_v43  ;;  %v847_v1 = vmul.f32 %v10874_v35, %v11518_v7  ;;  %10895 = vpow2.f32 %v756_v19  ;;  %v11649_v19 = vld [vmem:[#allocation2 + $0x48] sm:$0xf] }
 0x146   : > { %v1433_v42 = vrot.slane %v1431_v18, 4  ;;  %v10878_v58 = vpop.eup %10877  ;;  %v845_v40 = vmul.f32 %v10876_v34, %v11521_v63  ;;  %10897 = vpow2.f32 %v762_v36  ;;  %v1424_v39 = vor.u32 %v1423_v9, %v11600_v62  ;;  %10483 = vmatpush3.bf16.msra.mxu0 %v11360_v60  ;;  %v11654_v60 = vld [vmem:[#allocation2 + $0x58] sm:$0xf] }
 0x147   : > { %v1444_v13 = vrot.slane %v1442_v11, 5  ;;  %v10880_v21 = vpop.eup %10879  ;;  %1264 = vst [vmem:[#allocation2 + $0xe4] sm:$0xf] %v10190_v25  ;;  %v10191_v22 = vpack.c.bf16 %v847_v1, %v847_v1  ;;  %v790_v6 = vadd.f32 1.0, %v10878_v58  ;;  %10899 = vpow2.f32 %v758_v2 }
 0x148   : > { %v869_v49 = vpack.c.bf16 %v847_v1, %v846_v43  ;;  %v10882_v52 = vpop.eup %10881  ;;  %v788_v5 = vadd.f32 1.0, %v10880_v21  ;;  %v868_v7 = vpack.c.bf16 %v845_v40, %v844_v47  ;;  %v11651_v18 = vrot.slane %v1424_v39, 4 }
 0x149   : > { %v1434_v63 = vor.u32 %v1433_v42, %v11643_v56  ;;  %v10884_v36 = vpop.eup %10883  ;;  %1265 = vst [vmem:[#allocation2 + $0xe8] sm:$0xf] %v10191_v22  ;;  %10901 = vrcp.f32 %v790_v6  ;;  %v791_v62 = vadd.f32 1.0, %v10882_v52  ;;  %v14968_v48 = vshrl.u32 %v11254_v14, 16 }
 0x14a   : > { %v1446_v2 = vshrl.u32 %v11623_v37, 16  ;;  %v10886_v11 = vpop.eup %10885  ;;  %v850_v35 = vmul.f32 %v10884_v36, %v11539_v46  ;;  %10903 = vrcp.f32 %v788_v5  ;;  %10452 = vmatprep.mubr.bf16.mxu0 %v868_v7  ;;  %10248 = vst [vmem:[#allocation2 + $0xd0] sm:$0xff] %v868_v7   ;;  %v1430_v47 = vsel %vm11245_vm2, %v11651_v18, %v11643_v56 }
 0x14b   : > { %v11660_v43 = vsel %vm11245_vm2, %v14968_v48, %v1444_v13  ;;  %v11668_v9 = vrot.slane %v1434_v63, 4  ;;  %v10888_v14 = vpop.eup %10887  ;;  %v848_v34 = vmul.f32 %v10886_v11, %v11543_v44  ;;  %10905 = vrcp.f32 %v791_v62  ;;  %10453 = vmatmul.mubr.bf16.gmra.mrb[48].mxu0 %v869_v49 }
 0x14c   : > { %v1448_v25 = vrot.slane %v1446_v2, 4  ;;  %v1452_v1 = vshll.u32 %v11649_v19, 16  ;;  %v10890_v42 = vpop.eup %10889  ;;  %v10194_v46 = vpack.c.bf16 %v850_v35, %v850_v35  ;;  %v851_v58 = vmul.f32 %v10888_v14, %v11547_v41 }
 0x14d   : > { %v1456_v40 = vshrl.u32 %v11649_v19, 16  ;;  %v1467_v39 = vshll.u32 %v11654_v60, 16  ;;  %v10892_v21 = vpop.eup %10891  ;;  %v849_v56 = vmul.f32 %v10890_v42, %v11551_v31  ;;  %v1471_v44 = vshrl.u32 %v11654_v60, 16  ;;  %v11677_v31 = vld [vmem:[#allocation2 + $0x5c] sm:$0xf] }
 0x14e   : > { %v1449_v22 = vor.u32 %v1448_v25, %v1444_v13  ;;  %v1454_v6 = vrot.slane %v1452_v1, 5  ;;  %v10894_v52 = vpop.eup %10893  ;;  %1268 = vst [vmem:[#allocation2 + $0x10c] sm:$0xf] %v10194_v46  ;;  %v10195_v49 = vpack.c.bf16 %v851_v58, %v851_v58  ;;  %v789_v5 = vadd.f32 1.0, %v10892_v21 }
 0x14f   : > { %v871_v7 = vpack.c.bf16 %v851_v58, %v850_v35  ;;  %v1458_v18 = vrot.slane %v1456_v40, 4  ;;  %v10896_v63 = vpop.eup %10895  ;;  %v794_v36 = vadd.f32 1.0, %v10894_v52  ;;  %v870_v41 = vpack.c.bf16 %v849_v56, %v848_v34  ;;  %v1286_v52 = vld [vmem:[#allocation2 + $0x34] sm:$0x7] }
 0x150   : > { %v1450_v62 = vrot.slane %v1449_v22, 4  ;;  %v1469_v48 = vrot.slane %v1467_v39, 5  ;;  %v10898_v2 = vpop.eup %10897  ;;  %1269 = vst [vmem:[#allocation2 + $0x110] sm:$0xf] %v10195_v49  ;;  %10907 = vrcp.f32 %v789_v5  ;;  %v792_v11 = vadd.f32 1.0, %v10896_v63 }
 0x151   : > { %v1459_v13 = vor.u32 %v1458_v18, %v1454_v6  ;;  %v1473_v14 = vrot.slane %v1471_v44, 4  ;;  %v10900_v25 = vpop.eup %10899  ;;  %10909 = vrcp.f32 %v794_v36  ;;  %v795_v1 = vadd.f32 1.0, %v10898_v2  ;;  %10456 = vmatprep.mubr.bf16.mxu0 %v870_v41  ;;  %10249 = vst [vmem:[#allocation2 + $0xf8] sm:$0xff] %v870_v41   ;;  %v11045_v22 = vld [vmem:[#allocation2 + $0x2c] sm:$0x8] }
 0x152   : > { %v1455_v35 = vsel %vm11245_vm2, %v1450_v62, %v1454_v6  ;;  %v14969_v34 = vshrl.u32 %v11278_v53, 16  ;;  %10911 = vrcp.f32 %v792_v11  ;;  %v793_v46 = vadd.f32 1.0, %v10900_v25 }
 0x153   : > { %v11687_v58 = vrot.slane %v1459_v13, 4  ;;  %v1474_v40 = vor.u32 %v1473_v14, %v1469_v48  ;;  %v10902_v39 = vpop.eup %10901  ;;  %10913 = vrcp.f32 %v795_v1  ;;  %10457 = vmatmul.mubr.bf16.gmra.mrb[52].mxu0 %v871_v7  ;;  %v1477_v21 = vshll.u32 %v11677_v31, 16  ;;  %v11047_v14 = vld [vmem:[#allocation2 + $0x54] sm:$0x8] }
 0x154   : > { %v11685_v42 = vsel %vm11245_vm2, %v14969_v34, %v1469_v48  ;;  %v1481_v56 = vshrl.u32 %v11677_v31, 16  ;;  %v1927_v6 = vmax.bf16 %v11045_v22, %v11632_v20  ;;  %v10904_v53 = vpop.eup %10903  ;;  %v11693_v44 = vmul.f32 %v10902_v39, %v11563_v28  ;;  %v1289_v28 = vld [vmem:[#allocation2 + $0x48] sm:$0x7]  ;;  %v11046_v48 = vld [vmem:[#allocation2 + $0x40] sm:$0x8] }
 0x155   : > { %10915 = vrcp.f32 %v793_v46  ;;  %v1475_v49 = vrot.slane %v1474_v40, 4  ;;  %v11696_v5 = vmax.bf16 %v1430_v47, %v11582_v61  ;;  %v10906_v18 = vpop.eup %10905  ;;  %v852_v7 = vmul.f32 %v10904_v53, %v11570_v38  ;;  %v1292_v39 = vld [vmem:[#allocation2 + $0x5c] sm:$0x7] }
 0x156   : > { %v1479_v63 = vrot.slane %v1477_v21, 5  ;;  %v1483_v36 = vrot.slane %v1481_v56, 4  ;;  %v1929_v41 = vmax.bf16 %v11668_v9, %v1286_v52  ;;  %v10198_v20 = vpack.c.bf16 %v11693_v44, %v11693_v44 }
 0x157   : > { %v855_v62 = vmul.f32 %v10906_v18, %v11576_v30  ;;  %v1930_v2 = vmax.bf16 %v11046_v48, %v11660_v43  ;;  %v11705_v11 = vmax.bf16 %v1455_v35, %v11623_v37  ;;  %v1932_v13 = vmax.bf16 %v11687_v58, %v1289_v28 }
 0x158   : > { %v1480_v47 = vsel %vm11245_vm2, %v1475_v49, %v1479_v63  ;;  %v1484_v38 = vor.u32 %v1483_v36, %v1479_v63  ;;  %v1933_v9 = vmax.bf16 %v11047_v14, %v11685_v42  ;;  %1272 = vst [vmem:[#allocation2 + $0x134] sm:$0xf] %v10198_v20  ;;  %v2034_v43 = vrot.slane %v11582_v61, 5 }
 0x159   : > { %v10199_v25 = vpack.c.bf16 %v855_v62, %v855_v62  ;;  %v873_v30 = vpack.c.bf16 %v855_v62, %v11693_v44  ;;  %v11713_v1 = vmax.bf16 %v1480_v47, %v11654_v60  ;;  %v2036_v34 = vrot.slane %v11621_v0, 5 }
 0x15a   : > { %v1485_v35 = vrot.slane %v1484_v38, 4  ;;  %v2039_v46 = vrot.slane %v11623_v37, 5  ;;  %v2041_v40 = vrot.slane %v11649_v19, 5  ;;  %v10908_v58 = vpop.eup %10907  ;;  %v2035_v42 = vrot.slane %v2034_v43, 4 }
 0x15b   : > { %1273 = vst [vmem:[#allocation2 + $0x138] sm:$0xf] %v10199_v25  ;;  %v2044_v21 = vrot.slane %v11654_v60, 5  ;;  %v2046_v56 = vrot.slane %v11677_v31, 5  ;;  %v11721_v22 = vmax.bf16 %v2034_v43, %v1927_v6  ;;  %v10910_v53 = vpop.eup %10909  ;;  %v853_v61 = vmul.f32 %v10908_v58, %v11579_v12  ;;  %v2253_v25 = vld [vmem:[#allocation2 + $0x44] sm:$0xf] }
 0x15c   : > { %v1935_v44 = vmax.bf16 %v1485_v35, %v1292_v39  ;;  %v2038_v52 = vrot.slane %v2036_v34, 4  ;;  %v2040_v0 = vrot.slane %v2039_v46, 4  ;;  %v10912_v49 = vpop.eup %10911  ;;  %v11725_v37 = vmul.f32 %v10910_v53, %v11597_v54  ;;  %v2256_v39 = vld [vmem:[#allocation2 + $0x58] sm:$0xf] }
 0x15d   : > { %v11729_v19 = vsel %vm11300_vm5, %v2035_v42, %v2036_v34  ;;  %v2043_v18 = vrot.slane %v2041_v40, 4  ;;  %v2045_v60 = vrot.slane %v2044_v21, 4  ;;  %v10914_v63 = vpop.eup %10913  ;;  %v856_v31 = vmul.f32 %v10912_v49, %v11606_v16  ;;  %v2250_v16 = vld [vmem:[#allocation2 + $0x30] sm:$0xf] }
 0x15e   : > { %v872_v6 = vpack.c.bf16 %v853_v61, %v852_v7  ;;  %v11734_v12 = vsel %vm11300_vm5, %v2040_v0, %v2041_v40  ;;  %v2048_v36 = vrot.slane %v2046_v56, 4  ;;  %v10202_v54 = vpack.c.bf16 %v11725_v37, %v11725_v37  ;;  %v11759_v40 = vld [vmem:[#allocation2 + $0x48] sm:$0xf] }
 0x15f   : > { %v10916_v20 = vpop.eup %10915  ;;  %v859_v62 = vmul.f32 %v10914_v63, %v11612_v32  ;;  %v11741_v28 = vsel %vm11300_vm5, %v2045_v60, %v2046_v56  ;;  %v2191_v48 = vmax.bf16 %v11729_v19, %v11696_v5  ;;  %v11746_v47 = vmax.bf16 %v2038_v52, %v1929_v41  ;;  %v11752_v32 = vld [vmem:[#allocation2 + $0x34] sm:$0xf] }
 0x160   : > { %v857_v7 = vmul.f32 %v10916_v20, %v11618_v33  ;;  %10460 = vmatprep.mubr.bf16.mxu0 %v872_v6  ;;  %10250 = vst [vmem:[#allocation2 + $0x120] sm:$0xff] %v872_v6   ;;  %v11748_v38 = vmax.bf16 %v2039_v46, %v1930_v2  ;;  %v2194_v14 = vmax.bf16 %v11734_v12, %v11705_v11  ;;  %1276 = vst [vmem:[#allocation2 + $0x15c] sm:$0xf] %v10202_v54 }
 0x161   : > { %v10203_v43 = vpack.c.bf16 %v859_v62, %v859_v62  ;;  %10461 = vmatmul.mubr.bf16.gmra.mrb[56].mxu0 %v873_v30  ;;  %v875_v35 = vpack.c.bf16 %v859_v62, %v11725_v37  ;;  %v11755_v34 = vmax.bf16 %v2043_v18, %v1932_v13  ;;  %v11757_v33 = vmax.bf16 %v2044_v21, %v1933_v9  ;;  %v11767_v9 = vld [vmem:[#allocation2 + $0x5c] sm:$0xf] }
 0x162   : > { %v874_v41 = vpack.c.bf16 %v857_v7, %v856_v31  ;;  %v2197_v2 = vmax.bf16 %v11741_v28, %v11713_v1  ;;  %v11763_v46 = vmax.bf16 %v2048_v36, %v1935_v44  ;;  %v2356_v58 = vshrl.u32 %v2250_v16, 16 }
 0x163   : > { %1277 = vst [vmem:[#allocation2 + $0x160] sm:$0xf] %v10203_v43  ;;  %v2359_v42 = vshll.u32 %v2250_v16, 16  ;;  %v2365_v30 = vshrl.u32 %v11752_v32, 16  ;;  %v2368_v56 = vshll.u32 %v11752_v32, 16  ;;  %v2380_v13 = vshrl.u32 %v2253_v25, 16 }
 0x164   : > { %10464 = vmatprep.mubr.bf16.mxu0 %v874_v41  ;;  %10251 = vst [vmem:[#allocation2 + $0x148] sm:$0xff] %v874_v41   ;;  %v2358_v21 = vrot.slane %v2356_v58, 5  ;;  %v2383_v53 = vshll.u32 %v2253_v25, 16  ;;  %v2389_v61 = vshrl.u32 %v11759_v40, 16  ;;  %v2392_v44 = vshll.u32 %v11759_v40, 16 }
 0x165   : > { %v2361_v52 = vrot.slane %v2359_v42, 6  ;;  %v2367_v0 = vrot.slane %v2365_v30, 5  ;;  %v2370_v49 = vrot.slane %v2368_v56, 6  ;;  %v2382_v37 = vrot.slane %v2380_v13, 5 }
 0x166   : > { %v2385_v18 = vrot.slane %v2383_v53, 6  ;;  %v2391_v60 = vrot.slane %v2389_v61, 5  ;;  %v2394_v63 = vrot.slane %v2392_v44, 6  ;;  %v2404_v31 = vshrl.u32 %v2256_v39, 16 }
 0x167   : > { %v2362_v6 = vor.u32 %v2361_v52, %v2358_v21  ;;  %v2371_v36 = vor.u32 %v2370_v49, %v2367_v0  ;;  %v2407_v20 = vshll.u32 %v2256_v39, 16  ;;  %v2413_v54 = vshrl.u32 %v11767_v9, 16 }
 0x168   : > { %v2386_v62 = vor.u32 %v2385_v18, %v2382_v37  ;;  %v2395_v16 = vor.u32 %v2394_v63, %v2391_v60  ;;  %v2406_v7 = vrot.slane %v2404_v31, 5  ;;  %v2416_v25 = vshll.u32 %v11767_v9, 16  ;;  %v2910_v37 = vld [vmem:[#allocation2 + $0x44] sm:$0xe]  ;;  %v2911_v18 = vld [vmem:[#allocation2 + $0x58] sm:$0xe] }
 0x169   : > { %10465 = vmatmul.mubr.bf16.gmra.mrb[60].mxu0 %v875_v35  ;;  %v2363_v43 = vrot.slane %v2362_v6, 4  ;;  %v2373_v41 = vrot.slane %v2371_v36, 4  ;;  %v2409_v58 = vrot.slane %v2407_v20, 6  ;;  %v2415_v42 = vrot.slane %v2413_v54, 5  ;;  %v2909_v35 = vld [vmem:[#allocation2 + $0x30] sm:$0xe] }
 0x16a   : > { %v2387_v30 = vrot.slane %v2386_v62, 4  ;;  %v2397_v56 = vrot.slane %v2395_v16, 4  ;;  %v2418_v13 = vrot.slane %v2416_v25, 6  ;;  %v2853_v53 = vmax.bf16 %v2362_v6, %v11721_v22 }
 0x16b   : > { %v2372_v39 = vsel %vm11329_vm8, %v2363_v43, %v2371_v36  ;;  %v2378_v21 = vsel %vm11329_vm8, %v2373_v41, %v11353_v57  ;;  %v2410_v61 = vor.u32 %v2409_v58, %v2406_v7  ;;  %v2856_v44 = vmax.bf16 %v2386_v62, %v11748_v38 }
 0x16c   : > { %v2396_v52 = vsel %vm11329_vm8, %v2387_v30, %v2395_v16  ;;  %v2402_v0 = vsel %vm11329_vm8, %v2397_v56, %v11355_v59  ;;  %v2419_v49 = vor.u32 %v2418_v13, %v2415_v42  ;;  %v2854_v22 = vmax.bf16 %v2372_v39, %v2191_v48  ;;  %v1343_v42 = vld [vmem:[#allocation2 + $0x70] sm:$0xf] }
 0x16d   : > { %v2411_v60 = vrot.slane %v2410_v61, 4  ;;  %v2855_v57 = vmax.bf16 %v2378_v21, %v11746_v47  ;;  %v2857_v38 = vmax.bf16 %v2396_v52, %v2194_v14  ;;  %v2858_v63 = vmax.bf16 %v2402_v0, %v11755_v34 }
 0x16e   : > { %v2421_v31 = vrot.slane %v2419_v49, 4  ;;  %v2859_v6 = vmax.bf16 %v2410_v61, %v11757_v33  ;;  %v3004_v59 = vrot.slane %v2909_v35, 6  ;;  %v3006_v36 = vrot.slane %v11752_v32, 6 }
 0x16f   : > { %v2420_v5 = vsel %vm11329_vm8, %v2411_v60, %v2419_v49  ;;  %v3011_v19 = vrot.slane %v2910_v37, 6  ;;  %v3013_v48 = vrot.slane %v11759_v40, 6  ;;  %v3018_v20 = vrot.slane %v2911_v18, 6  ;;  %v14975_v49 = vld [vmem:[#allocation8_spill] sm:$0xff] }
 0x170   : > { %v2426_v11 = vsel %vm11329_vm8, %v2421_v31, %v11413_v4  ;;  %v2860_v12 = vmax.bf16 %v2420_v5, %v2197_v2  ;;  %v3005_v47 = vrot.slane %v3004_v59, 4  ;;  %v3008_v14 = vrot.slane %v3006_v36, 4 }
 0x171   : > { %v2861_v34 = vmax.bf16 %v2426_v11, %v11763_v46  ;;  %v3012_v32 = vrot.slane %v3011_v19, 4  ;;  %v3015_v33 = vrot.slane %v3013_v48, 4  ;;  %v3019_v54 = vrot.slane %v3018_v20, 4 }
 0x172   : > { %v3007_v40 = vsel %vm11417_vm11, %v3005_v47, %v3006_v36  ;;  %v14970_v62 = vrot.slane %v11309_v15, 6  ;;  %v3020_v1 = vrot.slane %v11767_v9, 6  ;;  %v11812_v28 = vmax.bf16 %v3004_v59, %v2853_v53  ;;  %v11824_v15 = vld [vmem:[#allocation2 + $0x6c] sm:$0xf] }
 0x173   : > { %v3014_v2 = vsel %vm11417_vm11, %v3012_v32, %v3013_v48  ;;  %v14971_v46 = vrot.slane %v11311_v17, 6  ;;  %v11820_v7 = vmax.bf16 %v3007_v40, %v2854_v22  ;;  %v11828_v41 = vmax.bf16 %v3011_v19, %v2856_v44  ;;  %v14973_v44 = vld [vmem:[#allocation4_spill] sm:$0xff]  ;;  %v2259_v19 = vld [vmem:[#allocation2 + $0x6c] sm:$0xf] }
 0x174   : > { %v3010_v4 = vsel %vm11417_vm11, %v3008_v14, %v14970_v62  ;;  %v3021_v43 = vsel %vm11417_vm11, %v3019_v54, %v3020_v1  ;;  %v3022_v9 = vrot.slane %v3020_v1, 4  ;;  %v11830_v58 = vmax.bf16 %v3014_v2, %v2857_v38  ;;  %v11048_v2 = vld [vmem:[#allocation2 + $0x68] sm:$0x8] }
 0x175   : > { %v3017_v16 = vsel %vm11417_vm11, %v3015_v33, %v14971_v46  ;;  %v11822_v25 = vmax.bf16 %v3010_v4, %v2855_v57  ;;  %v11834_v17 = vmax.bf16 %v3018_v20, %v2859_v6  ;;  %v11836_v56 = vmax.bf16 %v3021_v43, %v2860_v12 }
 0x176   : > { %v11832_v30 = vmax.bf16 %v3017_v16, %v2858_v63  ;;  %v3253_v13 = vmax.bf16 %v11812_v28, %v11441_v55  ;;  %v14972_v53 = vrot.slane %v11378_v8, 6  ;;  %v3254_v21 = vmax.bf16 %v11820_v7, %v11443_v50  ;;  %v14976_v8 = vld [vmem:[#allocation5_spill] sm:$0xff] }
 0x177   : > { %v3255_v61 = vmax.bf16 %v11822_v25, %v11448_v23  ;;  %v14974_v35 = vmax.bf16 %v11441_v55, %v14973_v44  ;;  %v3299_v22 = vmax.bf16 %v14975_v49, %v11820_v7  ;;  %v14977_v37 = vmax.bf16 %v11448_v23, %v14976_v8 }
 0x178   : > { %v3024_v39 = vsel %vm11417_vm11, %v3022_v9, %v14972_v53  ;;  %v1492_v60 = vshll.u32 %v11824_v15, 16  ;;  %v1496_v38 = vshrl.u32 %v11824_v15, 16  ;;  %v1502_v63 = vshll.u32 %v1343_v42, 16 }
 0x179   : > { %v3298_v52 = vmax.bf16 %v14974_v35, %v11812_v28  ;;  %v11852_v0 = vmax.bf16 %v3024_v39, %v2861_v34  ;;  %v3300_v18 = vmax.bf16 %v14977_v37, %v11822_v25  ;;  %v1506_v31 = vshrl.u32 %v1343_v42, 16  ;;  %v14978_v34 = vld [vmem:[#allocation7_spill] sm:$0xff]  ;;  %v2260_v39 = vld [vmem:[#allocation2 + $0x70] sm:$0xf] }
 0x17a   : > { %v3347_v6 = vmax.bf16 %v3299_v22, %v11830_v58  ;;  %v1494_v36 = vrot.slane %v1492_v60, 5  ;;  %v2049_v5 = vrot.slane %v11824_v15, 5  ;;  %v1498_v20 = vrot.slane %v1496_v38, 4  ;;  %v1295_v22 = vld [vmem:[#allocation2 + $0x70] sm:$0x7] }
 0x17b   : > { %v3346_v57 = vmax.bf16 %v3298_v52, %v11828_v41  ;;  %v3348_v59 = vmax.bf16 %v3300_v18, %v11832_v30  ;;  %v1504_v11 = vrot.slane %v1502_v63, 5  ;;  %v1508_v12 = vrot.slane %v1506_v31, 4 }
 0x17c   : > { %v3395_v47 = vmax.bf16 %v3347_v6, %v11836_v56  ;;  %v14979_v32 = vshrl.u32 %v14978_v34, 16  ;;  %v2050_v54 = vrot.slane %v2049_v5, 4  ;;  %v1499_v4 = vor.u32 %v1498_v20, %v1494_v36 }
 0x17d   : > { %v3394_v48 = vmax.bf16 %v3346_v57, %v11834_v17  ;;  %v3396_v14 = vmax.bf16 %v3348_v59, %v11852_v0  ;;  %v1509_v1 = vor.u32 %v1508_v12, %v1504_v11  ;;  %v2051_v9 = vrot.slane %v1343_v42, 5  ;;  %v2912_v57 = vld [vmem:[#allocation2 + $0x6c] sm:$0xe] }
 0x17e   : > { %v1495_v33 = vsel %vm11245_vm2, %v14979_v32, %v1494_v36  ;;  %v3527_v16 = vrot.slane %v3395_v47, 7  ;;  %v2428_v53 = vshrl.u32 %v2259_v19, 16  ;;  %v1500_v44 = vrot.slane %v1499_v4, 4 }
 0x17f   : > { %v9959_v62 = vrot.slane %v3394_v48, 11  ;;  %v1936_v46 = vmax.bf16 %v11048_v2, %v1495_v33  ;;  %v3530_v43 = vrot.slane %v3396_v14, 7  ;;  %v1510_v35 = vrot.slane %v1509_v1, 4 }
 0x180   : > { %v2431_v49 = vshll.u32 %v2259_v19, 16  ;;  %v3529_v37 = vrot.slane %v3527_v16, 4  ;;  %v2052_v18 = vsel %vm11300_vm5, %v2050_v54, %v2051_v9  ;;  %v2053_v60 = vrot.slane %v2051_v9, 4 }
 0x181   : > { %v2199_v52 = vmax.bf16 %v2049_v5, %v1936_v46  ;;  %v3528_v8 = vsel %vm11875_vm14, %v9959_v62, %v3527_v16  ;;  %v1505_v42 = vsel %vm11245_vm2, %v1500_v44, %v1504_v11  ;;  %v1938_v38 = vmax.bf16 %v1510_v35, %v1295_v22  ;;  %v11888_v11 = vld [vmem:[#allocation2 + $0x80] sm:$0xf] }
 0x182   : > { %4023 = vst [vmem:[#allocation2 + $0x30] sm:$0xf] %v3528_v8  ;;  %v2430_v63 = vrot.slane %v2428_v53, 5  ;;  %v2433_v31 = vrot.slane %v2431_v49, 6  ;;  %v3531_v6 = vsel %vm11875_vm14, %v3529_v37, %v3530_v43  ;;  %v1937_v59 = vmax.bf16 %v1505_v42, %v11824_v15  ;;  %v10773_v44 = vld [vmem:[%s14935_s3 + $0x80] sm:$0xff]  }
 0x183   : > { %v2437_v36 = vshrl.u32 %v2260_v39, 16  ;;  %v2440_v5 = vshll.u32 %v2260_v39, 16  ;;  %v9991_v19 = vcombine.low %v3528_v8, %v3531_v6  ;;  %4024 = vst [vmem:[#allocation2 + $0x34] sm:$0xf] %v3531_v6  ;;  %v2201_v48 = vmax.bf16 %v2053_v60, %v1938_v38  ;;  %v14984_v8 = vld [vmem:[#allocation9_spill] sm:$0xff]  ;;  %10516 = vmatprep.subr.bf16.mxu1 %v10773_v44 }
 0x184   : > { %v2434_v20 = vor.u32 %v2433_v31, %v2430_v63  ;;  %v3025_v12 = vrot.slane %v2912_v57, 6  ;;  %v2200_v47 = vmax.bf16 %v2052_v18, %v1937_v59  ;;  %v3027_v32 = vrot.slane %v2260_v39, 6  ;;  %v2262_v59 = vld [vmem:[#allocation2 + $0x80] sm:$0xf] }
 0x185   : > { %v2439_v14 = vrot.slane %v2437_v36, 5  ;;  %v2442_v34 = vrot.slane %v2440_v5, 6  ;;  %10484 = vmatprep.mubr.bf16.mxu0 %v9991_v19  ;;  %v3301_v15 = vmax.bf16 %v3253_v13, %v11828_v41  ;;  %v3302_v2 = vmax.bf16 %v3254_v21, %v11830_v58  ;;  %v1344_v13 = vld [vmem:[#allocation2 + $0x84] sm:$0xf] }
 0x186   : > { %v2435_v33 = vrot.slane %v2434_v20, 4  ;;  %v2862_v54 = vmax.bf16 %v2434_v20, %v2199_v52  ;;  %v3026_v62 = vrot.slane %v3025_v12, 4  ;;  %v3029_v1 = vrot.slane %v3027_v32, 4  ;;  %v14982_v21 = vld [vmem:[#allocation6_spill] sm:$0xff]  ;;  %v11049_v20 = vld [vmem:[#allocation2 + $0x7c] sm:$0x8] }
 0x187   : > { %v2443_v4 = vor.u32 %v2442_v34, %v2439_v14  ;;  %v3303_v46 = vmax.bf16 %v3255_v61, %v11832_v30  ;;  %v3349_v55 = vmax.bf16 %v3301_v15, %v11834_v17  ;;  %v1517_v9 = vshll.u32 %v11888_v11, 16 }
 0x188   : > { %v3028_v16 = vsel %vm11417_vm11, %v3026_v62, %v3027_v32  ;;  %v11904_v43 = vmax.bf16 %v3025_v12, %v2862_v54  ;;  %v14983_v39 = vrot.slane %v14982_v21, 6  ;;  %v3350_v61 = vmax.bf16 %v3302_v2, %v11836_v56  ;;  %v2263_v2 = vld [vmem:[#allocation2 + $0x84] sm:$0xf] }
 0x189   : > { %v2444_v53 = vsel %vm11329_vm8, %v2435_v33, %v2443_v4  ;;  %v2445_v50 = vrot.slane %v2443_v4, 4  ;;  %v3351_v52 = vmax.bf16 %v3303_v46, %v11852_v0  ;;  %v1519_v22 = vrot.slane %v1517_v9, 5 }
 0x18a   : > { %v3031_v23 = vsel %vm11417_vm11, %v3029_v1, %v14983_v39  ;;  %v2863_v35 = vmax.bf16 %v2444_v53, %v2200_v47  ;;  %v3397_v49 = vmax.bf16 %v3349_v55, %v11904_v43  ;;  %v1521_v18 = vshrl.u32 %v11888_v11, 16  ;;  %v2913_v53 = vld [vmem:[#allocation2 + $0x80] sm:$0xe]  ;;  %v1298_v39 = vld [vmem:[#allocation2 + $0x84] sm:$0x7] }
 0x18b   : > { %v2450_v37 = vsel %vm11329_vm8, %v2445_v50, %v14984_v8  ;;  %v1527_v60 = vshll.u32 %v1344_v13, 16  ;;  %v1531_v57 = vshrl.u32 %v1344_v13, 16  ;;  %v14985_v31 = vshrl.u32 %v11490_v26, 16 }
 0x18c   : > { %v2864_v42 = vmax.bf16 %v2450_v37, %v2201_v48  ;;  %v11924_v38 = vmax.bf16 %v3028_v16, %v2863_v35  ;;  %v9960_v63 = vrot.slane %v3397_v49, 11  ;;  %v1523_v36 = vrot.slane %v1521_v18, 4 }
 0x18d   : > { %v1520_v6 = vsel %vm11245_vm2, %v14985_v31, %v1519_v22  ;;  %v1529_v5 = vrot.slane %v1527_v60, 5  ;;  %v1533_v19 = vrot.slane %v1531_v57, 4  ;;  %v2054_v48 = vrot.slane %v11888_v11, 5 }
 0x18e   : > { %v1939_v12 = vmax.bf16 %v11049_v20, %v1520_v6  ;;  %v11930_v47 = vmax.bf16 %v3031_v23, %v2864_v42  ;;  %v3398_v14 = vmax.bf16 %v3350_v61, %v11924_v38  ;;  %v2056_v34 = vrot.slane %v1344_v13, 5 }
 0x18f   : > { %v1524_v32 = vor.u32 %v1523_v36, %v1519_v22  ;;  %v1534_v33 = vor.u32 %v1533_v19, %v1529_v5  ;;  %v2452_v54 = vshrl.u32 %v2262_v59, 16  ;;  %v2455_v26 = vshll.u32 %v2262_v59, 16 }
 0x190   : > { %v3399_v62 = vmax.bf16 %v3351_v52, %v11930_v47  ;;  %v3534_v15 = vrot.slane %v3398_v14, 7  ;;  %v2055_v4 = vrot.slane %v2054_v48, 4  ;;  %v2058_v1 = vrot.slane %v2056_v34, 4 }
 0x191   : > { %v1525_v46 = vrot.slane %v1524_v32, 4  ;;  %v1535_v16 = vrot.slane %v1534_v33, 4  ;;  %v2202_v55 = vmax.bf16 %v2054_v48, %v1939_v12  ;;  %v2454_v9 = vrot.slane %v2452_v54, 5 }
 0x192   : > { %v3535_v50 = vsel %vm11875_vm14, %v9960_v63, %v3534_v15  ;;  %v3536_v21 = vrot.slane %v3534_v15, 4  ;;  %v3537_v13 = vrot.slane %v3399_v62, 7  ;;  %v2057_v23 = vsel %vm11300_vm5, %v2055_v4, %v2056_v34  ;;  %v11944_v63 = vld [vmem:[#allocation2 + $0x94] sm:$0xf] }
 0x193   : > { %4025 = vst [vmem:[#allocation2 + $0x44] sm:$0xf] %v3535_v50  ;;  %v1530_v61 = vsel %vm11245_vm2, %v1525_v46, %v1529_v5  ;;  %v1941_v44 = vmax.bf16 %v1535_v16, %v1298_v39  ;;  %v2457_v35 = vrot.slane %v2455_v26, 6  ;;  %v2461_v52 = vshrl.u32 %v2263_v2, 16  ;;  %v1345_v26 = vld [vmem:[#allocation2 + $0x98] sm:$0xf] }
 0x194   : > { %v3538_v49 = vsel %vm11875_vm14, %v3536_v21, %v3537_v13  ;;  %v1940_v22 = vmax.bf16 %v1530_v61, %v11888_v11  ;;  %v2464_v8 = vshll.u32 %v2263_v2, 16  ;;  %v3032_v37 = vrot.slane %v2913_v53, 6 }
 0x195   : > { %v9992_v18 = vcombine.low %v3535_v50, %v3538_v49  ;;  %4026 = vst [vmem:[#allocation2 + $0x48] sm:$0xf] %v3538_v49  ;;  %v2204_v60 = vmax.bf16 %v2058_v1, %v1941_v44  ;;  %v2458_v57 = vor.u32 %v2457_v35, %v2454_v9  ;;  %v2463_v42 = vrot.slane %v2461_v52, 5  ;;  %v2265_v35 = vld [vmem:[#allocation2 + $0x94] sm:$0xf] }
 0x196   : > { %v2203_v31 = vmax.bf16 %v2057_v23, %v1940_v22  ;;  %v2466_v6 = vrot.slane %v2464_v8, 6  ;;  %v3033_v59 = vrot.slane %v3032_v37, 4  ;;  %v3034_v36 = vrot.slane %v2263_v2, 6  ;;  %v14988_v23 = vld [vmem:[#allocation10_spill] sm:$0xff]  ;;  %v11050_v8 = vld [vmem:[#allocation2 + $0x90] sm:$0x8] }
 0x197   : > { %10485 = vmatmul.mubr.bf16.vlgmr.msra.gmra.mrb[32].mxu0 %v9992_v18  ;;  %v2459_v5 = vrot.slane %v2458_v57, 4  ;;  %v2865_v19 = vmax.bf16 %v2458_v57, %v2202_v55  ;;  %v3256_v20 = vmax.bf16 %v11828_v41, %v11812_v28  ;;  %v3257_v11 = vmax.bf16 %v11830_v58, %v11820_v7  ;;  %v14987_v55 = vld [vmem:[#allocation11_spill] sm:$0xff] }
 0x198   : > { %v2467_v12 = vor.u32 %v2466_v6, %v2463_v42  ;;  %v3035_v14 = vsel %vm11417_vm11, %v3033_v59, %v3034_v36  ;;  %v3036_v48 = vrot.slane %v3034_v36, 4  ;;  %v3258_v34 = vmax.bf16 %v11832_v30, %v11822_v25 }
 0x199   : > { %v11954_v32 = vmax.bf16 %v3032_v37, %v2865_v19  ;;  %v3304_v33 = vmax.bf16 %v3256_v20, %v11834_v17  ;;  %v3305_v54 = vmax.bf16 %v3257_v11, %v11836_v56  ;;  %v1542_v28 = vshll.u32 %v11944_v63, 16 }
 0x19a   : > { %v2468_v7 = vsel %vm11329_vm8, %v2459_v5, %v2467_v12  ;;  %v2469_v62 = vrot.slane %v2467_v12, 4  ;;  %v14986_v15 = vrot.slane %v11480_v51, 6  ;;  %v3306_v25 = vmax.bf16 %v3258_v34, %v11852_v0  ;;  %v2266_v12 = vld [vmem:[#allocation2 + $0x98] sm:$0xf] }
 0x19b   : > { %v2866_v1 = vmax.bf16 %v2468_v7, %v2203_v31  ;;  %v3352_v2 = vmax.bf16 %v3304_v33, %v11904_v43  ;;  %v3353_v46 = vmax.bf16 %v3305_v54, %v11924_v38  ;;  %v1544_v16 = vrot.slane %v1542_v28, 5 }
 0x19c   : > { %v3038_v4 = vsel %vm11417_vm11, %v3036_v48, %v14986_v15  ;;  %v2474_v9 = vsel %vm11329_vm8, %v2469_v62, %v14987_v55  ;;  %v3354_v53 = vmax.bf16 %v3306_v25, %v11930_v47  ;;  %v1546_v50 = vshrl.u32 %v11944_v63, 16 }
 0x19d   : > { %v1552_v51 = vshll.u32 %v1345_v26, 16  ;;  %v2867_v21 = vmax.bf16 %v2474_v9, %v2204_v60  ;;  %v11973_v13 = vmax.bf16 %v3035_v14, %v2866_v1  ;;  %v3400_v39 = vmax.bf16 %v3352_v2, %v11954_v32  ;;  %v2914_v1 = vld [vmem:[#allocation2 + $0x94] sm:$0xe] }
 0x19e   : > { %v14989_v61 = vshrl.u32 %v14988_v23, 16  ;;  %v1548_v52 = vrot.slane %v1546_v50, 4  ;;  %v1556_v22 = vshrl.u32 %v1345_v26, 16  ;;  %v2059_v42 = vrot.slane %v11944_v63, 5 }
 0x19f   : > { %v1554_v49 = vrot.slane %v1552_v51, 5  ;;  %v11980_v18 = vmax.bf16 %v3038_v4, %v2867_v21  ;;  %v3401_v57 = vmax.bf16 %v3353_v46, %v11973_v13  ;;  %v9961_v60 = vrot.slane %v3400_v39, 11  ;;  %v1301_v46 = vld [vmem:[#allocation2 + $0x98] sm:$0x7] }
 0x1a0   : > { %v1545_v44 = vsel %vm11245_vm2, %v14989_v61, %v1544_v16  ;;  %v1549_v31 = vor.u32 %v1548_v52, %v1544_v16  ;;  %v1558_v6 = vrot.slane %v1556_v22, 4  ;;  %v2061_v59 = vrot.slane %v1345_v26, 5 }
 0x1a1   : > { %v1942_v37 = vmax.bf16 %v11050_v8, %v1545_v44  ;;  %14990 = vst [vmem:[#allocation4_spill] sm:$0xff] %v11980_v18  ;;  %v2476_v36 = vshrl.u32 %v2265_v35, 16  ;;  %v3402_v5 = vmax.bf16 %v3354_v53, %v11980_v18  ;;  %v3541_v19 = vrot.slane %v3401_v57, 7 }
 0x1a2   : > { %v2060_v20 = vrot.slane %v2059_v42, 4  ;;  %v1550_v14 = vrot.slane %v1549_v31, 4  ;;  %v1559_v48 = vor.u32 %v1558_v6, %v1554_v49  ;;  %v2063_v34 = vrot.slane %v2061_v59, 4  ;;  %v1302_v6 = vld [vmem:[#allocation2 + $0xa4] sm:$0x8] }
 0x1a3   : > { %v2205_v11 = vmax.bf16 %v2059_v42, %v1942_v37  ;;  %v2478_v33 = vrot.slane %v2476_v36, 5  ;;  %v3542_v54 = vsel %vm11875_vm14, %v9961_v60, %v3541_v19  ;;  %v3543_v28 = vrot.slane %v3541_v19, 4  ;;  %v1303_v19 = vld [vmem:[#allocation2 + $0xa8] sm:$0xf] }
 0x1a4   : > { %v3544_v7 = vrot.slane %v3402_v5, 7  ;;  %v2062_v62 = vsel %vm11300_vm5, %v2060_v20, %v2061_v59  ;;  %4027 = vst [vmem:[#allocation2 + $0x58] sm:$0xf] %v3542_v54  ;;  %v1555_v26 = vsel %vm11245_vm2, %v1550_v14, %v1554_v49  ;;  %v1560_v15 = vrot.slane %v1559_v48, 4  ;;  %v1346_v14 = vld [vmem:[#allocation2 + $0xac] sm:$0xf] }
 0x1a5   : > { %v2479_v4 = vshll.u32 %v2265_v35, 16  ;;  %v2485_v25 = vshrl.u32 %v2266_v12, 16  ;;  %v1943_v16 = vmax.bf16 %v1555_v26, %v11944_v63  ;;  %v2488_v55 = vshll.u32 %v2266_v12, 16 }
 0x1a6   : > { %v3545_v2 = vsel %vm11875_vm14, %v3543_v28, %v3544_v7  ;;  %v2497_v9 = vrot.slane %v2495_v29, 6  ;;  %v1944_v50 = vmax.bf16 %v1560_v15, %v1301_v46  ;;  %v3039_v61 = vrot.slane %v2914_v1, 6 }
 0x1a7   : > { %v9993_v53 = vcombine.low %v3542_v54, %v3545_v2  ;;  %4028 = vst [vmem:[#allocation2 + $0x5c] sm:$0xf] %v3545_v2  ;;  %v2481_v51 = vrot.slane %v2479_v4, 6  ;;  %v2487_v21 = vrot.slane %v2485_v25, 5  ;;  %v2206_v39 = vmax.bf16 %v2062_v62, %v1943_v16 }
 0x1a8   : > { %v2490_v23 = vrot.slane %v2488_v55, 6  ;;  %v3041_v44 = vrot.slane %v2266_v12, 6  ;;  %v2207_v35 = vmax.bf16 %v2063_v34, %v1944_v50  ;;  %v3259_v49 = vmax.bf16 %v11834_v17, %v11828_v41  ;;  %v2268_v55 = vld [vmem:[#allocation2 + $0xa8] sm:$0xf] }
 0x1a9   : > { %10488 = vmatprep.mubr.bf16.mxu0 %v9993_v53  ;;  %v2482_v52 = vor.u32 %v2481_v51, %v2478_v33  ;;  %v3260_v63 = vmax.bf16 %v11836_v56, %v11830_v58  ;;  %v3040_v29 = vrot.slane %v3039_v61, 4  ;;  %v3261_v37 = vmax.bf16 %v11852_v0, %v11832_v30 }
 0x1aa   : > { %v2491_v22 = vor.u32 %v2490_v23, %v2487_v21  ;;  %v3043_v8 = vrot.slane %v3041_v44, 4  ;;  %v3307_v42 = vmax.bf16 %v3259_v49, %v11904_v43  ;;  %v14991_v36 = vrot.slane %v11523_v24, 6  ;;  %v2269_v49 = vld [vmem:[#allocation2 + $0xac] sm:$0xf] }
 0x1ab   : > { %v2483_v57 = vrot.slane %v2482_v52, 4  ;;  %v2868_v60 = vmax.bf16 %v2482_v52, %v2205_v11  ;;  %v3308_v31 = vmax.bf16 %v3260_v63, %v11924_v38  ;;  %v3042_v41 = vsel %vm11417_vm11, %v3040_v29, %v3041_v44 }
 0x1ac   : > { %v2493_v59 = vrot.slane %v2491_v22, 4  ;;  %v3045_v58 = vsel %vm11417_vm11, %v3043_v8, %v14991_v36  ;;  %v3309_v5 = vmax.bf16 %v3261_v37, %v11930_v47  ;;  %v3355_v11 = vmax.bf16 %v3307_v42, %v11954_v32  ;;  %v1304_v42 = vld [vmem:[#allocation2 + $0xac] sm:$0x7] }
 0x1ad   : > { %v2492_v30 = vsel %vm11329_vm8, %v2483_v57, %v2491_v22  ;;  %v12013_v20 = vmax.bf16 %v3039_v61, %v2868_v60  ;;  %v3356_v12 = vmax.bf16 %v3308_v31, %v11973_v13  ;;  %v1562_v33 = vshrl.u32 %v1302_v6, 16 }
 0x1ae   : > { %v2498_v48 = vsel %vm11329_vm8, %v2493_v59, %v2497_v9  ;;  %v2869_v24 = vmax.bf16 %v2492_v30, %v2206_v39  ;;  %v3357_v34 = vmax.bf16 %v3309_v5, %v11980_v18  ;;  %v1567_v7 = vshll.u32 %v1303_v19, 16  ;;  %v2915_v5 = vld [vmem:[#allocation2 + $0xa8] sm:$0xe] }
 0x1af   : > { %14992 = vst [vmem:[#allocation8_spill] sm:$0xff] %v12013_v20  ;;  %v2870_v54 = vmax.bf16 %v2498_v48, %v2207_v35  ;;  %v3403_v28 = vmax.bf16 %v3355_v11, %v12013_v20  ;;  %v1571_v62 = vshrl.u32 %v1303_v19, 16  ;;  %v1577_v15 = vshll.u32 %v1346_v14, 16 }
 0x1b0   : > { %v12021_v26 = vmax.bf16 %v3042_v41, %v2869_v24  ;;  %v1581_v4 = vshrl.u32 %v1346_v14, 16  ;;  %v2064_v25 = vrot.slane %v1303_v19, 5  ;;  %v1569_v46 = vrot.slane %v1567_v7, 5 }
 0x1b1   : > { %v12023_v1 = vmax.bf16 %v3045_v58, %v2870_v54  ;;  %v9962_v2 = vrot.slane %v3403_v28, 11  ;;  %v1573_v16 = vrot.slane %v1571_v62, 4  ;;  %v1579_v53 = vrot.slane %v1577_v15, 5 }
 0x1b2   : > { %14993 = vst [vmem:[#allocation5_spill] sm:$0xff] %v12021_v26  ;;  %v3404_v9 = vmax.bf16 %v3356_v12, %v12021_v26  ;;  %v1583_v50 = vrot.slane %v1581_v4, 4  ;;  %v2065_v51 = vrot.slane %v2064_v25, 4  ;;  %v1570_v39 = vsel %vm11245_vm2, %v1562_v33, %v1569_v46 }
 0x1b3   : > { %14994 = vst [vmem:[#allocation7_spill] sm:$0xff] %v12023_v1  ;;  %v3405_v21 = vmax.bf16 %v3357_v34, %v12023_v1  ;;  %v1574_v23 = vor.u32 %v1573_v16, %v1569_v46  ;;  %v2066_v61 = vrot.slane %v1346_v14, 5  ;;  %v1945_v52 = vmax.bf16 %v1570_v39, %v1302_v6  ;;  %v2270_v14 = vld [vmem:[#allocation2 + $0xb0] sm:$0x1]  ;;  %v12043_v39 = vld [vmem:[#allocation2 + $0xbc] sm:$0xf] }
 0x1b4   : > { %v3548_v44 = vrot.slane %v3404_v9, 7  ;;  %v1584_v35 = vor.u32 %v1583_v50, %v1579_v53  ;;  %v2500_v63 = vshrl.u32 %v2268_v55, 16  ;;  %v2503_v36 = vshll.u32 %v2268_v55, 16 }
 0x1b5   : > { %v3551_v22 = vrot.slane %v3405_v21, 7  ;;  %v1575_v29 = vrot.slane %v1574_v23, 4  ;;  %v2067_v8 = vsel %vm11300_vm5, %v2065_v51, %v2066_v61  ;;  %v2068_v37 = vrot.slane %v2066_v61, 4 }
 0x1b6   : > { %v3549_v57 = vsel %vm11875_vm14, %v9962_v2, %v3548_v44  ;;  %v3550_v60 = vrot.slane %v3548_v44, 4  ;;  %v1585_v31 = vrot.slane %v1584_v35, 4  ;;  %v2208_v59 = vmax.bf16 %v2064_v25, %v1945_v52  ;;  %v12051_v52 = vld [vmem:[#allocation2 + $0xc0] sm:$0xf] }
 0x1b7   : > { %4029 = vst [vmem:[#allocation2 + $0x6c] sm:$0xf] %v3549_v57  ;;  %v1580_v41 = vsel %vm11245_vm2, %v1575_v29, %v1579_v53  ;;  %v2502_v6 = vrot.slane %v2500_v63, 5  ;;  %v2509_v58 = vshrl.u32 %v2269_v49, 16  ;;  %v2512_v48 = vshll.u32 %v2269_v49, 16 }
 0x1b8   : > { %v3552_v30 = vsel %vm11875_vm14, %v3550_v60, %v3551_v22  ;;  %v1946_v11 = vmax.bf16 %v1580_v41, %v1303_v19  ;;  %v1947_v12 = vmax.bf16 %v1585_v31, %v1304_v42  ;;  %v2505_v34 = vrot.slane %v2503_v36, 6  ;;  %v12072_v36 = vld [vmem:[#allocation2 + $0xd0] sm:$0xf] }
 0x1b9   : > { %v9994_v24 = vcombine.low %v3549_v57, %v3552_v30  ;;  %4030 = vst [vmem:[#allocation2 + $0x70] sm:$0xf] %v3552_v30  ;;  %v2511_v33 = vrot.slane %v2509_v58, 5  ;;  %v2519_v54 = vshll.u32 %v2270_v14, 16  ;;  %v2514_v62 = vrot.slane %v2512_v48, 6 }
 0x1ba   : > { %v2209_v28 = vmax.bf16 %v2067_v8, %v1946_v11  ;;  %v2210_v7 = vmax.bf16 %v2068_v37, %v1947_v12  ;;  %v3046_v15 = vrot.slane %v2915_v5, 6  ;;  %v2506_v4 = vor.u32 %v2505_v34, %v2502_v6  ;;  %v12064_v57 = vld [vmem:[#allocation2 + $0xcc] sm:$0x8]  ;;  %v12078_v11 = vld [vmem:[#allocation2 + $0xd4] sm:$0xf] }
 0x1bb   : > { %10489 = vmatmul.mubr.bf16.gmra.mrb[36].mxu0 %v9994_v24  ;;  %v2521_v25 = vrot.slane %v2519_v54, 6  ;;  %v3048_v2 = vrot.slane %v2269_v49, 6  ;;  %v3051_v46 = vrot.slane %v2270_v14, 6  ;;  %v2515_v16 = vor.u32 %v2514_v62, %v2511_v33 }
 0x1bc   : > { %v3047_v55 = vrot.slane %v3046_v15, 4  ;;  %v3262_v19 = vmax.bf16 %v11904_v43, %v11834_v17  ;;  %v3263_v9 = vmax.bf16 %v11924_v38, %v11836_v56  ;;  %v2507_v53 = vrot.slane %v2506_v4, 4  ;;  %v12049_v17 = vld [vmem:[#allocation2 + $0xb8] sm:$0x8] }
 0x1bd   : > { %v2871_v50 = vmax.bf16 %v2506_v4, %v2208_v59  ;;  %v3050_v51 = vrot.slane %v3048_v2, 4  ;;  %v3264_v21 = vmax.bf16 %v11930_v47, %v11852_v0  ;;  %v2517_v23 = vrot.slane %v2515_v16, 4 }
 0x1be   : > { %v3049_v61 = vsel %vm11417_vm11, %v3047_v55, %v3048_v2  ;;  %v3310_v44 = vmax.bf16 %v3262_v19, %v11954_v32  ;;  %v3311_v35 = vmax.bf16 %v3263_v9, %v11973_v13  ;;  %v2516_v56 = vsel %vm11329_vm8, %v2507_v53, %v2515_v16  ;;  %v12095_v19 = vld [vmem:[#allocation2 + $0xf4] sm:$0x8] }
 0x1bf   : > { %v3052_v0 = vsel %vm11417_vm11, %v3050_v51, %v3051_v46  ;;  %v12057_v49 = vmax.bf16 %v3046_v15, %v2871_v50  ;;  %v3312_v63 = vmax.bf16 %v3264_v21, %v11980_v18  ;;  %v2522_v22 = vsel %vm11329_vm8, %v2517_v23, %v2521_v25  ;;  %v12091_v25 = vld [vmem:[#allocation2 + $0xe0] sm:$0x8]  ;;  %v12101_v23 = vld [vmem:[#allocation2 + $0xe4] sm:$0xf] }
 0x1c0   : > { %v2872_v29 = vmax.bf16 %v2516_v56, %v2209_v28  ;;  %v3358_v8 = vmax.bf16 %v3310_v44, %v12013_v20  ;;  %v3359_v37 = vmax.bf16 %v3311_v35, %v12021_v26  ;;  %v2873_v60 = vmax.bf16 %v2522_v22, %v2210_v7  ;;  %v12103_v35 = vld [vmem:[#allocation2 + $0xe8] sm:$0xf] }
 0x1c1   : > { %v3360_v42 = vmax.bf16 %v3312_v63, %v12023_v1  ;;  %v1587_v31 = vshrl.u32 %v12049_v17, 16  ;;  %v1592_v59 = vshll.u32 %v12043_v39, 16  ;;  %v1596_v58 = vshrl.u32 %v12043_v39, 16 }
 0x1c2   : > { %v12069_v41 = vmax.bf16 %v3049_v61, %v2872_v29  ;;  %v3406_v6 = vmax.bf16 %v3358_v8, %v12057_v49  ;;  %v1602_v5 = vshll.u32 %v12051_v52, 16  ;;  %v12076_v30 = vmax.bf16 %v3052_v0, %v2873_v60  ;;  %v12113_v8 = vld [vmem:[#allocation2 + $0xf8] sm:$0xf] }
 0x1c3   : > { %v1594_v12 = vrot.slane %v1592_v59, 5  ;;  %v1606_v14 = vshrl.u32 %v12051_v52, 16  ;;  %v1612_v48 = vshrl.u32 %v12064_v57, 16  ;;  %v1598_v33 = vrot.slane %v1596_v58, 4 }
 0x1c4   : > { %v3407_v24 = vmax.bf16 %v3359_v37, %v12069_v41  ;;  %v9963_v34 = vrot.slane %v3406_v6, 11  ;;  %v12083_v54 = vrot.slane %v1602_v5, 5  ;;  %v3408_v28 = vmax.bf16 %v3360_v42, %v12076_v30  ;;  %v12121_v5 = vld [vmem:[#allocation2 + $0xfc] sm:$0xf] }
 0x1c5   : > { %v12088_v7 = vsel %vm11245_vm2, %v1587_v31, %v1594_v12  ;;  %v1608_v62 = vrot.slane %v1606_v14, 4  ;;  %v1617_v15 = vshll.u32 %v12072_v36, 16  ;;  %v1599_v2 = vor.u32 %v1598_v33, %v1594_v12 }
 0x1c6   : > { %v3555_v4 = vrot.slane %v3407_v24, 7  ;;  %v1621_v46 = vshrl.u32 %v12072_v36, 16  ;;  %v1627_v16 = vshll.u32 %v12078_v11, 16  ;;  %v3558_v55 = vrot.slane %v3408_v28, 7 }
 0x1c7   : > { %v1609_v9 = vor.u32 %v1608_v62, %v12083_v54  ;;  %v1619_v53 = vrot.slane %v1617_v15, 5  ;;  %v1631_v50 = vshrl.u32 %v12078_v11, 16  ;;  %v1600_v61 = vrot.slane %v1599_v2, 4 }
 0x1c8   : > { %v3556_v51 = vsel %vm11875_vm14, %v9963_v34, %v3555_v4  ;;  %v3557_v21 = vrot.slane %v3555_v4, 4  ;;  %v1623_v44 = vrot.slane %v1621_v46, 4  ;;  %v1629_v63 = vrot.slane %v1627_v16, 5 }
 0x1c9   : > { %4031 = vst [vmem:[#allocation2 + $0x80] sm:$0xf] %v3556_v51  ;;  %v12105_v56 = vrot.slane %v1609_v9, 4  ;;  %v12109_v0 = vsel %vm11245_vm2, %v1612_v48, %v1619_v53  ;;  %v1633_v22 = vrot.slane %v1631_v50, 4  ;;  %v1605_v37 = vsel %vm11245_vm2, %v1600_v61, %v12083_v54  ;;  %v1307_v61 = vld [vmem:[#allocation2 + $0xc0] sm:$0x7] }
 0x1ca   : > { %v3559_v29 = vsel %vm11875_vm14, %v3557_v21, %v3558_v55  ;;  %v1624_v60 = vor.u32 %v1623_v44, %v1619_v53  ;;  %v1637_v42 = vshrl.u32 %v12091_v25, 16  ;;  %v1642_v6 = vshll.u32 %v12101_v23, 16 }
 0x1cb   : > { %v9995_v31 = vcombine.low %v3556_v51, %v3559_v29  ;;  %4032 = vst [vmem:[#allocation2 + $0x84] sm:$0xf] %v3559_v29  ;;  %v1634_v59 = vor.u32 %v1633_v22, %v1629_v63  ;;  %v1646_v58 = vshrl.u32 %v12101_v23, 16  ;;  %v1652_v14 = vshll.u32 %v12103_v35, 16 }
 0x1cc   : > { %v1625_v12 = vrot.slane %v1624_v60, 4  ;;  %v1656_v48 = vshrl.u32 %v12103_v35, 16  ;;  %v1662_v24 = vshrl.u32 %v12095_v19, 16  ;;  %v1644_v33 = vrot.slane %v1642_v6, 5  ;;  %v1310_v60 = vld [vmem:[#allocation2 + $0xd4] sm:$0x7] }
 0x1cd   : > { %10492 = vmatprep.mubr.bf16.mxu0 %v9995_v31  ;;  %v12126_v34 = vrot.slane %v1634_v59, 4  ;;  %v1648_v54 = vrot.slane %v1646_v58, 4  ;;  %v1667_v28 = vshll.u32 %v12113_v8, 16  ;;  %v1654_v15 = vrot.slane %v1652_v14, 5  ;;  %v1313_v14 = vld [vmem:[#allocation2 + $0xe8] sm:$0x7] }
 0x1ce   : > { %v1630_v62 = vsel %vm11245_vm2, %v1625_v12, %v1629_v63  ;;  %v1658_v4 = vrot.slane %v1656_v48, 4  ;;  %v1671_v2 = vshrl.u32 %v12113_v8, 16  ;;  %v1645_v46 = vsel %vm11245_vm2, %v1637_v42, %v1644_v33 }
 0x1cf   : > { %v1649_v16 = vor.u32 %v1648_v54, %v1644_v33  ;;  %v1669_v55 = vrot.slane %v1667_v28, 5  ;;  %v1677_v9 = vshll.u32 %v12121_v5, 16  ;;  %v1681_v51 = vshrl.u32 %v12121_v5, 16 }
 0x1d0   : > { %v1659_v53 = vor.u32 %v1658_v4, %v1654_v15  ;;  %v1673_v50 = vrot.slane %v1671_v2, 4  ;;  %v1948_v21 = vmax.bf16 %v12088_v7, %v12049_v17  ;;  %v12141_v29 = vmax.bf16 %v1605_v37, %v12043_v39  ;;  %v1316_v4 = vld [vmem:[#allocation2 + $0xfc] sm:$0x7] }
 0x1d1   : > { %v1650_v44 = vrot.slane %v1649_v16, 4  ;;  %v1670_v63 = vsel %vm11245_vm2, %v1662_v24, %v1669_v55  ;;  %v1679_v22 = vrot.slane %v1677_v9, 5  ;;  %v1683_v59 = vrot.slane %v1681_v51, 4 }
 0x1d2   : > { %v1660_v42 = vrot.slane %v1659_v53, 4  ;;  %v1674_v31 = vor.u32 %v1673_v50, %v1669_v55  ;;  %v1950_v6 = vmax.bf16 %v12105_v56, %v1307_v61  ;;  %v1951_v17 = vmax.bf16 %v12109_v0, %v12064_v57 }
 0x1d3   : > { %v1655_v58 = vsel %vm11245_vm2, %v1650_v44, %v1654_v15  ;;  %v12149_v7 = vmax.bf16 %v1630_v62, %v12072_v36  ;;  %v1953_v12 = vmax.bf16 %v12126_v34, %v1310_v60  ;;  %v1684_v48 = vor.u32 %v1683_v59, %v1679_v22  ;;  %v2274_v59 = vld [vmem:[#allocation2 + $0xd0] sm:$0xf] }
 0x1d4   : > { %v1675_v37 = vrot.slane %v1674_v31, 4  ;;  %v1954_v24 = vmax.bf16 %v1645_v46, %v12091_v25  ;;  %v12154_v33 = vmax.bf16 %v1655_v58, %v12101_v23  ;;  %v1956_v56 = vmax.bf16 %v1660_v42, %v1313_v14  ;;  %v12196_v31 = vld [vmem:[#allocation2 + $0xc0] sm:$0xf] }
 0x1d5   : > { %v1957_v54 = vmax.bf16 %v1670_v63, %v12095_v19  ;;  %v2069_v28 = vrot.slane %v12043_v39, 5  ;;  %v2071_v57 = vrot.slane %v12051_v52, 5  ;;  %v1685_v62 = vrot.slane %v1684_v48, 4 }
 0x1d6   : > { %v1680_v0 = vsel %vm11245_vm2, %v1675_v37, %v1679_v22  ;;  %v2074_v34 = vrot.slane %v12072_v36, 5  ;;  %v2076_v15 = vrot.slane %v12078_v11, 5  ;;  %v2079_v19 = vrot.slane %v12101_v23, 5  ;;  %v12208_v37 = vld [vmem:[#allocation2 + $0xd4] sm:$0xf] }
 0x1d7   : > { %v12164_v25 = vmax.bf16 %v1680_v0, %v12113_v8  ;;  %v2070_v2 = vrot.slane %v2069_v28, 4  ;;  %v2073_v46 = vrot.slane %v2071_v57, 4  ;;  %v1959_v16 = vmax.bf16 %v1685_v62, %v1316_v4 }
 0x1d8   : > { %v2075_v39 = vrot.slane %v2074_v34, 4  ;;  %v2078_v55 = vrot.slane %v2076_v15, 4  ;;  %v2081_v52 = vrot.slane %v12103_v35, 5  ;;  %v2080_v36 = vrot.slane %v2079_v19, 4 }
 0x1d9   : > { %v12170_v9 = vsel %vm11300_vm5, %v2070_v2, %v2071_v57  ;;  %v2084_v11 = vrot.slane %v12113_v8, 5  ;;  %v2086_v53 = vrot.slane %v12121_v5, 5  ;;  %v12178_v23 = vmax.bf16 %v2069_v28, %v1948_v21  ;;  %v2271_v8 = vld [vmem:[#allocation2 + $0xbc] sm:$0xf] }
 0x1da   : > { %v12176_v50 = vsel %vm11300_vm5, %v2075_v39, %v2076_v15  ;;  %v2083_v51 = vrot.slane %v2081_v52, 4  ;;  %v12184_v35 = vsel %vm11300_vm5, %v2080_v36, %v2081_v52  ;;  %v12186_v22 = vmax.bf16 %v2073_v46, %v1950_v6  ;;  %v12222_v36 = vld [vmem:[#allocation2 + $0xd8] sm:$0x1]  ;;  %v12234_v6 = vld [vmem:[#allocation2 + $0xfc] sm:$0xf] }
 0x1db   : > { %v2085_v44 = vrot.slane %v2084_v11, 4  ;;  %v2088_v63 = vrot.slane %v2086_v53, 4  ;;  %v12188_v5 = vmax.bf16 %v2074_v34, %v1951_v17  ;;  %v12192_v42 = vmax.bf16 %v2078_v55, %v1953_v12 }
 0x1dc   : > { %v12194_v21 = vmax.bf16 %v2079_v19, %v1954_v24  ;;  %v12204_v14 = vmax.bf16 %v2083_v51, %v1956_v56  ;;  %v12206_v17 = vmax.bf16 %v2084_v11, %v1957_v54  ;;  %v12214_v24 = vld [vmem:[#allocation2 + $0xc4] sm:$0x1]  ;;  %v2524_v28 = vshrl.u32 %v2271_v8, 16  ;;  %v12220_v19 = vld [vmem:[#allocation2 + $0xe8] sm:$0xf] }
 0x1dd   : > { %v12200_v58 = vsel %vm11300_vm5, %v2085_v44, %v2086_v53  ;;  %v12212_v48 = vmax.bf16 %v2088_v63, %v1959_v16  ;;  %v2527_v57 = vshll.u32 %v2271_v8, 16  ;;  %v2533_v0 = vshrl.u32 %v12196_v31, 16  ;;  %v2277_v54 = vld [vmem:[#allocation2 + $0xe4] sm:$0xf] }
 0x1de   : > { %v2536_v62 = vshll.u32 %v12196_v31, 16  ;;  %v2543_v56 = vshll.u32 %v12214_v24, 16  ;;  %v2548_v34 = vshrl.u32 %v2274_v59, 16  ;;  %v2526_v15 = vrot.slane %v2524_v28, 5 }
 0x1df   : > { %v2529_v4 = vrot.slane %v2527_v57, 6  ;;  %v2551_v2 = vshll.u32 %v2274_v59, 16  ;;  %v2557_v46 = vshrl.u32 %v12208_v37, 16  ;;  %v2535_v16 = vrot.slane %v2533_v0, 5 }
 0x1e0   : > { %v2538_v39 = vrot.slane %v2536_v62, 6  ;;  %v2545_v55 = vrot.slane %v2543_v56, 6  ;;  %v2550_v52 = vrot.slane %v2548_v34, 5  ;;  %v2560_v44 = vshll.u32 %v12208_v37, 16  ;;  %v2280_v56 = vld [vmem:[#allocation2 + $0xf8] sm:$0xf] }
 0x1e1   : > { %v12224_v11 = vor.u32 %v2529_v4, %v2526_v15  ;;  %v2553_v53 = vrot.slane %v2551_v2, 6  ;;  %v2559_v51 = vrot.slane %v2557_v46, 5  ;;  %v2567_v8 = vshll.u32 %v12222_v36, 16  ;;  %v12232_v46 = vld [vmem:[#allocation2 + $0xec] sm:$0x1] }
 0x1e2   : > { %v2539_v63 = vor.u32 %v2538_v39, %v2535_v16  ;;  %v2572_v59 = vshrl.u32 %v2277_v54, 16  ;;  %v2575_v28 = vshll.u32 %v2277_v54, 16  ;;  %v2562_v0 = vrot.slane %v2560_v44, 6 }
 0x1e3   : > { %v2531_v57 = vrot.slane %v12224_v11, 4  ;;  %v12229_v12 = vor.u32 %v2553_v53, %v2550_v52  ;;  %v2581_v62 = vshrl.u32 %v12220_v19, 16  ;;  %v2569_v15 = vrot.slane %v2567_v8, 6 }
 0x1e4   : > { %v2541_v34 = vrot.slane %v2539_v63, 4  ;;  %v2574_v4 = vrot.slane %v2572_v59, 5  ;;  %v2577_v2 = vrot.slane %v2575_v28, 6  ;;  %v2563_v39 = vor.u32 %v2562_v0, %v2559_v51 }
 0x1e5   : > { %v2540_v16 = vsel %vm11329_vm8, %v2531_v57, %v2539_v63  ;;  %v2555_v54 = vrot.slane %v12229_v12, 4  ;;  %v2583_v52 = vrot.slane %v2581_v62, 5  ;;  %v2584_v8 = vshll.u32 %v12220_v19, 16 }
 0x1e6   : > { %v12241_v53 = vsel %vm11329_vm8, %v2541_v34, %v2545_v55  ;;  %v12243_v44 = vor.u32 %v2577_v2, %v2574_v4  ;;  %v2591_v59 = vshll.u32 %v12232_v46, 16  ;;  %v2565_v60 = vrot.slane %v2563_v39, 4  ;;  %v12251_v55 = vld [vmem:[#allocation2 + $0x100] sm:$0x1] }
 0x1e7   : > { %v2564_v28 = vsel %vm11329_vm8, %v2555_v54, %v2563_v39  ;;  %v2596_v61 = vshrl.u32 %v2280_v56, 16  ;;  %v2599_v63 = vshll.u32 %v2280_v56, 16  ;;  %v2586_v51 = vrot.slane %v2584_v8, 6 }
 0x1e8   : > { %v2579_v57 = vrot.slane %v12243_v44, 4  ;;  %v2593_v0 = vrot.slane %v2591_v59, 6  ;;  %v2605_v62 = vshrl.u32 %v12234_v6, 16  ;;  %v12255_v34 = vsel %vm11329_vm8, %v2565_v60, %v2569_v15 }
 0x1e9   : > { %v2598_v4 = vrot.slane %v2596_v61, 5  ;;  %v2601_v2 = vrot.slane %v2599_v63, 6  ;;  %v2608_v1 = vshll.u32 %v12234_v6, 16  ;;  %v2587_v54 = vor.u32 %v2586_v51, %v2583_v52  ;;  %v2916_v51 = vld [vmem:[#allocation2 + $0xbc] sm:$0xe] }
 0x1ea   : > { %v2607_v39 = vrot.slane %v2605_v62, 5  ;;  %v2615_v56 = vshll.u32 %v12251_v55, 16  ;;  %v2874_v8 = vmax.bf16 %v12224_v11, %v12178_v23  ;;  %v14995_v20 = vmax.bf16 %v12170_v9, %v12141_v29  ;;  %v2917_v9 = vld [vmem:[#allocation2 + $0xd0] sm:$0xe] }
 0x1eb   : > { %v12261_v59 = vor.u32 %v2601_v2, %v2598_v4  ;;  %v2610_v26 = vrot.slane %v2608_v1, 6  ;;  %v2876_v61 = vmax.bf16 %v12241_v53, %v12186_v22  ;;  %v2588_v60 = vsel %vm11329_vm8, %v2579_v57, %v2587_v54  ;;  %v2918_v53 = vld [vmem:[#allocation2 + $0xe4] sm:$0xe] }
 0x1ec   : > { %v2875_v18 = vmax.bf16 %v2540_v16, %v14995_v20  ;;  %v2589_v15 = vrot.slane %v2587_v54, 4  ;;  %v2617_v52 = vrot.slane %v2615_v56, 6  ;;  %v2877_v63 = vmax.bf16 %v12229_v12, %v12188_v5 }
 0x1ed   : > { %v2603_v23 = vrot.slane %v12261_v59, 4  ;;  %v2611_v11 = vor.u32 %v2610_v26, %v2607_v39  ;;  %v14996_v1 = vmax.bf16 %v12176_v50, %v12149_v7  ;;  %v2879_v20 = vmax.bf16 %v12255_v34, %v12192_v42 }
 0x1ee   : > { %v2594_v22 = vsel %vm11329_vm8, %v2589_v15, %v2593_v0  ;;  %v2880_v16 = vmax.bf16 %v12243_v44, %v12194_v21  ;;  %v14997_v5 = vmax.bf16 %v12184_v35, %v12154_v33  ;;  %v2883_v26 = vmax.bf16 %v12261_v59, %v12206_v17  ;;  %v2919_v44 = vld [vmem:[#allocation2 + $0xf8] sm:$0xe] }
 0x1ef   : > { %v2878_v29 = vmax.bf16 %v2564_v28, %v14996_v1  ;;  %v2612_v7 = vsel %vm11329_vm8, %v2603_v23, %v2611_v11  ;;  %v2613_v50 = vrot.slane %v2611_v11, 4  ;;  %v2882_v42 = vmax.bf16 %v2594_v22, %v12204_v14 }
 0x1f0   : > { %v2881_v12 = vmax.bf16 %v2588_v60, %v14997_v5  ;;  %v3053_v28 = vrot.slane %v2916_v51, 6  ;;  %v14998_v57 = vmax.bf16 %v12200_v58, %v12164_v25  ;;  %v3055_v21 = vrot.slane %v12196_v31, 6  ;;  %v1318_v5 = vld [vmem:[#allocation2 + $0x10c] sm:$0xf] }
 0x1f1   : > { %v3058_v33 = vrot.slane %v12214_v24, 6  ;;  %v3060_v35 = vrot.slane %v2917_v9, 6  ;;  %v2618_v17 = vsel %vm11329_vm8, %v2613_v50, %v2617_v52  ;;  %v3062_v34 = vrot.slane %v12208_v37, 6 }
 0x1f2   : > { %v2884_v0 = vmax.bf16 %v2612_v7, %v14998_v57  ;;  %v3054_v62 = vrot.slane %v3053_v28, 4  ;;  %v3065_v14 = vrot.slane %v12222_v36, 6  ;;  %v2885_v4 = vmax.bf16 %v2618_v17, %v12212_v48 }
 0x1f3   : > { %v3057_v2 = vrot.slane %v3055_v21, 4  ;;  %v3061_v54 = vrot.slane %v3060_v35, 4  ;;  %v3067_v25 = vrot.slane %v2918_v53, 6  ;;  %v3064_v58 = vrot.slane %v3062_v34, 4 }
 0x1f4   : > { %v3056_v31 = vsel %vm11417_vm11, %v3054_v62, %v3055_v21  ;;  %v3069_v24 = vrot.slane %v12220_v19, 6  ;;  %v3072_v39 = vrot.slane %v12232_v46, 6  ;;  %v3074_v59 = vrot.slane %v2919_v44, 6 }
 0x1f5   : > { %v3059_v56 = vsel %vm11417_vm11, %v3057_v2, %v3058_v33  ;;  %v3063_v37 = vsel %vm11417_vm11, %v3061_v54, %v3062_v34  ;;  %v3068_v36 = vrot.slane %v3067_v25, 4  ;;  %v3066_v48 = vsel %vm11417_vm11, %v3064_v58, %v3065_v14 }
 0x1f6   : > { %v3071_v60 = vrot.slane %v3069_v24, 4  ;;  %v3076_v15 = vrot.slane %v12234_v6, 6  ;;  %v3079_v52 = vrot.slane %v12251_v55, 6  ;;  %v3075_v46 = vrot.slane %v3074_v59, 4 }
 0x1f7   : > { %v3070_v19 = vsel %vm11417_vm11, %v3068_v36, %v3069_v24  ;;  %v12314_v51 = vmax.bf16 %v3053_v28, %v2874_v8  ;;  %v12316_v23 = vmax.bf16 %v3056_v31, %v2875_v18  ;;  %v12320_v9 = vmax.bf16 %v3059_v56, %v2876_v61  ;;  %v1317_v18 = vld [vmem:[#allocation2 + $0x108] sm:$0x8]  ;;  %v1351_v28 = vld [vmem:[#allocation2 + $0x110] sm:$0xf]  ;;  %v2283_v31 = vld [vmem:[#allocation2 + $0x10c] sm:$0xf] }
 0x1f8   : > { %v3073_v11 = vsel %vm11417_vm11, %v3071_v60, %v3072_v39  ;;  %v3078_v1 = vrot.slane %v3076_v15, 4  ;;  %v12322_v22 = vmax.bf16 %v3060_v35, %v2877_v63  ;;  %v3077_v6 = vsel %vm11417_vm11, %v3075_v46, %v3076_v15 }
 0x1f9   : > { %v12326_v55 = vmax.bf16 %v3063_v37, %v2878_v29  ;;  %v12328_v7 = vmax.bf16 %v3066_v48, %v2879_v20  ;;  %v12330_v8 = vmax.bf16 %v3067_v25, %v2880_v16  ;;  %v12334_v53 = vmax.bf16 %v3070_v19, %v2881_v12 }
 0x1fa   : > { %v3080_v50 = vsel %vm11417_vm11, %v3078_v1, %v3079_v52  ;;  %v12336_v61 = vmax.bf16 %v3073_v11, %v2882_v42  ;;  %v12338_v63 = vmax.bf16 %v3074_v59, %v2883_v26  ;;  %v12340_v57 = vmax.bf16 %v3077_v6, %v2884_v0 }
 0x1fb   : > { %v12342_v21 = vmax.bf16 %v3080_v50, %v2885_v4  ;;  %v3274_v29 = vmax.bf16 %v12314_v51, %v12057_v49  ;;  %v3275_v20 = vmax.bf16 %v12316_v23, %v12069_v41  ;;  %v3276_v16 = vmax.bf16 %v12320_v9, %v12076_v30  ;;  %v2284_v50 = vld [vmem:[#allocation2 + $0x110] sm:$0xf] }
 0x1fc   : > { %v1687_v12 = vshrl.u32 %v1317_v18, 16  ;;  %v1692_v33 = vshll.u32 %v1318_v5, 16  ;;  %v1696_v42 = vshrl.u32 %v1318_v5, 16  ;;  %v1702_v0 = vshll.u32 %v1351_v28, 16 }
 0x1fd   : > { %v3322_v26 = vmax.bf16 %v3274_v29, %v12322_v22  ;;  %v3323_v35 = vmax.bf16 %v3275_v20, %v12326_v55  ;;  %v1706_v17 = vshrl.u32 %v1351_v28, 16  ;;  %v3324_v44 = vmax.bf16 %v3276_v16, %v12328_v7  ;;  %v1319_v20 = vld [vmem:[#allocation2 + $0x110] sm:$0x7] }
 0x1fe   : > { %v1694_v62 = vrot.slane %v1692_v33, 5  ;;  %v1698_v34 = vrot.slane %v1696_v42, 4  ;;  %v2089_v14 = vrot.slane %v1318_v5, 5  ;;  %v1704_v54 = vrot.slane %v1702_v0, 5 }
 0x1ff   : > { %v3370_v4 = vmax.bf16 %v3322_v26, %v12330_v8  ;;  %v3371_v2 = vmax.bf16 %v3323_v35, %v12334_v53  ;;  %v1708_v25 = vrot.slane %v1706_v17, 4  ;;  %v3372_v58 = vmax.bf16 %v3324_v44, %v12336_v61  ;;  %v2285_v35 = vld [vmem:[#allocation2 + $0x114] sm:$0x1] }
 0x200   : > { %v1695_v24 = vsel %vm11245_vm2, %v1687_v12, %v1694_v62  ;;  %v1699_v39 = vor.u32 %v1698_v34, %v1694_v62  ;;  %v2090_v56 = vrot.slane %v2089_v14, 4  ;;  %v2091_v52 = vrot.slane %v1351_v28, 5  ;;  %v2920_v34 = vld [vmem:[#allocation2 + $0x10c] sm:$0xe] }
 0x201   : > { %v3418_v37 = vmax.bf16 %v3370_v4, %v12338_v63  ;;  %v3419_v36 = vmax.bf16 %v3371_v2, %v12340_v57  ;;  %v1709_v59 = vor.u32 %v1708_v25, %v1704_v54  ;;  %v1960_v48 = vmax.bf16 %v1695_v24, %v1317_v18 }
 0x202   : > { %v3420_v60 = vmax.bf16 %v3372_v58, %v12342_v21  ;;  %v1700_v15 = vrot.slane %v1699_v39, 4  ;;  %v2620_v19 = vshrl.u32 %v2283_v31, 16  ;;  %v2092_v12 = vsel %vm11300_vm5, %v2090_v56, %v2091_v52 }
 0x203   : > { %v9967_v46 = vrot.slane %v3418_v37, 11  ;;  %v3583_v11 = vrot.slane %v3419_v36, 7  ;;  %v1710_v1 = vrot.slane %v1709_v59, 4  ;;  %v2223_v6 = vmax.bf16 %v2089_v14, %v1960_v48 }
 0x204   : > { %v3586_v29 = vrot.slane %v3420_v60, 7  ;;  %v1705_v16 = vsel %vm11245_vm2, %v1700_v15, %v1704_v54  ;;  %v2093_v33 = vrot.slane %v2091_v52, 4  ;;  %v2622_v0 = vrot.slane %v2620_v19, 5 }
 0x205   : > { %v3584_v18 = vsel %vm11875_vm14, %v9967_v46, %v3583_v11  ;;  %v3585_v42 = vrot.slane %v3583_v11, 4  ;;  %v1961_v28 = vmax.bf16 %v1705_v16, %v1318_v5  ;;  %v1962_v26 = vmax.bf16 %v1710_v1, %v1319_v20 }
 0x206   : > { %4039 = vst [vmem:[#allocation2 + $0xd0] sm:$0xf] %v3584_v18  ;;  %v2623_v17 = vshll.u32 %v2283_v31, 16  ;;  %v2629_v44 = vshrl.u32 %v2284_v50, 16  ;;  %v2632_v62 = vshll.u32 %v2284_v50, 16  ;;  %v2639_v54 = vshll.u32 %v2285_v35, 16 }
 0x207   : > { %v3587_v14 = vsel %vm11875_vm14, %v3585_v42, %v3586_v29  ;;  %v2224_v4 = vmax.bf16 %v2092_v12, %v1961_v28  ;;  %v2225_v2 = vmax.bf16 %v2093_v33, %v1962_v26  ;;  %v3081_v56 = vrot.slane %v2920_v34, 6 }
 0x208   : > { %v9999_v25 = vcombine.low %v3584_v18, %v3587_v14  ;;  %4040 = vst [vmem:[#allocation2 + $0xd4] sm:$0xf] %v3587_v14  ;;  %v2625_v58 = vrot.slane %v2623_v17, 6  ;;  %v2631_v24 = vrot.slane %v2629_v44, 5  ;;  %v2634_v39 = vrot.slane %v2632_v62, 6  ;;  %v14999_v62 = vld [vmem:[#allocation4_spill] sm:$0xff] }
 0x209   : > { %v2641_v5 = vrot.slane %v2639_v54, 6  ;;  %v3083_v37 = vrot.slane %v2284_v50, 6  ;;  %v3086_v36 = vrot.slane %v2285_v35, 6  ;;  %v3277_v48 = vmax.bf16 %v12322_v22, %v12314_v51  ;;  %v15000_v14 = vld [vmem:[#allocation8_spill] sm:$0xff] }
 0x20a   : > { %10500 = vmatprep.mubr.bf16.mxu1 %v9999_v25  ;;  %v2626_v31 = vor.u32 %v2625_v58, %v2622_v0  ;;  %v2635_v59 = vor.u32 %v2634_v39, %v2631_v24  ;;  %v3278_v60 = vmax.bf16 %v12326_v55, %v12316_v23  ;;  %v3082_v15 = vrot.slane %v3081_v56, 4 }
 0x20b   : > { %v3085_v52 = vrot.slane %v3083_v37, 4  ;;  %v3279_v19 = vmax.bf16 %v12328_v7, %v12320_v9  ;;  %v3265_v46 = vmax.bf16 %v11954_v32, %v11904_v43  ;;  %v3325_v29 = vmax.bf16 %v3277_v48, %v12330_v8 }
 0x20c   : > { %v2627_v11 = vrot.slane %v2626_v31, 4  ;;  %v2637_v1 = vrot.slane %v2635_v59, 4  ;;  %v2886_v50 = vmax.bf16 %v2626_v31, %v2223_v6  ;;  %v3084_v20 = vsel %vm11417_vm11, %v3082_v15, %v3083_v37 }
 0x20d   : > { %v3087_v16 = vsel %vm11417_vm11, %v3085_v52, %v3086_v36  ;;  %v3326_v12 = vmax.bf16 %v3278_v60, %v12334_v53  ;;  %v3327_v33 = vmax.bf16 %v3279_v19, %v12336_v61  ;;  %v3373_v6 = vmax.bf16 %v3325_v29, %v12338_v63 }
 0x20e   : > { %v2636_v18 = vsel %vm11329_vm8, %v2627_v11, %v2635_v59  ;;  %v2642_v43 = vsel %vm11329_vm8, %v2637_v1, %v2641_v5  ;;  %v12388_v42 = vmax.bf16 %v3081_v56, %v2886_v50  ;;  %v3266_v44 = vmax.bf16 %v11973_v13, %v11924_v38  ;;  %v15002_v56 = vld [vmem:[#allocation7_spill] sm:$0xff]  ;;  %v1320_v11 = vld [vmem:[#allocation2 + $0x11c] sm:$0x8] }
 0x20f   : > { %v2887_v28 = vmax.bf16 %v2636_v18, %v2224_v4  ;;  %v2888_v26 = vmax.bf16 %v2642_v43, %v2225_v2  ;;  %v3374_v35 = vmax.bf16 %v3326_v12, %v12340_v57  ;;  %v3375_v0 = vmax.bf16 %v3327_v33, %v12342_v21  ;;  %v15001_v2 = vld [vmem:[#allocation5_spill] sm:$0xff] }
 0x210   : > { %v3421_v17 = vmax.bf16 %v3373_v6, %v12388_v42  ;;  %v3267_v34 = vmax.bf16 %v14999_v62, %v11930_v47  ;;  %v3313_v54 = vmax.bf16 %v3265_v46, %v15000_v14  ;;  %v3268_v4 = vmax.bf16 %v15000_v14, %v11954_v32 }
 0x211   : > { %v12399_v25 = vmax.bf16 %v3084_v20, %v2887_v28  ;;  %v12401_v58 = vmax.bf16 %v3087_v16, %v2888_v26  ;;  %v3269_v24 = vmax.bf16 %v15001_v2, %v11973_v13  ;;  %v3314_v5 = vmax.bf16 %v3266_v44, %v15001_v2  ;;  %v12424_v16 = vld [vmem:[#allocation2 + $0x120] sm:$0xf] }
 0x212   : > { %v9968_v39 = vrot.slane %v3421_v17, 11  ;;  %v3315_v38 = vmax.bf16 %v3267_v34, %v15002_v56  ;;  %v3361_v37 = vmax.bf16 %v3313_v54, %v12057_v49  ;;  %v3270_v31 = vmax.bf16 %v15002_v56, %v14999_v62 }
 0x213   : > { %v3422_v47 = vmax.bf16 %v3374_v35, %v12399_v25  ;;  %v3423_v36 = vmax.bf16 %v3375_v0, %v12401_v58  ;;  %v3316_v59 = vmax.bf16 %v3268_v4, %v12057_v49  ;;  %v3362_v32 = vmax.bf16 %v3314_v5, %v12069_v41  ;;  %v1352_v35 = vld [vmem:[#allocation2 + $0x124] sm:$0xf]  ;;  %v10774_v4 = vld [vmem:[%s14935_s3 + $0x88] sm:$0xff]  }
 0x214   : > { %v3363_v13 = vmax.bf16 %v3315_v38, %v12076_v30  ;;  %v3409_v48 = vmax.bf16 %v3361_v37, %v12314_v51  ;;  %v3317_v60 = vmax.bf16 %v3269_v24, %v12069_v41  ;;  %v3318_v19 = vmax.bf16 %v3270_v31, %v12076_v30 }
 0x215   : > { %v3590_v15 = vrot.slane %v3422_v47, 7  ;;  %v3593_v52 = vrot.slane %v3423_v36, 7  ;;  %v3364_v46 = vmax.bf16 %v3316_v59, %v12314_v51  ;;  %v3410_v1 = vmax.bf16 %v3362_v32, %v12316_v23 }
 0x216   : > { %v3411_v50 = vmax.bf16 %v3363_v13, %v12320_v9  ;;  %v9964_v29 = vrot.slane %v3409_v48, 11  ;;  %v3365_v20 = vmax.bf16 %v3317_v60, %v12316_v23  ;;  %v3366_v18 = vmax.bf16 %v3318_v19, %v12320_v9  ;;  %v2286_v48 = vld [vmem:[#allocation2 + $0x120] sm:$0xf] }
 0x217   : > { %v3591_v12 = vsel %vm11875_vm14, %v9968_v39, %v3590_v15  ;;  %v3592_v33 = vrot.slane %v3590_v15, 4  ;;  %v3412_v43 = vmax.bf16 %v3364_v46, %v12322_v22  ;;  %v3562_v6 = vrot.slane %v3410_v1, 7  ;;  %v11051_v60 = vld [vmem:[%s14935_s3 + $0x80] sm:$0xff]  }
 0x218   : > { %4041 = vst [vmem:[#allocation2 + $0xe4] sm:$0xf] %v3591_v12  ;;  %v3565_v28 = vrot.slane %v3411_v50, 7  ;;  %v3413_v26 = vmax.bf16 %v3365_v20, %v12326_v55  ;;  %v1712_v0 = vshrl.u32 %v1320_v11, 16  ;;  %v3414_v44 = vmax.bf16 %v3366_v18, %v12328_v7 }
 0x219   : > { %v3594_v17 = vsel %vm11875_vm14, %v3592_v33, %v3593_v52  ;;  %v9965_v62 = vrot.slane %v3412_v43, 11  ;;  %v1717_v34 = vshll.u32 %v12424_v16, 16  ;;  %v3563_v24 = vsel %vm11875_vm14, %v9964_v29, %v3562_v6  ;;  %v10775_v33 = vld [vmem:[%s14935_s3 + $0x90] sm:$0xff]  }
 0x21a   : > { %v10000_v54 = vcombine.low %v3591_v12, %v3594_v17  ;;  %4042 = vst [vmem:[#allocation2 + $0xe8] sm:$0xf] %v3594_v17  ;;  %v3564_v39 = vrot.slane %v3562_v6, 4  ;;  %v3569_v5 = vrot.slane %v3413_v26, 7  ;;  %4033 = vst [vmem:[#allocation2 + $0x94] sm:$0xf] %v3563_v24 }
 0x21b   : > { %v3572_v38 = vrot.slane %v3414_v44, 7  ;;  %v1719_v37 = vrot.slane %v1717_v34, 5  ;;  %v1721_v47 = vshrl.u32 %v12424_v16, 16  ;;  %v1727_v36 = vshll.u32 %v1352_v35, 16  ;;  %v2287_v12 = vld [vmem:[#allocation2 + $0x124] sm:$0xf] }
 0x21c   : > { %10501 = vmatmul.mubr.bf16.vlgmr.msra.gmra.mrb[0].mxu1 %v10000_v54  ;;  %v3566_v31 = vsel %vm11875_vm14, %v3564_v39, %v3565_v28  ;;  %v3570_v59 = vsel %vm11875_vm14, %v9965_v62, %v3569_v5  ;;  %v3571_v32 = vrot.slane %v3569_v5, 4  ;;  %v1731_v13 = vshrl.u32 %v1352_v35, 16  ;;  %v2921_v62 = vld [vmem:[#allocation2 + $0x120] sm:$0xe] }
 0x21d   : > { %10517 = vmatpush3.bf16.msra.mxu1 %v11051_v60  ;;  %v9996_v15 = vcombine.low %v3563_v24, %v3566_v31  ;;  %4034 = vst [vmem:[#allocation2 + $0x98] sm:$0xf] %v3566_v31  ;;  %4035 = vst [vmem:[#allocation2 + $0xa8] sm:$0xf] %v3570_v59  ;;  %v1720_v52 = vsel %vm11245_vm2, %v1712_v0, %v1719_v37  ;;  %v1723_v19 = vrot.slane %v1721_v47, 4  ;;  %v1729_v46 = vrot.slane %v1727_v36, 5 }
 0x21e   : > { %10518 = vmatprep.subr.bf16.mxu1 %v10774_v4  ;;  %v3573_v1 = vsel %vm11875_vm14, %v3571_v32, %v3572_v38  ;;  %v1733_v50 = vrot.slane %v1731_v13, 4  ;;  %v1963_v29 = vmax.bf16 %v1720_v52, %v1320_v11  ;;  %v2094_v20 = vrot.slane %v12424_v16, 5  ;;  %v2288_v38 = vld [vmem:[#allocation2 + $0x128] sm:$0x1]  ;;  %v1322_v36 = vld [vmem:[#allocation2 + $0x124] sm:$0x7] }
 0x21f   : > { %10493 = vmatmul.mubr.bf16.gmra.mrb[40].mxu0 %v9996_v15  ;;  %v9997_v18 = vcombine.low %v3570_v59, %v3573_v1  ;;  %4036 = vst [vmem:[#allocation2 + $0xac] sm:$0xf] %v3573_v1  ;;  %v1724_v43 = vor.u32 %v1723_v19, %v1719_v37  ;;  %v2096_v6 = vrot.slane %v1352_v35, 5  ;;  %v2644_v28 = vshrl.u32 %v2286_v48, 16  ;;  %v10776_v35 = vld [vmem:[%s14935_s3 + $0x98] sm:$0xff]  }
 0x220   : > { %v1734_v26 = vor.u32 %v1733_v50, %v1729_v46  ;;  %v2095_v0 = vrot.slane %v2094_v20, 4  ;;  %v2226_v17 = vmax.bf16 %v2094_v20, %v1963_v29  ;;  %v2647_v44 = vshll.u32 %v2286_v48, 16 }
 0x221   : > { %10519 = vmatpush3.bf16.msra.mxu1 %v10774_v4  ;;  %10496 = vmatprep.mubr.bf16.mxu0 %v9997_v18  ;;  %v1725_v11 = vrot.slane %v1724_v43, 4  ;;  %v2098_v34 = vrot.slane %v2096_v6, 4  ;;  %v2646_v54 = vrot.slane %v2644_v28, 5  ;;  %v2653_v24 = vshrl.u32 %v2287_v12, 16 }
 0x222   : > { %v1735_v39 = vrot.slane %v1734_v26, 4  ;;  %v2097_v5 = vsel %vm11300_vm5, %v2095_v0, %v2096_v6  ;;  %v2649_v47 = vrot.slane %v2647_v44, 6  ;;  %v2656_v37 = vshll.u32 %v2287_v12, 16  ;;  %10520 = vmatprep.subr.bf16.mxu1 %v10775_v33  ;;  %v12471_v0 = vld [vmem:[#allocation2 + $0x134] sm:$0xf] }
 0x223   : > { %v1730_v4 = vsel %vm11245_vm2, %v1725_v11, %v1729_v46  ;;  %v2655_v31 = vrot.slane %v2653_v24, 5  ;;  %v2663_v59 = vshll.u32 %v2288_v38, 16  ;;  %v3088_v32 = vrot.slane %v2921_v62, 6  ;;  %v10777_v46 = vld [vmem:[%s14935_s3 + $0xa0] sm:$0xff]  }
 0x224   : > { %v1964_v13 = vmax.bf16 %v1730_v4, %v12424_v16  ;;  %v1965_v48 = vmax.bf16 %v1735_v39, %v1322_v36  ;;  %v2650_v60 = vor.u32 %v2649_v47, %v2646_v54  ;;  %v2658_v15 = vrot.slane %v2656_v37, 6  ;;  %v1353_v39 = vld [vmem:[#allocation2 + $0x138] sm:$0xf]  ;;  %v10778_v36 = vld [vmem:[%s14935_s3 + $0xa8] sm:$0xff]  }
 0x225   : > { %v2665_v52 = vrot.slane %v2663_v59, 6  ;;  %v3089_v19 = vrot.slane %v3088_v32, 4  ;;  %v3090_v1 = vrot.slane %v2287_v12, 6  ;;  %v3093_v50 = vrot.slane %v2288_v38, 6  ;;  %10521 = vmatpush3.bf16.msra.mxu1 %v10775_v33  ;;  %v1323_v12 = vld [vmem:[#allocation2 + $0x130] sm:$0x8] }
 0x226   : > { %v2227_v29 = vmax.bf16 %v2097_v5, %v1964_v13  ;;  %v2228_v20 = vmax.bf16 %v2098_v34, %v1965_v48  ;;  %v2651_v18 = vrot.slane %v2650_v60, 4  ;;  %v2659_v43 = vor.u32 %v2658_v15, %v2655_v31  ;;  %10522 = vmatprep.subr.bf16.mxu1 %v10776_v35 }
 0x227   : > { %v2889_v6 = vmax.bf16 %v2650_v60, %v2226_v17  ;;  %v3091_v16 = vsel %vm11417_vm11, %v3089_v19, %v3090_v1  ;;  %v3092_v28 = vrot.slane %v3090_v1, 4  ;;  %v3280_v26 = vmax.bf16 %v12330_v8, %v12322_v22 }
 0x228   : > { %v2660_v33 = vsel %vm11329_vm8, %v2651_v18, %v2659_v43  ;;  %v2661_v44 = vrot.slane %v2659_v43, 4  ;;  %v3281_v62 = vmax.bf16 %v12334_v53, %v12326_v55  ;;  %v3282_v17 = vmax.bf16 %v12336_v61, %v12328_v7  ;;  %v2289_v43 = vld [vmem:[#allocation2 + $0x134] sm:$0xf] }
 0x229   : > { %v2890_v11 = vmax.bf16 %v2660_v33, %v2227_v29  ;;  %v3094_v34 = vsel %vm11417_vm11, %v3092_v28, %v3093_v50  ;;  %v12481_v54 = vmax.bf16 %v3088_v32, %v2889_v6  ;;  %v3328_v24 = vmax.bf16 %v3280_v26, %v12338_v63  ;;  %10523 = vmatpush3.bf16.msra.mxu1 %v10776_v35  ;;  %v10779_v6 = vld [vmem:[%s14935_s3 + $0xb0] sm:$0xff]  }
 0x22a   : > { %v2666_v5 = vsel %vm11329_vm8, %v2661_v44, %v2665_v52  ;;  %v3329_v38 = vmax.bf16 %v3281_v62, %v12340_v57  ;;  %v3330_v47 = vmax.bf16 %v3282_v17, %v12342_v21  ;;  %v1737_v37 = vshrl.u32 %v1323_v12, 16  ;;  %10524 = vmatprep.subr.bf16.mxu1 %v10777_v46 }
 0x22b   : > { %v2891_v4 = vmax.bf16 %v2666_v5, %v2228_v20  ;;  %v12491_v31 = vmax.bf16 %v3091_v16, %v2890_v11  ;;  %v3376_v59 = vmax.bf16 %v3328_v24, %v12388_v42  ;;  %v1742_v35 = vshll.u32 %v12471_v0, 16  ;;  %v2290_v5 = vld [vmem:[#allocation2 + $0x138] sm:$0xf] }
 0x22c   : > { %v3377_v32 = vmax.bf16 %v3329_v38, %v12399_v25  ;;  %v3378_v13 = vmax.bf16 %v3330_v47, %v12401_v58  ;;  %v1746_v48 = vshrl.u32 %v12471_v0, 16  ;;  %v1752_v60 = vshll.u32 %v1353_v39, 16 }
 0x22d   : > { %v12498_v15 = vmax.bf16 %v3094_v34, %v2891_v4  ;;  %v3424_v52 = vmax.bf16 %v3376_v59, %v12481_v54  ;;  %v1744_v19 = vrot.slane %v1742_v35, 5  ;;  %v1756_v1 = vshrl.u32 %v1353_v39, 16  ;;  %10525 = vmatpush3.bf16.msra.mxu1 %v10777_v46 }
 0x22e   : > { %v3425_v50 = vmax.bf16 %v3377_v32, %v12491_v31  ;;  %v1748_v29 = vrot.slane %v1746_v48, 4  ;;  %v1754_v20 = vrot.slane %v1752_v60, 5  ;;  %v2099_v18 = vrot.slane %v12471_v0, 5  ;;  %10526 = vmatprep.subr.bf16.mxu1 %v10778_v36  ;;  %v2922_v48 = vld [vmem:[#allocation2 + $0x134] sm:$0xe] }
 0x22f   : > { %v3426_v16 = vmax.bf16 %v3378_v13, %v12498_v15  ;;  %v9969_v28 = vrot.slane %v3424_v52, 11  ;;  %v1745_v26 = vsel %vm11245_vm2, %v1737_v37, %v1744_v19  ;;  %v1758_v33 = vrot.slane %v1756_v1, 4  ;;  %v1325_v60 = vld [vmem:[#allocation2 + $0x138] sm:$0x7] }
 0x230   : > { %v3597_v46 = vrot.slane %v3425_v50, 7  ;;  %v1749_v44 = vor.u32 %v1748_v29, %v1744_v19  ;;  %v1966_v62 = vmax.bf16 %v1745_v26, %v1323_v12  ;;  %v2100_v17 = vrot.slane %v2099_v18, 4 }
 0x231   : > { %v3600_v11 = vrot.slane %v3426_v16, 7  ;;  %v1759_v34 = vor.u32 %v1758_v33, %v1754_v20  ;;  %v2101_v24 = vrot.slane %v1353_v39, 5  ;;  %v2668_v38 = vshrl.u32 %v2289_v43, 16  ;;  %10527 = vmatpush3.bf16.msra.mxu1 %v10778_v36 }
 0x232   : > { %v3598_v47 = vsel %vm11875_vm14, %v9969_v28, %v3597_v46  ;;  %v3599_v4 = vrot.slane %v3597_v46, 4  ;;  %v1750_v59 = vrot.slane %v1749_v44, 4  ;;  %v2229_v35 = vmax.bf16 %v2099_v18, %v1966_v62  ;;  %10528 = vmatprep.subr.bf16.mxu1 %v10779_v6  ;;  %v2291_v18 = vld [vmem:[#allocation2 + $0x13c] sm:$0x1] }
 0x233   : > { %4043 = vst [vmem:[#allocation2 + $0xf8] sm:$0xf] %v3598_v47  ;;  %v1760_v37 = vrot.slane %v1759_v34, 4  ;;  %v2102_v32 = vsel %vm11300_vm5, %v2100_v17, %v2101_v24  ;;  %v2103_v12 = vrot.slane %v2101_v24, 4  ;;  %v2670_v13 = vrot.slane %v2668_v38, 5 }
 0x234   : > { %v3601_v39 = vsel %vm11875_vm14, %v3599_v4, %v3600_v11  ;;  %v1755_v36 = vsel %vm11245_vm2, %v1750_v59, %v1754_v20  ;;  %v2671_v52 = vshll.u32 %v2289_v43, 16  ;;  %v2677_v19 = vshrl.u32 %v2290_v5, 16 }
 0x235   : > { %v10001_v1 = vcombine.low %v3598_v47, %v3601_v39  ;;  %4044 = vst [vmem:[#allocation2 + $0xfc] sm:$0xf] %v3601_v39  ;;  %v1967_v50 = vmax.bf16 %v1755_v36, %v12471_v0  ;;  %v1968_v29 = vmax.bf16 %v1760_v37, %v1325_v60  ;;  %v2680_v16 = vshll.u32 %v2290_v5, 16  ;;  %10529 = vmatpush3.bf16.msra.mxu1 %v10779_v6 }
 0x236   : > { %v2673_v28 = vrot.slane %v2671_v52, 6  ;;  %v2679_v26 = vrot.slane %v2677_v19, 5  ;;  %v2687_v33 = vshll.u32 %v2291_v18, 16  ;;  %v3095_v46 = vrot.slane %v2922_v48, 6  ;;  %v1326_v52 = vld [vmem:[#allocation2 + $0x144] sm:$0x8] }
 0x237   : > { %10504 = vmatprep.mubr.bf16.mxu1 %v10001_v1  ;;  %v2230_v44 = vmax.bf16 %v2102_v32, %v1967_v50  ;;  %v2231_v62 = vmax.bf16 %v2103_v12, %v1968_v29  ;;  %v2682_v17 = vrot.slane %v2680_v16, 6  ;;  %v3097_v11 = vrot.slane %v2290_v5, 6 }
 0x238   : > { %v2674_v20 = vor.u32 %v2673_v28, %v2670_v13  ;;  %v2689_v43 = vrot.slane %v2687_v33, 6  ;;  %v3096_v34 = vrot.slane %v3095_v46, 4  ;;  %v3100_v24 = vrot.slane %v2291_v18, 6  ;;  %v1327_v18 = vld [vmem:[#allocation2 + $0x148] sm:$0xf] }
 0x239   : > { %v2683_v38 = vor.u32 %v2682_v17, %v2679_v26  ;;  %v3099_v47 = vrot.slane %v3097_v11, 4  ;;  %v3283_v0 = vmax.bf16 %v12338_v63, %v12330_v8  ;;  %v3284_v6 = vmax.bf16 %v12340_v57, %v12334_v53 }
 0x23a   : > { %v2675_v4 = vrot.slane %v2674_v20, 4  ;;  %v2892_v59 = vmax.bf16 %v2674_v20, %v2229_v35  ;;  %v3098_v37 = vsel %vm11417_vm11, %v3096_v34, %v3097_v11  ;;  %v3285_v5 = vmax.bf16 %v12342_v21, %v12336_v61  ;;  %v1354_v20 = vld [vmem:[#allocation2 + $0x14c] sm:$0xf] }
 0x23b   : > { %v2685_v32 = vrot.slane %v2683_v38, 4  ;;  %v3101_v12 = vsel %vm11417_vm11, %v3099_v47, %v3100_v24  ;;  %v3331_v13 = vmax.bf16 %v3283_v0, %v12388_v42  ;;  %v3332_v48 = vmax.bf16 %v3284_v6, %v12399_v25 }
 0x23c   : > { %v2684_v39 = vsel %vm11329_vm8, %v2675_v4, %v2683_v38  ;;  %v12532_v60 = vmax.bf16 %v3095_v46, %v2892_v59  ;;  %v3333_v35 = vmax.bf16 %v3285_v5, %v12401_v58  ;;  %v3271_v36 = vmax.bf16 %v12057_v49, %v15000_v14 }
 0x23d   : > { %v2690_v19 = vsel %vm11329_vm8, %v2685_v32, %v2689_v43  ;;  %v2893_v1 = vmax.bf16 %v2684_v39, %v2230_v44  ;;  %v3379_v50 = vmax.bf16 %v3331_v13, %v12481_v54  ;;  %v3380_v29 = vmax.bf16 %v3332_v48, %v12491_v31 }
 0x23e   : > { %v2894_v16 = vmax.bf16 %v2690_v19, %v2231_v62  ;;  %v3381_v28 = vmax.bf16 %v3333_v35, %v12498_v15  ;;  %v3272_v26 = vmax.bf16 %v12069_v41, %v15001_v2  ;;  %v3273_v33 = vmax.bf16 %v12076_v30, %v15002_v56  ;;  %v2292_v35 = vld [vmem:[#allocation2 + $0x148] sm:$0xf] }
 0x23f   : > { %v12546_v49 = vmax.bf16 %v3098_v37, %v2893_v1  ;;  %v3427_v14 = vmax.bf16 %v3379_v50, %v12532_v60  ;;  %v3319_v46 = vmax.bf16 %v3271_v36, %v12314_v51  ;;  %v1762_v44 = vshrl.u32 %v1326_v52, 16 }
 0x240   : > { %v12550_v17 = vmax.bf16 %v3101_v12, %v2894_v16  ;;  %v3320_v11 = vmax.bf16 %v3272_v26, %v12316_v23  ;;  %v3321_v62 = vmax.bf16 %v3273_v33, %v12320_v9  ;;  %v1767_v43 = vshll.u32 %v1327_v18, 16  ;;  %v2293_v33 = vld [vmem:[#allocation2 + $0x14c] sm:$0xf] }
 0x241   : > { %v3428_v41 = vmax.bf16 %v3380_v29, %v12546_v49  ;;  %v9970_v2 = vrot.slane %v3427_v14, 11  ;;  %v3367_v30 = vmax.bf16 %v3319_v46, %v12322_v22  ;;  %v1771_v56 = vshrl.u32 %v1327_v18, 16 }
 0x242   : > { %v3429_v34 = vmax.bf16 %v3381_v28, %v12550_v17  ;;  %v3368_v24 = vmax.bf16 %v3320_v11, %v12326_v55  ;;  %v3369_v51 = vmax.bf16 %v3321_v62, %v12328_v7  ;;  %v1769_v38 = vrot.slane %v1767_v43, 5  ;;  %v2923_v11 = vld [vmem:[#allocation2 + $0x148] sm:$0xe] }
 0x243   : > { %v3604_v47 = vrot.slane %v3428_v41, 7  ;;  %v3415_v23 = vmax.bf16 %v3367_v30, %v12330_v8  ;;  %v1773_v0 = vrot.slane %v1771_v56, 4  ;;  %v1777_v9 = vshll.u32 %v1354_v20, 16 }
 0x244   : > { %v3607_v6 = vrot.slane %v3429_v34, 7  ;;  %v3416_v4 = vmax.bf16 %v3368_v24, %v12334_v53  ;;  %v3417_v59 = vmax.bf16 %v3369_v51, %v12336_v61  ;;  %v1770_v22 = vsel %vm11245_vm2, %v1762_v44, %v1769_v38  ;;  %v1328_v51 = vld [vmem:[#allocation2 + $0x14c] sm:$0x7] }
 0x245   : > { %v3605_v37 = vsel %vm11875_vm14, %v9970_v2, %v3604_v47  ;;  %v3606_v55 = vrot.slane %v3604_v47, 4  ;;  %v9966_v5 = vrot.slane %v3415_v23, 11  ;;  %v1774_v7 = vor.u32 %v1773_v0, %v1769_v38  ;;  %v2294_v2 = vld [vmem:[#allocation2 + $0x150] sm:$0x1] }
 0x246   : > { %4045 = vst [vmem:[#allocation2 + $0x10c] sm:$0xf] %v3605_v37  ;;  %v3576_v32 = vrot.slane %v3416_v4, 7  ;;  %v3579_v12 = vrot.slane %v3417_v59, 7  ;;  %v1779_v8 = vrot.slane %v1777_v9, 5  ;;  %v1781_v13 = vshrl.u32 %v1354_v20, 16 }
 0x247   : > { %v3608_v48 = vsel %vm11875_vm14, %v3606_v55, %v3607_v6  ;;  %v1775_v53 = vrot.slane %v1774_v7, 4  ;;  %v1969_v39 = vmax.bf16 %v1770_v22, %v1326_v52  ;;  %v2104_v61 = vrot.slane %v1327_v18, 5 }
 0x248   : > { %v10002_v36 = vcombine.low %v3605_v37, %v3608_v48  ;;  %4046 = vst [vmem:[#allocation2 + $0x110] sm:$0xf] %v3608_v48  ;;  %v3577_v19 = vsel %vm11875_vm14, %v9966_v5, %v3576_v32  ;;  %v3578_v1 = vrot.slane %v3576_v32, 4  ;;  %v1783_v50 = vrot.slane %v1781_v13, 4 }
 0x249   : > { %4037 = vst [vmem:[#allocation2 + $0xbc] sm:$0xf] %v3577_v19  ;;  %v1780_v29 = vsel %vm11245_vm2, %v1775_v53, %v1779_v8  ;;  %v2105_v16 = vrot.slane %v2104_v61, 4  ;;  %v2106_v28 = vrot.slane %v1354_v20, 5  ;;  %v2232_v26 = vmax.bf16 %v2104_v61, %v1969_v39 }
 0x24a   : > { %10505 = vmatmul.mubr.bf16.gmra.mrb[4].mxu1 %v10002_v36  ;;  %v3580_v52 = vsel %vm11875_vm14, %v3578_v1, %v3579_v12  ;;  %v1784_v14 = vor.u32 %v1783_v50, %v1779_v8  ;;  %v1970_v46 = vmax.bf16 %v1780_v29, %v1327_v18  ;;  %v2692_v44 = vshrl.u32 %v2292_v35, 16  ;;  %v1329_v8 = vld [vmem:[#allocation2 + $0x158] sm:$0x8]  ;;  %v1355_v1 = vld [vmem:[#allocation2 + $0x160] sm:$0xf] }
 0x24b   : > { %v9998_v62 = vcombine.low %v3577_v19, %v3580_v52  ;;  %4038 = vst [vmem:[#allocation2 + $0xc0] sm:$0xf] %v3580_v52  ;;  %v2107_v43 = vsel %vm11300_vm5, %v2105_v16, %v2106_v28  ;;  %v2108_v41 = vrot.slane %v2106_v28, 4  ;;  %v2695_v30 = vshll.u32 %v2292_v35, 16  ;;  %v1330_v19 = vld [vmem:[#allocation2 + $0x15c] sm:$0xf] }
 0x24c   : > { %v1785_v56 = vrot.slane %v1784_v14, 4  ;;  %v2233_v20 = vmax.bf16 %v2107_v43, %v1970_v46  ;;  %v2694_v34 = vrot.slane %v2692_v44, 5  ;;  %v2701_v24 = vshrl.u32 %v2293_v33, 16 }
 0x24d   : > { %10497 = vmatmul.mubr.bf16.gmra.mrb[44].mxu0 %v9998_v62  ;;  %v2697_v38 = vrot.slane %v2695_v30, 6  ;;  %v2704_v47 = vshll.u32 %v2293_v33, 16  ;;  %v2711_v23 = vshll.u32 %v2294_v2, 16  ;;  %v3102_v18 = vrot.slane %v2923_v11, 6 }
 0x24e   : > { %v1971_v0 = vmax.bf16 %v1785_v56, %v1328_v51  ;;  %v2703_v9 = vrot.slane %v2701_v24, 5  ;;  %v3104_v6 = vrot.slane %v2293_v33, 6  ;;  %v3107_v4 = vrot.slane %v2294_v2, 6 }
 0x24f   : > { %v2698_v59 = vor.u32 %v2697_v38, %v2694_v34  ;;  %v2706_v22 = vrot.slane %v2704_v47, 6  ;;  %v2713_v37 = vrot.slane %v2711_v23, 6  ;;  %v3103_v55 = vrot.slane %v3102_v18, 4  ;;  %v2295_v47 = vld [vmem:[#allocation2 + $0x15c] sm:$0xf] }
 0x250   : > { %v2234_v5 = vmax.bf16 %v2108_v41, %v1971_v0  ;;  %v3106_v7 = vrot.slane %v3104_v6, 4  ;;  %v3286_v32 = vmax.bf16 %v12388_v42, %v12338_v63  ;;  %v3287_v12 = vmax.bf16 %v12399_v25, %v12340_v57 }
 0x251   : > { %v2699_v13 = vrot.slane %v2698_v59, 4  ;;  %v2707_v48 = vor.u32 %v2706_v22, %v2703_v9  ;;  %v2895_v53 = vmax.bf16 %v2698_v59, %v2232_v26  ;;  %v3105_v39 = vsel %vm11417_vm11, %v3103_v55, %v3104_v6 }
 0x252   : > { %v3108_v61 = vsel %vm11417_vm11, %v3106_v7, %v3107_v4  ;;  %v3288_v35 = vmax.bf16 %v12401_v58, %v12342_v21  ;;  %v3334_v36 = vmax.bf16 %v3286_v32, %v12481_v54  ;;  %v3335_v63 = vmax.bf16 %v3287_v12, %v12491_v31  ;;  %v2296_v7 = vld [vmem:[#allocation2 + $0x160] sm:$0xf] }
 0x253   : > { %v2708_v57 = vsel %vm11329_vm8, %v2699_v13, %v2707_v48  ;;  %v2709_v50 = vrot.slane %v2707_v48, 4  ;;  %v12590_v29 = vmax.bf16 %v3102_v18, %v2895_v53  ;;  %v1787_v16 = vshrl.u32 %v1329_v8, 16 }
 0x254   : > { %v2896_v28 = vmax.bf16 %v2708_v57, %v2233_v20  ;;  %v3336_v26 = vmax.bf16 %v3288_v35, %v12498_v15  ;;  %v3382_v33 = vmax.bf16 %v3334_v36, %v12532_v60  ;;  %v3383_v21 = vmax.bf16 %v3335_v63, %v12546_v49  ;;  %v2924_v36 = vld [vmem:[#allocation2 + $0x15c] sm:$0xe] }
 0x255   : > { %v2714_v52 = vsel %vm11329_vm8, %v2709_v50, %v2713_v37  ;;  %v1792_v14 = vshll.u32 %v1330_v19, 16  ;;  %v1796_v46 = vshrl.u32 %v1330_v19, 16  ;;  %v1802_v44 = vshll.u32 %v1355_v1, 16  ;;  %v2297_v50 = vld [vmem:[#allocation2 + $0x164] sm:$0x1] }
 0x256   : > { %v2897_v11 = vmax.bf16 %v2714_v52, %v2234_v5  ;;  %v12597_v62 = vmax.bf16 %v3105_v39, %v2896_v28  ;;  %v3384_v43 = vmax.bf16 %v3336_v26, %v12550_v17  ;;  %v3430_v41 = vmax.bf16 %v3382_v33, %v12590_v29 }
 0x257   : > { %v1794_v2 = vrot.slane %v1792_v14, 5  ;;  %v1798_v30 = vrot.slane %v1796_v46, 4  ;;  %v1804_v56 = vrot.slane %v1802_v44, 5  ;;  %v1806_v20 = vshrl.u32 %v1355_v1, 16 }
 0x258   : > { %v12601_v34 = vmax.bf16 %v3108_v61, %v2897_v11  ;;  %v3431_v24 = vmax.bf16 %v3383_v21, %v12597_v62  ;;  %v9971_v51 = vrot.slane %v3430_v41, 11  ;;  %v2109_v38 = vrot.slane %v1330_v19, 5 }
 0x259   : > { %v1795_v23 = vsel %vm11245_vm2, %v1787_v16, %v1794_v2  ;;  %v1799_v18 = vor.u32 %v1798_v30, %v1794_v2  ;;  %v1808_v0 = vrot.slane %v1806_v20, 4  ;;  %v2111_v9 = vrot.slane %v1355_v1, 5  ;;  %v1331_v1 = vld [vmem:[#allocation2 + $0x160] sm:$0x7] }
 0x25a   : > { %v3432_v6 = vmax.bf16 %v3384_v43, %v12601_v34  ;;  %v3611_v4 = vrot.slane %v3431_v24, 7  ;;  %v1972_v59 = vmax.bf16 %v1795_v23, %v1329_v8  ;;  %v2110_v22 = vrot.slane %v2109_v38, 4 }
 0x25b   : > { %v1800_v37 = vrot.slane %v1799_v18, 4  ;;  %v1809_v55 = vor.u32 %v1808_v0, %v1804_v56  ;;  %v2113_v5 = vrot.slane %v2111_v9, 4  ;;  %v2716_v32 = vshrl.u32 %v2295_v47, 16  ;;  %v1332_v18 = vld [vmem:[#allocation2 + $0x16c] sm:$0x8] }
 0x25c   : > { %v3612_v12 = vsel %vm11875_vm14, %v9971_v51, %v3611_v4  ;;  %v3613_v13 = vrot.slane %v3611_v4, 4  ;;  %v3614_v48 = vrot.slane %v3432_v6, 7  ;;  %v2112_v53 = vsel %vm11300_vm5, %v2110_v22, %v2111_v9 }
 0x25d   : > { %4047 = vst [vmem:[#allocation2 + $0x120] sm:$0xf] %v3612_v12  ;;  %v1805_v39 = vsel %vm11245_vm2, %v1800_v37, %v1804_v56  ;;  %v1810_v61 = vrot.slane %v1809_v55, 4  ;;  %v2235_v8 = vmax.bf16 %v2109_v38, %v1972_v59  ;;  %v2718_v35 = vrot.slane %v2716_v32, 5  ;;  %v10781_v59 = vld [vmem:[%s14935_s3 + $0xc0] sm:$0xff]  }
 0x25e   : > { %v3615_v63 = vsel %vm11875_vm14, %v3613_v13, %v3614_v48  ;;  %v1973_v57 = vmax.bf16 %v1805_v39, %v1330_v19  ;;  %v2719_v16 = vshll.u32 %v2295_v47, 16  ;;  %v2725_v28 = vshrl.u32 %v2296_v7, 16  ;;  %v1333_v55 = vld [vmem:[#allocation2 + $0x170] sm:$0xf] }
 0x25f   : > { %v10003_v26 = vcombine.low %v3612_v12, %v3615_v63  ;;  %4048 = vst [vmem:[#allocation2 + $0x124] sm:$0xf] %v3615_v63  ;;  %v1974_v33 = vmax.bf16 %v1810_v61, %v1331_v1  ;;  %v2728_v21 = vshll.u32 %v2296_v7, 16  ;;  %v2735_v52 = vshll.u32 %v2297_v50, 16  ;;  %v1356_v12 = vld [vmem:[#allocation2 + $0x174] sm:$0xf] }
 0x260   : > { %v2236_v14 = vmax.bf16 %v2112_v53, %v1973_v57  ;;  %v2721_v46 = vrot.slane %v2719_v16, 6  ;;  %v2727_v44 = vrot.slane %v2725_v28, 5  ;;  %v3109_v11 = vrot.slane %v2924_v36, 6 }
 0x261   : > { %10508 = vmatprep.mubr.bf16.mxu1 %v10003_v26  ;;  %v2237_v43 = vmax.bf16 %v2113_v5, %v1974_v33  ;;  %v2730_v41 = vrot.slane %v2728_v21, 6  ;;  %v2737_v2 = vrot.slane %v2735_v52, 6  ;;  %v3111_v30 = vrot.slane %v2296_v7, 6  ;;  %v2298_v52 = vld [vmem:[#allocation2 + $0x170] sm:$0xf] }
 0x262   : > { %v2722_v56 = vor.u32 %v2721_v46, %v2718_v35  ;;  %v3110_v20 = vrot.slane %v3109_v11, 4  ;;  %v3114_v19 = vrot.slane %v2297_v50, 6  ;;  %v3289_v24 = vmax.bf16 %v12481_v54, %v12388_v42  ;;  %v10780_v42 = vld [vmem:[%s14935_s3 + $0xb8] sm:$0xff]  }
 0x263   : > { %v2731_v51 = vor.u32 %v2730_v41, %v2727_v44  ;;  %v3113_v38 = vrot.slane %v3111_v30, 4  ;;  %v3290_v47 = vmax.bf16 %v12491_v31, %v12399_v25  ;;  %v3291_v23 = vmax.bf16 %v12498_v15, %v12401_v58  ;;  %10530 = vmatprep.subr.bf16.mxu1 %v10780_v42 }
 0x264   : > { %v2723_v0 = vrot.slane %v2722_v56, 4  ;;  %v2898_v9 = vmax.bf16 %v2722_v56, %v2235_v8  ;;  %v3112_v6 = vsel %vm11417_vm11, %v3110_v20, %v3111_v30  ;;  %v3337_v4 = vmax.bf16 %v3289_v24, %v12532_v60  ;;  %10531 = vmatpush3.bf16.msra.mxu1 %v10780_v42  ;;  %v2299_v24 = vld [vmem:[#allocation2 + $0x174] sm:$0xf] }
 0x265   : > { %v2733_v25 = vrot.slane %v2731_v51, 4  ;;  %v3115_v58 = vsel %vm11417_vm11, %v3113_v38, %v3114_v19  ;;  %v3338_v22 = vmax.bf16 %v3290_v47, %v12546_v49  ;;  %v3339_v37 = vmax.bf16 %v3291_v23, %v12550_v17  ;;  %10564 = vmatprep.subr.bf16.mxu1 %v10781_v59  ;;  %v1334_v47 = vld [vmem:[#allocation2 + $0x174] sm:$0x7] }
 0x266   : > { %v2732_v5 = vsel %vm11329_vm8, %v2723_v0, %v2731_v51  ;;  %v12636_v7 = vmax.bf16 %v3109_v11, %v2898_v9  ;;  %v3385_v32 = vmax.bf16 %v3337_v4, %v12590_v29  ;;  %v1812_v13 = vshrl.u32 %v1332_v18, 16 }
 0x267   : > { %v2738_v48 = vsel %vm11329_vm8, %v2733_v25, %v2737_v2  ;;  %v2899_v53 = vmax.bf16 %v2732_v5, %v2236_v14  ;;  %v3386_v39 = vmax.bf16 %v3338_v22, %v12597_v62  ;;  %v3387_v61 = vmax.bf16 %v3339_v37, %v12601_v34  ;;  %v2300_v25 = vld [vmem:[#allocation2 + $0x178] sm:$0x1]  ;;  %v2925_v5 = vld [vmem:[#allocation2 + $0x170] sm:$0xe] }
 0x268   : > { %v2900_v8 = vmax.bf16 %v2738_v48, %v2237_v43  ;;  %v3433_v35 = vmax.bf16 %v3385_v32, %v12636_v7  ;;  %v1817_v36 = vshll.u32 %v1333_v55, 16  ;;  %v1821_v63 = vshrl.u32 %v1333_v55, 16 }
 0x269   : > { %v12644_v1 = vmax.bf16 %v3112_v6, %v2899_v53  ;;  %v1827_v57 = vshll.u32 %v1356_v12, 16  ;;  %v1831_v50 = vshrl.u32 %v1356_v12, 16  ;;  %v2114_v16 = vrot.slane %v1333_v55, 5 }
 0x26a   : > { %v12646_v28 = vmax.bf16 %v3115_v58, %v2900_v8  ;;  %v9972_v26 = vrot.slane %v3433_v35, 11  ;;  %v1819_v33 = vrot.slane %v1817_v36, 5  ;;  %v1823_v21 = vrot.slane %v1821_v63, 4 }
 0x26b   : > { %v3434_v14 = vmax.bf16 %v3386_v39, %v12644_v1  ;;  %v1829_v46 = vrot.slane %v1827_v57, 5  ;;  %v1833_v44 = vrot.slane %v1831_v50, 4  ;;  %v2115_v11 = vrot.slane %v2114_v16, 4 }
 0x26c   : > { %v3435_v43 = vmax.bf16 %v3387_v61, %v12646_v28  ;;  %v1820_v41 = vsel %vm11245_vm2, %v1812_v13, %v1819_v33  ;;  %v1824_v2 = vor.u32 %v1823_v21, %v1819_v33  ;;  %v2116_v30 = vrot.slane %v1356_v12, 5 }
 0x26d   : > { %v3618_v56 = vrot.slane %v3434_v14, 7  ;;  %v1834_v20 = vor.u32 %v1833_v44, %v1829_v46  ;;  %v1975_v19 = vmax.bf16 %v1820_v41, %v1332_v18  ;;  %v2740_v51 = vshrl.u32 %v2298_v52, 16 }
 0x26e   : > { %v3621_v38 = vrot.slane %v3435_v43, 7  ;;  %v1825_v23 = vrot.slane %v1824_v2, 4  ;;  %v2117_v0 = vsel %vm11300_vm5, %v2115_v11, %v2116_v30  ;;  %v2118_v9 = vrot.slane %v2116_v30, 4 }
 0x26f   : > { %v3619_v6 = vsel %vm11875_vm14, %v9972_v26, %v3618_v56  ;;  %v3620_v4 = vrot.slane %v3618_v56, 4  ;;  %v1835_v42 = vrot.slane %v1834_v20, 4  ;;  %v2238_v59 = vmax.bf16 %v2114_v16, %v1975_v19  ;;  %v1335_v20 = vld [vmem:[#allocation2 + $0x180] sm:$0x8]  ;;  %v1336_v19 = vld [vmem:[#allocation2 + $0x184] sm:$0xf] }
 0x270   : > { %4049 = vst [vmem:[#allocation2 + $0x134] sm:$0xf] %v3619_v6  ;;  %v1830_v18 = vsel %vm11245_vm2, %v1825_v23, %v1829_v46  ;;  %v2742_v58 = vrot.slane %v2740_v51, 5  ;;  %v2743_v22 = vshll.u32 %v2298_v52, 16  ;;  %v2749_v37 = vshrl.u32 %v2299_v24, 16 }
 0x271   : > { %v3622_v32 = vsel %vm11875_vm14, %v3620_v4, %v3621_v38  ;;  %v1976_v12 = vmax.bf16 %v1830_v18, %v1333_v55  ;;  %v1977_v13 = vmax.bf16 %v1835_v42, %v1334_v47  ;;  %v2752_v48 = vshll.u32 %v2299_v24, 16  ;;  %v1357_v51 = vld [vmem:[#allocation2 + $0x188] sm:$0xf] }
 0x272   : > { %v10004_v53 = vcombine.low %v3619_v6, %v3622_v32  ;;  %4050 = vst [vmem:[#allocation2 + $0x138] sm:$0xf] %v3622_v32  ;;  %v2745_v39 = vrot.slane %v2743_v22, 6  ;;  %v2751_v61 = vrot.slane %v2749_v37, 5  ;;  %v2759_v8 = vshll.u32 %v2300_v25, 16 }
 0x273   : > { %v2239_v35 = vmax.bf16 %v2117_v0, %v1976_v12  ;;  %v2240_v36 = vmax.bf16 %v2118_v9, %v1977_v13  ;;  %v2754_v63 = vrot.slane %v2752_v48, 6  ;;  %v3116_v57 = vrot.slane %v2925_v5, 6 }
 0x274   : > { %10509 = vmatmul.mubr.bf16.gmra.mrb[8].mxu1 %v10004_v53  ;;  %v2746_v50 = vor.u32 %v2745_v39, %v2742_v58  ;;  %v2761_v16 = vrot.slane %v2759_v8, 6  ;;  %v3118_v26 = vrot.slane %v2299_v24, 6  ;;  %v3121_v33 = vrot.slane %v2300_v25, 6  ;;  %v2301_v39 = vld [vmem:[#allocation2 + $0x184] sm:$0xf] }
 0x275   : > { %v2755_v21 = vor.u32 %v2754_v63, %v2751_v61  ;;  %v3117_v52 = vrot.slane %v3116_v57, 4  ;;  %v3292_v55 = vmax.bf16 %v12532_v60, %v12481_v54  ;;  %v3293_v14 = vmax.bf16 %v12546_v49, %v12491_v31 }
 0x276   : > { %v2747_v46 = vrot.slane %v2746_v50, 4  ;;  %v2901_v44 = vmax.bf16 %v2746_v50, %v2238_v59  ;;  %v3120_v11 = vrot.slane %v3118_v26, 4  ;;  %v3294_v43 = vmax.bf16 %v12550_v17, %v12498_v15 }
 0x277   : > { %v2757_v41 = vrot.slane %v2755_v21, 4  ;;  %v3119_v2 = vsel %vm11417_vm11, %v3117_v52, %v3118_v26  ;;  %v3340_v30 = vmax.bf16 %v3292_v55, %v12590_v29  ;;  %v3341_v56 = vmax.bf16 %v3293_v14, %v12597_v62 }
 0x278   : > { %v2756_v54 = vsel %vm11329_vm8, %v2747_v46, %v2755_v21  ;;  %v3122_v31 = vsel %vm11417_vm11, %v3120_v11, %v3121_v33  ;;  %v12674_v24 = vmax.bf16 %v3116_v57, %v2901_v44  ;;  %v3342_v15 = vmax.bf16 %v3294_v43, %v12601_v34  ;;  %v2302_v21 = vld [vmem:[#allocation2 + $0x188] sm:$0xf] }
 0x279   : > { %v2762_v38 = vsel %vm11329_vm8, %v2757_v41, %v2761_v16  ;;  %v2902_v47 = vmax.bf16 %v2756_v54, %v2239_v35  ;;  %v3388_v23 = vmax.bf16 %v3340_v30, %v12636_v7  ;;  %v3389_v0 = vmax.bf16 %v3341_v56, %v12644_v1  ;;  %v1337_v44 = vld [vmem:[#allocation2 + $0x188] sm:$0x7]  ;;  %v2303_v41 = vld [vmem:[#allocation2 + $0x18c] sm:$0x1]  ;;  %v2926_v54 = vld [vmem:[#allocation2 + $0x184] sm:$0xe] }
 0x27a   : > { %v2903_v9 = vmax.bf16 %v2762_v38, %v2240_v36  ;;  %v3390_v6 = vmax.bf16 %v3342_v15, %v12646_v28  ;;  %v1837_v4 = vshrl.u32 %v1335_v20, 16  ;;  %v1842_v42 = vshll.u32 %v1336_v19, 16 }
 0x27b   : > { %v12682_v59 = vmax.bf16 %v3119_v2, %v2902_v47  ;;  %v3436_v25 = vmax.bf16 %v3388_v23, %v12674_v24  ;;  %v1846_v18 = vshrl.u32 %v1336_v19, 16  ;;  %v1852_v58 = vshll.u32 %v1357_v51, 16 }
 0x27c   : > { %v12685_v22 = vmax.bf16 %v3122_v31, %v2903_v9  ;;  %v1844_v37 = vrot.slane %v1842_v42, 5  ;;  %v1856_v5 = vshrl.u32 %v1357_v51, 16  ;;  %v2119_v32 = vrot.slane %v1336_v19, 5 }
 0x27d   : > { %v3437_v12 = vmax.bf16 %v3389_v0, %v12682_v59  ;;  %v9973_v13 = vrot.slane %v3436_v25, 11  ;;  %v1848_v48 = vrot.slane %v1846_v18, 4  ;;  %v1854_v53 = vrot.slane %v1852_v58, 5 }
 0x27e   : > { %v3438_v61 = vmax.bf16 %v3390_v6, %v12685_v22  ;;  %v1845_v8 = vsel %vm11245_vm2, %v1837_v4, %v1844_v37  ;;  %v1858_v35 = vrot.slane %v1856_v5, 4  ;;  %v2120_v36 = vrot.slane %v2119_v32, 4 }
 0x27f   : > { %v3625_v63 = vrot.slane %v3437_v12, 7  ;;  %v1849_v57 = vor.u32 %v1848_v48, %v1844_v37  ;;  %v1978_v50 = vmax.bf16 %v1845_v8, %v1335_v20  ;;  %v2121_v16 = vrot.slane %v1357_v51, 5  ;;  %v12701_v8 = vld [vmem:[#allocation2 + $0x4] sm:$0x8] }
 0x280   : > { %v3628_v26 = vrot.slane %v3438_v61, 7  ;;  %v1859_v33 = vor.u32 %v1858_v35, %v1854_v53  ;;  %v2764_v52 = vshrl.u32 %v2301_v39, 16  ;;  %v2767_v55 = vshll.u32 %v2301_v39, 16 }
 0x281   : > { %v3626_v14 = vsel %vm11875_vm14, %v9973_v13, %v3625_v63  ;;  %v3627_v46 = vrot.slane %v3625_v63, 4  ;;  %v1850_v11 = vrot.slane %v1849_v57, 4  ;;  %v2122_v43 = vsel %vm11300_vm5, %v2120_v36, %v2121_v16 }
 0x282   : > { %4051 = vst [vmem:[#allocation2 + $0x148] sm:$0xf] %v3626_v14  ;;  %v1860_v2 = vrot.slane %v1859_v33, 4  ;;  %v2123_v30 = vrot.slane %v2121_v16, 4  ;;  %v2241_v56 = vmax.bf16 %v2119_v32, %v1978_v50  ;;  %v2766_v20 = vrot.slane %v2764_v52, 5 }
 0x283   : > { %v3629_v31 = vsel %vm11875_vm14, %v3627_v46, %v3628_v26  ;;  %v1855_v15 = vsel %vm11245_vm2, %v1850_v11, %v1854_v53  ;;  %v2769_v51 = vrot.slane %v2767_v55, 6  ;;  %v2773_v38 = vshrl.u32 %v2302_v21, 16  ;;  %v12709_v50 = vld [vmem:[#allocation2 + $0x8] sm:$0xf]  ;;  %v12724_v55 = vld [vmem:[#allocation2 + $0x18] sm:$0x8] }
 0x284   : > { %v10005_v47 = vcombine.low %v3626_v14, %v3629_v31  ;;  %4052 = vst [vmem:[#allocation2 + $0x14c] sm:$0xf] %v3629_v31  ;;  %v1979_v23 = vmax.bf16 %v1855_v15, %v1336_v19  ;;  %v1980_v0 = vmax.bf16 %v1860_v2, %v1337_v44  ;;  %v2776_v9 = vshll.u32 %v2302_v21, 16 }
 0x285   : > { %v2770_v6 = vor.u32 %v2769_v51, %v2766_v20  ;;  %v2775_v4 = vrot.slane %v2773_v38, 5  ;;  %v2783_v42 = vshll.u32 %v2303_v41, 16  ;;  %v3123_v25 = vrot.slane %v2926_v54, 6  ;;  %v12733_v20 = vld [vmem:[#allocation2 + $0x20] sm:$0xf] }
 0x286   : > { %10512 = vmatprep.mubr.bf16.mxu1 %v10005_v47  ;;  %v2242_v18 = vmax.bf16 %v2122_v43, %v1979_v23  ;;  %v2243_v58 = vmax.bf16 %v2123_v30, %v1980_v0  ;;  %v2778_v37 = vrot.slane %v2776_v9, 6  ;;  %v3125_v5 = vrot.slane %v2302_v21, 6  ;;  %v12730_v43 = vld [vmem:[#allocation2 + $0x1c] sm:$0xf]  ;;  %v12744_v9 = vld [vmem:[#allocation2 + $0x2c] sm:$0x8] }
 0x287   : > { %v2771_v32 = vrot.slane %v2770_v6, 4  ;;  %v2785_v12 = vrot.slane %v2783_v42, 6  ;;  %v2904_v13 = vmax.bf16 %v2770_v6, %v2241_v56  ;;  %v3124_v48 = vrot.slane %v3123_v25, 4 }
 0x288   : > { %v2779_v53 = vor.u32 %v2778_v37, %v2775_v4  ;;  %v3127_v39 = vrot.slane %v3125_v5, 4  ;;  %v3128_v61 = vrot.slane %v2303_v41, 6  ;;  %v3295_v19 = vmax.bf16 %v12590_v29, %v12532_v60 }
 0x289   : > { %v3126_v35 = vsel %vm11417_vm11, %v3124_v48, %v3125_v5  ;;  %v3247_v36 = vmax.bf16 %v3123_v25, %v2904_v13  ;;  %v3296_v63 = vmax.bf16 %v12597_v62, %v12546_v49  ;;  %v3297_v57 = vmax.bf16 %v12601_v34, %v12550_v17  ;;  %v12718_v49 = vld [vmem:[#allocation2 + $0xc] sm:$0xf]  ;;  %v12753_v5 = vld [vmem:[#allocation2 + $0x30] sm:$0xf]  ;;  %v12758_v13 = vld [vmem:[#allocation2 + $0x34] sm:$0xf] }
 0x28a   : > { %v2780_v16 = vsel %vm11329_vm8, %v2771_v32, %v2779_v53  ;;  %v2781_v26 = vrot.slane %v2779_v53, 4  ;;  %v3129_v60 = vsel %vm11417_vm11, %v3127_v39, %v3128_v61  ;;  %v3343_v29 = vmax.bf16 %v3295_v19, %v12636_v7  ;;  %v12755_v32 = vld [vmem:[#allocation2 + $0x40] sm:$0x8] }
 0x28b   : > { %v2905_v33 = vmax.bf16 %v2780_v16, %v2242_v18  ;;  %v3344_v21 = vmax.bf16 %v3296_v63, %v12644_v1  ;;  %v3345_v52 = vmax.bf16 %v3297_v57, %v12646_v28  ;;  %v4136_v17 = vshrl.u32 %v12701_v8, 16 }
 0x28c   : > { %v2786_v62 = vsel %vm11329_vm8, %v2781_v26, %v2785_v12  ;;  %v3391_v34 = vmax.bf16 %v3343_v29, %v12674_v24  ;;  %v4141_v14 = vshll.u32 %v12709_v50, 16  ;;  %v4145_v7 = vshrl.u32 %v12709_v50, 16 }
 0x28d   : > { %v2906_v46 = vmax.bf16 %v2786_v62, %v2243_v58  ;;  %v3248_v44 = vmax.bf16 %v3126_v35, %v2905_v33  ;;  %v3392_v1 = vmax.bf16 %v3344_v21, %v12682_v59  ;;  %v3393_v28 = vmax.bf16 %v3345_v52, %v12685_v22  ;;  %v12768_v35 = vld [vmem:[#allocation2 + $0x44] sm:$0xf]  ;;  %v12778_v33 = vld [vmem:[#allocation2 + $0x58] sm:$0xf] }
 0x28e   : > { %v3439_v11 = vmax.bf16 %v3391_v34, %v3247_v36  ;;  %v4143_v41 = vrot.slane %v4141_v14, 5  ;;  %v4147_v2 = vrot.slane %v4145_v7, 4  ;;  %v4151_v30 = vshll.u32 %v12718_v49, 16  ;;  %v12784_v34 = vld [vmem:[#allocation2 + $0x48] sm:$0xf] }
 0x28f   : > { %v3249_v24 = vmax.bf16 %v3129_v60, %v2906_v46  ;;  %v3440_v56 = vmax.bf16 %v3392_v1, %v3248_v44  ;;  %v4155_v54 = vshrl.u32 %v12718_v49, 16  ;;  %v4161_v31 = vshrl.u32 %v12724_v55, 16  ;;  %v12788_v1 = vld [vmem:[#allocation2 + $0x54] sm:$0x8] }
 0x290   : > { %v9974_v15 = vrot.slane %v3439_v11, 11  ;;  %v12739_v59 = vsel %vm11245_vm2, %v4136_v17, %v4143_v41  ;;  %v4148_v22 = vor.u32 %v4147_v2, %v4143_v41  ;;  %v12741_v51 = vrot.slane %v4151_v30, 5 }
 0x291   : > { %v3441_v38 = vmax.bf16 %v3393_v28, %v3249_v24  ;;  %v3632_v47 = vrot.slane %v3440_v56, 7  ;;  %v4157_v23 = vrot.slane %v4155_v54, 4  ;;  %v4166_v0 = vshll.u32 %v12730_v43, 16 }
 0x292   : > { %v12746_v6 = vrot.slane %v4148_v22, 4  ;;  %v4170_v4 = vshrl.u32 %v12730_v43, 16  ;;  %v4176_v42 = vshll.u32 %v12733_v20, 16  ;;  %v4180_v25 = vshrl.u32 %v12733_v20, 16 }
 0x293   : > { %v3633_v18 = vsel %vm11875_vm14, %v9974_v15, %v3632_v47  ;;  %v3634_v58 = vrot.slane %v3632_v47, 4  ;;  %v3635_v37 = vrot.slane %v3441_v38, 7  ;;  %v4158_v12 = vor.u32 %v4157_v23, %v12741_v51 }
 0x294   : > { %4053 = vst [vmem:[#allocation2 + $0x15c] sm:$0xf] %v3633_v18  ;;  %v4154_v48 = vsel %vm11245_vm2, %v12746_v6, %v12741_v51  ;;  %v4168_v53 = vrot.slane %v4166_v0, 5  ;;  %v4172_v39 = vrot.slane %v4170_v4, 4  ;;  %v12764_v61 = vrot.slane %v4176_v42, 5 }
 0x295   : > { %v3636_v19 = vsel %vm11875_vm14, %v3634_v58, %v3635_v37  ;;  %v12770_v36 = vrot.slane %v4158_v12, 4  ;;  %v4182_v63 = vrot.slane %v4180_v25, 4  ;;  %v4186_v57 = vshrl.u32 %v12744_v9, 16  ;;  %v12812_v12 = vld [vmem:[#allocation2 + $0xc] sm:$0x7] }
 0x296   : > { %v10006_v16 = vcombine.low %v3633_v18, %v3636_v19  ;;  %4054 = vst [vmem:[#allocation2 + $0x160] sm:$0xf] %v3636_v19  ;;  %v12775_v26 = vsel %vm11245_vm2, %v4161_v31, %v4168_v53  ;;  %v4173_v60 = vor.u32 %v4172_v39, %v4168_v53  ;;  %v4191_v29 = vshll.u32 %v12753_v5, 16  ;;  %v12800_v31 = vld [vmem:[#allocation2 + $0x5c] sm:$0xf] }
 0x297   : > { %v4183_v21 = vor.u32 %v4182_v63, %v12764_v61  ;;  %v4195_v52 = vshrl.u32 %v12753_v5, 16  ;;  %v4201_v17 = vshll.u32 %v12758_v13, 16  ;;  %v4205_v62 = vshrl.u32 %v12758_v13, 16 }
 0x298   : > { %10513 = vmatmul.mubr.bf16.gmra.mrb[12].mxu1 %v10006_v16  ;;  %v4174_v14 = vrot.slane %v4173_v60, 4  ;;  %v4193_v7 = vrot.slane %v4191_v29, 5  ;;  %v4211_v46 = vshrl.u32 %v12755_v32, 16  ;;  %v4216_v44 = vshll.u32 %v12768_v35, 16  ;;  %v4060_v29 = vld [vmem:[#allocation2 + $0x20] sm:$0x7] }
 0x299   : > { %v12790_v28 = vrot.slane %v4183_v21, 4  ;;  %v4197_v11 = vrot.slane %v4195_v52, 4  ;;  %v4203_v41 = vrot.slane %v4201_v17, 5  ;;  %v4207_v2 = vrot.slane %v4205_v62, 4 }
 0x29a   : > { %v4179_v30 = vsel %vm11245_vm2, %v4174_v14, %v12764_v61  ;;  %v12797_v24 = vsel %vm11245_vm2, %v4186_v57, %v4193_v7  ;;  %v4218_v56 = vrot.slane %v4216_v44, 5  ;;  %v4220_v54 = vshrl.u32 %v12768_v35, 16 }
 0x29b   : > { %v4198_v15 = vor.u32 %v4197_v11, %v4193_v7  ;;  %v4208_v22 = vor.u32 %v4207_v2, %v4203_v41  ;;  %v4226_v38 = vshll.u32 %v12784_v34, 16  ;;  %v4230_v47 = vshrl.u32 %v12784_v34, 16  ;;  %v4063_v2 = vld [vmem:[#allocation2 + $0x34] sm:$0x7] }
 0x29c   : > { %v12806_v23 = vsel %vm11245_vm2, %v4211_v46, %v4218_v56  ;;  %v4222_v0 = vrot.slane %v4220_v54, 4  ;;  %v4236_v4 = vshrl.u32 %v12788_v1, 16  ;;  %v4241_v42 = vshll.u32 %v12778_v33, 16 }
 0x29d   : > { %v4199_v25 = vrot.slane %v4198_v15, 4  ;;  %v12810_v18 = vrot.slane %v4208_v22, 4  ;;  %v4228_v58 = vrot.slane %v4226_v38, 5  ;;  %v4232_v37 = vrot.slane %v4230_v47, 4 }
 0x29e   : > { %v4223_v53 = vor.u32 %v4222_v0, %v4218_v56  ;;  %v4243_v39 = vrot.slane %v4241_v42, 5  ;;  %v4245_v61 = vshrl.u32 %v12778_v33, 16  ;;  %v4251_v19 = vshll.u32 %v12800_v31, 16 }
 0x29f   : > { %v4204_v63 = vsel %vm11245_vm2, %v4199_v25, %v4203_v41  ;;  %v4233_v57 = vor.u32 %v4232_v37, %v4228_v58  ;;  %v4255_v16 = vshrl.u32 %v12800_v31, 16  ;;  %v4695_v60 = vmax.bf16 %v12739_v59, %v12701_v8 }
 0x2a0   : > { %v4224_v21 = vrot.slane %v4223_v53, 4  ;;  %v12823_v52 = vsel %vm11245_vm2, %v4236_v4, %v4243_v39  ;;  %v4247_v17 = vrot.slane %v4245_v61, 4  ;;  %v4253_v62 = vrot.slane %v4251_v19, 5 }
 0x2a1   : > { %v12825_v14 = vrot.slane %v4233_v57, 4  ;;  %v4257_v7 = vrot.slane %v4255_v16, 4  ;;  %v12833_v46 = vmax.bf16 %v4154_v48, %v12709_v50  ;;  %v4697_v8 = vmax.bf16 %v12770_v36, %v12812_v12  ;;  %v4066_v48 = vld [vmem:[#allocation2 + $0x48] sm:$0x7] }
 0x2a2   : > { %v4229_v59 = vsel %vm11245_vm2, %v4224_v21, %v4228_v58  ;;  %v4248_v44 = vor.u32 %v4247_v17, %v4243_v39  ;;  %v4698_v11 = vmax.bf16 %v12775_v26, %v12724_v55  ;;  %v12842_v41 = vmax.bf16 %v4179_v30, %v12730_v43 }
 0x2a3   : > { %v4258_v56 = vor.u32 %v4257_v7, %v4253_v62  ;;  %v4700_v54 = vmax.bf16 %v12790_v28, %v4060_v29  ;;  %v4701_v51 = vmax.bf16 %v12797_v24, %v12744_v9  ;;  %v12848_v6 = vmax.bf16 %v4204_v63, %v12753_v5  ;;  %v4069_v24 = vld [vmem:[#allocation2 + $0x5c] sm:$0x7]  ;;  %v12912_v7 = vld [vmem:[#allocation2 + $0xc] sm:$0xf] }
 0x2a4   : > { %v4249_v36 = vrot.slane %v4248_v44, 4  ;;  %v4703_v15 = vmax.bf16 %v12810_v18, %v4063_v2  ;;  %v4704_v55 = vmax.bf16 %v12806_v23, %v12755_v32  ;;  %v12854_v26 = vmax.bf16 %v4229_v59, %v12768_v35  ;;  %v5018_v59 = vld [vmem:[#allocation2 + $0x1c] sm:$0xf] }
 0x2a5   : > { %v4259_v30 = vrot.slane %v4258_v56, 4  ;;  %v4706_v22 = vmax.bf16 %v12825_v14, %v4066_v48  ;;  %v4707_v28 = vmax.bf16 %v12823_v52, %v12788_v1  ;;  %v4795_v9 = vrot.slane %v12709_v50, 5 }
 0x2a6   : > { %v4254_v38 = vsel %vm11245_vm2, %v4249_v36, %v4253_v62  ;;  %v4797_v47 = vrot.slane %v12718_v49, 5  ;;  %v4800_v0 = vrot.slane %v12730_v43, 5  ;;  %v4802_v32 = vrot.slane %v12733_v20, 5 }
 0x2a7   : > { %v12866_v23 = vmax.bf16 %v4254_v38, %v12778_v33  ;;  %v4709_v4 = vmax.bf16 %v4259_v30, %v4069_v24  ;;  %v4796_v42 = vrot.slane %v4795_v9, 4  ;;  %v4805_v25 = vrot.slane %v12753_v5, 5  ;;  %v5021_v30 = vld [vmem:[#allocation2 + $0x30] sm:$0xf]  ;;  %v12933_v38 = vld [vmem:[#allocation2 + $0x24] sm:$0x1] }
 0x2a8   : > { %v4799_v1 = vrot.slane %v4797_v47, 4  ;;  %v4801_v18 = vrot.slane %v4800_v0, 4  ;;  %v4804_v50 = vrot.slane %v4802_v32, 4  ;;  %v4807_v58 = vrot.slane %v12758_v13, 5 }
 0x2a9   : > { %v12872_v37 = vsel %vm11300_vm5, %v4796_v42, %v4797_v47  ;;  %v4806_v49 = vrot.slane %v4805_v25, 4  ;;  %v4810_v43 = vrot.slane %v12768_v35, 5  ;;  %v4812_v20 = vrot.slane %v12784_v34, 5  ;;  %v12936_v42 = vld [vmem:[#allocation2 + $0x34] sm:$0xf] }
 0x2aa   : > { %v12878_v12 = vsel %vm11300_vm5, %v4801_v18, %v4802_v32  ;;  %v4809_v53 = vrot.slane %v4807_v58, 4  ;;  %v4815_v5 = vrot.slane %v12778_v33, 5  ;;  %v4817_v39 = vrot.slane %v12800_v31, 5 }
 0x2ab   : > { %v12884_v13 = vsel %vm11300_vm5, %v4806_v49, %v4807_v58  ;;  %v4811_v61 = vrot.slane %v4810_v43, 4  ;;  %v4814_v19 = vrot.slane %v4812_v20, 4  ;;  %v12886_v63 = vmax.bf16 %v4795_v9, %v4695_v60  ;;  %v5015_v60 = vld [vmem:[#allocation2 + $0x8] sm:$0xf] }
 0x2ac   : > { %v4816_v35 = vrot.slane %v4815_v5, 4  ;;  %v4819_v57 = vrot.slane %v4817_v39, 4  ;;  %v12890_v16 = vmax.bf16 %v4799_v1, %v4697_v8  ;;  %v12896_v31 = vmax.bf16 %v4800_v0, %v4698_v11  ;;  %v12914_v8 = vld [vmem:[#allocation2 + $0x10] sm:$0x1] }
 0x2ad   : > { %v12894_v33 = vsel %vm11300_vm5, %v4811_v61, %v4812_v20  ;;  %v12900_v21 = vmax.bf16 %v4804_v50, %v4700_v54  ;;  %v12906_v17 = vmax.bf16 %v4805_v25, %v4701_v51  ;;  %v12910_v14 = vmax.bf16 %v4809_v53, %v4703_v15  ;;  %v12924_v54 = vld [vmem:[#allocation2 + $0x20] sm:$0xf] }
 0x2ae   : > { %v12904_v52 = vsel %vm11300_vm5, %v4816_v35, %v4817_v39  ;;  %v12916_v44 = vmax.bf16 %v4810_v43, %v4704_v55  ;;  %v12920_v2 = vmax.bf16 %v4814_v19, %v4706_v22  ;;  %v12922_v56 = vmax.bf16 %v4815_v5, %v4707_v28 }
 0x2af   : > { %v12928_v48 = vmax.bf16 %v4819_v57, %v4709_v4  ;;  %v5076_v36 = vshrl.u32 %v5015_v60, 16  ;;  %v5079_v15 = vshll.u32 %v5015_v60, 16  ;;  %v5085_v55 = vshrl.u32 %v12912_v7, 16  ;;  %v5024_v60 = vld [vmem:[#allocation2 + $0x44] sm:$0xf] }
 0x2b0   : > { %v5088_v9 = vshll.u32 %v12912_v7, 16  ;;  %v5095_v24 = vshll.u32 %v12914_v8, 16  ;;  %v5100_v22 = vshrl.u32 %v5018_v59, 16  ;;  %v5103_v0 = vshll.u32 %v5018_v59, 16 }
 0x2b1   : > { %v5078_v28 = vrot.slane %v5076_v36, 5  ;;  %v5081_v47 = vrot.slane %v5079_v15, 6  ;;  %v5109_v32 = vshrl.u32 %v12924_v54, 16  ;;  %v5087_v4 = vrot.slane %v5085_v55, 5 }
 0x2b2   : > { %v5090_v25 = vrot.slane %v5088_v9, 6  ;;  %v5097_v1 = vrot.slane %v5095_v24, 6  ;;  %v5102_v18 = vrot.slane %v5100_v22, 5  ;;  %v5105_v58 = vrot.slane %v5103_v0, 6  ;;  %v12946_v9 = vld [vmem:[#allocation2 + $0x38] sm:$0x1] }
 0x2b3   : > { %v12938_v50 = vor.u32 %v5081_v47, %v5078_v28  ;;  %v5111_v49 = vrot.slane %v5109_v32, 5  ;;  %v5112_v43 = vshll.u32 %v12924_v54, 16  ;;  %v5119_v53 = vshll.u32 %v12933_v38, 16  ;;  %v12948_v24 = vld [vmem:[#allocation2 + $0x48] sm:$0xf] }
 0x2b4   : > { %v5091_v20 = vor.u32 %v5090_v25, %v5087_v4  ;;  %v5124_v5 = vshrl.u32 %v5021_v30, 16  ;;  %v5127_v39 = vshll.u32 %v5021_v30, 16  ;;  %v12943_v19 = vor.u32 %v5105_v58, %v5102_v18  ;;  %v5027_v18 = vld [vmem:[#allocation2 + $0x58] sm:$0xf] }
 0x2b5   : > { %v5083_v61 = vrot.slane %v12938_v50, 4  ;;  %v5114_v35 = vrot.slane %v5112_v43, 6  ;;  %v5133_v57 = vshrl.u32 %v12936_v42, 16  ;;  %v5121_v36 = vrot.slane %v5119_v53, 6 }
 0x2b6   : > { %v5093_v59 = vrot.slane %v5091_v20, 4  ;;  %v5126_v15 = vrot.slane %v5124_v5, 5  ;;  %v5129_v55 = vrot.slane %v5127_v39, 6  ;;  %v5107_v30 = vrot.slane %v12943_v19, 4  ;;  %v12963_v5 = vld [vmem:[#allocation2 + $0x5c] sm:$0xf] }
 0x2b7   : > { %v5092_v22 = vsel %vm11329_vm8, %v5083_v61, %v5091_v20  ;;  %v5115_v28 = vor.u32 %v5114_v35, %v5111_v49  ;;  %v5135_v47 = vrot.slane %v5133_v57, 5  ;;  %v5136_v4 = vshll.u32 %v12936_v42, 16  ;;  %v12967_v35 = vld [vmem:[#allocation2 + $0x4c] sm:$0x1] }
 0x2b8   : > { %v12955_v0 = vsel %vm11329_vm8, %v5093_v59, %v5097_v1  ;;  %v12957_v32 = vor.u32 %v5129_v55, %v5126_v15  ;;  %v5143_v25 = vshll.u32 %v12946_v9, 16  ;;  %v5148_v20 = vshrl.u32 %v5024_v60, 16 }
 0x2b9   : > { %v5116_v58 = vsel %vm11329_vm8, %v5107_v30, %v5115_v28  ;;  %v5117_v43 = vrot.slane %v5115_v28, 4  ;;  %v5151_v53 = vshll.u32 %v5024_v60, 16  ;;  %v5138_v39 = vrot.slane %v5136_v4, 6 }
 0x2ba   : > { %v5131_v49 = vrot.slane %v12957_v32, 4  ;;  %v5145_v1 = vrot.slane %v5143_v25, 6  ;;  %v5157_v61 = vshrl.u32 %v12948_v24, 16  ;;  %v5150_v59 = vrot.slane %v5148_v20, 5 }
 0x2bb   : > { %v12971_v57 = vsel %vm11329_vm8, %v5117_v43, %v5121_v36  ;;  %v5153_v15 = vrot.slane %v5151_v53, 6  ;;  %v5160_v55 = vshll.u32 %v12948_v24, 16  ;;  %v5139_v30 = vor.u32 %v5138_v39, %v5135_v47  ;;  %v12980_v53 = vld [vmem:[#allocation2 + $0x60] sm:$0x1] }
 0x2bc   : > { %v5159_v60 = vrot.slane %v5157_v61, 5  ;;  %v5167_v28 = vshll.u32 %v12967_v35, 16  ;;  %v5172_v51 = vshrl.u32 %v5027_v18, 16  ;;  %v5175_v25 = vshll.u32 %v5027_v18, 16 }
 0x2bd   : > { %v12975_v11 = vor.u32 %v5153_v15, %v5150_v59  ;;  %v5162_v4 = vrot.slane %v5160_v55, 6  ;;  %v5181_v62 = vshrl.u32 %v12963_v5, 16  ;;  %v5140_v29 = vsel %vm11329_vm8, %v5131_v49, %v5139_v30 }
 0x2be   : > { %v5141_v36 = vrot.slane %v5139_v30, 4  ;;  %v5169_v43 = vrot.slane %v5167_v28, 6  ;;  %v5174_v20 = vrot.slane %v5172_v51, 5  ;;  %v5177_v61 = vrot.slane %v5175_v25, 6 }
 0x2bf   : > { %v5155_v47 = vrot.slane %v12975_v11, 4  ;;  %v5163_v39 = vor.u32 %v5162_v4, %v5159_v60  ;;  %v5183_v34 = vrot.slane %v5181_v62, 5  ;;  %v5184_v18 = vshll.u32 %v12963_v5, 16 }
 0x2c0   : > { %v12985_v59 = vsel %vm11329_vm8, %v5141_v36, %v5145_v1  ;;  %v5191_v15 = vshll.u32 %v12980_v53, 16  ;;  %v5615_v49 = vmax.bf16 %v12938_v50, %v12886_v63  ;;  %v12993_v30 = vor.u32 %v5177_v61, %v5174_v20 }
 0x2c1   : > { %v5164_v51 = vsel %vm11329_vm8, %v5155_v47, %v5163_v39  ;;  %v5165_v55 = vrot.slane %v5163_v39, 4  ;;  %v15003_v62 = vmax.bf16 %v12872_v37, %v12833_v46  ;;  %v5186_v1 = vrot.slane %v5184_v18, 6 }
 0x2c2   : > { %v5193_v28 = vrot.slane %v5191_v15, 6  ;;  %v5617_v4 = vmax.bf16 %v12955_v0, %v12890_v16  ;;  %v5618_v25 = vmax.bf16 %v12943_v19, %v12896_v31  ;;  %v5179_v50 = vrot.slane %v12993_v30, 4 }
 0x2c3   : > { %v12998_v60 = vmax.bf16 %v5092_v22, %v15003_v62  ;;  %v13006_v63 = vsel %vm11329_vm8, %v5165_v55, %v5169_v43  ;;  %v15004_v36 = vmax.bf16 %v12878_v12, %v12842_v41  ;;  %v5620_v37 = vmax.bf16 %v12971_v57, %v12900_v21  ;;  %v5675_v22 = vld [vmem:[#allocation2 + $0x8] sm:$0xe]  ;;  %v5676_v43 = vld [vmem:[#allocation2 + $0x1c] sm:$0xe] }
 0x2c4   : > { %v5187_v20 = vor.u32 %v5186_v1, %v5183_v34  ;;  %v5621_v16 = vmax.bf16 %v12957_v32, %v12906_v17  ;;  %v15005_v31 = vmax.bf16 %v12884_v13, %v12848_v6  ;;  %v5623_v0 = vmax.bf16 %v12985_v59, %v12910_v14 }
 0x2c5   : > { %v5619_v46 = vmax.bf16 %v5116_v58, %v15004_v36  ;;  %v5624_v41 = vmax.bf16 %v12975_v11, %v12916_v44  ;;  %v15006_v12 = vmax.bf16 %v12894_v33, %v12854_v26  ;;  %v5626_v34 = vmax.bf16 %v13006_v63, %v12920_v2  ;;  %v5678_v58 = vld [vmem:[#allocation2 + $0x44] sm:$0xe] }
 0x2c6   : > { %v5622_v19 = vmax.bf16 %v5140_v29, %v15005_v31  ;;  %v5627_v17 = vmax.bf16 %v12993_v30, %v12922_v56  ;;  %v5188_v6 = vsel %vm11329_vm8, %v5179_v50, %v5187_v20  ;;  %v5189_v13 = vrot.slane %v5187_v20, 4  ;;  %v5677_v29 = vld [vmem:[#allocation2 + $0x30] sm:$0xe] }
 0x2c7   : > { %v5625_v21 = vmax.bf16 %v5164_v51, %v15006_v12  ;;  %v5755_v14 = vrot.slane %v5675_v22, 6  ;;  %v5757_v32 = vrot.slane %v12912_v7, 6  ;;  %v15007_v44 = vmax.bf16 %v12904_v52, %v12866_v23  ;;  %v5679_v7 = vld [vmem:[#allocation2 + $0x58] sm:$0xe] }
 0x2c8   : > { %v5760_v26 = vrot.slane %v12914_v8, 6  ;;  %v5762_v33 = vrot.slane %v5676_v43, 6  ;;  %v5764_v2 = vrot.slane %v12924_v54, 6  ;;  %v5194_v56 = vsel %vm11329_vm8, %v5189_v13, %v5193_v28 }
 0x2c9   : > { %v5628_v11 = vmax.bf16 %v5188_v6, %v15007_v44  ;;  %v5756_v57 = vrot.slane %v5755_v14, 4  ;;  %v5759_v47 = vrot.slane %v5757_v32, 4  ;;  %v5767_v39 = vrot.slane %v12933_v38, 6 }
 0x2ca   : > { %v5629_v61 = vmax.bf16 %v5194_v56, %v12928_v48  ;;  %v5763_v59 = vrot.slane %v5762_v33, 4  ;;  %v5766_v18 = vrot.slane %v5764_v2, 4  ;;  %v5769_v23 = vrot.slane %v5677_v29, 6 }
 0x2cb   : > { %v5758_v52 = vsel %vm11417_vm11, %v5756_v57, %v5757_v32  ;;  %v5761_v8 = vsel %vm11417_vm11, %v5759_v47, %v5760_v26  ;;  %v5771_v54 = vrot.slane %v12936_v42, 6  ;;  %v5774_v15 = vrot.slane %v12946_v9, 6 }
 0x2cc   : > { %v5765_v51 = vsel %vm11417_vm11, %v5763_v59, %v5764_v2  ;;  %v5768_v48 = vsel %vm11417_vm11, %v5766_v18, %v5767_v39  ;;  %v5770_v38 = vrot.slane %v5769_v23, 4  ;;  %v5776_v55 = vrot.slane %v5678_v58, 6 }
 0x2cd   : > { %v5773_v30 = vrot.slane %v5771_v54, 4  ;;  %v5778_v62 = vrot.slane %v12948_v24, 6  ;;  %v5781_v1 = vrot.slane %v12967_v35, 6  ;;  %v5783_v28 = vrot.slane %v5679_v7, 6 }
 0x2ce   : > { %v5772_v63 = vsel %vm11417_vm11, %v5770_v38, %v5771_v54  ;;  %v5777_v42 = vrot.slane %v5776_v55, 4  ;;  %v5785_v9 = vrot.slane %v12963_v5, 6  ;;  %v5788_v50 = vrot.slane %v12980_v53, 6 }
 0x2cf   : > { %v5775_v36 = vsel %vm11417_vm11, %v5773_v30, %v5774_v15  ;;  %v5780_v22 = vrot.slane %v5778_v62, 4  ;;  %v5784_v20 = vrot.slane %v5783_v28, 4  ;;  %v5955_v31 = vmax.bf16 %v5755_v14, %v5615_v49 }
 0x2d0   : > { %v5779_v24 = vsel %vm11417_vm11, %v5777_v42, %v5778_v62  ;;  %v5787_v43 = vrot.slane %v5785_v9, 4  ;;  %v5956_v35 = vmax.bf16 %v5758_v52, %v12998_v60  ;;  %v5957_v12 = vmax.bf16 %v5761_v8, %v5617_v4 }
 0x2d1   : > { %v5782_v6 = vsel %vm11417_vm11, %v5780_v22, %v5781_v1  ;;  %v5786_v5 = vsel %vm11417_vm11, %v5784_v20, %v5785_v9  ;;  %v13067_v53 = vmax.bf16 %v5762_v33, %v5618_v25  ;;  %v13069_v13 = vmax.bf16 %v5765_v51, %v5619_v46  ;;  %v4070_v25 = vld [vmem:[#allocation2 + $0x68] sm:$0x8]  ;;  %v4071_v46 = vld [vmem:[#allocation2 + $0x6c] sm:$0xf] }
 0x2d2   : > { %v5789_v49 = vsel %vm11417_vm11, %v5787_v43, %v5788_v50  ;;  %v13073_v29 = vmax.bf16 %v5768_v48, %v5620_v37  ;;  %v13075_v14 = vmax.bf16 %v5769_v23, %v5621_v16  ;;  %v13077_v32 = vmax.bf16 %v5772_v63, %v5622_v19  ;;  %v4120_v19 = vld [vmem:[#allocation2 + $0x70] sm:$0xf]  ;;  %v5030_v51 = vld [vmem:[#allocation2 + $0x6c] sm:$0xf] }
 0x2d3   : > { %v13079_v60 = vmax.bf16 %v5775_v36, %v5623_v0  ;;  %v13081_v4 = vmax.bf16 %v5776_v55, %v5624_v41  ;;  %v13083_v44 = vmax.bf16 %v5779_v24, %v5625_v21  ;;  %v13085_v26 = vmax.bf16 %v5782_v6, %v5626_v34  ;;  %v5031_v43 = vld [vmem:[#allocation2 + $0x70] sm:$0xf] }
 0x2d4   : > { %v13087_v33 = vmax.bf16 %v5783_v28, %v5627_v17  ;;  %v13089_v2 = vmax.bf16 %v5786_v5, %v5628_v11  ;;  %v13091_v37 = vmax.bf16 %v5789_v49, %v5629_v61  ;;  %v6015_v16 = vmax.bf16 %v13067_v53, %v5955_v31  ;;  %v5680_v49 = vld [vmem:[#allocation2 + $0x6c] sm:$0xe] }
 0x2d5   : > { %v6016_v0 = vmax.bf16 %v13069_v13, %v5956_v35  ;;  %v6017_v41 = vmax.bf16 %v13073_v29, %v5957_v12  ;;  %v6018_v21 = vmax.bf16 %v13075_v14, %v13067_v53  ;;  %v6019_v34 = vmax.bf16 %v13077_v32, %v13069_v13  ;;  %v4121_v13 = vld [vmem:[#allocation2 + $0x84] sm:$0xf] }
 0x2d6   : > { %v6020_v17 = vmax.bf16 %v13079_v60, %v13073_v29  ;;  %v6063_v11 = vmax.bf16 %v6015_v16, %v13075_v14  ;;  %v4261_v56 = vshrl.u32 %v4070_v25, 16  ;;  %v4266_v58 = vshll.u32 %v4071_v46, 16 }
 0x2d7   : > { %v6064_v57 = vmax.bf16 %v6016_v0, %v13077_v32  ;;  %v6065_v47 = vmax.bf16 %v6017_v41, %v13079_v60  ;;  %v4270_v39 = vshrl.u32 %v4071_v46, 16  ;;  %v4276_v61 = vshll.u32 %v4120_v19, 16  ;;  %v4072_v0 = vld [vmem:[#allocation2 + $0x70] sm:$0x7] }
 0x2d8   : > { %v6111_v7 = vmax.bf16 %v6063_v11, %v13081_v4  ;;  %v4268_v59 = vrot.slane %v4266_v58, 5  ;;  %v4280_v18 = vshrl.u32 %v4120_v19, 16  ;;  %v4820_v23 = vrot.slane %v4071_v46, 5  ;;  %v5032_v58 = vld [vmem:[#allocation2 + $0x74] sm:$0x1] }
 0x2d9   : > { %v6112_v52 = vmax.bf16 %v6064_v57, %v13083_v44  ;;  %v6113_v8 = vmax.bf16 %v6065_v47, %v13085_v26  ;;  %v4272_v54 = vrot.slane %v4270_v39, 4  ;;  %v4278_v15 = vrot.slane %v4276_v61, 5 }
 0x2da   : > { %v6159_v48 = vmax.bf16 %v6111_v7, %v13087_v33  ;;  %v4269_v38 = vsel %vm11245_vm2, %v4261_v56, %v4268_v59  ;;  %v4282_v55 = vrot.slane %v4280_v18, 4  ;;  %v4821_v30 = vrot.slane %v4820_v23, 4 }
 0x2db   : > { %v6160_v62 = vmax.bf16 %v6112_v52, %v13089_v2  ;;  %v6161_v1 = vmax.bf16 %v6113_v8, %v13091_v37  ;;  %v4273_v28 = vor.u32 %v4272_v54, %v4268_v59  ;;  %v4710_v63 = vmax.bf16 %v4269_v38, %v4070_v25 }
 0x2dc   : > { %v10035_v42 = vrot.slane %v6159_v48, 11  ;;  %v4283_v9 = vor.u32 %v4282_v55, %v4278_v15  ;;  %v4822_v50 = vrot.slane %v4120_v19, 5  ;;  %v5196_v36 = vshrl.u32 %v5030_v51, 16 }
 0x2dd   : > { %v6289_v22 = vrot.slane %v6160_v62, 7  ;;  %v6292_v20 = vrot.slane %v6161_v1, 7  ;;  %v4274_v31 = vrot.slane %v4273_v28, 4  ;;  %v4970_v24 = vmax.bf16 %v4820_v23, %v4710_v63 }
 0x2de   : > { %v4284_v35 = vrot.slane %v4283_v9, 4  ;;  %v4823_v12 = vsel %vm11300_vm5, %v4821_v30, %v4822_v50  ;;  %v4824_v6 = vrot.slane %v4822_v50, 4  ;;  %v5198_v5 = vrot.slane %v5196_v36, 5  ;;  %v4074_v9 = vld [vmem:[#allocation2 + $0x80] sm:$0xf] }
 0x2df   : > { %v6290_v16 = vsel %vm11875_vm14, %v10035_v42, %v6289_v22  ;;  %v6291_v25 = vrot.slane %v6289_v22, 4  ;;  %v4279_v19 = vsel %vm11245_vm2, %v4274_v31, %v4278_v15  ;;  %v5199_v41 = vshll.u32 %v5030_v51, 16  ;;  %v4073_v42 = vld [vmem:[#allocation2 + $0x7c] sm:$0x8] }
 0x2e0   : > { %6785 = vst [vmem:[#allocation2 + $0x30] sm:$0xf] %v6290_v16  ;;  %v4711_v11 = vmax.bf16 %v4279_v19, %v4071_v46  ;;  %v4712_v56 = vmax.bf16 %v4284_v35, %v4072_v0  ;;  %v5205_v57 = vshrl.u32 %v5031_v43, 16  ;;  %v5208_v47 = vshll.u32 %v5031_v43, 16 }
 0x2e1   : > { %v6293_v39 = vsel %vm11875_vm14, %v6291_v25, %v6292_v20  ;;  %v5201_v61 = vrot.slane %v5199_v41, 6  ;;  %v5215_v7 = vshll.u32 %v5032_v58, 16  ;;  %v5790_v59 = vrot.slane %v5680_v49, 6 }
 0x2e2   : > { %v10067_v18 = vcombine.low %v6290_v16, %v6293_v39  ;;  %6786 = vst [vmem:[#allocation2 + $0x34] sm:$0xf] %v6293_v39  ;;  %v4971_v23 = vmax.bf16 %v4823_v12, %v4711_v11  ;;  %v4972_v52 = vmax.bf16 %v4824_v6, %v4712_v56  ;;  %v5207_v8 = vrot.slane %v5205_v57, 5 }
 0x2e3   : > { %v5202_v54 = vor.u32 %v5201_v61, %v5198_v5  ;;  %v5210_v15 = vrot.slane %v5208_v47, 6  ;;  %v5217_v51 = vrot.slane %v5215_v7, 6  ;;  %v5791_v48 = vrot.slane %v5790_v59, 4 }
 0x2e4   : > { %10532 = vmatprep.mubr.bf16.mxu1 %v10067_v18  ;;  %v5792_v46 = vrot.slane %v5031_v43, 6  ;;  %v5795_v38 = vrot.slane %v5032_v58, 6  ;;  %v6066_v55 = vmax.bf16 %v6018_v21, %v13081_v4  ;;  %v6067_v30 = vmax.bf16 %v6019_v34, %v13083_v44  ;;  %v5033_v58 = vld [vmem:[#allocation2 + $0x80] sm:$0xf] }
 0x2e5   : > { %v5203_v62 = vrot.slane %v5202_v54, 4  ;;  %v5211_v1 = vor.u32 %v5210_v15, %v5207_v8  ;;  %v5630_v28 = vmax.bf16 %v5202_v54, %v4970_v24  ;;  %v6068_v63 = vmax.bf16 %v6020_v17, %v13085_v26  ;;  %v5034_v15 = vld [vmem:[#allocation2 + $0x84] sm:$0xf] }
 0x2e6   : > { %v5793_v50 = vsel %vm11417_vm11, %v5791_v48, %v5792_v46  ;;  %v5794_v53 = vrot.slane %v5792_v46, 4  ;;  %v6114_v21 = vmax.bf16 %v6066_v55, %v13087_v33  ;;  %v6115_v36 = vmax.bf16 %v6067_v30, %v13089_v2 }
 0x2e7   : > { %v5212_v34 = vsel %vm11329_vm8, %v5203_v62, %v5211_v1  ;;  %v5213_v22 = vrot.slane %v5211_v1, 4  ;;  %v13139_v20 = vmax.bf16 %v5790_v59, %v5630_v28  ;;  %v6116_v29 = vmax.bf16 %v6068_v63, %v13091_v37  ;;  %v4075_v28 = vld [vmem:[#allocation2 + $0x84] sm:$0x7] }
 0x2e8   : > { %v5631_v17 = vmax.bf16 %v5212_v34, %v4971_v23  ;;  %v5796_v31 = vsel %vm11417_vm11, %v5794_v53, %v5795_v38  ;;  %v4286_v24 = vshrl.u32 %v4073_v42, 16  ;;  %v4291_v43 = vshll.u32 %v4074_v9, 16 }
 0x2e9   : > { %v5218_v35 = vsel %vm11329_vm8, %v5213_v22, %v5217_v51  ;;  %v6162_v12 = vmax.bf16 %v6114_v21, %v13139_v20  ;;  %v4295_v6 = vshrl.u32 %v4074_v9, 16  ;;  %v4301_v5 = vshll.u32 %v4121_v13, 16 }
 0x2ea   : > { %v5632_v49 = vmax.bf16 %v5218_v35, %v4972_v52  ;;  %v13147_v16 = vmax.bf16 %v5793_v50, %v5631_v17  ;;  %v4293_v25 = vrot.slane %v4291_v43, 5  ;;  %v4305_v0 = vshrl.u32 %v4121_v13, 16 }
 0x2eb   : > { %v10036_v19 = vrot.slane %v6162_v12, 11  ;;  %v4297_v41 = vrot.slane %v4295_v6, 4  ;;  %v4303_v11 = vrot.slane %v4301_v5, 5  ;;  %v4825_v56 = vrot.slane %v4074_v9, 5  ;;  %v10782_v12 = vld [vmem:[%s14935_s3 + $0xc8] sm:$0xff]  }
 0x2ec   : > { %v13149_v57 = vmax.bf16 %v5796_v31, %v5632_v49  ;;  %v6163_v47 = vmax.bf16 %v6115_v36, %v13147_v16  ;;  %v4294_v39 = vsel %vm11245_vm2, %v4286_v24, %v4293_v25  ;;  %v4307_v61 = vrot.slane %v4305_v0, 4  ;;  %v5681_v36 = vld [vmem:[#allocation2 + $0x80] sm:$0xe] }
 0x2ed   : > { %v4298_v7 = vor.u32 %v4297_v41, %v4293_v25  ;;  %v4713_v59 = vmax.bf16 %v4294_v39, %v4073_v42  ;;  %v4826_v18 = vrot.slane %v4825_v56, 4  ;;  %v4827_v23 = vrot.slane %v4121_v13, 5 }
 0x2ee   : > { %v6164_v52 = vmax.bf16 %v6116_v29, %v13149_v57  ;;  %v6296_v8 = vrot.slane %v6163_v47, 7  ;;  %v4308_v54 = vor.u32 %v4307_v61, %v4303_v11  ;;  %v5220_v51 = vshrl.u32 %v5033_v58, 16  ;;  %v5035_v29 = vld [vmem:[#allocation2 + $0x88] sm:$0x1] }
 0x2ef   : > { %v4299_v48 = vrot.slane %v4298_v7, 4  ;;  %v4828_v46 = vsel %vm11300_vm5, %v4826_v18, %v4827_v23  ;;  %v4829_v38 = vrot.slane %v4827_v23, 4  ;;  %v4973_v55 = vmax.bf16 %v4825_v56, %v4713_v59  ;;  %v10783_v23 = vld [vmem:[%s14935_s3 + $0xd0] sm:$0xff]  }
 0x2f0   : > { %v6297_v30 = vsel %vm11875_vm14, %v10036_v19, %v6296_v8  ;;  %v6298_v62 = vrot.slane %v6296_v8, 4  ;;  %v6299_v1 = vrot.slane %v6164_v52, 7  ;;  %v4309_v63 = vrot.slane %v4308_v54, 4 }
 0x2f1   : > { %6787 = vst [vmem:[#allocation2 + $0x44] sm:$0xf] %v6297_v30  ;;  %v4304_v42 = vsel %vm11245_vm2, %v4299_v48, %v4303_v11  ;;  %v5222_v50 = vrot.slane %v5220_v51, 5  ;;  %v5223_v53 = vshll.u32 %v5033_v58, 16  ;;  %v5229_v21 = vshrl.u32 %v5034_v15, 16  ;;  %v11052_v11 = vld [vmem:[%s14935_s3 + $0xc0] sm:$0xff]  }
 0x2f2   : > { %v6300_v13 = vsel %vm11875_vm14, %v6298_v62, %v6299_v1  ;;  %v4714_v34 = vmax.bf16 %v4304_v42, %v4074_v9  ;;  %v4715_v22 = vmax.bf16 %v4309_v63, %v4075_v28  ;;  %v5232_v17 = vshll.u32 %v5034_v15, 16 }
 0x2f3   : > { %v10068_v31 = vcombine.low %v6297_v30, %v6300_v13  ;;  %6788 = vst [vmem:[#allocation2 + $0x48] sm:$0xf] %v6300_v13  ;;  %v5225_v24 = vrot.slane %v5223_v53, 6  ;;  %v5231_v43 = vrot.slane %v5229_v21, 5  ;;  %v5239_v35 = vshll.u32 %v5035_v29, 16  ;;  %v10784_v53 = vld [vmem:[%s14935_s3 + $0xd8] sm:$0xff]  }
 0x2f4   : > { %v4974_v6 = vmax.bf16 %v4828_v46, %v4714_v34  ;;  %v4975_v5 = vmax.bf16 %v4829_v38, %v4715_v22  ;;  %v5234_v49 = vrot.slane %v5232_v17, 6  ;;  %v5797_v25 = vrot.slane %v5681_v36, 6  ;;  %v4122_v38 = vld [vmem:[#allocation2 + $0x98] sm:$0xf] }
 0x2f5   : > { %10533 = vmatmul.mubr.bf16.vlgmr.msra.gmra.mrb[16].mxu1 %v10068_v31  ;;  %v5226_v0 = vor.u32 %v5225_v24, %v5222_v50  ;;  %v5241_v19 = vrot.slane %v5239_v35, 6  ;;  %v5799_v9 = vrot.slane %v5034_v15, 6  ;;  %v5802_v41 = vrot.slane %v5035_v29, 6  ;;  %v13182_v15 = vld [vmem:[#allocation2 + $0x94] sm:$0xf] }
 0x2f6   : > { %10565 = vmatpush3.bf16.msra.mxu1 %v11052_v11  ;;  %v5235_v56 = vor.u32 %v5234_v49, %v5231_v43  ;;  %v5798_v58 = vrot.slane %v5797_v25, 4  ;;  %v6021_v47 = vmax.bf16 %v13081_v4, %v13075_v14  ;;  %v6022_v39 = vmax.bf16 %v13083_v44, %v13077_v32  ;;  %v4076_v32 = vld [vmem:[#allocation2 + $0x90] sm:$0x8] }
 0x2f7   : > { %v5227_v61 = vrot.slane %v5226_v0, 4  ;;  %v5633_v7 = vmax.bf16 %v5226_v0, %v4973_v55  ;;  %v5801_v59 = vrot.slane %v5799_v9, 4  ;;  %v6023_v18 = vmax.bf16 %v13085_v26, %v13079_v60  ;;  %10566 = vmatprep.subr.bf16.mxu1 %v10782_v12 }
 0x2f8   : > { %v5237_v52 = vrot.slane %v5235_v56, 4  ;;  %v5800_v8 = vsel %vm11417_vm11, %v5798_v58, %v5799_v9  ;;  %v6069_v14 = vmax.bf16 %v6021_v47, %v13087_v33  ;;  %v6070_v54 = vmax.bf16 %v6022_v39, %v13089_v2  ;;  %v5037_v39 = vld [vmem:[#allocation2 + $0x98] sm:$0xf] }
 0x2f9   : > { %v5236_v51 = vsel %vm11329_vm8, %v5227_v61, %v5235_v56  ;;  %v5803_v60 = vsel %vm11417_vm11, %v5801_v59, %v5802_v41  ;;  %v13188_v48 = vmax.bf16 %v5797_v25, %v5633_v7  ;;  %v6071_v46 = vmax.bf16 %v6023_v18, %v13091_v37 }
 0x2fa   : > { %v5242_v55 = vsel %vm11329_vm8, %v5237_v52, %v5241_v19  ;;  %v5634_v30 = vmax.bf16 %v5236_v51, %v4974_v6  ;;  %v6117_v62 = vmax.bf16 %v6069_v14, %v13139_v20  ;;  %v6118_v1 = vmax.bf16 %v6070_v54, %v13147_v16  ;;  %10567 = vmatpush3.bf16.msra.mxu1 %v10782_v12  ;;  %v5036_v6 = vld [vmem:[#allocation2 + $0x94] sm:$0xf]  ;;  %v10785_v19 = vld [vmem:[%s14935_s3 + $0xe0] sm:$0xff]  }
 0x2fb   : > { %v5635_v28 = vmax.bf16 %v5242_v55, %v4975_v5  ;;  %v6119_v63 = vmax.bf16 %v6071_v46, %v13149_v57  ;;  %v4311_v42 = vshrl.u32 %v4076_v32, 16  ;;  %v4316_v50 = vshll.u32 %v13182_v15, 16  ;;  %10568 = vmatprep.subr.bf16.mxu1 %v10783_v23  ;;  %v5682_v51 = vld [vmem:[#allocation2 + $0x94] sm:$0xe]  ;;  %v4078_v46 = vld [vmem:[#allocation2 + $0x98] sm:$0x7] }
 0x2fc   : > { %v13200_v21 = vmax.bf16 %v5800_v8, %v5634_v30  ;;  %v6165_v36 = vmax.bf16 %v6117_v62, %v13188_v48  ;;  %v4320_v13 = vshrl.u32 %v13182_v15, 16  ;;  %v4326_v34 = vshll.u32 %v4122_v38, 16 }
 0x2fd   : > { %v13204_v22 = vmax.bf16 %v5803_v60, %v5635_v28  ;;  %v4318_v29 = vrot.slane %v4316_v50, 5  ;;  %v4330_v17 = vshrl.u32 %v4122_v38, 16  ;;  %v4830_v31 = vrot.slane %v13182_v15, 5 }
 0x2fe   : > { %v6166_v24 = vmax.bf16 %v6118_v1, %v13200_v21  ;;  %v10037_v43 = vrot.slane %v6165_v36, 11  ;;  %v4322_v35 = vrot.slane %v4320_v13, 4  ;;  %v4328_v12 = vrot.slane %v4326_v34, 5  ;;  %10569 = vmatpush3.bf16.msra.mxu1 %v10783_v23 }
 0x2ff   : > { %v6167_v5 = vmax.bf16 %v6119_v63, %v13204_v22  ;;  %v4319_v49 = vsel %vm11245_vm2, %v4311_v42, %v4318_v29  ;;  %v4332_v25 = vrot.slane %v4330_v17, 4  ;;  %v4831_v0 = vrot.slane %v4830_v31, 4  ;;  %10570 = vmatprep.subr.bf16.mxu1 %v10784_v53  ;;  %v5038_v63 = vld [vmem:[#allocation2 + $0x9c] sm:$0x1] }
 0x300   : > { %v6303_v9 = vrot.slane %v6166_v24, 7  ;;  %v4323_v41 = vor.u32 %v4322_v35, %v4318_v29  ;;  %v4716_v11 = vmax.bf16 %v4319_v49, %v4076_v32  ;;  %v4832_v56 = vrot.slane %v4122_v38, 5 }
 0x301   : > { %v6306_v58 = vrot.slane %v6167_v5, 7  ;;  %v4333_v47 = vor.u32 %v4332_v25, %v4328_v12  ;;  %v5244_v61 = vshrl.u32 %v5036_v6, 16  ;;  %v5247_v7 = vshll.u32 %v5036_v6, 16  ;;  %v4079_v25 = vld [vmem:[#allocation2 + $0xa4] sm:$0x8] }
 0x302   : > { %v6304_v59 = vsel %vm11875_vm14, %v10037_v43, %v6303_v9  ;;  %v6305_v18 = vrot.slane %v6303_v9, 4  ;;  %v4324_v23 = vrot.slane %v4323_v41, 4  ;;  %v4833_v52 = vsel %vm11300_vm5, %v4831_v0, %v4832_v56  ;;  %10571 = vmatpush3.bf16.msra.mxu1 %v10784_v53 }
 0x303   : > { %6789 = vst [vmem:[#allocation2 + $0x58] sm:$0xf] %v6304_v59  ;;  %v4334_v8 = vrot.slane %v4333_v47, 4  ;;  %v4834_v14 = vrot.slane %v4832_v56, 4  ;;  %v4976_v54 = vmax.bf16 %v4830_v31, %v4716_v11  ;;  %v5246_v32 = vrot.slane %v5244_v61, 5  ;;  %10572 = vmatprep.subr.bf16.mxu1 %v10785_v19 }
 0x304   : > { %v6307_v60 = vsel %vm11875_vm14, %v6305_v18, %v6306_v58  ;;  %v4329_v38 = vsel %vm11245_vm2, %v4324_v23, %v4328_v12  ;;  %v5249_v55 = vrot.slane %v5247_v7, 6  ;;  %v5253_v30 = vshrl.u32 %v5037_v39, 16  ;;  %v4080_v11 = vld [vmem:[#allocation2 + $0xa8] sm:$0xf] }
 0x305   : > { %v10069_v62 = vcombine.low %v6304_v59, %v6307_v60  ;;  %6790 = vst [vmem:[#allocation2 + $0x5c] sm:$0xf] %v6307_v60  ;;  %v4717_v1 = vmax.bf16 %v4329_v38, %v13182_v15  ;;  %v4718_v28 = vmax.bf16 %v4334_v8, %v4078_v46  ;;  %v5256_v42 = vshll.u32 %v5037_v39, 16  ;;  %v4123_v59 = vld [vmem:[#allocation2 + $0xac] sm:$0xf] }
 0x306   : > { %v5250_v50 = vor.u32 %v5249_v55, %v5246_v32  ;;  %v5255_v53 = vrot.slane %v5253_v30, 5  ;;  %v5263_v36 = vshll.u32 %v5038_v63, 16  ;;  %v5804_v13 = vrot.slane %v5682_v51, 6  ;;  %10573 = vmatpush3.bf16.msra.mxu1 %v10785_v19 }
 0x307   : > { %10536 = vmatprep.mubr.bf16.mxu1 %v10069_v62  ;;  %v4977_v34 = vmax.bf16 %v4833_v52, %v4717_v1  ;;  %v4978_v29 = vmax.bf16 %v4834_v14, %v4718_v28  ;;  %v5258_v17 = vrot.slane %v5256_v42, 6  ;;  %v5806_v31 = vrot.slane %v5037_v39, 6  ;;  %v5039_v28 = vld [vmem:[#allocation2 + $0xa8] sm:$0xf] }
 0x308   : > { %v5251_v24 = vrot.slane %v5250_v50, 4  ;;  %v5265_v43 = vrot.slane %v5263_v36, 6  ;;  %v5636_v35 = vmax.bf16 %v5250_v50, %v4976_v54  ;;  %v5805_v12 = vrot.slane %v5804_v13, 4 }
 0x309   : > { %v5259_v6 = vor.u32 %v5258_v17, %v5255_v53  ;;  %v5808_v5 = vrot.slane %v5806_v31, 4  ;;  %v5809_v15 = vrot.slane %v5038_v63, 6  ;;  %v6024_v49 = vmax.bf16 %v13087_v33, %v13081_v4 }
 0x30a   : > { %v5807_v0 = vsel %vm11417_vm11, %v5805_v12, %v5806_v31  ;;  %v13227_v19 = vmax.bf16 %v5804_v13, %v5636_v35  ;;  %v6025_v9 = vmax.bf16 %v13089_v2, %v13083_v44  ;;  %v6026_v41 = vmax.bf16 %v13091_v37, %v13085_v26 }
 0x30b   : > { %v5260_v56 = vsel %vm11329_vm8, %v5251_v24, %v5259_v6  ;;  %v5261_v58 = vrot.slane %v5259_v6, 4  ;;  %v5810_v4 = vsel %vm11417_vm11, %v5808_v5, %v5809_v15  ;;  %v6072_v47 = vmax.bf16 %v6024_v49, %v13139_v20  ;;  %v5040_v15 = vld [vmem:[#allocation2 + $0xac] sm:$0xf] }
 0x30c   : > { %v5637_v39 = vmax.bf16 %v5260_v56, %v4977_v34  ;;  %v6073_v61 = vmax.bf16 %v6025_v9, %v13147_v16  ;;  %v6074_v7 = vmax.bf16 %v6026_v41, %v13149_v57  ;;  %v4336_v44 = vshrl.u32 %v4079_v25, 16  ;;  %v5683_v41 = vld [vmem:[#allocation2 + $0xa8] sm:$0xe] }
 0x30d   : > { %v5266_v26 = vsel %vm11329_vm8, %v5261_v58, %v5265_v43  ;;  %v6120_v18 = vmax.bf16 %v6072_v47, %v13188_v48  ;;  %v4341_v23 = vshll.u32 %v4080_v11, 16  ;;  %v4345_v52 = vshrl.u32 %v4080_v11, 16  ;;  %v4081_v58 = vld [vmem:[#allocation2 + $0xac] sm:$0x7] }
 0x30e   : > { %v5638_v8 = vmax.bf16 %v5266_v26, %v4978_v29  ;;  %v13243_v14 = vmax.bf16 %v5807_v0, %v5637_v39  ;;  %v6121_v54 = vmax.bf16 %v6073_v61, %v13200_v21  ;;  %v6122_v32 = vmax.bf16 %v6074_v7, %v13204_v22  ;;  %v5041_v7 = vld [vmem:[#allocation2 + $0xb0] sm:$0x1] }
 0x30f   : > { %v6168_v51 = vmax.bf16 %v6120_v18, %v13227_v19  ;;  %v4343_v60 = vrot.slane %v4341_v23, 5  ;;  %v4347_v46 = vrot.slane %v4345_v52, 4  ;;  %v4351_v38 = vshll.u32 %v4123_v59, 16 }
 0x310   : > { %v13248_v55 = vmax.bf16 %v5810_v4, %v5638_v8  ;;  %v6169_v30 = vmax.bf16 %v6121_v54, %v13243_v14  ;;  %v4355_v62 = vshrl.u32 %v4123_v59, 16  ;;  %v4835_v1 = vrot.slane %v4080_v11, 5 }
 0x311   : > { %v10038_v63 = vrot.slane %v6168_v51, 11  ;;  %v4344_v42 = vsel %vm11245_vm2, %v4336_v44, %v4343_v60  ;;  %v4348_v50 = vor.u32 %v4347_v46, %v4343_v60  ;;  %v4353_v53 = vrot.slane %v4351_v38, 5  ;;  %v13262_v46 = vld [vmem:[#allocation2 + $0xb8] sm:$0x8] }
 0x312   : > { %v6170_v36 = vmax.bf16 %v6122_v32, %v13248_v55  ;;  %v6310_v13 = vrot.slane %v6169_v30, 7  ;;  %v4357_v34 = vrot.slane %v4355_v62, 4  ;;  %v4719_v29 = vmax.bf16 %v4344_v42, %v4079_v25 }
 0x313   : > { %v4349_v17 = vrot.slane %v4348_v50, 4  ;;  %v4836_v31 = vrot.slane %v4835_v1, 4  ;;  %v4837_v24 = vrot.slane %v4123_v59, 5  ;;  %v5268_v43 = vshrl.u32 %v5039_v28, 16  ;;  %v4083_v50 = vld [vmem:[#allocation2 + $0xbc] sm:$0xf] }
 0x314   : > { %v6311_v35 = vsel %vm11875_vm14, %v10038_v63, %v6310_v13  ;;  %v6312_v12 = vrot.slane %v6310_v13, 4  ;;  %v6313_v6 = vrot.slane %v6170_v36, 7  ;;  %v4358_v5 = vor.u32 %v4357_v34, %v4353_v53 }
 0x315   : > { %6791 = vst [vmem:[#allocation2 + $0x6c] sm:$0xf] %v6311_v35  ;;  %v4354_v49 = vsel %vm11245_vm2, %v4349_v17, %v4353_v53  ;;  %v4838_v0 = vsel %vm11300_vm5, %v4836_v31, %v4837_v24  ;;  %v4839_v9 = vrot.slane %v4837_v24, 4  ;;  %v4979_v25 = vmax.bf16 %v4835_v1, %v4719_v29  ;;  %v10786_v53 = vld [vmem:[%s14935_s3 + $0xe8] sm:$0xff]  }
 0x316   : > { %v6314_v56 = vsel %vm11875_vm14, %v6312_v12, %v6313_v6  ;;  %v4359_v4 = vrot.slane %v4358_v5, 4  ;;  %v4720_v47 = vmax.bf16 %v4354_v49, %v4080_v11  ;;  %v5270_v39 = vrot.slane %v5268_v43, 5  ;;  %10574 = vmatprep.subr.bf16.mxu1 %v10786_v53  ;;  %v4124_v6 = vld [vmem:[#allocation2 + $0xc0] sm:$0xf] }
 0x317   : > { %v10070_v61 = vcombine.low %v6311_v35, %v6314_v56  ;;  %6792 = vst [vmem:[#allocation2 + $0x70] sm:$0xf] %v6314_v56  ;;  %v5271_v59 = vshll.u32 %v5039_v28, 16  ;;  %v5277_v44 = vshrl.u32 %v5040_v15, 16  ;;  %v5280_v26 = vshll.u32 %v5040_v15, 16  ;;  %10575 = vmatpush3.bf16.msra.mxu1 %v10786_v53 }
 0x318   : > { %v4721_v18 = vmax.bf16 %v4359_v4, %v4081_v58  ;;  %v4980_v23 = vmax.bf16 %v4838_v0, %v4720_v47  ;;  %v5287_v52 = vshll.u32 %v5041_v7, 16  ;;  %v5811_v8 = vrot.slane %v5683_v41, 6 }
 0x319   : > { %10537 = vmatmul.mubr.bf16.gmra.mrb[20].mxu1 %v10070_v61  ;;  %v5273_v54 = vrot.slane %v5271_v59, 6  ;;  %v5279_v32 = vrot.slane %v5277_v44, 5  ;;  %v5282_v51 = vrot.slane %v5280_v26, 6  ;;  %v5813_v60 = vrot.slane %v5040_v15, 6 }
 0x31a   : > { %v4981_v38 = vmax.bf16 %v4839_v9, %v4721_v18  ;;  %v5289_v11 = vrot.slane %v5287_v52, 6  ;;  %v5812_v30 = vrot.slane %v5811_v8, 4  ;;  %v5816_v62 = vrot.slane %v5041_v7, 6  ;;  %v5042_v52 = vld [vmem:[#allocation2 + $0xbc] sm:$0xf] }
 0x31b   : > { %v5274_v1 = vor.u32 %v5273_v54, %v5270_v39  ;;  %v5283_v63 = vor.u32 %v5282_v51, %v5279_v32  ;;  %v5815_v28 = vrot.slane %v5813_v60, 4  ;;  %v6027_v42 = vmax.bf16 %v13139_v20, %v13087_v33 }
 0x31c   : > { %v5814_v36 = vsel %vm11417_vm11, %v5812_v30, %v5813_v60  ;;  %v6028_v13 = vmax.bf16 %v13147_v16, %v13089_v2  ;;  %v6029_v34 = vmax.bf16 %v13149_v57, %v13091_v37  ;;  %v4361_v29 = vshrl.u32 %v13262_v46, 16 }
 0x31d   : > { %v5275_v17 = vrot.slane %v5274_v1, 4  ;;  %v5285_v31 = vrot.slane %v5283_v63, 4  ;;  %v5639_v24 = vmax.bf16 %v5274_v1, %v4979_v25  ;;  %v5817_v33 = vsel %vm11417_vm11, %v5815_v28, %v5816_v62  ;;  %v5043_v28 = vld [vmem:[#allocation2 + $0xc0] sm:$0xf] }
 0x31e   : > { %v6075_v43 = vmax.bf16 %v6027_v42, %v13188_v48  ;;  %v6076_v35 = vmax.bf16 %v6028_v13, %v13200_v21  ;;  %v6077_v12 = vmax.bf16 %v6029_v34, %v13204_v22  ;;  %v4366_v2 = vshll.u32 %v4083_v50, 16 }
 0x31f   : > { %v5284_v37 = vsel %vm11329_vm8, %v5275_v17, %v5283_v63  ;;  %v5290_v5 = vsel %vm11329_vm8, %v5285_v31, %v5289_v11  ;;  %v13285_v15 = vmax.bf16 %v5811_v8, %v5639_v24  ;;  %v4370_v49 = vshrl.u32 %v4083_v50, 16 }
 0x320   : > { %v5640_v0 = vmax.bf16 %v5284_v37, %v4980_v23  ;;  %v5641_v9 = vmax.bf16 %v5290_v5, %v4981_v38  ;;  %v6123_v25 = vmax.bf16 %v6075_v43, %v13227_v19  ;;  %v6124_v41 = vmax.bf16 %v6076_v35, %v13243_v14 }
 0x321   : > { %v6125_v56 = vmax.bf16 %v6077_v12, %v13248_v55  ;;  %v4368_v58 = vrot.slane %v4366_v2, 5  ;;  %v4372_v4 = vrot.slane %v4370_v49, 4  ;;  %v4376_v47 = vshll.u32 %v4124_v6, 16  ;;  %v5684_v2 = vld [vmem:[#allocation2 + $0xbc] sm:$0xe] }
 0x322   : > { %v13290_v39 = vmax.bf16 %v5814_v36, %v5640_v0  ;;  %v13292_v61 = vmax.bf16 %v5817_v33, %v5641_v9  ;;  %v6171_v7 = vmax.bf16 %v6123_v25, %v13285_v15  ;;  %v4380_v59 = vshrl.u32 %v4124_v6, 16  ;;  %v5044_v33 = vld [vmem:[#allocation2 + $0xc4] sm:$0x1] }
 0x323   : > { %v4369_v44 = vsel %vm11245_vm2, %v4361_v29, %v4368_v58  ;;  %v4373_v26 = vor.u32 %v4372_v4, %v4368_v58  ;;  %v4378_v18 = vrot.slane %v4376_v47, 5  ;;  %v4840_v23 = vrot.slane %v4083_v50, 5 }
 0x324   : > { %v6172_v8 = vmax.bf16 %v6124_v41, %v13290_v39  ;;  %v6173_v54 = vmax.bf16 %v6125_v56, %v13292_v61  ;;  %v10039_v32 = vrot.slane %v6171_v7, 11  ;;  %v4382_v51 = vrot.slane %v4380_v59, 4 }
 0x325   : > { %v4374_v60 = vrot.slane %v4373_v26, 4  ;;  %v4722_v38 = vmax.bf16 %v4369_v44, %v13262_v46  ;;  %v4841_v11 = vrot.slane %v4840_v23, 4  ;;  %v4842_v30 = vrot.slane %v4124_v6, 5  ;;  %v4084_v46 = vld [vmem:[#allocation2 + $0xc0] sm:$0x7] }
 0x326   : > { %v6317_v62 = vrot.slane %v6172_v8, 7  ;;  %v6320_v1 = vrot.slane %v6173_v54, 7  ;;  %v4383_v63 = vor.u32 %v4382_v51, %v4378_v18  ;;  %v5292_v42 = vshrl.u32 %v5042_v52, 16 }
 0x327   : > { %v4379_v53 = vsel %vm11245_vm2, %v4374_v60, %v4378_v18  ;;  %v4843_v36 = vsel %vm11300_vm5, %v4841_v11, %v4842_v30  ;;  %v4844_v13 = vrot.slane %v4842_v30, 4  ;;  %v4982_v34 = vmax.bf16 %v4840_v23, %v4722_v38 }
 0x328   : > { %v6318_v29 = vsel %vm11875_vm14, %v10039_v32, %v6317_v62  ;;  %v6319_v17 = vrot.slane %v6317_v62, 4  ;;  %v4384_v31 = vrot.slane %v4383_v63, 4  ;;  %v4723_v24 = vmax.bf16 %v4379_v53, %v4083_v50  ;;  %v4085_v62 = vld [vmem:[#allocation2 + $0xcc] sm:$0x8] }
 0x329   : > { %6793 = vst [vmem:[#allocation2 + $0x80] sm:$0xf] %v6318_v29  ;;  %v5294_v43 = vrot.slane %v5292_v42, 5  ;;  %v5295_v35 = vshll.u32 %v5042_v52, 16  ;;  %v5301_v12 = vshrl.u32 %v5043_v28, 16  ;;  %v5304_v6 = vshll.u32 %v5043_v28, 16 }
 0x32a   : > { %v6321_v37 = vsel %vm11875_vm14, %v6319_v17, %v6320_v1  ;;  %v4724_v5 = vmax.bf16 %v4384_v31, %v4084_v46  ;;  %v4983_v49 = vmax.bf16 %v4843_v36, %v4723_v24  ;;  %v5311_v0 = vshll.u32 %v5044_v33, 16  ;;  %v4125_v42 = vld [vmem:[#allocation2 + $0xd4] sm:$0xf] }
 0x32b   : > { %v10071_v9 = vcombine.low %v6318_v29, %v6321_v37  ;;  %6794 = vst [vmem:[#allocation2 + $0x84] sm:$0xf] %v6321_v37  ;;  %v5297_v25 = vrot.slane %v5295_v35, 6  ;;  %v5303_v41 = vrot.slane %v5301_v12, 5  ;;  %v5306_v56 = vrot.slane %v5304_v6, 6 }
 0x32c   : > { %v4984_v58 = vmax.bf16 %v4844_v13, %v4724_v5  ;;  %v5313_v50 = vrot.slane %v5311_v0, 6  ;;  %v5818_v4 = vrot.slane %v5684_v2, 6  ;;  %v5820_v47 = vrot.slane %v5043_v28, 6 }
 0x32d   : > { %10540 = vmatprep.mubr.bf16.mxu1 %v10071_v9  ;;  %v5298_v7 = vor.u32 %v5297_v25, %v5294_v43  ;;  %v5307_v59 = vor.u32 %v5306_v56, %v5303_v41  ;;  %v5823_v44 = vrot.slane %v5044_v33, 6  ;;  %v6030_v26 = vmax.bf16 %v13188_v48, %v13139_v20  ;;  %v5045_v25 = vld [vmem:[#allocation2 + $0xd0] sm:$0xf] }
 0x32e   : > { %v5819_v18 = vrot.slane %v5818_v4, 4  ;;  %v5822_v23 = vrot.slane %v5820_v47, 4  ;;  %v6031_v52 = vmax.bf16 %v13200_v21, %v13147_v16  ;;  %v6032_v8 = vmax.bf16 %v13204_v22, %v13149_v57  ;;  %v4086_v16 = vld [vmem:[#allocation2 + $0xd0] sm:$0xf] }
 0x32f   : > { %v5299_v54 = vrot.slane %v5298_v7, 4  ;;  %v5309_v32 = vrot.slane %v5307_v59, 4  ;;  %v5642_v51 = vmax.bf16 %v5298_v7, %v4982_v34  ;;  %v6078_v60 = vmax.bf16 %v6030_v26, %v13227_v19 }
 0x330   : > { %v5821_v38 = vsel %vm11417_vm11, %v5819_v18, %v5820_v47  ;;  %v5824_v11 = vsel %vm11417_vm11, %v5822_v23, %v5823_v44  ;;  %v6079_v20 = vmax.bf16 %v6031_v52, %v13243_v14  ;;  %v6080_v30 = vmax.bf16 %v6032_v8, %v13248_v55  ;;  %v5046_v44 = vld [vmem:[#allocation2 + $0xd4] sm:$0xf] }
 0x331   : > { %v5308_v57 = vsel %vm11329_vm8, %v5299_v54, %v5307_v59  ;;  %v5314_v1 = vsel %vm11329_vm8, %v5309_v32, %v5313_v50  ;;  %v13325_v63 = vmax.bf16 %v5818_v4, %v5642_v51  ;;  %v6126_v28 = vmax.bf16 %v6078_v60, %v13285_v15  ;;  %v4087_v32 = vld [vmem:[#allocation2 + $0xd4] sm:$0x7] }
 0x332   : > { %v5643_v53 = vmax.bf16 %v5308_v57, %v4983_v49  ;;  %v5644_v36 = vmax.bf16 %v5314_v1, %v4984_v58  ;;  %v6127_v13 = vmax.bf16 %v6079_v20, %v13290_v39  ;;  %v6128_v34 = vmax.bf16 %v6080_v30, %v13292_v61 }
 0x333   : > { %v6174_v29 = vmax.bf16 %v6126_v28, %v13325_v63  ;;  %v4386_v17 = vshrl.u32 %v4085_v62, 16  ;;  %v4391_v46 = vshll.u32 %v4086_v16, 16  ;;  %v4395_v31 = vshrl.u32 %v4086_v16, 16 }
 0x334   : > { %v13331_v24 = vmax.bf16 %v5821_v38, %v5643_v53  ;;  %v13333_v33 = vmax.bf16 %v5824_v11, %v5644_v36  ;;  %v4401_v43 = vshll.u32 %v4125_v42, 16  ;;  %v4405_v35 = vshrl.u32 %v4125_v42, 16 }
 0x335   : > { %v10040_v12 = vrot.slane %v6174_v29, 11  ;;  %v4393_v6 = vrot.slane %v4391_v46, 5  ;;  %v4397_v2 = vrot.slane %v4395_v31, 4  ;;  %v4845_v37 = vrot.slane %v4086_v16, 5 }
 0x336   : > { %v6175_v5 = vmax.bf16 %v6127_v13, %v13331_v24  ;;  %v6176_v49 = vmax.bf16 %v6128_v34, %v13333_v33  ;;  %v4403_v0 = vrot.slane %v4401_v43, 5  ;;  %v4407_v9 = vrot.slane %v4405_v35, 4 }
 0x337   : > { %v4394_v41 = vsel %vm11245_vm2, %v4386_v17, %v4393_v6  ;;  %v4398_v56 = vor.u32 %v4397_v2, %v4393_v6  ;;  %v4846_v58 = vrot.slane %v4845_v37, 4  ;;  %v4847_v50 = vrot.slane %v4125_v42, 5  ;;  %v5047_v42 = vld [vmem:[#allocation2 + $0xd8] sm:$0x1] }
 0x338   : > { %v6324_v4 = vrot.slane %v6175_v5, 7  ;;  %v6327_v47 = vrot.slane %v6176_v49, 7  ;;  %v4408_v7 = vor.u32 %v4407_v9, %v4403_v0  ;;  %v4725_v59 = vmax.bf16 %v4394_v41, %v4085_v62  ;;  %v5685_v62 = vld [vmem:[#allocation2 + $0xd0] sm:$0xe] }
 0x339   : > { %v4399_v26 = vrot.slane %v4398_v56, 4  ;;  %v4848_v18 = vsel %vm11300_vm5, %v4846_v58, %v4847_v50  ;;  %v4849_v23 = vrot.slane %v4847_v50, 4  ;;  %v5316_v52 = vshrl.u32 %v5045_v25, 16  ;;  %v10787_v56 = vld [vmem:[%s14935_s3 + $0xf0] sm:$0xff]  }
 0x33a   : > { %v6325_v8 = vsel %vm11875_vm14, %v10040_v12, %v6324_v4  ;;  %v6326_v54 = vrot.slane %v6324_v4, 4  ;;  %v4409_v51 = vrot.slane %v4408_v7, 4  ;;  %v4985_v60 = vmax.bf16 %v4845_v37, %v4725_v59  ;;  %10576 = vmatprep.subr.bf16.mxu1 %v10787_v56 }
 0x33b   : > { %6795 = vst [vmem:[#allocation2 + $0x94] sm:$0xf] %v6325_v8  ;;  %v4404_v38 = vsel %vm11245_vm2, %v4399_v26, %v4403_v0  ;;  %v5318_v11 = vrot.slane %v5316_v52, 5  ;;  %v5319_v20 = vshll.u32 %v5045_v25, 16  ;;  %v5325_v30 = vshrl.u32 %v5046_v44, 16  ;;  %10577 = vmatpush3.bf16.msra.mxu1 %v10787_v56 }
 0x33c   : > { %v6328_v57 = vsel %vm11875_vm14, %v6326_v54, %v6327_v47  ;;  %v4726_v1 = vmax.bf16 %v4404_v38, %v4086_v16  ;;  %v4727_v28 = vmax.bf16 %v4409_v51, %v4087_v32  ;;  %v5328_v53 = vshll.u32 %v5046_v44, 16  ;;  %v4088_v47 = vld [vmem:[#allocation2 + $0xe0] sm:$0x8]  ;;  %v4126_v26 = vld [vmem:[#allocation2 + $0xe8] sm:$0xf] }
 0x33d   : > { %v10072_v36 = vcombine.low %v6325_v8, %v6328_v57  ;;  %6796 = vst [vmem:[#allocation2 + $0x98] sm:$0xf] %v6328_v57  ;;  %v5321_v13 = vrot.slane %v5319_v20, 6  ;;  %v5327_v34 = vrot.slane %v5325_v30, 5  ;;  %v5335_v29 = vshll.u32 %v5047_v42, 16 }
 0x33e   : > { %v4986_v17 = vmax.bf16 %v4848_v18, %v4726_v1  ;;  %v4987_v46 = vmax.bf16 %v4849_v23, %v4727_v28  ;;  %v5330_v31 = vrot.slane %v5328_v53, 6  ;;  %v5825_v43 = vrot.slane %v5685_v62, 6 }
 0x33f   : > { %10541 = vmatmul.mubr.bf16.gmra.mrb[24].mxu1 %v10072_v36  ;;  %v5322_v35 = vor.u32 %v5321_v13, %v5318_v11  ;;  %v5337_v12 = vrot.slane %v5335_v29, 6  ;;  %v5827_v6 = vrot.slane %v5046_v44, 6  ;;  %v5830_v2 = vrot.slane %v5047_v42, 6 }
 0x340   : > { %v5331_v37 = vor.u32 %v5330_v31, %v5327_v34  ;;  %v5826_v5 = vrot.slane %v5825_v43, 4  ;;  %v6033_v16 = vmax.bf16 %v13227_v19, %v13188_v48  ;;  %v6034_v49 = vmax.bf16 %v13243_v14, %v13200_v21  ;;  %v4089_v21 = vld [vmem:[#allocation2 + $0xe4] sm:$0xf] }
 0x341   : > { %v5323_v0 = vrot.slane %v5322_v35, 4  ;;  %v5645_v9 = vmax.bf16 %v5322_v35, %v4985_v60  ;;  %v5829_v25 = vrot.slane %v5827_v6, 4  ;;  %v6035_v41 = vmax.bf16 %v13248_v55, %v13204_v22  ;;  %v5048_v34 = vld [vmem:[#allocation2 + $0xe4] sm:$0xf] }
 0x342   : > { %v5333_v58 = vrot.slane %v5331_v37, 4  ;;  %v5828_v50 = vsel %vm11417_vm11, %v5826_v5, %v5827_v6  ;;  %v6081_v4 = vmax.bf16 %v6033_v16, %v13285_v15  ;;  %v6082_v48 = vmax.bf16 %v6034_v49, %v13290_v39  ;;  %v5049_v5 = vld [vmem:[#allocation2 + $0xe8] sm:$0xf] }
 0x343   : > { %v5332_v7 = vsel %vm11329_vm8, %v5323_v0, %v5331_v37  ;;  %v5831_v22 = vsel %vm11417_vm11, %v5829_v25, %v5830_v2  ;;  %v13364_v59 = vmax.bf16 %v5825_v43, %v5645_v9  ;;  %v6083_v44 = vmax.bf16 %v6035_v41, %v13292_v61 }
 0x344   : > { %v5338_v18 = vsel %vm11329_vm8, %v5333_v58, %v5337_v12  ;;  %v5646_v23 = vmax.bf16 %v5332_v7, %v4986_v17  ;;  %v6129_v52 = vmax.bf16 %v6081_v4, %v13325_v63  ;;  %v6130_v8 = vmax.bf16 %v6082_v48, %v13331_v24  ;;  %v5686_v48 = vld [vmem:[#allocation2 + $0xe4] sm:$0xe]  ;;  %v4090_v7 = vld [vmem:[#allocation2 + $0xe8] sm:$0x7] }
 0x345   : > { %v5647_v54 = vmax.bf16 %v5338_v18, %v4987_v46  ;;  %v6131_v32 = vmax.bf16 %v6083_v44, %v13333_v33  ;;  %v4411_v51 = vshrl.u32 %v4088_v47, 16  ;;  %v4416_v60 = vshll.u32 %v4089_v21, 16 }
 0x346   : > { %v13372_v38 = vmax.bf16 %v5828_v50, %v5646_v23  ;;  %v6177_v11 = vmax.bf16 %v6129_v52, %v13364_v59  ;;  %v4420_v20 = vshrl.u32 %v4089_v21, 16  ;;  %v4426_v30 = vshll.u32 %v4126_v26, 16 }
 0x347   : > { %v13375_v62 = vmax.bf16 %v5831_v22, %v5647_v54  ;;  %v4418_v57 = vrot.slane %v4416_v60, 5  ;;  %v4430_v1 = vshrl.u32 %v4126_v26, 16  ;;  %v4850_v28 = vrot.slane %v4089_v21, 5 }
 0x348   : > { %v6178_v42 = vmax.bf16 %v6130_v8, %v13372_v38  ;;  %v10041_v53 = vrot.slane %v6177_v11, 11  ;;  %v4422_v36 = vrot.slane %v4420_v20, 4  ;;  %v4428_v13 = vrot.slane %v4426_v30, 5  ;;  %v5050_v8 = vld [vmem:[#allocation2 + $0xec] sm:$0x1] }
 0x349   : > { %v6179_v29 = vmax.bf16 %v6131_v32, %v13375_v62  ;;  %v4419_v17 = vsel %vm11245_vm2, %v4411_v51, %v4418_v57  ;;  %v4432_v46 = vrot.slane %v4430_v1, 4  ;;  %v4851_v31 = vrot.slane %v4850_v28, 4 }
 0x34a   : > { %v6331_v43 = vrot.slane %v6178_v42, 7  ;;  %v4423_v35 = vor.u32 %v4422_v36, %v4418_v57  ;;  %v4728_v12 = vmax.bf16 %v4419_v17, %v4088_v47  ;;  %v4852_v6 = vrot.slane %v4126_v26, 5  ;;  %v4091_v17 = vld [vmem:[#allocation2 + $0xf4] sm:$0x8] }
 0x34b   : > { %v6334_v2 = vrot.slane %v6179_v29, 7  ;;  %v4433_v37 = vor.u32 %v4432_v46, %v4428_v13  ;;  %v5340_v16 = vshrl.u32 %v5048_v34, 16  ;;  %v5343_v49 = vshll.u32 %v5048_v34, 16 }
 0x34c   : > { %v6332_v0 = vsel %vm11875_vm14, %v10041_v53, %v6331_v43  ;;  %v6333_v9 = vrot.slane %v6331_v43, 4  ;;  %v4424_v25 = vrot.slane %v4423_v35, 4  ;;  %v4853_v41 = vsel %vm11300_vm5, %v4851_v31, %v4852_v6 }
 0x34d   : > { %6797 = vst [vmem:[#allocation2 + $0xa8] sm:$0xf] %v6332_v0  ;;  %v4434_v56 = vrot.slane %v4433_v37, 4  ;;  %v4854_v58 = vrot.slane %v4852_v6, 4  ;;  %v4988_v50 = vmax.bf16 %v4850_v28, %v4728_v12  ;;  %v5342_v4 = vrot.slane %v5340_v16, 5 }
 0x34e   : > { %v6335_v47 = vsel %vm11875_vm14, %v6333_v9, %v6334_v2  ;;  %v4429_v22 = vsel %vm11245_vm2, %v4424_v25, %v4428_v13  ;;  %v5345_v44 = vrot.slane %v5343_v49, 6  ;;  %v5349_v26 = vshrl.u32 %v5049_v5, 16  ;;  %v4092_v12 = vld [vmem:[#allocation2 + $0xf8] sm:$0xf] }
 0x34f   : > { %v10073_v18 = vcombine.low %v6332_v0, %v6335_v47  ;;  %6798 = vst [vmem:[#allocation2 + $0xac] sm:$0xf] %v6335_v47  ;;  %v4729_v23 = vmax.bf16 %v4429_v22, %v4089_v21  ;;  %v4730_v52 = vmax.bf16 %v4434_v56, %v4090_v7  ;;  %v5352_v54 = vshll.u32 %v5049_v5, 16  ;;  %v4127_v0 = vld [vmem:[#allocation2 + $0xfc] sm:$0xf] }
 0x350   : > { %v5346_v32 = vor.u32 %v5345_v44, %v5342_v4  ;;  %v5351_v51 = vrot.slane %v5349_v26, 5  ;;  %v5359_v60 = vshll.u32 %v5050_v8, 16  ;;  %v5832_v11 = vrot.slane %v5686_v48, 6 }
 0x351   : > { %10544 = vmatprep.mubr.bf16.mxu1 %v10073_v18  ;;  %v4989_v20 = vmax.bf16 %v4853_v41, %v4729_v23  ;;  %v4990_v30 = vmax.bf16 %v4854_v58, %v4730_v52  ;;  %v5354_v57 = vrot.slane %v5352_v54, 6  ;;  %v5834_v1 = vrot.slane %v5049_v5, 6  ;;  %v5051_v52 = vld [vmem:[#allocation2 + $0xf8] sm:$0xf] }
 0x352   : > { %v5347_v28 = vrot.slane %v5346_v32, 4  ;;  %v5361_v42 = vrot.slane %v5359_v60, 6  ;;  %v5648_v53 = vmax.bf16 %v5346_v32, %v4988_v50  ;;  %v5833_v36 = vrot.slane %v5832_v11, 4 }
 0x353   : > { %v5355_v13 = vor.u32 %v5354_v57, %v5351_v51  ;;  %v5836_v34 = vrot.slane %v5834_v1, 4  ;;  %v5837_v29 = vrot.slane %v5050_v8, 6  ;;  %v6036_v21 = vmax.bf16 %v13285_v15, %v13227_v19 }
 0x354   : > { %v5835_v46 = vsel %vm11417_vm11, %v5833_v36, %v5834_v1  ;;  %v13393_v31 = vmax.bf16 %v5832_v11, %v5648_v53  ;;  %v6037_v43 = vmax.bf16 %v13290_v39, %v13243_v14  ;;  %v6038_v35 = vmax.bf16 %v13292_v61, %v13248_v55 }
 0x355   : > { %v5356_v6 = vsel %vm11329_vm8, %v5347_v28, %v5355_v13  ;;  %v5357_v2 = vrot.slane %v5355_v13, 4  ;;  %v5838_v19 = vsel %vm11417_vm11, %v5836_v34, %v5837_v29  ;;  %v6084_v37 = vmax.bf16 %v6036_v21, %v13325_v63  ;;  %v5052_v29 = vld [vmem:[#allocation2 + $0xfc] sm:$0xf] }
 0x356   : > { %v5649_v5 = vmax.bf16 %v5356_v6, %v4989_v20  ;;  %v6085_v16 = vmax.bf16 %v6037_v43, %v13331_v24  ;;  %v6086_v49 = vmax.bf16 %v6038_v35, %v13333_v33  ;;  %v4436_v14 = vshrl.u32 %v4091_v17, 16  ;;  %v5687_v35 = vld [vmem:[#allocation2 + $0xf8] sm:$0xe] }
 0x357   : > { %v5362_v55 = vsel %vm11329_vm8, %v5357_v2, %v5361_v42  ;;  %v6132_v9 = vmax.bf16 %v6084_v37, %v13364_v59  ;;  %v4441_v25 = vshll.u32 %v4092_v12, 16  ;;  %v4445_v41 = vshrl.u32 %v4092_v12, 16  ;;  %v4093_v2 = vld [vmem:[#allocation2 + $0xfc] sm:$0x7] }
 0x358   : > { %v5650_v56 = vmax.bf16 %v5362_v55, %v4990_v30  ;;  %v13409_v58 = vmax.bf16 %v5835_v46, %v5649_v5  ;;  %v6133_v50 = vmax.bf16 %v6085_v16, %v13372_v38  ;;  %v6134_v4 = vmax.bf16 %v6086_v49, %v13375_v62  ;;  %v5053_v49 = vld [vmem:[#allocation2 + $0x100] sm:$0x1] }
 0x359   : > { %v6180_v48 = vmax.bf16 %v6132_v9, %v13393_v31  ;;  %v4443_v47 = vrot.slane %v4441_v25, 5  ;;  %v4447_v7 = vrot.slane %v4445_v41, 4  ;;  %v4451_v22 = vshll.u32 %v4127_v0, 16 }
 0x35a   : > { %v13414_v44 = vmax.bf16 %v5838_v19, %v5650_v56  ;;  %v6181_v26 = vmax.bf16 %v6133_v50, %v13409_v58  ;;  %v4455_v18 = vshrl.u32 %v4127_v0, 16  ;;  %v4855_v23 = vrot.slane %v4092_v12, 5 }
 0x35b   : > { %v10042_v8 = vrot.slane %v6180_v48, 11  ;;  %v4444_v54 = vsel %vm11245_vm2, %v4436_v14, %v4443_v47  ;;  %v4448_v32 = vor.u32 %v4447_v7, %v4443_v47  ;;  %v4453_v51 = vrot.slane %v4451_v22, 5  ;;  %v13428_v7 = vld [vmem:[#allocation2 + $0x108] sm:$0x8] }
 0x35c   : > { %v6182_v60 = vmax.bf16 %v6134_v4, %v13414_v44  ;;  %v6338_v11 = vrot.slane %v6181_v26, 7  ;;  %v4457_v20 = vrot.slane %v4455_v18, 4  ;;  %v4731_v30 = vmax.bf16 %v4444_v54, %v4091_v17 }
 0x35d   : > { %v4449_v57 = vrot.slane %v4448_v32, 4  ;;  %v4856_v1 = vrot.slane %v4855_v23, 4  ;;  %v4857_v28 = vrot.slane %v4127_v0, 5  ;;  %v5364_v42 = vshrl.u32 %v5051_v52, 16  ;;  %v4095_v32 = vld [vmem:[#allocation2 + $0x10c] sm:$0xf] }
 0x35e   : > { %v6339_v53 = vsel %vm11875_vm14, %v10042_v8, %v6338_v11  ;;  %v6340_v36 = vrot.slane %v6338_v11, 4  ;;  %v6341_v13 = vrot.slane %v6182_v60, 7  ;;  %v4458_v34 = vor.u32 %v4457_v20, %v4453_v51 }
 0x35f   : > { %6799 = vst [vmem:[#allocation2 + $0xbc] sm:$0xf] %v6339_v53  ;;  %v4454_v21 = vsel %vm11245_vm2, %v4449_v57, %v4453_v51  ;;  %v4858_v46 = vsel %vm11300_vm5, %v4856_v1, %v4857_v28  ;;  %v4859_v43 = vrot.slane %v4857_v28, 4  ;;  %v4991_v17 = vmax.bf16 %v4855_v23, %v4731_v30  ;;  %v10788_v51 = vld [vmem:[%s14935_s3 + $0xf8] sm:$0xff]  }
 0x360   : > { %v6342_v6 = vsel %vm11875_vm14, %v6340_v36, %v6341_v13  ;;  %v4459_v19 = vrot.slane %v4458_v34, 4  ;;  %v4732_v37 = vmax.bf16 %v4454_v21, %v4092_v12  ;;  %v5366_v5 = vrot.slane %v5364_v42, 5  ;;  %10578 = vmatprep.subr.bf16.mxu1 %v10788_v51  ;;  %v4128_v13 = vld [vmem:[#allocation2 + $0x110] sm:$0xf] }
 0x361   : > { %v10074_v16 = vcombine.low %v6339_v53, %v6342_v6  ;;  %6800 = vst [vmem:[#allocation2 + $0xc0] sm:$0xf] %v6342_v6  ;;  %v5367_v0 = vshll.u32 %v5051_v52, 16  ;;  %v5373_v14 = vshrl.u32 %v5052_v29, 16  ;;  %v5376_v55 = vshll.u32 %v5052_v29, 16  ;;  %10579 = vmatpush3.bf16.msra.mxu1 %v10788_v51 }
 0x362   : > { %v4733_v9 = vmax.bf16 %v4459_v19, %v4093_v2  ;;  %v4992_v25 = vmax.bf16 %v4858_v46, %v4732_v37  ;;  %v5383_v41 = vshll.u32 %v5053_v49, 16  ;;  %v5839_v56 = vrot.slane %v5687_v35, 6 }
 0x363   : > { %10545 = vmatmul.mubr.bf16.gmra.mrb[28].mxu1 %v10074_v16  ;;  %v5369_v50 = vrot.slane %v5367_v0, 6  ;;  %v5375_v4 = vrot.slane %v5373_v14, 5  ;;  %v5378_v48 = vrot.slane %v5376_v55, 6  ;;  %v5841_v47 = vrot.slane %v5052_v29, 6 }
 0x364   : > { %v4993_v22 = vmax.bf16 %v4859_v43, %v4733_v9  ;;  %v5385_v12 = vrot.slane %v5383_v41, 6  ;;  %v5840_v26 = vrot.slane %v5839_v56, 4  ;;  %v5844_v18 = vrot.slane %v5053_v49, 6  ;;  %v5054_v41 = vld [vmem:[#allocation2 + $0x10c] sm:$0xf] }
 0x365   : > { %v5370_v23 = vor.u32 %v5369_v50, %v5366_v5  ;;  %v5379_v8 = vor.u32 %v5378_v48, %v5375_v4  ;;  %v5843_v52 = vrot.slane %v5841_v47, 4  ;;  %v6039_v54 = vmax.bf16 %v13325_v63, %v13285_v15 }
 0x366   : > { %v5842_v60 = vsel %vm11417_vm11, %v5840_v26, %v5841_v47  ;;  %v6040_v11 = vmax.bf16 %v13331_v24, %v13290_v39  ;;  %v6041_v20 = vmax.bf16 %v13333_v33, %v13292_v61  ;;  %v4461_v30 = vshrl.u32 %v13428_v7, 16 }
 0x367   : > { %v5371_v57 = vrot.slane %v5370_v23, 4  ;;  %v5381_v1 = vrot.slane %v5379_v8, 4  ;;  %v5651_v28 = vmax.bf16 %v5370_v23, %v4991_v17  ;;  %v5845_v15 = vsel %vm11417_vm11, %v5843_v52, %v5844_v18  ;;  %v5055_v52 = vld [vmem:[#allocation2 + $0x110] sm:$0xf] }
 0x368   : > { %v6087_v42 = vmax.bf16 %v6039_v54, %v13364_v59  ;;  %v6088_v53 = vmax.bf16 %v6040_v11, %v13372_v38  ;;  %v6089_v36 = vmax.bf16 %v6041_v20, %v13375_v62  ;;  %v4466_v39 = vshll.u32 %v4095_v32, 16 }
 0x369   : > { %v5380_v61 = vsel %vm11329_vm8, %v5371_v57, %v5379_v8  ;;  %v5386_v34 = vsel %vm11329_vm8, %v5381_v1, %v5385_v12  ;;  %v13451_v29 = vmax.bf16 %v5839_v56, %v5651_v28  ;;  %v4470_v21 = vshrl.u32 %v4095_v32, 16 }
 0x36a   : > { %v5652_v46 = vmax.bf16 %v5380_v61, %v4992_v25  ;;  %v5653_v43 = vmax.bf16 %v5386_v34, %v4993_v22  ;;  %v6135_v17 = vmax.bf16 %v6087_v42, %v13393_v31  ;;  %v6136_v35 = vmax.bf16 %v6088_v53, %v13409_v58 }
 0x36b   : > { %v6137_v6 = vmax.bf16 %v6089_v36, %v13414_v44  ;;  %v4468_v2 = vrot.slane %v4466_v39, 5  ;;  %v4472_v19 = vrot.slane %v4470_v21, 4  ;;  %v4476_v37 = vshll.u32 %v4128_v13, 16  ;;  %v5688_v39 = vld [vmem:[#allocation2 + $0x10c] sm:$0xe] }
 0x36c   : > { %v13456_v5 = vmax.bf16 %v5842_v60, %v5652_v46  ;;  %v13458_v16 = vmax.bf16 %v5845_v15, %v5653_v43  ;;  %v6183_v49 = vmax.bf16 %v6135_v17, %v13451_v29  ;;  %v4480_v0 = vshrl.u32 %v4128_v13, 16  ;;  %v5056_v15 = vld [vmem:[#allocation2 + $0x114] sm:$0x1] }
 0x36d   : > { %v4469_v14 = vsel %vm11245_vm2, %v4461_v30, %v4468_v2  ;;  %v4473_v55 = vor.u32 %v4472_v19, %v4468_v2  ;;  %v4478_v9 = vrot.slane %v4476_v37, 5  ;;  %v4860_v25 = vrot.slane %v4095_v32, 5 }
 0x36e   : > { %v6184_v56 = vmax.bf16 %v6136_v35, %v13456_v5  ;;  %v6185_v50 = vmax.bf16 %v6137_v6, %v13458_v16  ;;  %v10043_v4 = vrot.slane %v6183_v49, 11  ;;  %v4482_v48 = vrot.slane %v4480_v0, 4 }
 0x36f   : > { %v4474_v47 = vrot.slane %v4473_v55, 4  ;;  %v4734_v22 = vmax.bf16 %v4469_v14, %v13428_v7  ;;  %v4861_v12 = vrot.slane %v4860_v25, 4  ;;  %v4862_v26 = vrot.slane %v4128_v13, 5  ;;  %v4096_v7 = vld [vmem:[#allocation2 + $0x110] sm:$0x7] }
 0x370   : > { %v6345_v18 = vrot.slane %v6184_v56, 7  ;;  %v6348_v23 = vrot.slane %v6185_v50, 7  ;;  %v4483_v8 = vor.u32 %v4482_v48, %v4478_v9  ;;  %v5388_v54 = vshrl.u32 %v5054_v41, 16 }
 0x371   : > { %v4479_v51 = vsel %vm11245_vm2, %v4474_v47, %v4478_v9  ;;  %v4863_v60 = vsel %vm11300_vm5, %v4861_v12, %v4862_v26  ;;  %v4864_v11 = vrot.slane %v4862_v26, 4  ;;  %v4994_v20 = vmax.bf16 %v4860_v25, %v4734_v22 }
 0x372   : > { %v6346_v30 = vsel %vm11875_vm14, %v10043_v4, %v6345_v18  ;;  %v6347_v57 = vrot.slane %v6345_v18, 4  ;;  %v4484_v1 = vrot.slane %v4483_v8, 4  ;;  %v4735_v28 = vmax.bf16 %v4479_v51, %v4095_v32  ;;  %v4097_v18 = vld [vmem:[#allocation2 + $0x11c] sm:$0x8] }
 0x373   : > { %6801 = vst [vmem:[#allocation2 + $0xd0] sm:$0xf] %v6346_v30  ;;  %v5390_v42 = vrot.slane %v5388_v54, 5  ;;  %v5391_v53 = vshll.u32 %v5054_v41, 16  ;;  %v5397_v36 = vshrl.u32 %v5055_v52, 16  ;;  %v5400_v13 = vshll.u32 %v5055_v52, 16 }
 0x374   : > { %v6349_v61 = vsel %vm11875_vm14, %v6347_v57, %v6348_v23  ;;  %v4736_v34 = vmax.bf16 %v4484_v1, %v4096_v7  ;;  %v4995_v21 = vmax.bf16 %v4863_v60, %v4735_v28  ;;  %v5407_v46 = vshll.u32 %v5056_v15, 16  ;;  %v4129_v54 = vld [vmem:[#allocation2 + $0x124] sm:$0xf] }
 0x375   : > { %v10075_v43 = vcombine.low %v6346_v30, %v6349_v61  ;;  %6802 = vst [vmem:[#allocation2 + $0xd4] sm:$0xf] %v6349_v61  ;;  %v5393_v17 = vrot.slane %v5391_v53, 6  ;;  %v5399_v35 = vrot.slane %v5397_v36, 5  ;;  %v5402_v6 = vrot.slane %v5400_v13, 6 }
 0x376   : > { %v4996_v2 = vmax.bf16 %v4864_v11, %v4736_v34  ;;  %v5409_v32 = vrot.slane %v5407_v46, 6  ;;  %v5846_v19 = vrot.slane %v5688_v39, 6  ;;  %v5848_v37 = vrot.slane %v5055_v52, 6 }
 0x377   : > { %10548 = vmatprep.mubr.bf16.mxu1 %v10075_v43  ;;  %v5394_v49 = vor.u32 %v5393_v17, %v5390_v42  ;;  %v5403_v0 = vor.u32 %v5402_v6, %v5399_v35  ;;  %v5851_v14 = vrot.slane %v5056_v15, 6  ;;  %v6042_v55 = vmax.bf16 %v13364_v59, %v13325_v63  ;;  %v5057_v17 = vld [vmem:[#allocation2 + $0x120] sm:$0xf] }
 0x378   : > { %v5847_v9 = vrot.slane %v5846_v19, 4  ;;  %v5850_v25 = vrot.slane %v5848_v37, 4  ;;  %v6043_v41 = vmax.bf16 %v13372_v38, %v13331_v24  ;;  %v6044_v56 = vmax.bf16 %v13375_v62, %v13333_v33  ;;  %v4098_v24 = vld [vmem:[#allocation2 + $0x120] sm:$0xf] }
 0x379   : > { %v5395_v50 = vrot.slane %v5394_v49, 4  ;;  %v5405_v4 = vrot.slane %v5403_v0, 4  ;;  %v5654_v48 = vmax.bf16 %v5394_v49, %v4994_v20  ;;  %v6090_v47 = vmax.bf16 %v6042_v55, %v13393_v31 }
 0x37a   : > { %v5849_v22 = vsel %vm11417_vm11, %v5847_v9, %v5848_v37  ;;  %v5852_v12 = vsel %vm11417_vm11, %v5850_v25, %v5851_v14  ;;  %v6091_v63 = vmax.bf16 %v6043_v41, %v13409_v58  ;;  %v6092_v26 = vmax.bf16 %v6044_v56, %v13414_v44  ;;  %v5058_v14 = vld [vmem:[#allocation2 + $0x124] sm:$0xf] }
 0x37b   : > { %v5404_v33 = vsel %vm11329_vm8, %v5395_v50, %v5403_v0  ;;  %v5410_v23 = vsel %vm11329_vm8, %v5405_v4, %v5409_v32  ;;  %v13491_v8 = vmax.bf16 %v5846_v19, %v5654_v48  ;;  %v6138_v52 = vmax.bf16 %v6090_v47, %v13451_v29  ;;  %v4099_v4 = vld [vmem:[#allocation2 + $0x124] sm:$0x7] }
 0x37c   : > { %v5655_v51 = vmax.bf16 %v5404_v33, %v4995_v21  ;;  %v5656_v60 = vmax.bf16 %v5410_v23, %v4996_v2  ;;  %v6139_v11 = vmax.bf16 %v6091_v63, %v13456_v5  ;;  %v6140_v20 = vmax.bf16 %v6092_v26, %v13458_v16 }
 0x37d   : > { %v6186_v30 = vmax.bf16 %v6138_v52, %v13491_v8  ;;  %v4486_v57 = vshrl.u32 %v4097_v18, 16  ;;  %v4491_v7 = vshll.u32 %v4098_v24, 16  ;;  %v4495_v1 = vshrl.u32 %v4098_v24, 16 }
 0x37e   : > { %v13497_v28 = vmax.bf16 %v5849_v22, %v5655_v51  ;;  %v13499_v15 = vmax.bf16 %v5852_v12, %v5656_v60  ;;  %v4501_v42 = vshll.u32 %v4129_v54, 16  ;;  %v4505_v53 = vshrl.u32 %v4129_v54, 16 }
 0x37f   : > { %v10044_v36 = vrot.slane %v6186_v30, 11  ;;  %v4493_v13 = vrot.slane %v4491_v7, 5  ;;  %v4497_v39 = vrot.slane %v4495_v1, 4  ;;  %v4865_v61 = vrot.slane %v4098_v24, 5 }
 0x380   : > { %v6187_v34 = vmax.bf16 %v6139_v11, %v13497_v28  ;;  %v6188_v21 = vmax.bf16 %v6140_v20, %v13499_v15  ;;  %v4503_v46 = vrot.slane %v4501_v42, 5  ;;  %v4507_v43 = vrot.slane %v4505_v53, 4 }
 0x381   : > { %v4494_v35 = vsel %vm11245_vm2, %v4486_v57, %v4493_v13  ;;  %v4498_v6 = vor.u32 %v4497_v39, %v4493_v13  ;;  %v4866_v2 = vrot.slane %v4865_v61, 4  ;;  %v4867_v32 = vrot.slane %v4129_v54, 5  ;;  %v5059_v54 = vld [vmem:[#allocation2 + $0x128] sm:$0x1] }
 0x382   : > { %v6352_v19 = vrot.slane %v6187_v34, 7  ;;  %v6355_v37 = vrot.slane %v6188_v21, 7  ;;  %v4508_v49 = vor.u32 %v4507_v43, %v4503_v46  ;;  %v4737_v0 = vmax.bf16 %v4494_v35, %v4097_v18  ;;  %v5689_v18 = vld [vmem:[#allocation2 + $0x120] sm:$0xe] }
 0x383   : > { %v4499_v55 = vrot.slane %v4498_v6, 4  ;;  %v4868_v9 = vsel %vm11300_vm5, %v4866_v2, %v4867_v32  ;;  %v4869_v25 = vrot.slane %v4867_v32, 4  ;;  %v5412_v41 = vshrl.u32 %v5057_v17, 16 }
 0x384   : > { %v6353_v56 = vsel %vm11875_vm14, %v10044_v36, %v6352_v19  ;;  %v6354_v50 = vrot.slane %v6352_v19, 4  ;;  %v4509_v48 = vrot.slane %v4508_v49, 4  ;;  %v4997_v47 = vmax.bf16 %v4865_v61, %v4737_v0  ;;  %v4101_v49 = vld [vmem:[#allocation2 + $0x134] sm:$0xf] }
 0x385   : > { %6803 = vst [vmem:[#allocation2 + $0xe4] sm:$0xf] %v6353_v56  ;;  %v4504_v22 = vsel %vm11245_vm2, %v4499_v55, %v4503_v46  ;;  %v5414_v12 = vrot.slane %v5412_v41, 5  ;;  %v5415_v63 = vshll.u32 %v5057_v17, 16  ;;  %v5421_v26 = vshrl.u32 %v5058_v14, 16 }
 0x386   : > { %v6356_v33 = vsel %vm11875_vm14, %v6354_v50, %v6355_v37  ;;  %v4738_v23 = vmax.bf16 %v4504_v22, %v4098_v24  ;;  %v4739_v52 = vmax.bf16 %v4509_v48, %v4099_v4  ;;  %v5424_v51 = vshll.u32 %v5058_v14, 16  ;;  %v4100_v37 = vld [vmem:[#allocation2 + $0x130] sm:$0x8] }
 0x387   : > { %v10076_v60 = vcombine.low %v6353_v56, %v6356_v33  ;;  %6804 = vst [vmem:[#allocation2 + $0xe8] sm:$0xf] %v6356_v33  ;;  %v5417_v11 = vrot.slane %v5415_v63, 6  ;;  %v5423_v20 = vrot.slane %v5421_v26, 5  ;;  %v5431_v30 = vshll.u32 %v5059_v54, 16 }
 0x388   : > { %v4998_v57 = vmax.bf16 %v4868_v9, %v4738_v23  ;;  %v4999_v7 = vmax.bf16 %v4869_v25, %v4739_v52  ;;  %v5426_v1 = vrot.slane %v5424_v51, 6  ;;  %v5853_v42 = vrot.slane %v5689_v18, 6 }
 0x389   : > { %10549 = vmatmul.mubr.bf16.gmra.mrb[0].mxu1 %v10076_v60  ;;  %v5418_v53 = vor.u32 %v5417_v11, %v5414_v12  ;;  %v5433_v36 = vrot.slane %v5431_v30, 6  ;;  %v5855_v13 = vrot.slane %v5058_v14, 6  ;;  %v5858_v39 = vrot.slane %v5059_v54, 6  ;;  %v4130_v14 = vld [vmem:[#allocation2 + $0x138] sm:$0xf] }
 0x38a   : > { %v5427_v61 = vor.u32 %v5426_v1, %v5423_v20  ;;  %v5854_v34 = vrot.slane %v5853_v42, 4  ;;  %v6045_v24 = vmax.bf16 %v13393_v31, %v13364_v59  ;;  %v6046_v21 = vmax.bf16 %v13409_v58, %v13372_v38  ;;  %v5060_v11 = vld [vmem:[#allocation2 + $0x134] sm:$0xf] }
 0x38b   : > { %v5419_v46 = vrot.slane %v5418_v53, 4  ;;  %v5657_v43 = vmax.bf16 %v5418_v53, %v4997_v47  ;;  %v5857_v17 = vrot.slane %v5855_v13, 4  ;;  %v6047_v35 = vmax.bf16 %v13414_v44, %v13375_v62 }
 0x38c   : > { %v5429_v6 = vrot.slane %v5427_v61, 4  ;;  %v5856_v2 = vsel %vm11417_vm11, %v5854_v34, %v5855_v13  ;;  %v6093_v32 = vmax.bf16 %v6045_v24, %v13451_v29  ;;  %v6094_v19 = vmax.bf16 %v6046_v21, %v13456_v5 }
 0x38d   : > { %v5428_v59 = vsel %vm11329_vm8, %v5419_v46, %v5427_v61  ;;  %v5859_v38 = vsel %vm11417_vm11, %v5857_v17, %v5858_v39  ;;  %v13527_v0 = vmax.bf16 %v5853_v42, %v5657_v43  ;;  %v6095_v62 = vmax.bf16 %v6047_v35, %v13458_v16  ;;  %v5061_v61 = vld [vmem:[#allocation2 + $0x138] sm:$0xf] }
 0x38e   : > { %v5434_v55 = vsel %vm11329_vm8, %v5429_v6, %v5433_v36  ;;  %v5658_v9 = vmax.bf16 %v5428_v59, %v4998_v57  ;;  %v6141_v25 = vmax.bf16 %v6093_v32, %v13491_v8  ;;  %v6142_v41 = vmax.bf16 %v6094_v19, %v13497_v28  ;;  %v5690_v19 = vld [vmem:[#allocation2 + $0x134] sm:$0xe]  ;;  %v4102_v59 = vld [vmem:[#allocation2 + $0x138] sm:$0x7] }
 0x38f   : > { %v5659_v56 = vmax.bf16 %v5434_v55, %v4999_v7  ;;  %v6143_v50 = vmax.bf16 %v6095_v62, %v13499_v15  ;;  %v4511_v4 = vshrl.u32 %v4100_v37, 16  ;;  %v4516_v48 = vshll.u32 %v4101_v49, 16 }
 0x390   : > { %v13535_v47 = vmax.bf16 %v5856_v2, %v5658_v9  ;;  %v6189_v22 = vmax.bf16 %v6141_v25, %v13527_v0  ;;  %v4520_v12 = vshrl.u32 %v4101_v49, 16  ;;  %v4526_v63 = vshll.u32 %v4130_v14, 16 }
 0x391   : > { %v13538_v26 = vmax.bf16 %v5859_v38, %v5659_v56  ;;  %v4518_v18 = vrot.slane %v4516_v48, 5  ;;  %v4530_v33 = vshrl.u32 %v4130_v14, 16  ;;  %v4870_v23 = vrot.slane %v4101_v49, 5 }
 0x392   : > { %v6190_v52 = vmax.bf16 %v6142_v41, %v13535_v47  ;;  %v10045_v54 = vrot.slane %v6189_v22, 11  ;;  %v4522_v51 = vrot.slane %v4520_v12, 4  ;;  %v4528_v60 = vrot.slane %v4526_v63, 5  ;;  %v5062_v41 = vld [vmem:[#allocation2 + $0x13c] sm:$0x1] }
 0x393   : > { %v6191_v20 = vmax.bf16 %v6143_v50, %v13538_v26  ;;  %v4519_v30 = vsel %vm11245_vm2, %v4511_v4, %v4518_v18  ;;  %v4532_v57 = vrot.slane %v4530_v33, 4  ;;  %v4871_v7 = vrot.slane %v4870_v23, 4 }
 0x394   : > { %v6359_v1 = vrot.slane %v6190_v52, 7  ;;  %v4523_v42 = vor.u32 %v4522_v51, %v4518_v18  ;;  %v4740_v53 = vmax.bf16 %v4519_v30, %v4100_v37  ;;  %v4872_v36 = vrot.slane %v4130_v14, 5  ;;  %v4103_v30 = vld [vmem:[#allocation2 + $0x144] sm:$0x8] }
 0x395   : > { %v6362_v13 = vrot.slane %v6191_v20, 7  ;;  %v4533_v39 = vor.u32 %v4532_v57, %v4528_v60  ;;  %v5436_v34 = vshrl.u32 %v5060_v11, 16  ;;  %v5439_v24 = vshll.u32 %v5060_v11, 16 }
 0x396   : > { %v6360_v21 = vsel %vm11875_vm14, %v10045_v54, %v6359_v1  ;;  %v6361_v46 = vrot.slane %v6359_v1, 4  ;;  %v4524_v43 = vrot.slane %v4523_v42, 4  ;;  %v4873_v17 = vsel %vm11300_vm5, %v4871_v7, %v4872_v36 }
 0x397   : > { %6805 = vst [vmem:[#allocation2 + $0xf8] sm:$0xf] %v6360_v21  ;;  %v4534_v35 = vrot.slane %v4533_v39, 4  ;;  %v4874_v6 = vrot.slane %v4872_v36, 4  ;;  %v5000_v2 = vmax.bf16 %v4870_v23, %v4740_v53  ;;  %v5438_v32 = vrot.slane %v5436_v34, 5 }
 0x398   : > { %v6363_v37 = vsel %vm11875_vm14, %v6361_v46, %v6362_v13  ;;  %v4529_v38 = vsel %vm11245_vm2, %v4524_v43, %v4528_v60  ;;  %v5441_v62 = vrot.slane %v5439_v24, 6  ;;  %v5445_v14 = vshrl.u32 %v5061_v61, 16  ;;  %v4104_v53 = vld [vmem:[#allocation2 + $0x148] sm:$0xf] }
 0x399   : > { %v10077_v55 = vcombine.low %v6360_v21, %v6363_v37  ;;  %6806 = vst [vmem:[#allocation2 + $0xfc] sm:$0xf] %v6363_v37  ;;  %v4741_v9 = vmax.bf16 %v4529_v38, %v4101_v49  ;;  %v4742_v25 = vmax.bf16 %v4534_v35, %v4102_v59  ;;  %v5448_v56 = vshll.u32 %v5061_v61, 16  ;;  %v4131_v21 = vld [vmem:[#allocation2 + $0x14c] sm:$0xf] }
 0x39a   : > { %v5442_v50 = vor.u32 %v5441_v62, %v5438_v32  ;;  %v5447_v4 = vrot.slane %v5445_v14, 5  ;;  %v5455_v48 = vshll.u32 %v5062_v41, 16  ;;  %v5860_v22 = vrot.slane %v5690_v19, 6 }
 0x39b   : > { %10552 = vmatprep.mubr.bf16.mxu1 %v10077_v55  ;;  %v5001_v12 = vmax.bf16 %v4873_v17, %v4741_v9  ;;  %v5002_v63 = vmax.bf16 %v4874_v6, %v4742_v25  ;;  %v5450_v18 = vrot.slane %v5448_v56, 6  ;;  %v5862_v33 = vrot.slane %v5061_v61, 6  ;;  %v5063_v25 = vld [vmem:[#allocation2 + $0x148] sm:$0xf] }
 0x39c   : > { %v5443_v23 = vrot.slane %v5442_v50, 4  ;;  %v5457_v52 = vrot.slane %v5455_v48, 6  ;;  %v5660_v54 = vmax.bf16 %v5442_v50, %v5000_v2  ;;  %v5861_v51 = vrot.slane %v5860_v22, 4 }
 0x39d   : > { %v5451_v60 = vor.u32 %v5450_v18, %v5447_v4  ;;  %v5864_v11 = vrot.slane %v5862_v33, 4  ;;  %v5865_v20 = vrot.slane %v5062_v41, 6  ;;  %v6048_v49 = vmax.bf16 %v13451_v29, %v13393_v31 }
 0x39e   : > { %v5863_v57 = vsel %vm11417_vm11, %v5861_v51, %v5862_v33  ;;  %v13556_v7 = vmax.bf16 %v5860_v22, %v5660_v54  ;;  %v6049_v1 = vmax.bf16 %v13456_v5, %v13409_v58  ;;  %v6050_v42 = vmax.bf16 %v13458_v16, %v13414_v44 }
 0x39f   : > { %v5452_v36 = vsel %vm11329_vm8, %v5443_v23, %v5451_v60  ;;  %v5453_v13 = vrot.slane %v5451_v60, 4  ;;  %v5866_v31 = vsel %vm11417_vm11, %v5864_v11, %v5865_v20  ;;  %v6096_v39 = vmax.bf16 %v6048_v49, %v13491_v8  ;;  %v5064_v20 = vld [vmem:[#allocation2 + $0x14c] sm:$0xf] }
 0x3a0   : > { %v5661_v61 = vmax.bf16 %v5452_v36, %v5001_v12  ;;  %v6097_v34 = vmax.bf16 %v6049_v1, %v13497_v28  ;;  %v6098_v24 = vmax.bf16 %v6050_v42, %v13499_v15  ;;  %v4536_v58 = vshrl.u32 %v4103_v30, 16  ;;  %v5691_v42 = vld [vmem:[#allocation2 + $0x148] sm:$0xe] }
 0x3a1   : > { %v5458_v44 = vsel %vm11329_vm8, %v5453_v13, %v5457_v52  ;;  %v6144_v46 = vmax.bf16 %v6096_v39, %v13527_v0  ;;  %v4541_v43 = vshll.u32 %v4104_v53, 16  ;;  %v4545_v17 = vshrl.u32 %v4104_v53, 16  ;;  %v4105_v13 = vld [vmem:[#allocation2 + $0x14c] sm:$0x7] }
 0x3a2   : > { %v5662_v35 = vmax.bf16 %v5458_v44, %v5002_v63  ;;  %v13572_v6 = vmax.bf16 %v5863_v57, %v5661_v61  ;;  %v6145_v2 = vmax.bf16 %v6097_v34, %v13535_v47  ;;  %v6146_v32 = vmax.bf16 %v6098_v24, %v13538_v26  ;;  %v5065_v24 = vld [vmem:[#allocation2 + $0x150] sm:$0x1] }
 0x3a3   : > { %v6192_v19 = vmax.bf16 %v6144_v46, %v13556_v7  ;;  %v4543_v37 = vrot.slane %v4541_v43, 5  ;;  %v4547_v59 = vrot.slane %v4545_v17, 4  ;;  %v4551_v38 = vshll.u32 %v4131_v21, 16 }
 0x3a4   : > { %v13577_v62 = vmax.bf16 %v5866_v31, %v5662_v35  ;;  %v6193_v14 = vmax.bf16 %v6145_v2, %v13572_v6  ;;  %v4555_v55 = vshrl.u32 %v4131_v21, 16  ;;  %v4875_v9 = vrot.slane %v4104_v53, 5 }
 0x3a5   : > { %v10046_v41 = vrot.slane %v6192_v19, 11  ;;  %v4544_v56 = vsel %vm11245_vm2, %v4536_v58, %v4543_v37  ;;  %v4548_v50 = vor.u32 %v4547_v59, %v4543_v37  ;;  %v4553_v4 = vrot.slane %v4551_v38, 5  ;;  %v4106_v59 = vld [vmem:[#allocation2 + $0x158] sm:$0x8] }
 0x3a6   : > { %v6194_v48 = vmax.bf16 %v6146_v32, %v13577_v62  ;;  %v6366_v22 = vrot.slane %v6193_v14, 7  ;;  %v4557_v12 = vrot.slane %v4555_v55, 4  ;;  %v4743_v63 = vmax.bf16 %v4544_v56, %v4103_v30 }
 0x3a7   : > { %v4549_v18 = vrot.slane %v4548_v50, 4  ;;  %v4876_v33 = vrot.slane %v4875_v9, 4  ;;  %v4877_v23 = vrot.slane %v4131_v21, 5  ;;  %v5460_v52 = vshrl.u32 %v5063_v25, 16  ;;  %v4107_v50 = vld [vmem:[#allocation2 + $0x15c] sm:$0xf] }
 0x3a8   : > { %v6367_v54 = vsel %vm11875_vm14, %v10046_v41, %v6366_v22  ;;  %v6368_v51 = vrot.slane %v6366_v22, 4  ;;  %v6369_v60 = vrot.slane %v6194_v48, 7  ;;  %v4558_v11 = vor.u32 %v4557_v12, %v4553_v4 }
 0x3a9   : > { %6807 = vst [vmem:[#allocation2 + $0x10c] sm:$0xf] %v6367_v54  ;;  %v4554_v49 = vsel %vm11245_vm2, %v4549_v18, %v4553_v4  ;;  %v4878_v57 = vsel %vm11300_vm5, %v4876_v33, %v4877_v23  ;;  %v4879_v1 = vrot.slane %v4877_v23, 4  ;;  %v5003_v30 = vmax.bf16 %v4875_v9, %v4743_v63 }
 0x3aa   : > { %v6370_v36 = vsel %vm11875_vm14, %v6368_v51, %v6369_v60  ;;  %v4559_v31 = vrot.slane %v4558_v11, 4  ;;  %v4744_v39 = vmax.bf16 %v4554_v49, %v4104_v53  ;;  %v5462_v61 = vrot.slane %v5460_v52, 5  ;;  %v4132_v51 = vld [vmem:[#allocation2 + $0x160] sm:$0xf] }
 0x3ab   : > { %v10078_v34 = vcombine.low %v6367_v54, %v6370_v36  ;;  %6808 = vst [vmem:[#allocation2 + $0x110] sm:$0xf] %v6370_v36  ;;  %v5463_v21 = vshll.u32 %v5063_v25, 16  ;;  %v5469_v58 = vshrl.u32 %v5064_v20, 16  ;;  %v5472_v44 = vshll.u32 %v5064_v20, 16 }
 0x3ac   : > { %v4745_v46 = vmax.bf16 %v4559_v31, %v4105_v13  ;;  %v5004_v43 = vmax.bf16 %v4878_v57, %v4744_v39  ;;  %v5479_v17 = vshll.u32 %v5065_v24, 16  ;;  %v5867_v35 = vrot.slane %v5691_v42, 6 }
 0x3ad   : > { %10553 = vmatmul.mubr.bf16.gmra.mrb[4].mxu1 %v10078_v34  ;;  %v5465_v2 = vrot.slane %v5463_v21, 6  ;;  %v5471_v32 = vrot.slane %v5469_v58, 5  ;;  %v5474_v19 = vrot.slane %v5472_v44, 6  ;;  %v5869_v37 = vrot.slane %v5064_v20, 6 }
 0x3ae   : > { %v5005_v38 = vmax.bf16 %v4879_v1, %v4745_v46  ;;  %v5481_v14 = vrot.slane %v5479_v17, 6  ;;  %v5868_v53 = vrot.slane %v5867_v35, 4  ;;  %v5872_v55 = vrot.slane %v5065_v24, 6 }
 0x3af   : > { %v5466_v9 = vor.u32 %v5465_v2, %v5462_v61  ;;  %v5475_v41 = vor.u32 %v5474_v19, %v5471_v32  ;;  %v5871_v56 = vrot.slane %v5869_v37, 4  ;;  %v6051_v25 = vmax.bf16 %v13491_v8, %v13451_v29 }
 0x3b0   : > { %v5870_v4 = vsel %vm11417_vm11, %v5868_v53, %v5869_v37  ;;  %v6052_v48 = vmax.bf16 %v13497_v28, %v13456_v5  ;;  %v6053_v22 = vmax.bf16 %v13499_v15, %v13458_v16  ;;  %v4561_v12 = vshrl.u32 %v4106_v59, 16 }
 0x3b1   : > { %v5467_v63 = vrot.slane %v5466_v9, 4  ;;  %v5477_v18 = vrot.slane %v5475_v41, 4  ;;  %v5663_v33 = vmax.bf16 %v5466_v9, %v5003_v30  ;;  %v5873_v23 = vsel %vm11417_vm11, %v5871_v56, %v5872_v55 }
 0x3b2   : > { %v6099_v52 = vmax.bf16 %v6051_v25, %v13527_v0  ;;  %v6100_v29 = vmax.bf16 %v6052_v48, %v13535_v47  ;;  %v6101_v54 = vmax.bf16 %v6053_v22, %v13538_v26  ;;  %v4566_v60 = vshll.u32 %v4107_v50, 16 }
 0x3b3   : > { %v5476_v5 = vsel %vm11329_vm8, %v5467_v63, %v5475_v41  ;;  %v5482_v16 = vsel %vm11329_vm8, %v5477_v18, %v5481_v14  ;;  %v13608_v11 = vmax.bf16 %v5867_v35, %v5663_v33  ;;  %v4570_v20 = vshrl.u32 %v4107_v50, 16  ;;  %v5067_v41 = vld [vmem:[#allocation2 + $0x160] sm:$0xf] }
 0x3b4   : > { %v5664_v49 = vmax.bf16 %v5476_v5, %v5004_v43  ;;  %v5665_v57 = vmax.bf16 %v5482_v16, %v5005_v38  ;;  %v6147_v1 = vmax.bf16 %v6099_v52, %v13556_v7  ;;  %v6148_v30 = vmax.bf16 %v6100_v29, %v13572_v6  ;;  %v5066_v43 = vld [vmem:[#allocation2 + $0x15c] sm:$0xf] }
 0x3b5   : > { %v6149_v42 = vmax.bf16 %v6101_v54, %v13577_v62  ;;  %v4568_v36 = vrot.slane %v4566_v60, 5  ;;  %v4572_v13 = vrot.slane %v4570_v20, 4  ;;  %v4576_v31 = vshll.u32 %v4132_v51, 16  ;;  %v5692_v60 = vld [vmem:[#allocation2 + $0x15c] sm:$0xe] }
 0x3b6   : > { %v13613_v39 = vmax.bf16 %v5870_v4, %v5664_v49  ;;  %v13615_v61 = vmax.bf16 %v5873_v23, %v5665_v57  ;;  %v6195_v34 = vmax.bf16 %v6147_v1, %v13608_v11  ;;  %v4580_v24 = vshrl.u32 %v4132_v51, 16  ;;  %v5068_v23 = vld [vmem:[#allocation2 + $0x164] sm:$0x1] }
 0x3b7   : > { %v4569_v21 = vsel %vm11245_vm2, %v4561_v12, %v4568_v36  ;;  %v4573_v58 = vor.u32 %v4572_v13, %v4568_v36  ;;  %v4578_v44 = vrot.slane %v4576_v31, 5  ;;  %v4880_v46 = vrot.slane %v4107_v50, 5 }
 0x3b8   : > { %v6196_v17 = vmax.bf16 %v6148_v30, %v13613_v39  ;;  %v6197_v35 = vmax.bf16 %v6149_v42, %v13615_v61  ;;  %v10047_v2 = vrot.slane %v6195_v34, 11  ;;  %v4582_v32 = vrot.slane %v4580_v24, 4 }
 0x3b9   : > { %v4574_v19 = vrot.slane %v4573_v58, 4  ;;  %v4746_v37 = vmax.bf16 %v4569_v21, %v4106_v59  ;;  %v4881_v38 = vrot.slane %v4880_v46, 4  ;;  %v4882_v14 = vrot.slane %v4132_v51, 5  ;;  %v4108_v59 = vld [vmem:[#allocation2 + $0x160] sm:$0x7] }
 0x3ba   : > { %v6373_v53 = vrot.slane %v6196_v17, 7  ;;  %v6376_v55 = vrot.slane %v6197_v35, 7  ;;  %v4583_v9 = vor.u32 %v4582_v32, %v4578_v44  ;;  %v5484_v56 = vshrl.u32 %v5066_v43, 16 }
 0x3bb   : > { %v4579_v25 = vsel %vm11245_vm2, %v4574_v19, %v4578_v44  ;;  %v4883_v4 = vsel %vm11300_vm5, %v4881_v38, %v4882_v14  ;;  %v4884_v48 = vrot.slane %v4882_v14, 4  ;;  %v5006_v22 = vmax.bf16 %v4880_v46, %v4746_v37 }
 0x3bc   : > { %v6374_v12 = vsel %vm11875_vm14, %v10047_v2, %v6373_v53  ;;  %v6375_v63 = vrot.slane %v6373_v53, 4  ;;  %v4584_v18 = vrot.slane %v4583_v9, 4  ;;  %v4747_v33 = vmax.bf16 %v4579_v25, %v4107_v50  ;;  %v4109_v53 = vld [vmem:[#allocation2 + $0x16c] sm:$0x8] }
 0x3bd   : > { %6809 = vst [vmem:[#allocation2 + $0x120] sm:$0xf] %v6374_v12  ;;  %v5486_v52 = vrot.slane %v5484_v56, 5  ;;  %v5487_v29 = vshll.u32 %v5066_v43, 16  ;;  %v5493_v54 = vshrl.u32 %v5067_v41, 16  ;;  %v5496_v51 = vshll.u32 %v5067_v41, 16 }
 0x3be   : > { %v6377_v5 = vsel %vm11875_vm14, %v6375_v63, %v6376_v55  ;;  %v4748_v16 = vmax.bf16 %v4584_v18, %v4108_v59  ;;  %v5007_v20 = vmax.bf16 %v4883_v4, %v4747_v33  ;;  %v5503_v49 = vshll.u32 %v5068_v23, 16  ;;  %v4133_v56 = vld [vmem:[#allocation2 + $0x174] sm:$0xf] }
 0x3bf   : > { %v10079_v57 = vcombine.low %v6374_v12, %v6377_v5  ;;  %6810 = vst [vmem:[#allocation2 + $0x124] sm:$0xf] %v6377_v5  ;;  %v5489_v1 = vrot.slane %v5487_v29, 6  ;;  %v5495_v30 = vrot.slane %v5493_v54, 5  ;;  %v5498_v42 = vrot.slane %v5496_v51, 6 }
 0x3c0   : > { %v5008_v36 = vmax.bf16 %v4884_v48, %v4748_v16  ;;  %v5505_v50 = vrot.slane %v5503_v49, 6  ;;  %v5874_v13 = vrot.slane %v5692_v60, 6  ;;  %v5876_v31 = vrot.slane %v5067_v41, 6 }
 0x3c1   : > { %10556 = vmatprep.mubr.bf16.mxu1 %v10079_v57  ;;  %v5490_v34 = vor.u32 %v5489_v1, %v5486_v52  ;;  %v5499_v24 = vor.u32 %v5498_v42, %v5495_v30  ;;  %v5879_v21 = vrot.slane %v5068_v23, 6  ;;  %v6054_v58 = vmax.bf16 %v13527_v0, %v13491_v8  ;;  %v5069_v1 = vld [vmem:[#allocation2 + $0x170] sm:$0xf] }
 0x3c2   : > { %v5875_v44 = vrot.slane %v5874_v13, 4  ;;  %v5878_v46 = vrot.slane %v5876_v31, 4  ;;  %v6055_v43 = vmax.bf16 %v13535_v47, %v13497_v28  ;;  %v6056_v17 = vmax.bf16 %v13538_v26, %v13499_v15  ;;  %v4110_v28 = vld [vmem:[#allocation2 + $0x170] sm:$0xf] }
 0x3c3   : > { %v5491_v35 = vrot.slane %v5490_v34, 4  ;;  %v5501_v2 = vrot.slane %v5499_v24, 4  ;;  %v5666_v32 = vmax.bf16 %v5490_v34, %v5006_v22  ;;  %v6102_v19 = vmax.bf16 %v6054_v58, %v13556_v7  ;;  %v4111_v58 = vld [vmem:[#allocation2 + $0x174] sm:$0x7] }
 0x3c4   : > { %v5877_v37 = vsel %vm11417_vm11, %v5875_v44, %v5876_v31  ;;  %v5880_v38 = vsel %vm11417_vm11, %v5878_v46, %v5879_v21  ;;  %v6103_v8 = vmax.bf16 %v6055_v43, %v13572_v6  ;;  %v6104_v14 = vmax.bf16 %v6056_v17, %v13577_v62  ;;  %v5070_v21 = vld [vmem:[#allocation2 + $0x174] sm:$0xf] }
 0x3c5   : > { %v5500_v15 = vsel %vm11329_vm8, %v5491_v35, %v5499_v24  ;;  %v5506_v55 = vsel %vm11329_vm8, %v5501_v2, %v5505_v50  ;;  %v13647_v9 = vmax.bf16 %v5874_v13, %v5666_v32  ;;  %v6150_v41 = vmax.bf16 %v6102_v19, %v13608_v11 }
 0x3c6   : > { %v5667_v25 = vmax.bf16 %v5500_v15, %v5007_v20  ;;  %v5668_v4 = vmax.bf16 %v5506_v55, %v5008_v36  ;;  %v6151_v48 = vmax.bf16 %v6103_v8, %v13613_v39  ;;  %v6152_v22 = vmax.bf16 %v6104_v14, %v13615_v61  ;;  %v5693_v15 = vld [vmem:[#allocation2 + $0x170] sm:$0xe] }
 0x3c7   : > { %v6198_v12 = vmax.bf16 %v6150_v41, %v13647_v9  ;;  %v4586_v63 = vshrl.u32 %v4109_v53, 16  ;;  %v4591_v59 = vshll.u32 %v4110_v28, 16  ;;  %v4595_v18 = vshrl.u32 %v4110_v28, 16 }
 0x3c8   : > { %v13653_v33 = vmax.bf16 %v5877_v37, %v5667_v25  ;;  %v13655_v23 = vmax.bf16 %v5880_v38, %v5668_v4  ;;  %v4601_v52 = vshll.u32 %v4133_v56, 16  ;;  %v4605_v29 = vshrl.u32 %v4133_v56, 16  ;;  %v5071_v37 = vld [vmem:[#allocation2 + $0x178] sm:$0x1] }
 0x3c9   : > { %v10048_v54 = vrot.slane %v6198_v12, 11  ;;  %v4593_v51 = vrot.slane %v4591_v59, 5  ;;  %v4597_v60 = vrot.slane %v4595_v18, 4  ;;  %v4885_v5 = vrot.slane %v4110_v28, 5 }
 0x3ca   : > { %v6199_v16 = vmax.bf16 %v6151_v48, %v13653_v33  ;;  %v6200_v20 = vmax.bf16 %v6152_v22, %v13655_v23  ;;  %v4603_v49 = vrot.slane %v4601_v52, 5  ;;  %v4607_v57 = vrot.slane %v4605_v29, 4 }
 0x3cb   : > { %v4594_v30 = vsel %vm11245_vm2, %v4586_v63, %v4593_v51  ;;  %v4598_v42 = vor.u32 %v4597_v60, %v4593_v51  ;;  %v4886_v36 = vrot.slane %v4885_v5, 4  ;;  %v4887_v50 = vrot.slane %v4133_v56, 5 }
 0x3cc   : > { %v6380_v13 = vrot.slane %v6199_v16, 7  ;;  %v6383_v31 = vrot.slane %v6200_v20, 7  ;;  %v4608_v34 = vor.u32 %v4607_v57, %v4603_v49  ;;  %v4749_v24 = vmax.bf16 %v4594_v30, %v4109_v53 }
 0x3cd   : > { %v4599_v44 = vrot.slane %v4598_v42, 4  ;;  %v4888_v46 = vsel %vm11300_vm5, %v4886_v36, %v4887_v50  ;;  %v4889_v43 = vrot.slane %v4887_v50, 4  ;;  %v5508_v17 = vshrl.u32 %v5069_v1, 16 }
 0x3ce   : > { %v6381_v35 = vsel %vm11875_vm14, %v10048_v54, %v6380_v13  ;;  %v6382_v2 = vrot.slane %v6380_v13, 4  ;;  %v4609_v32 = vrot.slane %v4608_v34, 4  ;;  %v5009_v19 = vmax.bf16 %v4885_v5, %v4749_v24  ;;  %v4113_v34 = vld [vmem:[#allocation2 + $0x184] sm:$0xf] }
 0x3cf   : > { %6811 = vst [vmem:[#allocation2 + $0x134] sm:$0xf] %v6381_v35  ;;  %v4604_v38 = vsel %vm11245_vm2, %v4599_v44, %v4603_v49  ;;  %v5510_v8 = vrot.slane %v5508_v17, 5  ;;  %v5511_v14 = vshll.u32 %v5069_v1, 16  ;;  %v5517_v53 = vshrl.u32 %v5070_v21, 16 }
 0x3d0   : > { %v6384_v55 = vsel %vm11875_vm14, %v6382_v2, %v6383_v31  ;;  %v4750_v41 = vmax.bf16 %v4604_v38, %v4110_v28  ;;  %v4751_v56 = vmax.bf16 %v4609_v32, %v4111_v58  ;;  %v5520_v25 = vshll.u32 %v5070_v21, 16  ;;  %v4112_v31 = vld [vmem:[#allocation2 + $0x180] sm:$0x8] }
 0x3d1   : > { %v10080_v4 = vcombine.low %v6381_v35, %v6384_v55  ;;  %6812 = vst [vmem:[#allocation2 + $0x138] sm:$0xf] %v6384_v55  ;;  %v5513_v48 = vrot.slane %v5511_v14, 6  ;;  %v5519_v22 = vrot.slane %v5517_v53, 5  ;;  %v5527_v12 = vshll.u32 %v5071_v37, 16 }
 0x3d2   : > { %v5010_v63 = vmax.bf16 %v4888_v46, %v4750_v41  ;;  %v5011_v59 = vmax.bf16 %v4889_v43, %v4751_v56  ;;  %v5522_v18 = vrot.slane %v5520_v25, 6  ;;  %v5881_v52 = vrot.slane %v5693_v15, 6 }
 0x3d3   : > { %10557 = vmatmul.mubr.bf16.gmra.mrb[8].mxu1 %v10080_v4  ;;  %v5514_v29 = vor.u32 %v5513_v48, %v5510_v8  ;;  %v5529_v54 = vrot.slane %v5527_v12, 6  ;;  %v5883_v51 = vrot.slane %v5070_v21, 6  ;;  %v5886_v60 = vrot.slane %v5071_v37, 6  ;;  %v4134_v21 = vld [vmem:[#allocation2 + $0x188] sm:$0xf] }
 0x3d4   : > { %v5523_v5 = vor.u32 %v5522_v18, %v5519_v22  ;;  %v5882_v16 = vrot.slane %v5881_v52, 4  ;;  %v6057_v28 = vmax.bf16 %v13556_v7, %v13527_v0  ;;  %v6058_v20 = vmax.bf16 %v13572_v6, %v13535_v47  ;;  %v5072_v48 = vld [vmem:[#allocation2 + $0x184] sm:$0xf] }
 0x3d5   : > { %v5515_v49 = vrot.slane %v5514_v29, 4  ;;  %v5669_v57 = vmax.bf16 %v5514_v29, %v5009_v19  ;;  %v5885_v1 = vrot.slane %v5883_v51, 4  ;;  %v6059_v30 = vmax.bf16 %v13577_v62, %v13538_v26 }
 0x3d6   : > { %v5525_v42 = vrot.slane %v5523_v5, 4  ;;  %v5884_v36 = vsel %vm11417_vm11, %v5882_v16, %v5883_v51  ;;  %v6105_v50 = vmax.bf16 %v6057_v28, %v13608_v11  ;;  %v6106_v13 = vmax.bf16 %v6058_v20, %v13613_v39 }
 0x3d7   : > { %v5524_v0 = vsel %vm11329_vm8, %v5515_v49, %v5523_v5  ;;  %v5887_v47 = vsel %vm11417_vm11, %v5885_v1, %v5886_v60  ;;  %v13683_v24 = vmax.bf16 %v5881_v52, %v5669_v57  ;;  %v6107_v26 = vmax.bf16 %v6059_v30, %v13615_v61  ;;  %v5073_v5 = vld [vmem:[#allocation2 + $0x188] sm:$0xf] }
 0x3d8   : > { %v5530_v58 = vsel %vm11329_vm8, %v5525_v42, %v5529_v54  ;;  %v5670_v44 = vmax.bf16 %v5524_v0, %v5010_v63  ;;  %v6153_v46 = vmax.bf16 %v6105_v50, %v13647_v9  ;;  %v6154_v43 = vmax.bf16 %v6106_v13, %v13653_v33  ;;  %v4114_v57 = vld [vmem:[#allocation2 + $0x188] sm:$0x7]  ;;  %v5074_v42 = vld [vmem:[#allocation2 + $0x18c] sm:$0x1]  ;;  %v5694_v0 = vld [vmem:[#allocation2 + $0x184] sm:$0xe] }
 0x3d9   : > { %v5671_v17 = vmax.bf16 %v5530_v58, %v5011_v59  ;;  %v6155_v35 = vmax.bf16 %v6107_v26, %v13655_v23  ;;  %v4611_v2 = vshrl.u32 %v4112_v31, 16  ;;  %v4616_v32 = vshll.u32 %v4113_v34, 16 }
 0x3da   : > { %v13691_v19 = vmax.bf16 %v5884_v36, %v5670_v44  ;;  %v6201_v37 = vmax.bf16 %v6153_v46, %v13683_v24  ;;  %v4620_v38 = vshrl.u32 %v4113_v34, 16  ;;  %v4626_v8 = vshll.u32 %v4134_v21, 16 }
 0x3db   : > { %v13694_v14 = vmax.bf16 %v5887_v47, %v5671_v17  ;;  %v4618_v53 = vrot.slane %v4616_v32, 5  ;;  %v4630_v15 = vshrl.u32 %v4134_v21, 16  ;;  %v4890_v55 = vrot.slane %v4113_v34, 5 }
 0x3dc   : > { %v6202_v41 = vmax.bf16 %v6154_v43, %v13691_v19  ;;  %v10049_v56 = vrot.slane %v6201_v37, 11  ;;  %v4622_v25 = vrot.slane %v4620_v38, 4  ;;  %v4628_v4 = vrot.slane %v4626_v8, 5 }
 0x3dd   : > { %v6203_v22 = vmax.bf16 %v6155_v35, %v13694_v14  ;;  %v4619_v12 = vsel %vm11245_vm2, %v4611_v2, %v4618_v53  ;;  %v4632_v63 = vrot.slane %v4630_v15, 4  ;;  %v4891_v59 = vrot.slane %v4890_v55, 4 }
 0x3de   : > { %v6387_v18 = vrot.slane %v6202_v41, 7  ;;  %v4623_v52 = vor.u32 %v4622_v25, %v4618_v53  ;;  %v4752_v29 = vmax.bf16 %v4619_v12, %v4112_v31  ;;  %v4892_v54 = vrot.slane %v4134_v21, 5  ;;  %v13710_v12 = vld [vmem:[#allocation2 + $0x4] sm:$0x8] }
 0x3df   : > { %v6390_v51 = vrot.slane %v6203_v22, 7  ;;  %v4633_v60 = vor.u32 %v4632_v63, %v4628_v4  ;;  %v5532_v16 = vshrl.u32 %v5072_v48, 16  ;;  %v5535_v28 = vshll.u32 %v5072_v48, 16 }
 0x3e0   : > { %v6388_v20 = vsel %vm11875_vm14, %v10049_v56, %v6387_v18  ;;  %v6389_v49 = vrot.slane %v6387_v18, 4  ;;  %v4624_v1 = vrot.slane %v4623_v52, 4  ;;  %v4893_v30 = vsel %vm11300_vm5, %v4891_v59, %v4892_v54 }
 0x3e1   : > { %6813 = vst [vmem:[#allocation2 + $0x148] sm:$0xf] %v6388_v20  ;;  %v4634_v36 = vrot.slane %v4633_v60, 4  ;;  %v4894_v50 = vrot.slane %v4892_v54, 4  ;;  %v5012_v13 = vmax.bf16 %v4890_v55, %v4752_v29  ;;  %v5534_v31 = vrot.slane %v5532_v16, 5 }
 0x3e2   : > { %v6391_v47 = vsel %vm11875_vm14, %v6389_v49, %v6390_v51  ;;  %v4629_v26 = vsel %vm11245_vm2, %v4624_v1, %v4628_v4  ;;  %v5537_v21 = vrot.slane %v5535_v28, 6  ;;  %v5541_v58 = vshrl.u32 %v5073_v5, 16  ;;  %v13718_v29 = vld [vmem:[#allocation2 + $0x8] sm:$0xf]  ;;  %v13733_v28 = vld [vmem:[#allocation2 + $0x18] sm:$0x8] }
 0x3e3   : > { %v10081_v44 = vcombine.low %v6388_v20, %v6391_v47  ;;  %6814 = vst [vmem:[#allocation2 + $0x14c] sm:$0xf] %v6391_v47  ;;  %v4753_v46 = vmax.bf16 %v4629_v26, %v4113_v34  ;;  %v4754_v43 = vmax.bf16 %v4634_v36, %v4114_v57  ;;  %v5544_v17 = vshll.u32 %v5073_v5, 16 }
 0x3e4   : > { %v5538_v35 = vor.u32 %v5537_v21, %v5534_v31  ;;  %v5543_v2 = vrot.slane %v5541_v58, 5  ;;  %v5551_v32 = vshll.u32 %v5074_v42, 16  ;;  %v5888_v37 = vrot.slane %v5694_v0, 6  ;;  %v13742_v31 = vld [vmem:[#allocation2 + $0x20] sm:$0xf] }
 0x3e5   : > { %10560 = vmatprep.mubr.bf16.mxu1 %v10081_v44  ;;  %v5013_v38 = vmax.bf16 %v4893_v30, %v4753_v46  ;;  %v5014_v8 = vmax.bf16 %v4894_v50, %v4754_v43  ;;  %v5546_v53 = vrot.slane %v5544_v17, 6  ;;  %v5890_v15 = vrot.slane %v5073_v5, 6  ;;  %v13739_v30 = vld [vmem:[#allocation2 + $0x1c] sm:$0xf]  ;;  %v13753_v17 = vld [vmem:[#allocation2 + $0x2c] sm:$0x8] }
 0x3e6   : > { %v5539_v55 = vrot.slane %v5538_v35, 4  ;;  %v5553_v41 = vrot.slane %v5551_v32, 6  ;;  %v5672_v56 = vmax.bf16 %v5538_v35, %v5012_v13  ;;  %v5889_v25 = vrot.slane %v5888_v37, 4 }
 0x3e7   : > { %v5547_v4 = vor.u32 %v5546_v53, %v5543_v2  ;;  %v5892_v48 = vrot.slane %v5890_v15, 4  ;;  %v5893_v22 = vrot.slane %v5074_v42, 6  ;;  %v6060_v34 = vmax.bf16 %v13608_v11, %v13556_v7 }
 0x3e8   : > { %v5891_v63 = vsel %vm11417_vm11, %v5889_v25, %v5890_v15  ;;  %v6012_v59 = vmax.bf16 %v5888_v37, %v5672_v56  ;;  %v6061_v18 = vmax.bf16 %v13613_v39, %v13572_v6  ;;  %v6062_v52 = vmax.bf16 %v13615_v61, %v13577_v62  ;;  %v13727_v6 = vld [vmem:[#allocation2 + $0xc] sm:$0xf]  ;;  %v13762_v15 = vld [vmem:[#allocation2 + $0x30] sm:$0xf]  ;;  %v13767_v56 = vld [vmem:[#allocation2 + $0x34] sm:$0xf] }
 0x3e9   : > { %v5548_v54 = vsel %vm11329_vm8, %v5539_v55, %v5547_v4  ;;  %v5549_v51 = vrot.slane %v5547_v4, 4  ;;  %v5894_v7 = vsel %vm11417_vm11, %v5892_v48, %v5893_v22  ;;  %v6108_v11 = vmax.bf16 %v6060_v34, %v13647_v9  ;;  %v13764_v55 = vld [vmem:[#allocation2 + $0x40] sm:$0x8] }
 0x3ea   : > { %v5673_v60 = vmax.bf16 %v5548_v54, %v5013_v38  ;;  %v6109_v5 = vmax.bf16 %v6061_v18, %v13653_v33  ;;  %v6110_v16 = vmax.bf16 %v6062_v52, %v13655_v23  ;;  %v6898_v62 = vshrl.u32 %v13710_v12, 16 }
 0x3eb   : > { %v5554_v39 = vsel %vm11329_vm8, %v5549_v51, %v5553_v41  ;;  %v6156_v61 = vmax.bf16 %v6108_v11, %v13683_v24  ;;  %v6903_v20 = vshll.u32 %v13718_v29, 16  ;;  %v6907_v9 = vshrl.u32 %v13718_v29, 16 }
 0x3ec   : > { %v5674_v49 = vmax.bf16 %v5554_v39, %v5014_v8  ;;  %v6013_v57 = vmax.bf16 %v5891_v63, %v5673_v60  ;;  %v6157_v33 = vmax.bf16 %v6109_v5, %v13691_v19  ;;  %v6158_v23 = vmax.bf16 %v6110_v16, %v13694_v14  ;;  %v13777_v63 = vld [vmem:[#allocation2 + $0x44] sm:$0xf]  ;;  %v13787_v60 = vld [vmem:[#allocation2 + $0x54] sm:$0x8] }
 0x3ed   : > { %v6204_v1 = vmax.bf16 %v6156_v61, %v6012_v59  ;;  %v6905_v42 = vrot.slane %v6903_v20, 5  ;;  %v6909_v36 = vrot.slane %v6907_v9, 4  ;;  %v6913_v50 = vshll.u32 %v13727_v6, 16  ;;  %v13793_v61 = vld [vmem:[#allocation2 + $0x48] sm:$0xf] }
 0x3ee   : > { %v6014_v24 = vmax.bf16 %v5894_v7, %v5674_v49  ;;  %v6205_v13 = vmax.bf16 %v6157_v33, %v6013_v57  ;;  %v6917_v0 = vshrl.u32 %v13727_v6, 16  ;;  %v6923_v47 = vshrl.u32 %v13733_v28, 16  ;;  %v13797_v33 = vld [vmem:[#allocation2 + $0x58] sm:$0xf] }
 0x3ef   : > { %v10050_v26 = vrot.slane %v6204_v1, 11  ;;  %v13748_v19 = vsel %vm11245_vm2, %v6898_v62, %v6905_v42  ;;  %v6910_v14 = vor.u32 %v6909_v36, %v6905_v42  ;;  %v13750_v21 = vrot.slane %v6913_v50, 5 }
 0x3f0   : > { %v6206_v58 = vmax.bf16 %v6158_v23, %v6014_v24  ;;  %v6394_v44 = vrot.slane %v6205_v13, 7  ;;  %v6919_v46 = vrot.slane %v6917_v0, 4  ;;  %v6928_v43 = vshll.u32 %v13739_v30, 16 }
 0x3f1   : > { %v13755_v35 = vrot.slane %v6910_v14, 4  ;;  %v6932_v2 = vshrl.u32 %v13739_v30, 16  ;;  %v6938_v32 = vshll.u32 %v13742_v31, 16  ;;  %v6942_v37 = vshrl.u32 %v13742_v31, 16 }
 0x3f2   : > { %v6395_v38 = vsel %vm11875_vm14, %v10050_v26, %v6394_v44  ;;  %v6396_v8 = vrot.slane %v6394_v44, 4  ;;  %v6397_v53 = vrot.slane %v6206_v58, 7  ;;  %v6920_v41 = vor.u32 %v6919_v46, %v13750_v21 }
 0x3f3   : > { %6815 = vst [vmem:[#allocation2 + $0x15c] sm:$0xf] %v6395_v38  ;;  %v6916_v25 = vsel %vm11245_vm2, %v13755_v35, %v13750_v21  ;;  %v6930_v4 = vrot.slane %v6928_v43, 5  ;;  %v6934_v48 = vrot.slane %v6932_v2, 4  ;;  %v13773_v22 = vrot.slane %v6938_v32, 5 }
 0x3f4   : > { %v6398_v34 = vsel %vm11875_vm14, %v6396_v8, %v6397_v53  ;;  %v13779_v59 = vrot.slane %v6920_v41, 4  ;;  %v6944_v18 = vrot.slane %v6942_v37, 4  ;;  %v6948_v52 = vshrl.u32 %v13753_v17, 16  ;;  %v13821_v41 = vld [vmem:[#allocation2 + $0xc] sm:$0x7] }
 0x3f5   : > { %v10082_v54 = vcombine.low %v6395_v38, %v6398_v34  ;;  %6816 = vst [vmem:[#allocation2 + $0x160] sm:$0xf] %v6398_v34  ;;  %v13784_v51 = vsel %vm11245_vm2, %v6923_v47, %v6930_v4  ;;  %v6935_v7 = vor.u32 %v6934_v48, %v6930_v4  ;;  %v6953_v11 = vshll.u32 %v13762_v15, 16  ;;  %v13809_v47 = vld [vmem:[#allocation2 + $0x5c] sm:$0xf] }
 0x3f6   : > { %v6945_v5 = vor.u32 %v6944_v18, %v13773_v22  ;;  %v6957_v16 = vshrl.u32 %v13762_v15, 16  ;;  %v6963_v62 = vshll.u32 %v13767_v56, 16  ;;  %v6967_v39 = vshrl.u32 %v13767_v56, 16 }
 0x3f7   : > { %10561 = vmatmul.mubr.bf16.gmra.mrb[12].mxu1 %v10082_v54  ;;  %v6936_v20 = vrot.slane %v6935_v7, 4  ;;  %v6955_v9 = vrot.slane %v6953_v11, 5  ;;  %v6973_v49 = vshrl.u32 %v13764_v55, 16  ;;  %v6978_v57 = vshll.u32 %v13777_v63, 16  ;;  %v6822_v11 = vld [vmem:[#allocation2 + $0x20] sm:$0x7] }
 0x3f8   : > { %v13799_v23 = vrot.slane %v6945_v5, 4  ;;  %v6959_v1 = vrot.slane %v6957_v16, 4  ;;  %v6965_v42 = vrot.slane %v6963_v62, 5  ;;  %v6969_v36 = vrot.slane %v6967_v39, 4 }
 0x3f9   : > { %v6941_v50 = vsel %vm11245_vm2, %v6936_v20, %v13773_v22  ;;  %v13806_v24 = vsel %vm11245_vm2, %v6948_v52, %v6955_v9  ;;  %v6980_v13 = vrot.slane %v6978_v57, 5  ;;  %v6982_v0 = vshrl.u32 %v13777_v63, 16 }
 0x3fa   : > { %v6960_v26 = vor.u32 %v6959_v1, %v6955_v9  ;;  %v6970_v14 = vor.u32 %v6969_v36, %v6965_v42  ;;  %v6988_v58 = vshll.u32 %v13793_v61, 16  ;;  %v6992_v44 = vshrl.u32 %v13793_v61, 16  ;;  %v6825_v36 = vld [vmem:[#allocation2 + $0x34] sm:$0x7] }
 0x3fb   : > { %v13815_v46 = vsel %vm11245_vm2, %v6973_v49, %v6980_v13  ;;  %v6984_v43 = vrot.slane %v6982_v0, 4  ;;  %v6998_v2 = vshrl.u32 %v13787_v60, 16  ;;  %v7003_v32 = vshll.u32 %v13797_v33, 16 }
 0x3fc   : > { %v6961_v37 = vrot.slane %v6960_v26, 4  ;;  %v13819_v38 = vrot.slane %v6970_v14, 4  ;;  %v6990_v8 = vrot.slane %v6988_v58, 5  ;;  %v6994_v53 = vrot.slane %v6992_v44, 4 }
 0x3fd   : > { %v6985_v4 = vor.u32 %v6984_v43, %v6980_v13  ;;  %v7005_v48 = vrot.slane %v7003_v32, 5  ;;  %v7007_v22 = vshrl.u32 %v13797_v33, 16  ;;  %v7013_v34 = vshll.u32 %v13809_v47, 16 }
 0x3fe   : > { %v6966_v18 = vsel %vm11245_vm2, %v6961_v37, %v6965_v42  ;;  %v6995_v52 = vor.u32 %v6994_v53, %v6990_v8  ;;  %v7017_v54 = vshrl.u32 %v13809_v47, 16  ;;  %v7457_v7 = vmax.bf16 %v13748_v19, %v13710_v12 }
 0x3ff   : > { %v6986_v5 = vrot.slane %v6985_v4, 4  ;;  %v13832_v16 = vsel %vm11245_vm2, %v6998_v2, %v7005_v48  ;;  %v7009_v62 = vrot.slane %v7007_v22, 4  ;;  %v7015_v39 = vrot.slane %v7013_v34, 5 }
 0x400   : > { %v13834_v20 = vrot.slane %v6995_v52, 4  ;;  %v7019_v9 = vrot.slane %v7017_v54, 4  ;;  %v13842_v49 = vmax.bf16 %v6916_v25, %v13718_v29  ;;  %v7459_v12 = vmax.bf16 %v13779_v59, %v13821_v41  ;;  %v6828_v25 = vld [vmem:[#allocation2 + $0x48] sm:$0x7] }
 0x401   : > { %v6991_v19 = vsel %vm11245_vm2, %v6986_v5, %v6990_v8  ;;  %v7010_v57 = vor.u32 %v7009_v62, %v7005_v48  ;;  %v7460_v1 = vmax.bf16 %v13784_v51, %v13733_v28  ;;  %v13851_v42 = vmax.bf16 %v6941_v50, %v13739_v30 }
 0x402   : > { %v7020_v13 = vor.u32 %v7019_v9, %v7015_v39  ;;  %v7462_v0 = vmax.bf16 %v13799_v23, %v6822_v11  ;;  %v7463_v21 = vmax.bf16 %v13806_v24, %v13753_v17  ;;  %v13857_v35 = vmax.bf16 %v6966_v18, %v13762_v15  ;;  %v6831_v24 = vld [vmem:[#allocation2 + $0x5c] sm:$0x7]  ;;  %v13921_v9 = vld [vmem:[#allocation2 + $0xc] sm:$0xf] }
 0x403   : > { %v7011_v59 = vrot.slane %v7010_v57, 4  ;;  %v7465_v26 = vmax.bf16 %v13819_v38, %v6825_v36  ;;  %v7466_v28 = vmax.bf16 %v13815_v46, %v13764_v55  ;;  %v13863_v51 = vmax.bf16 %v6991_v19, %v13777_v63  ;;  %v7780_v19 = vld [vmem:[#allocation2 + $0x1c] sm:$0xf] }
 0x404   : > { %v7021_v50 = vrot.slane %v7020_v13, 4  ;;  %v7468_v14 = vmax.bf16 %v13834_v20, %v6828_v25  ;;  %v7469_v23 = vmax.bf16 %v13832_v16, %v13787_v60  ;;  %v7557_v17 = vrot.slane %v13718_v29, 5 }
 0x405   : > { %v7016_v58 = vsel %vm11245_vm2, %v7011_v59, %v7015_v39  ;;  %v7559_v44 = vrot.slane %v13727_v6, 5  ;;  %v7562_v43 = vrot.slane %v13739_v30, 5  ;;  %v7564_v55 = vrot.slane %v13742_v31, 5 }
 0x406   : > { %v13875_v46 = vmax.bf16 %v7016_v58, %v13797_v33  ;;  %v7471_v2 = vmax.bf16 %v7021_v50, %v6831_v24  ;;  %v7558_v32 = vrot.slane %v7557_v17, 4  ;;  %v7567_v37 = vrot.slane %v13762_v15, 5  ;;  %v7783_v50 = vld [vmem:[#allocation2 + $0x30] sm:$0xf]  ;;  %v13942_v58 = vld [vmem:[#allocation2 + $0x24] sm:$0x1] }
 0x407   : > { %v7561_v60 = vrot.slane %v7559_v44, 4  ;;  %v7563_v38 = vrot.slane %v7562_v43, 4  ;;  %v7566_v29 = vrot.slane %v7564_v55, 4  ;;  %v7569_v8 = vrot.slane %v13767_v56, 5 }
 0x408   : > { %v13881_v53 = vsel %vm11300_vm5, %v7558_v32, %v7559_v44  ;;  %v7568_v6 = vrot.slane %v7567_v37, 4  ;;  %v7572_v30 = vrot.slane %v13777_v63, 5  ;;  %v7574_v31 = vrot.slane %v13793_v61, 5  ;;  %v13945_v32 = vld [vmem:[#allocation2 + $0x34] sm:$0xf] }
 0x409   : > { %v13887_v41 = vsel %vm11300_vm5, %v7563_v38, %v7564_v55  ;;  %v7571_v4 = vrot.slane %v7569_v8, 4  ;;  %v7577_v15 = vrot.slane %v13797_v33, 5  ;;  %v7579_v48 = vrot.slane %v13809_v47, 5 }
 0x40a   : > { %v13893_v56 = vsel %vm11300_vm5, %v7568_v6, %v7569_v8  ;;  %v7573_v22 = vrot.slane %v7572_v30, 4  ;;  %v7576_v34 = vrot.slane %v7574_v31, 4  ;;  %v13895_v18 = vmax.bf16 %v7557_v17, %v7457_v7  ;;  %v7777_v7 = vld [vmem:[#allocation2 + $0x8] sm:$0xf] }
 0x40b   : > { %v7578_v63 = vrot.slane %v7577_v15, 4  ;;  %v7581_v52 = vrot.slane %v7579_v48, 4  ;;  %v13899_v54 = vmax.bf16 %v7561_v60, %v7459_v12  ;;  %v13905_v47 = vmax.bf16 %v7562_v43, %v7460_v1  ;;  %v13923_v12 = vld [vmem:[#allocation2 + $0x10] sm:$0x1] }
 0x40c   : > { %v13903_v33 = vsel %vm11300_vm5, %v7573_v22, %v7574_v31  ;;  %v13909_v5 = vmax.bf16 %v7566_v29, %v7462_v0  ;;  %v13915_v62 = vmax.bf16 %v7567_v37, %v7463_v21  ;;  %v13919_v20 = vmax.bf16 %v7571_v4, %v7465_v26  ;;  %v13933_v0 = vld [vmem:[#allocation2 + $0x20] sm:$0xf] }
 0x40d   : > { %v13913_v16 = vsel %vm11300_vm5, %v7578_v63, %v7579_v48  ;;  %v13925_v57 = vmax.bf16 %v7572_v30, %v7466_v28  ;;  %v13929_v36 = vmax.bf16 %v7576_v34, %v7468_v14  ;;  %v13931_v13 = vmax.bf16 %v7577_v15, %v7469_v23 }
 0x40e   : > { %v13937_v25 = vmax.bf16 %v7581_v52, %v7471_v2  ;;  %v7838_v59 = vshrl.u32 %v7777_v7, 16  ;;  %v7841_v26 = vshll.u32 %v7777_v7, 16  ;;  %v7847_v28 = vshrl.u32 %v13921_v9, 16  ;;  %v7786_v7 = vld [vmem:[#allocation2 + $0x44] sm:$0xf] }
 0x40f   : > { %v7850_v17 = vshll.u32 %v13921_v9, 16  ;;  %v7857_v24 = vshll.u32 %v13923_v12, 16  ;;  %v7862_v14 = vshrl.u32 %v7780_v19, 16  ;;  %v7865_v43 = vshll.u32 %v7780_v19, 16 }
 0x410   : > { %v7840_v23 = vrot.slane %v7838_v59, 5  ;;  %v7843_v44 = vrot.slane %v7841_v26, 6  ;;  %v7871_v55 = vshrl.u32 %v13933_v0, 16  ;;  %v7849_v2 = vrot.slane %v7847_v28, 5 }
 0x411   : > { %v7852_v37 = vrot.slane %v7850_v17, 6  ;;  %v7859_v60 = vrot.slane %v7857_v24, 6  ;;  %v7864_v38 = vrot.slane %v7862_v14, 5  ;;  %v7867_v8 = vrot.slane %v7865_v43, 6  ;;  %v13955_v17 = vld [vmem:[#allocation2 + $0x38] sm:$0x1] }
 0x412   : > { %v13947_v29 = vor.u32 %v7843_v44, %v7840_v23  ;;  %v7873_v6 = vrot.slane %v7871_v55, 5  ;;  %v7874_v30 = vshll.u32 %v13933_v0, 16  ;;  %v7881_v4 = vshll.u32 %v13942_v58, 16  ;;  %v13957_v24 = vld [vmem:[#allocation2 + $0x48] sm:$0xf] }
 0x413   : > { %v7853_v31 = vor.u32 %v7852_v37, %v7849_v2  ;;  %v7886_v15 = vshrl.u32 %v7783_v50, 16  ;;  %v7889_v48 = vshll.u32 %v7783_v50, 16  ;;  %v13952_v34 = vor.u32 %v7867_v8, %v7864_v38  ;;  %v7789_v38 = vld [vmem:[#allocation2 + $0x58] sm:$0xf] }
 0x414   : > { %v7845_v22 = vrot.slane %v13947_v29, 4  ;;  %v7876_v63 = vrot.slane %v7874_v30, 6  ;;  %v7895_v52 = vshrl.u32 %v13945_v32, 16  ;;  %v7883_v59 = vrot.slane %v7881_v4, 6 }
 0x415   : > { %v7855_v19 = vrot.slane %v7853_v31, 4  ;;  %v7888_v26 = vrot.slane %v7886_v15, 5  ;;  %v7891_v28 = vrot.slane %v7889_v48, 6  ;;  %v7869_v50 = vrot.slane %v13952_v34, 4  ;;  %v13972_v15 = vld [vmem:[#allocation2 + $0x5c] sm:$0xf] }
 0x416   : > { %v7854_v14 = vsel %vm11329_vm8, %v7845_v22, %v7853_v31  ;;  %v7877_v23 = vor.u32 %v7876_v63, %v7873_v6  ;;  %v7897_v44 = vrot.slane %v7895_v52, 5  ;;  %v7898_v2 = vshll.u32 %v13945_v32, 16  ;;  %v13976_v63 = vld [vmem:[#allocation2 + $0x4c] sm:$0x1] }
 0x417   : > { %v13964_v43 = vsel %vm11329_vm8, %v7855_v19, %v7859_v60  ;;  %v13966_v55 = vor.u32 %v7891_v28, %v7888_v26  ;;  %v7905_v37 = vshll.u32 %v13955_v17, 16  ;;  %v7910_v31 = vshrl.u32 %v7786_v7, 16 }
 0x418   : > { %v7878_v8 = vsel %vm11329_vm8, %v7869_v50, %v7877_v23  ;;  %v7879_v30 = vrot.slane %v7877_v23, 4  ;;  %v7913_v4 = vshll.u32 %v7786_v7, 16  ;;  %v7900_v48 = vrot.slane %v7898_v2, 6 }
 0x419   : > { %v7893_v6 = vrot.slane %v13966_v55, 4  ;;  %v7907_v60 = vrot.slane %v7905_v37, 6  ;;  %v7919_v22 = vshrl.u32 %v13957_v24, 16  ;;  %v7912_v19 = vrot.slane %v7910_v31, 5 }
 0x41a   : > { %v13980_v52 = vsel %vm11329_vm8, %v7879_v30, %v7883_v59  ;;  %v7915_v26 = vrot.slane %v7913_v4, 6  ;;  %v7922_v28 = vshll.u32 %v13957_v24, 16  ;;  %v7901_v50 = vor.u32 %v7900_v48, %v7897_v44  ;;  %v13989_v4 = vld [vmem:[#allocation2 + $0x60] sm:$0x1] }
 0x41b   : > { %v7921_v7 = vrot.slane %v7919_v22, 5  ;;  %v7929_v23 = vshll.u32 %v13976_v63, 16  ;;  %v7934_v21 = vshrl.u32 %v7789_v38, 16  ;;  %v7937_v37 = vshll.u32 %v7789_v38, 16 }
 0x41c   : > { %v13984_v1 = vor.u32 %v7915_v26, %v7912_v19  ;;  %v7924_v2 = vrot.slane %v7922_v28, 6  ;;  %v7943_v39 = vshrl.u32 %v13972_v15, 16  ;;  %v7902_v11 = vsel %vm11329_vm8, %v7893_v6, %v7901_v50 }
 0x41d   : > { %v7903_v59 = vrot.slane %v7901_v50, 4  ;;  %v7931_v30 = vrot.slane %v7929_v23, 6  ;;  %v7936_v31 = vrot.slane %v7934_v21, 5  ;;  %v7939_v22 = vrot.slane %v7937_v37, 6 }
 0x41e   : > { %v7917_v44 = vrot.slane %v13984_v1, 4  ;;  %v7925_v48 = vor.u32 %v7924_v2, %v7921_v7  ;;  %v7945_v61 = vrot.slane %v7943_v39, 5  ;;  %v7946_v38 = vshll.u32 %v13972_v15, 16 }
 0x41f   : > { %v13994_v19 = vsel %vm11329_vm8, %v7903_v59, %v7907_v60  ;;  %v7953_v26 = vshll.u32 %v13989_v4, 16  ;;  %v8377_v6 = vmax.bf16 %v13947_v29, %v13895_v18  ;;  %v14002_v50 = vor.u32 %v7939_v22, %v7936_v31 }
 0x420   : > { %v7926_v21 = vsel %vm11329_vm8, %v7917_v44, %v7925_v48  ;;  %v7927_v28 = vrot.slane %v7925_v48, 4  ;;  %v15008_v39 = vmax.bf16 %v13881_v53, %v13842_v49  ;;  %v7948_v60 = vrot.slane %v7946_v38, 6 }
 0x421   : > { %v7955_v23 = vrot.slane %v7953_v26, 6  ;;  %v8379_v2 = vmax.bf16 %v13964_v43, %v13899_v54  ;;  %v8380_v37 = vmax.bf16 %v13952_v34, %v13905_v47  ;;  %v7941_v29 = vrot.slane %v14002_v50, 4 }
 0x422   : > { %v14007_v7 = vmax.bf16 %v7854_v14, %v15008_v39  ;;  %v14015_v18 = vsel %vm11329_vm8, %v7927_v28, %v7931_v30  ;;  %v15009_v59 = vmax.bf16 %v13887_v41, %v13851_v42  ;;  %v8382_v53 = vmax.bf16 %v13980_v52, %v13909_v5  ;;  %v8437_v14 = vld [vmem:[#allocation2 + $0x8] sm:$0xe]  ;;  %v8438_v30 = vld [vmem:[#allocation2 + $0x1c] sm:$0xe] }
 0x423   : > { %v7949_v31 = vor.u32 %v7948_v60, %v7945_v61  ;;  %v8383_v54 = vmax.bf16 %v13966_v55, %v13915_v62  ;;  %v15010_v47 = vmax.bf16 %v13893_v56, %v13857_v35  ;;  %v8385_v43 = vmax.bf16 %v13994_v19, %v13919_v20 }
 0x424   : > { %v8381_v49 = vmax.bf16 %v7878_v8, %v15009_v59  ;;  %v8386_v42 = vmax.bf16 %v13984_v1, %v13925_v57  ;;  %v15011_v41 = vmax.bf16 %v13903_v33, %v13863_v51  ;;  %v8388_v61 = vmax.bf16 %v14015_v18, %v13929_v36  ;;  %v8440_v8 = vld [vmem:[#allocation2 + $0x44] sm:$0xe] }
 0x425   : > { %v8384_v34 = vmax.bf16 %v7902_v11, %v15010_v47  ;;  %v8389_v62 = vmax.bf16 %v14002_v50, %v13931_v13  ;;  %v7950_v35 = vsel %vm11329_vm8, %v7941_v29, %v7949_v31  ;;  %v7951_v56 = vrot.slane %v7949_v31, 4  ;;  %v8439_v11 = vld [vmem:[#allocation2 + $0x30] sm:$0xe] }
 0x426   : > { %v8387_v5 = vmax.bf16 %v7926_v21, %v15011_v41  ;;  %v8517_v20 = vrot.slane %v8437_v14, 6  ;;  %v8519_v55 = vrot.slane %v13921_v9, 6  ;;  %v15012_v57 = vmax.bf16 %v13913_v16, %v13875_v46  ;;  %v8441_v9 = vld [vmem:[#allocation2 + $0x58] sm:$0xe] }
 0x427   : > { %v8522_v51 = vrot.slane %v13923_v12, 6  ;;  %v8524_v33 = vrot.slane %v8438_v30, 6  ;;  %v8526_v36 = vrot.slane %v13933_v0, 6  ;;  %v7956_v13 = vsel %vm11329_vm8, %v7951_v56, %v7955_v23 }
 0x428   : > { %v8390_v1 = vmax.bf16 %v7950_v35, %v15012_v57  ;;  %v8518_v52 = vrot.slane %v8517_v20, 4  ;;  %v8521_v44 = vrot.slane %v8519_v55, 4  ;;  %v8529_v48 = vrot.slane %v13942_v58, 6 }
 0x429   : > { %v8391_v22 = vmax.bf16 %v7956_v13, %v13937_v25  ;;  %v8525_v19 = vrot.slane %v8524_v33, 4  ;;  %v8528_v38 = vrot.slane %v8526_v36, 4  ;;  %v8531_v46 = vrot.slane %v8439_v11, 6 }
 0x42a   : > { %v8520_v16 = vsel %vm11417_vm11, %v8518_v52, %v8519_v55  ;;  %v8523_v12 = vsel %vm11417_vm11, %v8521_v44, %v8522_v51  ;;  %v8533_v0 = vrot.slane %v13945_v32, 6  ;;  %v8536_v26 = vrot.slane %v13955_v17, 6 }
 0x42b   : > { %v8527_v21 = vsel %vm11417_vm11, %v8525_v19, %v8526_v36  ;;  %v8530_v25 = vsel %vm11417_vm11, %v8528_v38, %v8529_v48  ;;  %v8532_v58 = vrot.slane %v8531_v46, 4  ;;  %v8538_v28 = vrot.slane %v8440_v8, 6 }
 0x42c   : > { %v8535_v50 = vrot.slane %v8533_v0, 4  ;;  %v8540_v39 = vrot.slane %v13957_v24, 6  ;;  %v8543_v60 = vrot.slane %v13976_v63, 6  ;;  %v8545_v23 = vrot.slane %v8441_v9, 6 }
 0x42d   : > { %v8534_v18 = vsel %vm11417_vm11, %v8532_v58, %v8533_v0  ;;  %v8539_v32 = vrot.slane %v8538_v28, 4  ;;  %v8547_v17 = vrot.slane %v13972_v15, 6  ;;  %v8550_v29 = vrot.slane %v13989_v4, 6 }
 0x42e   : > { %v8537_v59 = vsel %vm11417_vm11, %v8535_v50, %v8536_v26  ;;  %v8542_v14 = vrot.slane %v8540_v39, 4  ;;  %v8546_v31 = vrot.slane %v8545_v23, 4  ;;  %v8717_v47 = vmax.bf16 %v8517_v20, %v8377_v6 }
 0x42f   : > { %v8541_v24 = vsel %vm11417_vm11, %v8539_v32, %v8540_v39  ;;  %v8549_v30 = vrot.slane %v8547_v17, 4  ;;  %v8718_v63 = vmax.bf16 %v8520_v16, %v14007_v7  ;;  %v8719_v41 = vmax.bf16 %v8523_v12, %v8379_v2 }
 0x430   : > { %v8544_v35 = vsel %vm11417_vm11, %v8542_v14, %v8543_v60  ;;  %v8548_v15 = vsel %vm11417_vm11, %v8546_v31, %v8547_v17  ;;  %v14076_v4 = vmax.bf16 %v8524_v33, %v8380_v37  ;;  %v14078_v56 = vmax.bf16 %v8527_v21, %v8381_v49  ;;  %v6832_v37 = vld [vmem:[#allocation2 + $0x68] sm:$0x8]  ;;  %v6833_v49 = vld [vmem:[#allocation2 + $0x6c] sm:$0xf] }
 0x431   : > { %v8551_v6 = vsel %vm11417_vm11, %v8549_v30, %v8550_v29  ;;  %v14082_v11 = vmax.bf16 %v8530_v25, %v8382_v53  ;;  %v14084_v20 = vmax.bf16 %v8531_v46, %v8383_v54  ;;  %v14086_v55 = vmax.bf16 %v8534_v18, %v8384_v34  ;;  %v6882_v34 = vld [vmem:[#allocation2 + $0x70] sm:$0xf]  ;;  %v7792_v21 = vld [vmem:[#allocation2 + $0x6c] sm:$0xf] }
 0x432   : > { %v14088_v7 = vmax.bf16 %v8537_v59, %v8385_v43  ;;  %v14090_v2 = vmax.bf16 %v8538_v28, %v8386_v42  ;;  %v14092_v57 = vmax.bf16 %v8541_v24, %v8387_v5  ;;  %v14094_v51 = vmax.bf16 %v8544_v35, %v8388_v61  ;;  %v7793_v30 = vld [vmem:[#allocation2 + $0x70] sm:$0xf] }
 0x433   : > { %v14096_v33 = vmax.bf16 %v8545_v23, %v8389_v62  ;;  %v14098_v36 = vmax.bf16 %v8548_v15, %v8390_v1  ;;  %v14100_v53 = vmax.bf16 %v8551_v6, %v8391_v22  ;;  %v8777_v54 = vmax.bf16 %v14076_v4, %v8717_v47  ;;  %v8442_v6 = vld [vmem:[#allocation2 + $0x6c] sm:$0xe] }
 0x434   : > { %v8778_v43 = vmax.bf16 %v14078_v56, %v8718_v63  ;;  %v8779_v42 = vmax.bf16 %v14082_v11, %v8719_v41  ;;  %v8780_v5 = vmax.bf16 %v14084_v20, %v14076_v4  ;;  %v8781_v61 = vmax.bf16 %v14086_v55, %v14078_v56  ;;  %v6883_v56 = vld [vmem:[#allocation2 + $0x84] sm:$0xf] }
 0x435   : > { %v8782_v62 = vmax.bf16 %v14088_v7, %v14082_v11  ;;  %v8825_v1 = vmax.bf16 %v8777_v54, %v14084_v20  ;;  %v7023_v13 = vshrl.u32 %v6832_v37, 16  ;;  %v7028_v8 = vshll.u32 %v6833_v49, 16 }
 0x436   : > { %v8826_v52 = vmax.bf16 %v8778_v43, %v14086_v55  ;;  %v8827_v44 = vmax.bf16 %v8779_v42, %v14088_v7  ;;  %v7032_v48 = vshrl.u32 %v6833_v49, 16  ;;  %v7038_v22 = vshll.u32 %v6882_v34, 16  ;;  %v6834_v43 = vld [vmem:[#allocation2 + $0x70] sm:$0x7] }
 0x437   : > { %v8873_v9 = vmax.bf16 %v8825_v1, %v14090_v2  ;;  %v7030_v19 = vrot.slane %v7028_v8, 5  ;;  %v7042_v38 = vshrl.u32 %v6882_v34, 16  ;;  %v7582_v46 = vrot.slane %v6833_v49, 5  ;;  %v7794_v8 = vld [vmem:[#allocation2 + $0x74] sm:$0x1] }
 0x438   : > { %v8874_v16 = vmax.bf16 %v8826_v52, %v14092_v57  ;;  %v8875_v12 = vmax.bf16 %v8827_v44, %v14094_v51  ;;  %v7034_v0 = vrot.slane %v7032_v48, 4  ;;  %v7040_v26 = vrot.slane %v7038_v22, 5 }
 0x439   : > { %v8921_v25 = vmax.bf16 %v8873_v9, %v14096_v33  ;;  %v7031_v58 = vsel %vm11245_vm2, %v7023_v13, %v7030_v19  ;;  %v7044_v28 = vrot.slane %v7042_v38, 4  ;;  %v7583_v50 = vrot.slane %v7582_v46, 4 }
 0x43a   : > { %v8922_v39 = vmax.bf16 %v8874_v16, %v14098_v36  ;;  %v8923_v60 = vmax.bf16 %v8875_v12, %v14100_v53  ;;  %v7035_v23 = vor.u32 %v7034_v0, %v7030_v19  ;;  %v7472_v18 = vmax.bf16 %v7031_v58, %v6832_v37 }
 0x43b   : > { %v10111_v32 = vrot.slane %v8921_v25, 11  ;;  %v7045_v17 = vor.u32 %v7044_v28, %v7040_v26  ;;  %v7584_v29 = vrot.slane %v6882_v34, 5  ;;  %v7958_v59 = vshrl.u32 %v7792_v21, 16 }
 0x43c   : > { %v9051_v14 = vrot.slane %v8922_v39, 7  ;;  %v9054_v31 = vrot.slane %v8923_v60, 7  ;;  %v7036_v47 = vrot.slane %v7035_v23, 4  ;;  %v7732_v24 = vmax.bf16 %v7582_v46, %v7472_v18 }
 0x43d   : > { %v7046_v63 = vrot.slane %v7045_v17, 4  ;;  %v7585_v41 = vsel %vm11300_vm5, %v7583_v50, %v7584_v29  ;;  %v7586_v35 = vrot.slane %v7584_v29, 4  ;;  %v7960_v15 = vrot.slane %v7958_v59, 5  ;;  %v6836_v17 = vld [vmem:[#allocation2 + $0x80] sm:$0xf] }
 0x43e   : > { %v9052_v54 = vsel %vm11875_vm14, %v10111_v32, %v9051_v14  ;;  %v9053_v37 = vrot.slane %v9051_v14, 4  ;;  %v7041_v34 = vsel %vm11245_vm2, %v7036_v47, %v7040_v26  ;;  %v7961_v42 = vshll.u32 %v7792_v21, 16  ;;  %v6835_v32 = vld [vmem:[#allocation2 + $0x7c] sm:$0x8] }
 0x43f   : > { %v7473_v1 = vmax.bf16 %v7041_v34, %v6833_v49  ;;  %v7474_v13 = vmax.bf16 %v7046_v63, %v6834_v43  ;;  %v7967_v52 = vshrl.u32 %v7793_v30, 16  ;;  %v7970_v44 = vshll.u32 %v7793_v30, 16 }
 0x440   : > { %v9055_v48 = vsel %vm11875_vm14, %v9053_v37, %v9054_v31  ;;  %v7963_v22 = vrot.slane %v7961_v42, 6  ;;  %v7977_v9 = vshll.u32 %v7794_v8, 16  ;;  %v8552_v19 = vrot.slane %v8442_v6, 6 }
 0x441   : > { %v10143_v38 = vcombine.low %v9052_v54, %v9055_v48  ;;  %v7733_v46 = vmax.bf16 %v7585_v41, %v7473_v1  ;;  %v7734_v16 = vmax.bf16 %v7586_v35, %v7474_v13  ;;  %v7969_v12 = vrot.slane %v7967_v52, 5 }
 0x442   : > { %v7964_v0 = vor.u32 %v7963_v22, %v7960_v15  ;;  %v7972_v25 = vrot.slane %v7970_v44, 6  ;;  %v7979_v58 = vrot.slane %v7977_v9, 6  ;;  %v8553_v26 = vrot.slane %v8552_v19, 4 }
 0x443   : > { %10580 = vmatprep.mubr.bf16.mxu1 %v10143_v38  ;;  %v8554_v49 = vrot.slane %v7793_v30, 6  ;;  %v8557_v21 = vrot.slane %v7794_v8, 6  ;;  %v8828_v28 = vmax.bf16 %v8780_v5, %v14090_v2  ;;  %v8829_v50 = vmax.bf16 %v8781_v61, %v14092_v57  ;;  %v7795_v8 = vld [vmem:[#allocation2 + $0x80] sm:$0xf] }
 0x444   : > { %v7965_v39 = vrot.slane %v7964_v0, 4  ;;  %v7973_v60 = vor.u32 %v7972_v25, %v7969_v12  ;;  %v8392_v23 = vmax.bf16 %v7964_v0, %v7732_v24  ;;  %v8830_v18 = vmax.bf16 %v8782_v62, %v14094_v51  ;;  %v7796_v25 = vld [vmem:[#allocation2 + $0x84] sm:$0xf] }
 0x445   : > { %v8555_v29 = vsel %vm11417_vm11, %v8553_v26, %v8554_v49  ;;  %v8556_v4 = vrot.slane %v8554_v49, 4  ;;  %v8876_v5 = vmax.bf16 %v8828_v28, %v14096_v33  ;;  %v8877_v59 = vmax.bf16 %v8829_v50, %v14098_v36 }
 0x446   : > { %v7974_v61 = vsel %vm11329_vm8, %v7965_v39, %v7973_v60  ;;  %v7975_v14 = vrot.slane %v7973_v60, 4  ;;  %v14148_v31 = vmax.bf16 %v8552_v19, %v8392_v23  ;;  %v8878_v11 = vmax.bf16 %v8830_v18, %v14100_v53  ;;  %v6837_v23 = vld [vmem:[#allocation2 + $0x84] sm:$0x7] }
 0x447   : > { %v8393_v62 = vmax.bf16 %v7974_v61, %v7733_v46  ;;  %v8558_v47 = vsel %vm11417_vm11, %v8556_v4, %v8557_v21  ;;  %v7048_v24 = vshrl.u32 %v6835_v32, 16  ;;  %v7053_v30 = vshll.u32 %v6836_v17, 16 }
 0x448   : > { %v7980_v63 = vsel %vm11329_vm8, %v7975_v14, %v7979_v58  ;;  %v8924_v41 = vmax.bf16 %v8876_v5, %v14148_v31  ;;  %v7057_v35 = vshrl.u32 %v6836_v17, 16  ;;  %v7063_v15 = vshll.u32 %v6883_v56, 16 }
 0x449   : > { %v8394_v6 = vmax.bf16 %v7980_v63, %v7734_v16  ;;  %v14156_v54 = vmax.bf16 %v8555_v29, %v8393_v62  ;;  %v7055_v37 = vrot.slane %v7053_v30, 5  ;;  %v7067_v43 = vshrl.u32 %v6883_v56, 16 }
 0x44a   : > { %v10112_v34 = vrot.slane %v8924_v41, 11  ;;  %v7059_v42 = vrot.slane %v7057_v35, 4  ;;  %v7065_v1 = vrot.slane %v7063_v15, 5  ;;  %v7587_v13 = vrot.slane %v6836_v17, 5 }
 0x44b   : > { %v14158_v52 = vmax.bf16 %v8558_v47, %v8394_v6  ;;  %v8925_v44 = vmax.bf16 %v8877_v59, %v14156_v54  ;;  %v7056_v48 = vsel %vm11245_vm2, %v7048_v24, %v7055_v37  ;;  %v7069_v22 = vrot.slane %v7067_v43, 4  ;;  %v8443_v59 = vld [vmem:[#allocation2 + $0x80] sm:$0xe] }
 0x44c   : > { %v7060_v9 = vor.u32 %v7059_v42, %v7055_v37  ;;  %v7475_v19 = vmax.bf16 %v7056_v48, %v6835_v32  ;;  %v7588_v38 = vrot.slane %v7587_v13, 4  ;;  %v7589_v46 = vrot.slane %v6883_v56, 5 }
 0x44d   : > { %v8926_v16 = vmax.bf16 %v8878_v11, %v14158_v52  ;;  %v9058_v12 = vrot.slane %v8925_v44, 7  ;;  %v7070_v0 = vor.u32 %v7069_v22, %v7065_v1  ;;  %v7982_v58 = vshrl.u32 %v7795_v8, 16  ;;  %v7797_v11 = vld [vmem:[#allocation2 + $0x88] sm:$0x1] }
 0x44e   : > { %v7061_v26 = vrot.slane %v7060_v9, 4  ;;  %v7590_v49 = vsel %vm11300_vm5, %v7588_v38, %v7589_v46  ;;  %v7591_v21 = vrot.slane %v7589_v46, 4  ;;  %v7735_v28 = vmax.bf16 %v7587_v13, %v7475_v19 }
 0x44f   : > { %v9059_v50 = vsel %vm11875_vm14, %v10112_v34, %v9058_v12  ;;  %v9060_v39 = vrot.slane %v9058_v12, 4  ;;  %v9061_v60 = vrot.slane %v8926_v16, 7  ;;  %v7071_v18 = vrot.slane %v7070_v0, 4  ;;  %v6838_v12 = vld [vmem:[#allocation2 + $0x90] sm:$0x8] }
 0x450   : > { %v7066_v32 = vsel %vm11245_vm2, %v7061_v26, %v7065_v1  ;;  %v7984_v29 = vrot.slane %v7982_v58, 5  ;;  %v7985_v4 = vshll.u32 %v7795_v8, 16  ;;  %v7991_v5 = vshrl.u32 %v7796_v25, 16  ;;  %v6839_v0 = vld [vmem:[#allocation2 + $0x94] sm:$0xf] }
 0x451   : > { %v9062_v56 = vsel %vm11875_vm14, %v9060_v39, %v9061_v60  ;;  %v7476_v61 = vmax.bf16 %v7066_v32, %v6836_v17  ;;  %v7477_v14 = vmax.bf16 %v7071_v18, %v6837_v23  ;;  %v7994_v62 = vshll.u32 %v7796_v25, 16  ;;  %v6884_v58 = vld [vmem:[#allocation2 + $0x98] sm:$0xf] }
 0x452   : > { %v10144_v47 = vcombine.low %v9059_v50, %v9062_v56  ;;  %v7987_v24 = vrot.slane %v7985_v4, 6  ;;  %v7993_v30 = vrot.slane %v7991_v5, 5  ;;  %v8001_v63 = vshll.u32 %v7797_v11, 16 }
 0x453   : > { %v7736_v41 = vmax.bf16 %v7590_v49, %v7476_v61  ;;  %v7737_v35 = vmax.bf16 %v7591_v21, %v7477_v14  ;;  %v7996_v15 = vrot.slane %v7994_v62, 6  ;;  %v8559_v6 = vrot.slane %v8443_v59, 6 }
 0x454   : > { %10581 = vmatmul.mubr.bf16.vlgmr.msra.gmra.mrb[16].mxu1 %v10144_v47  ;;  %v7988_v37 = vor.u32 %v7987_v24, %v7984_v29  ;;  %v8003_v43 = vrot.slane %v8001_v63, 6  ;;  %v8561_v34 = vrot.slane %v7796_v25, 6  ;;  %v8564_v42 = vrot.slane %v7797_v11, 6  ;;  %v7798_v24 = vld [vmem:[#allocation2 + $0x94] sm:$0xf] }
 0x455   : > { %v7997_v1 = vor.u32 %v7996_v15, %v7993_v30  ;;  %v8560_v13 = vrot.slane %v8559_v6, 4  ;;  %v8783_v17 = vmax.bf16 %v14090_v2, %v14084_v20  ;;  %v8784_v8 = vmax.bf16 %v14092_v57, %v14086_v55 }
 0x456   : > { %v7989_v44 = vrot.slane %v7988_v37, 4  ;;  %v8395_v48 = vmax.bf16 %v7988_v37, %v7735_v28  ;;  %v8563_v22 = vrot.slane %v8561_v34, 4  ;;  %v8785_v9 = vmax.bf16 %v14094_v51, %v14088_v7 }
 0x457   : > { %v7999_v19 = vrot.slane %v7997_v1, 4  ;;  %v8562_v38 = vsel %vm11417_vm11, %v8560_v13, %v8561_v34  ;;  %v8831_v46 = vmax.bf16 %v8783_v17, %v14096_v33  ;;  %v8832_v16 = vmax.bf16 %v8784_v8, %v14098_v36 }
 0x458   : > { %v7998_v20 = vsel %vm11329_vm8, %v7989_v44, %v7997_v1  ;;  %v8565_v55 = vsel %vm11417_vm11, %v8563_v22, %v8564_v42  ;;  %v14186_v25 = vmax.bf16 %v8559_v6, %v8395_v48  ;;  %v8833_v7 = vmax.bf16 %v8785_v9, %v14100_v53  ;;  %v7799_v1 = vld [vmem:[#allocation2 + $0x98] sm:$0xf] }
 0x459   : > { %v8004_v26 = vsel %vm11329_vm8, %v7999_v19, %v8003_v43  ;;  %v8396_v49 = vmax.bf16 %v7998_v20, %v7736_v41  ;;  %v8879_v21 = vmax.bf16 %v8831_v46, %v14148_v31  ;;  %v8880_v28 = vmax.bf16 %v8832_v16, %v14156_v54  ;;  %v8444_v16 = vld [vmem:[#allocation2 + $0x94] sm:$0xe]  ;;  %v6840_v20 = vld [vmem:[#allocation2 + $0x98] sm:$0x7] }
 0x45a   : > { %v8397_v50 = vmax.bf16 %v8004_v26, %v7737_v35  ;;  %v8881_v39 = vmax.bf16 %v8833_v7, %v14158_v52  ;;  %v7073_v60 = vshrl.u32 %v6838_v12, 16  ;;  %v7078_v23 = vshll.u32 %v6839_v0, 16 }
 0x45b   : > { %v14194_v18 = vmax.bf16 %v8562_v38, %v8396_v49  ;;  %v8927_v32 = vmax.bf16 %v8879_v21, %v14186_v25  ;;  %v7082_v29 = vshrl.u32 %v6839_v0, 16  ;;  %v7088_v4 = vshll.u32 %v6884_v58, 16 }
 0x45c   : > { %v14197_v5 = vmax.bf16 %v8565_v55, %v8397_v50  ;;  %v7080_v59 = vrot.slane %v7078_v23, 5  ;;  %v7092_v56 = vshrl.u32 %v6884_v58, 16  ;;  %v7592_v61 = vrot.slane %v6839_v0, 5 }
 0x45d   : > { %v8928_v14 = vmax.bf16 %v8880_v28, %v14194_v18  ;;  %v10113_v11 = vrot.slane %v8927_v32, 11  ;;  %v7084_v62 = vrot.slane %v7082_v29, 4  ;;  %v7090_v47 = vrot.slane %v7088_v4, 5  ;;  %v7800_v28 = vld [vmem:[#allocation2 + $0x9c] sm:$0x1] }
 0x45e   : > { %v8929_v30 = vmax.bf16 %v8881_v39, %v14197_v5  ;;  %v7081_v63 = vsel %vm11245_vm2, %v7073_v60, %v7080_v59  ;;  %v7094_v41 = vrot.slane %v7092_v56, 4  ;;  %v7593_v35 = vrot.slane %v7592_v61, 4 }
 0x45f   : > { %v9065_v15 = vrot.slane %v8928_v14, 7  ;;  %v7085_v6 = vor.u32 %v7084_v62, %v7080_v59  ;;  %v7478_v37 = vmax.bf16 %v7081_v63, %v6838_v12  ;;  %v7594_v43 = vrot.slane %v6884_v58, 5  ;;  %v6841_v63 = vld [vmem:[#allocation2 + $0xa4] sm:$0x8] }
 0x460   : > { %v9068_v34 = vrot.slane %v8929_v30, 7  ;;  %v7095_v42 = vor.u32 %v7094_v41, %v7090_v47  ;;  %v8006_v13 = vshrl.u32 %v7798_v24, 16  ;;  %v8009_v17 = vshll.u32 %v7798_v24, 16 }
 0x461   : > { %v9066_v8 = vsel %vm11875_vm14, %v10113_v11, %v9065_v15  ;;  %v9067_v44 = vrot.slane %v9065_v15, 4  ;;  %v7086_v48 = vrot.slane %v7085_v6, 4  ;;  %v7595_v22 = vsel %vm11300_vm5, %v7593_v35, %v7594_v43 }
 0x462   : > { %v7096_v9 = vrot.slane %v7095_v42, 4  ;;  %v7596_v19 = vrot.slane %v7594_v43, 4  ;;  %v7738_v38 = vmax.bf16 %v7592_v61, %v7478_v37  ;;  %v8008_v46 = vrot.slane %v8006_v13, 5  ;;  %v6842_v37 = vld [vmem:[#allocation2 + $0xa8] sm:$0xf] }
 0x463   : > { %v9069_v12 = vsel %vm11875_vm14, %v9067_v44, %v9068_v34  ;;  %v7091_v55 = vsel %vm11245_vm2, %v7086_v48, %v7090_v47  ;;  %v8011_v7 = vrot.slane %v8009_v17, 6  ;;  %v8015_v58 = vshrl.u32 %v7799_v1, 16 }
 0x464   : > { %v10145_v26 = vcombine.low %v9066_v8, %v9069_v12  ;;  %v7479_v49 = vmax.bf16 %v7091_v55, %v6839_v0  ;;  %v7480_v21 = vmax.bf16 %v7096_v9, %v6840_v20  ;;  %v8018_v50 = vshll.u32 %v7799_v1, 16  ;;  %v6885_v8 = vld [vmem:[#allocation2 + $0xac] sm:$0xf] }
 0x465   : > { %v8012_v39 = vor.u32 %v8011_v7, %v8008_v46  ;;  %v8017_v60 = vrot.slane %v8015_v58, 5  ;;  %v8025_v23 = vshll.u32 %v7800_v28, 16  ;;  %v8566_v32 = vrot.slane %v8444_v16, 6 }
 0x466   : > { %10584 = vmatprep.mubr.bf16.mxu1 %v10145_v26  ;;  %v7739_v29 = vmax.bf16 %v7595_v22, %v7479_v49  ;;  %v7740_v4 = vmax.bf16 %v7596_v19, %v7480_v21  ;;  %v8020_v59 = vrot.slane %v8018_v50, 6  ;;  %v8568_v56 = vrot.slane %v7799_v1, 6  ;;  %v7801_v21 = vld [vmem:[#allocation2 + $0xa8] sm:$0xf] }
 0x467   : > { %v8013_v61 = vrot.slane %v8012_v39, 4  ;;  %v8027_v14 = vrot.slane %v8025_v23, 6  ;;  %v8398_v11 = vmax.bf16 %v8012_v39, %v7738_v38  ;;  %v8567_v62 = vrot.slane %v8566_v32, 4 }
 0x468   : > { %v8021_v47 = vor.u32 %v8020_v59, %v8017_v60  ;;  %v8570_v24 = vrot.slane %v8568_v56, 4  ;;  %v8571_v30 = vrot.slane %v7800_v28, 6  ;;  %v8786_v0 = vmax.bf16 %v14096_v33, %v14090_v2 }
 0x469   : > { %v8569_v41 = vsel %vm11417_vm11, %v8567_v62, %v8568_v56  ;;  %v14215_v35 = vmax.bf16 %v8566_v32, %v8398_v11  ;;  %v8787_v15 = vmax.bf16 %v14098_v36, %v14092_v57  ;;  %v8788_v6 = vmax.bf16 %v14100_v53, %v14094_v51 }
 0x46a   : > { %v8022_v43 = vsel %vm11329_vm8, %v8013_v61, %v8021_v47  ;;  %v8023_v34 = vrot.slane %v8021_v47, 4  ;;  %v8572_v2 = vsel %vm11417_vm11, %v8570_v24, %v8571_v30  ;;  %v8834_v42 = vmax.bf16 %v8786_v0, %v14148_v31  ;;  %v7802_v30 = vld [vmem:[#allocation2 + $0xac] sm:$0xf] }
 0x46b   : > { %v8399_v1 = vmax.bf16 %v8022_v43, %v7739_v29  ;;  %v8835_v13 = vmax.bf16 %v8787_v15, %v14156_v54  ;;  %v8836_v17 = vmax.bf16 %v8788_v6, %v14158_v52  ;;  %v7098_v57 = vshrl.u32 %v6841_v63, 16 }
 0x46c   : > { %v8028_v51 = vsel %vm11329_vm8, %v8023_v34, %v8027_v14  ;;  %v8882_v44 = vmax.bf16 %v8834_v42, %v14186_v25  ;;  %v7103_v48 = vshll.u32 %v6842_v37, 16  ;;  %v7107_v22 = vshrl.u32 %v6842_v37, 16  ;;  %v6843_v34 = vld [vmem:[#allocation2 + $0xac] sm:$0x7] }
 0x46d   : > { %v8400_v9 = vmax.bf16 %v8028_v51, %v7740_v4  ;;  %v14231_v19 = vmax.bf16 %v8569_v41, %v8399_v1  ;;  %v8883_v38 = vmax.bf16 %v8835_v13, %v14194_v18  ;;  %v8884_v46 = vmax.bf16 %v8836_v17, %v14197_v5  ;;  %v7803_v17 = vld [vmem:[#allocation2 + $0xb0] sm:$0x1] }
 0x46e   : > { %v8930_v16 = vmax.bf16 %v8882_v44, %v14215_v35  ;;  %v7105_v12 = vrot.slane %v7103_v48, 5  ;;  %v7109_v20 = vrot.slane %v7107_v22, 4  ;;  %v7113_v55 = vshll.u32 %v6885_v8, 16 }
 0x46f   : > { %v14236_v7 = vmax.bf16 %v8572_v2, %v8400_v9  ;;  %v8931_v58 = vmax.bf16 %v8883_v38, %v14231_v19  ;;  %v7117_v26 = vshrl.u32 %v6885_v8, 16  ;;  %v7597_v49 = vrot.slane %v6842_v37, 5 }
 0x470   : > { %v10114_v28 = vrot.slane %v8930_v16, 11  ;;  %v7106_v50 = vsel %vm11245_vm2, %v7098_v57, %v7105_v12  ;;  %v7110_v39 = vor.u32 %v7109_v20, %v7105_v12  ;;  %v7115_v60 = vrot.slane %v7113_v55, 5  ;;  %v6844_v20 = vld [vmem:[#allocation2 + $0xb8] sm:$0x8] }
 0x471   : > { %v8932_v23 = vmax.bf16 %v8884_v46, %v14236_v7  ;;  %v9072_v32 = vrot.slane %v8931_v58, 7  ;;  %v7119_v29 = vrot.slane %v7117_v26, 4  ;;  %v7481_v4 = vmax.bf16 %v7106_v50, %v6841_v63  ;;  %v8445_v63 = vld [vmem:[#allocation2 + $0xa8] sm:$0xe] }
 0x472   : > { %v7111_v59 = vrot.slane %v7110_v39, 4  ;;  %v7598_v56 = vrot.slane %v7597_v49, 4  ;;  %v7599_v61 = vrot.slane %v6885_v8, 5  ;;  %v8030_v14 = vshrl.u32 %v7801_v21, 16  ;;  %v6845_v39 = vld [vmem:[#allocation2 + $0xbc] sm:$0xf] }
 0x473   : > { %v9073_v11 = vsel %vm11875_vm14, %v10114_v28, %v9072_v32  ;;  %v9074_v62 = vrot.slane %v9072_v32, 4  ;;  %v9075_v47 = vrot.slane %v8932_v23, 7  ;;  %v7120_v24 = vor.u32 %v7119_v29, %v7115_v60 }
 0x474   : > { %v7116_v0 = vsel %vm11245_vm2, %v7111_v59, %v7115_v60  ;;  %v7600_v41 = vsel %vm11300_vm5, %v7598_v56, %v7599_v61  ;;  %v7601_v15 = vrot.slane %v7599_v61, 4  ;;  %v7741_v6 = vmax.bf16 %v7597_v49, %v7481_v4 }
 0x475   : > { %v9076_v43 = vsel %vm11875_vm14, %v9074_v62, %v9075_v47  ;;  %v7121_v2 = vrot.slane %v7120_v24, 4  ;;  %v7482_v42 = vmax.bf16 %v7116_v0, %v6842_v37  ;;  %v8032_v1 = vrot.slane %v8030_v14, 5  ;;  %v6886_v62 = vld [vmem:[#allocation2 + $0xc0] sm:$0xf] }
 0x476   : > { %v10146_v13 = vcombine.low %v9073_v11, %v9076_v43  ;;  %v8033_v8 = vshll.u32 %v7801_v21, 16  ;;  %v8039_v57 = vshrl.u32 %v7802_v30, 16  ;;  %v8042_v51 = vshll.u32 %v7802_v30, 16 }
 0x477   : > { %v7483_v44 = vmax.bf16 %v7121_v2, %v6843_v34  ;;  %v7742_v48 = vmax.bf16 %v7600_v41, %v7482_v42  ;;  %v8049_v22 = vshll.u32 %v7803_v17, 16  ;;  %v8573_v9 = vrot.slane %v8445_v63, 6 }
 0x478   : > { %10585 = vmatmul.mubr.bf16.gmra.mrb[20].mxu1 %v10146_v13  ;;  %v8035_v38 = vrot.slane %v8033_v8, 6  ;;  %v8041_v46 = vrot.slane %v8039_v57, 5  ;;  %v8044_v16 = vrot.slane %v8042_v51, 6  ;;  %v8575_v12 = vrot.slane %v7802_v30, 6 }
 0x479   : > { %v7743_v55 = vmax.bf16 %v7601_v15, %v7483_v44  ;;  %v8051_v58 = vrot.slane %v8049_v22, 6  ;;  %v8574_v26 = vrot.slane %v8573_v9, 4  ;;  %v8578_v37 = vrot.slane %v7803_v17, 6 }
 0x47a   : > { %v8036_v49 = vor.u32 %v8035_v38, %v8032_v1  ;;  %v8045_v28 = vor.u32 %v8044_v16, %v8041_v46  ;;  %v8577_v50 = vrot.slane %v8575_v12, 4  ;;  %v8789_v21 = vmax.bf16 %v14148_v31, %v14096_v33 }
 0x47b   : > { %v8576_v60 = vsel %vm11417_vm11, %v8574_v26, %v8575_v12  ;;  %v8790_v23 = vmax.bf16 %v14156_v54, %v14098_v36  ;;  %v8791_v32 = vmax.bf16 %v14158_v52, %v14100_v53  ;;  %v7123_v29 = vshrl.u32 %v6844_v20, 16 }
 0x47c   : > { %v8037_v4 = vrot.slane %v8036_v49, 4  ;;  %v8047_v59 = vrot.slane %v8045_v28, 4  ;;  %v8401_v56 = vmax.bf16 %v8036_v49, %v7741_v6  ;;  %v8579_v61 = vsel %vm11417_vm11, %v8577_v50, %v8578_v37 }
 0x47d   : > { %v8837_v14 = vmax.bf16 %v8789_v21, %v14186_v25  ;;  %v8838_v33 = vmax.bf16 %v8790_v23, %v14194_v18  ;;  %v8839_v11 = vmax.bf16 %v8791_v32, %v14197_v5  ;;  %v7128_v47 = vshll.u32 %v6845_v39, 16 }
 0x47e   : > { %v8046_v36 = vsel %vm11329_vm8, %v8037_v4, %v8045_v28  ;;  %v8052_v53 = vsel %vm11329_vm8, %v8047_v59, %v8051_v58  ;;  %v14267_v24 = vmax.bf16 %v8573_v9, %v8401_v56  ;;  %v7132_v30 = vshrl.u32 %v6845_v39, 16  ;;  %v7805_v28 = vld [vmem:[#allocation2 + $0xc0] sm:$0xf] }
 0x47f   : > { %v8402_v0 = vmax.bf16 %v8046_v36, %v7742_v48  ;;  %v8403_v41 = vmax.bf16 %v8052_v53, %v7743_v55  ;;  %v8885_v15 = vmax.bf16 %v8837_v14, %v14215_v35  ;;  %v8886_v6 = vmax.bf16 %v8838_v33, %v14231_v19  ;;  %v7804_v48 = vld [vmem:[#allocation2 + $0xbc] sm:$0xf] }
 0x480   : > { %v8887_v63 = vmax.bf16 %v8839_v11, %v14236_v7  ;;  %v7130_v43 = vrot.slane %v7128_v47, 5  ;;  %v7134_v34 = vrot.slane %v7132_v30, 4  ;;  %v7138_v2 = vshll.u32 %v6886_v62, 16  ;;  %v8446_v47 = vld [vmem:[#allocation2 + $0xbc] sm:$0xe] }
 0x481   : > { %v14272_v42 = vmax.bf16 %v8576_v60, %v8402_v0  ;;  %v14274_v1 = vmax.bf16 %v8579_v61, %v8403_v41  ;;  %v8933_v13 = vmax.bf16 %v8885_v15, %v14267_v24  ;;  %v7142_v17 = vshrl.u32 %v6886_v62, 16  ;;  %v7806_v61 = vld [vmem:[#allocation2 + $0xc4] sm:$0x1] }
 0x482   : > { %v7131_v8 = vsel %vm11245_vm2, %v7123_v29, %v7130_v43  ;;  %v7135_v57 = vor.u32 %v7134_v34, %v7130_v43  ;;  %v7140_v51 = vrot.slane %v7138_v2, 5  ;;  %v7602_v44 = vrot.slane %v6845_v39, 5 }
 0x483   : > { %v8934_v22 = vmax.bf16 %v8886_v6, %v14272_v42  ;;  %v8935_v9 = vmax.bf16 %v8887_v63, %v14274_v1  ;;  %v10115_v38 = vrot.slane %v8933_v13, 11  ;;  %v7144_v46 = vrot.slane %v7142_v17, 4 }
 0x484   : > { %v7136_v16 = vrot.slane %v7135_v57, 4  ;;  %v7484_v12 = vmax.bf16 %v7131_v8, %v6844_v20  ;;  %v7603_v55 = vrot.slane %v7602_v44, 4  ;;  %v7604_v58 = vrot.slane %v6886_v62, 5  ;;  %v6846_v20 = vld [vmem:[#allocation2 + $0xc0] sm:$0x7] }
 0x485   : > { %v9079_v26 = vrot.slane %v8934_v22, 7  ;;  %v9082_v37 = vrot.slane %v8935_v9, 7  ;;  %v7145_v49 = vor.u32 %v7144_v46, %v7140_v51  ;;  %v8054_v50 = vshrl.u32 %v7804_v48, 16 }
 0x486   : > { %v7141_v21 = vsel %vm11245_vm2, %v7136_v16, %v7140_v51  ;;  %v7605_v60 = vsel %vm11300_vm5, %v7603_v55, %v7604_v58  ;;  %v7606_v23 = vrot.slane %v7604_v58, 4  ;;  %v7744_v32 = vmax.bf16 %v7602_v44, %v7484_v12 }
 0x487   : > { %v9080_v29 = vsel %vm11875_vm14, %v10115_v38, %v9079_v26  ;;  %v9081_v4 = vrot.slane %v9079_v26, 4  ;;  %v7146_v59 = vrot.slane %v7145_v49, 4  ;;  %v7485_v56 = vmax.bf16 %v7141_v21, %v6845_v39  ;;  %v6847_v26 = vld [vmem:[#allocation2 + $0xcc] sm:$0x8] }
 0x488   : > { %v8056_v14 = vrot.slane %v8054_v50, 5  ;;  %v8057_v33 = vshll.u32 %v7804_v48, 16  ;;  %v8063_v11 = vshrl.u32 %v7805_v28, 16  ;;  %v8066_v62 = vshll.u32 %v7805_v28, 16  ;;  %v6887_v50 = vld [vmem:[#allocation2 + $0xd4] sm:$0xf] }
 0x489   : > { %v9083_v36 = vsel %vm11875_vm14, %v9081_v4, %v9082_v37  ;;  %v7486_v53 = vmax.bf16 %v7146_v59, %v6846_v20  ;;  %v7745_v30 = vmax.bf16 %v7605_v60, %v7485_v56  ;;  %v8073_v0 = vshll.u32 %v7806_v61, 16 }
 0x48a   : > { %v10147_v41 = vcombine.low %v9080_v29, %v9083_v36  ;;  %v8059_v15 = vrot.slane %v8057_v33, 6  ;;  %v8065_v6 = vrot.slane %v8063_v11, 5  ;;  %v8068_v63 = vrot.slane %v8066_v62, 6 }
 0x48b   : > { %v7746_v43 = vmax.bf16 %v7606_v23, %v7486_v53  ;;  %v8075_v34 = vrot.slane %v8073_v0, 6  ;;  %v8580_v2 = vrot.slane %v8446_v47, 6  ;;  %v8582_v39 = vrot.slane %v7805_v28, 6 }
 0x48c   : > { %10588 = vmatprep.mubr.bf16.mxu1 %v10147_v41  ;;  %v8060_v13 = vor.u32 %v8059_v15, %v8056_v14  ;;  %v8069_v17 = vor.u32 %v8068_v63, %v8065_v6  ;;  %v8585_v8 = vrot.slane %v7806_v61, 6  ;;  %v8792_v57 = vmax.bf16 %v14186_v25, %v14148_v31  ;;  %v7807_v15 = vld [vmem:[#allocation2 + $0xd0] sm:$0xf] }
 0x48d   : > { %v8581_v51 = vrot.slane %v8580_v2, 4  ;;  %v8584_v44 = vrot.slane %v8582_v39, 4  ;;  %v8793_v48 = vmax.bf16 %v14194_v18, %v14156_v54  ;;  %v8794_v22 = vmax.bf16 %v14197_v5, %v14158_v52  ;;  %v6848_v54 = vld [vmem:[#allocation2 + $0xd0] sm:$0xf] }
 0x48e   : > { %v8061_v9 = vrot.slane %v8060_v13, 4  ;;  %v8071_v38 = vrot.slane %v8069_v17, 4  ;;  %v8404_v46 = vmax.bf16 %v8060_v13, %v7744_v32  ;;  %v8840_v16 = vmax.bf16 %v8792_v57, %v14215_v35 }
 0x48f   : > { %v8583_v12 = vsel %vm11417_vm11, %v8581_v51, %v8582_v39  ;;  %v8586_v55 = vsel %vm11417_vm11, %v8584_v44, %v8585_v8  ;;  %v8841_v31 = vmax.bf16 %v8793_v48, %v14231_v19  ;;  %v8842_v58 = vmax.bf16 %v8794_v22, %v14236_v7  ;;  %v7808_v8 = vld [vmem:[#allocation2 + $0xd4] sm:$0xf] }
 0x490   : > { %v8070_v52 = vsel %vm11329_vm8, %v8061_v9, %v8069_v17  ;;  %v8076_v37 = vsel %vm11329_vm8, %v8071_v38, %v8075_v34  ;;  %v14306_v49 = vmax.bf16 %v8580_v2, %v8404_v46  ;;  %v8888_v28 = vmax.bf16 %v8840_v16, %v14267_v24  ;;  %v6849_v38 = vld [vmem:[#allocation2 + $0xd4] sm:$0x7] }
 0x491   : > { %v8405_v21 = vmax.bf16 %v8070_v52, %v7745_v30  ;;  %v8406_v60 = vmax.bf16 %v8076_v37, %v7746_v43  ;;  %v8889_v23 = vmax.bf16 %v8841_v31, %v14272_v42  ;;  %v8890_v32 = vmax.bf16 %v8842_v58, %v14274_v1 }
 0x492   : > { %v8936_v29 = vmax.bf16 %v8888_v28, %v14306_v49  ;;  %v7148_v4 = vshrl.u32 %v6847_v26, 16  ;;  %v7153_v20 = vshll.u32 %v6848_v54, 16  ;;  %v7157_v59 = vshrl.u32 %v6848_v54, 16 }
 0x493   : > { %v14312_v56 = vmax.bf16 %v8583_v12, %v8405_v21  ;;  %v14314_v61 = vmax.bf16 %v8586_v55, %v8406_v60  ;;  %v7163_v14 = vshll.u32 %v6887_v50, 16  ;;  %v7167_v33 = vshrl.u32 %v6887_v50, 16 }
 0x494   : > { %v10116_v11 = vrot.slane %v8936_v29, 11  ;;  %v7155_v62 = vrot.slane %v7153_v20, 5  ;;  %v7159_v47 = vrot.slane %v7157_v59, 4  ;;  %v7607_v36 = vrot.slane %v6848_v54, 5 }
 0x495   : > { %v8937_v53 = vmax.bf16 %v8889_v23, %v14312_v56  ;;  %v8938_v30 = vmax.bf16 %v8890_v32, %v14314_v61  ;;  %v7165_v0 = vrot.slane %v7163_v14, 5  ;;  %v7169_v41 = vrot.slane %v7167_v33, 4 }
 0x496   : > { %v7156_v6 = vsel %vm11245_vm2, %v7148_v4, %v7155_v62  ;;  %v7160_v63 = vor.u32 %v7159_v47, %v7155_v62  ;;  %v7608_v43 = vrot.slane %v7607_v36, 4  ;;  %v7609_v34 = vrot.slane %v6887_v50, 5  ;;  %v7809_v50 = vld [vmem:[#allocation2 + $0xd8] sm:$0x1] }
 0x497   : > { %v9086_v2 = vrot.slane %v8937_v53, 7  ;;  %v9089_v39 = vrot.slane %v8938_v30, 7  ;;  %v7170_v13 = vor.u32 %v7169_v41, %v7165_v0  ;;  %v7487_v17 = vmax.bf16 %v7156_v6, %v6847_v26  ;;  %v8447_v26 = vld [vmem:[#allocation2 + $0xd0] sm:$0xe] }
 0x498   : > { %v7161_v57 = vrot.slane %v7160_v63, 4  ;;  %v7610_v51 = vsel %vm11300_vm5, %v7608_v43, %v7609_v34  ;;  %v7611_v44 = vrot.slane %v7609_v34, 4  ;;  %v8078_v48 = vshrl.u32 %v7807_v15, 16 }
 0x499   : > { %v9087_v22 = vsel %vm11875_vm14, %v10116_v11, %v9086_v2  ;;  %v9088_v9 = vrot.slane %v9086_v2, 4  ;;  %v7171_v46 = vrot.slane %v7170_v13, 4  ;;  %v7747_v16 = vmax.bf16 %v7607_v36, %v7487_v17  ;;  %v6851_v13 = vld [vmem:[#allocation2 + $0xe4] sm:$0xf] }
 0x49a   : > { %v7166_v12 = vsel %vm11245_vm2, %v7161_v57, %v7165_v0  ;;  %v8080_v55 = vrot.slane %v8078_v48, 5  ;;  %v8081_v31 = vshll.u32 %v7807_v15, 16  ;;  %v8087_v58 = vshrl.u32 %v7808_v8, 16 }
 0x49b   : > { %v9090_v52 = vsel %vm11875_vm14, %v9088_v9, %v9089_v39  ;;  %v7488_v37 = vmax.bf16 %v7166_v12, %v6848_v54  ;;  %v7489_v28 = vmax.bf16 %v7171_v46, %v6849_v38  ;;  %v8090_v21 = vshll.u32 %v7808_v8, 16  ;;  %v6850_v39 = vld [vmem:[#allocation2 + $0xe0] sm:$0x8] }
 0x49c   : > { %v10148_v60 = vcombine.low %v9087_v22, %v9090_v52  ;;  %v8083_v23 = vrot.slane %v8081_v31, 6  ;;  %v8089_v32 = vrot.slane %v8087_v58, 5  ;;  %v8097_v29 = vshll.u32 %v7809_v50, 16 }
 0x49d   : > { %v7748_v4 = vmax.bf16 %v7610_v51, %v7488_v37  ;;  %v7749_v20 = vmax.bf16 %v7611_v44, %v7489_v28  ;;  %v8092_v59 = vrot.slane %v8090_v21, 6  ;;  %v8587_v14 = vrot.slane %v8447_v26, 6 }
 0x49e   : > { %10589 = vmatmul.mubr.bf16.gmra.mrb[24].mxu1 %v10148_v60  ;;  %v8084_v33 = vor.u32 %v8083_v23, %v8080_v55  ;;  %v8099_v11 = vrot.slane %v8097_v29, 6  ;;  %v8589_v62 = vrot.slane %v7808_v8, 6  ;;  %v8592_v47 = vrot.slane %v7809_v50, 6  ;;  %v6888_v8 = vld [vmem:[#allocation2 + $0xe8] sm:$0xf] }
 0x49f   : > { %v8093_v36 = vor.u32 %v8092_v59, %v8089_v32  ;;  %v8588_v53 = vrot.slane %v8587_v14, 4  ;;  %v8795_v54 = vmax.bf16 %v14215_v35, %v14186_v25  ;;  %v8796_v30 = vmax.bf16 %v14231_v19, %v14194_v18  ;;  %v7810_v23 = vld [vmem:[#allocation2 + $0xe4] sm:$0xf] }
 0x4a0   : > { %v8085_v0 = vrot.slane %v8084_v33, 4  ;;  %v8407_v41 = vmax.bf16 %v8084_v33, %v7747_v16  ;;  %v8591_v15 = vrot.slane %v8589_v62, 4  ;;  %v8797_v6 = vmax.bf16 %v14236_v7, %v14197_v5 }
 0x4a1   : > { %v8095_v63 = vrot.slane %v8093_v36, 4  ;;  %v8590_v43 = vsel %vm11417_vm11, %v8588_v53, %v8589_v62  ;;  %v8843_v34 = vmax.bf16 %v8795_v54, %v14267_v24  ;;  %v8844_v2 = vmax.bf16 %v8796_v30, %v14272_v42 }
 0x4a2   : > { %v8094_v25 = vsel %vm11329_vm8, %v8085_v0, %v8093_v36  ;;  %v8593_v18 = vsel %vm11417_vm11, %v8591_v15, %v8592_v47  ;;  %v14342_v17 = vmax.bf16 %v8587_v14, %v8407_v41  ;;  %v8845_v5 = vmax.bf16 %v8797_v6, %v14274_v1  ;;  %v7811_v36 = vld [vmem:[#allocation2 + $0xe8] sm:$0xf] }
 0x4a3   : > { %v8100_v57 = vsel %vm11329_vm8, %v8095_v63, %v8099_v11  ;;  %v8408_v51 = vmax.bf16 %v8094_v25, %v7748_v4  ;;  %v8891_v44 = vmax.bf16 %v8843_v34, %v14306_v49  ;;  %v8892_v48 = vmax.bf16 %v8844_v2, %v14312_v56  ;;  %v8448_v2 = vld [vmem:[#allocation2 + $0xe4] sm:$0xe]  ;;  %v6852_v25 = vld [vmem:[#allocation2 + $0xe8] sm:$0x7] }
 0x4a4   : > { %v8409_v22 = vmax.bf16 %v8100_v57, %v7749_v20  ;;  %v8893_v9 = vmax.bf16 %v8845_v5, %v14314_v61  ;;  %v7173_v38 = vshrl.u32 %v6850_v39, 16  ;;  %v7178_v46 = vshll.u32 %v6851_v13, 16 }
 0x4a5   : > { %v14350_v16 = vmax.bf16 %v8590_v43, %v8408_v51  ;;  %v8939_v12 = vmax.bf16 %v8891_v44, %v14342_v17  ;;  %v7182_v55 = vshrl.u32 %v6851_v13, 16  ;;  %v7188_v31 = vshll.u32 %v6888_v8, 16 }
 0x4a6   : > { %v14353_v58 = vmax.bf16 %v8593_v18, %v8409_v22  ;;  %v7180_v26 = vrot.slane %v7178_v46, 5  ;;  %v7192_v52 = vshrl.u32 %v6888_v8, 16  ;;  %v7612_v37 = vrot.slane %v6851_v13, 5 }
 0x4a7   : > { %v8940_v28 = vmax.bf16 %v8892_v48, %v14350_v16  ;;  %v10117_v50 = vrot.slane %v8939_v12, 11  ;;  %v7184_v21 = vrot.slane %v7182_v55, 4  ;;  %v7190_v60 = vrot.slane %v7188_v31, 5  ;;  %v7812_v48 = vld [vmem:[#allocation2 + $0xec] sm:$0x1] }
 0x4a8   : > { %v8941_v32 = vmax.bf16 %v8893_v9, %v14353_v58  ;;  %v7181_v29 = vsel %vm11245_vm2, %v7173_v38, %v7180_v26  ;;  %v7194_v4 = vrot.slane %v7192_v52, 4  ;;  %v7613_v20 = vrot.slane %v7612_v37, 4 }
 0x4a9   : > { %v9093_v59 = vrot.slane %v8940_v28, 7  ;;  %v7185_v14 = vor.u32 %v7184_v21, %v7180_v26  ;;  %v7490_v33 = vmax.bf16 %v7181_v29, %v6850_v39  ;;  %v7614_v11 = vrot.slane %v6888_v8, 5  ;;  %v6853_v29 = vld [vmem:[#allocation2 + $0xf4] sm:$0x8] }
 0x4aa   : > { %v9096_v62 = vrot.slane %v8941_v32, 7  ;;  %v7195_v47 = vor.u32 %v7194_v4, %v7190_v60  ;;  %v8102_v53 = vshrl.u32 %v7810_v23, 16  ;;  %v8105_v54 = vshll.u32 %v7810_v23, 16 }
 0x4ab   : > { %v9094_v30 = vsel %vm11875_vm14, %v10117_v50, %v9093_v59  ;;  %v9095_v0 = vrot.slane %v9093_v59, 4  ;;  %v7186_v41 = vrot.slane %v7185_v14, 4  ;;  %v7615_v15 = vsel %vm11300_vm5, %v7613_v20, %v7614_v11 }
 0x4ac   : > { %v7196_v6 = vrot.slane %v7195_v47, 4  ;;  %v7616_v63 = vrot.slane %v7614_v11, 4  ;;  %v7750_v43 = vmax.bf16 %v7612_v37, %v7490_v33  ;;  %v8104_v34 = vrot.slane %v8102_v53, 5  ;;  %v6854_v33 = vld [vmem:[#allocation2 + $0xf8] sm:$0xf] }
 0x4ad   : > { %v9097_v39 = vsel %vm11875_vm14, %v9095_v0, %v9096_v62  ;;  %v7191_v18 = vsel %vm11245_vm2, %v7186_v41, %v7190_v60  ;;  %v8107_v5 = vrot.slane %v8105_v54, 6  ;;  %v8111_v8 = vshrl.u32 %v7811_v36, 16 }
 0x4ae   : > { %v10149_v57 = vcombine.low %v9094_v30, %v9097_v39  ;;  %v7491_v51 = vmax.bf16 %v7191_v18, %v6851_v13  ;;  %v7492_v44 = vmax.bf16 %v7196_v6, %v6852_v25  ;;  %v8114_v22 = vshll.u32 %v7811_v36, 16  ;;  %v6889_v30 = vld [vmem:[#allocation2 + $0xfc] sm:$0xf] }
 0x4af   : > { %v8108_v9 = vor.u32 %v8107_v5, %v8104_v34  ;;  %v8113_v38 = vrot.slane %v8111_v8, 5  ;;  %v8121_v46 = vshll.u32 %v7812_v48, 16  ;;  %v8594_v12 = vrot.slane %v8448_v2, 6 }
 0x4b0   : > { %10592 = vmatprep.mubr.bf16.mxu1 %v10149_v57  ;;  %v7751_v55 = vmax.bf16 %v7615_v15, %v7491_v51  ;;  %v7752_v31 = vmax.bf16 %v7616_v63, %v7492_v44  ;;  %v8116_v26 = vrot.slane %v8114_v22, 6  ;;  %v8596_v52 = vrot.slane %v7811_v36, 6  ;;  %v7813_v44 = vld [vmem:[#allocation2 + $0xf8] sm:$0xf] }
 0x4b1   : > { %v8109_v37 = vrot.slane %v8108_v9, 4  ;;  %v8123_v28 = vrot.slane %v8121_v46, 6  ;;  %v8410_v50 = vmax.bf16 %v8108_v9, %v7750_v43  ;;  %v8595_v21 = vrot.slane %v8594_v12, 4 }
 0x4b2   : > { %v8117_v60 = vor.u32 %v8116_v26, %v8113_v38  ;;  %v8598_v23 = vrot.slane %v8596_v52, 4  ;;  %v8599_v32 = vrot.slane %v7812_v48, 6  ;;  %v8798_v13 = vmax.bf16 %v14267_v24, %v14215_v35 }
 0x4b3   : > { %v8597_v4 = vsel %vm11417_vm11, %v8595_v21, %v8596_v52  ;;  %v14371_v20 = vmax.bf16 %v8594_v12, %v8410_v50  ;;  %v8799_v59 = vmax.bf16 %v14272_v42, %v14231_v19  ;;  %v8800_v14 = vmax.bf16 %v14274_v1, %v14236_v7 }
 0x4b4   : > { %v8118_v11 = vsel %vm11329_vm8, %v8109_v37, %v8117_v60  ;;  %v8119_v62 = vrot.slane %v8117_v60, 4  ;;  %v8600_v35 = vsel %vm11417_vm11, %v8598_v23, %v8599_v32  ;;  %v8846_v47 = vmax.bf16 %v8798_v13, %v14306_v49  ;;  %v7814_v32 = vld [vmem:[#allocation2 + $0xfc] sm:$0xf] }
 0x4b5   : > { %v8411_v36 = vmax.bf16 %v8118_v11, %v7751_v55  ;;  %v8847_v53 = vmax.bf16 %v8799_v59, %v14312_v56  ;;  %v8848_v54 = vmax.bf16 %v8800_v14, %v14314_v61  ;;  %v7198_v19 = vshrl.u32 %v6853_v29, 16 }
 0x4b6   : > { %v8124_v7 = vsel %vm11329_vm8, %v8119_v62, %v8123_v28  ;;  %v8894_v0 = vmax.bf16 %v8846_v47, %v14342_v17  ;;  %v7203_v41 = vshll.u32 %v6854_v33, 16  ;;  %v7207_v15 = vshrl.u32 %v6854_v33, 16  ;;  %v6855_v62 = vld [vmem:[#allocation2 + $0xfc] sm:$0x7] }
 0x4b7   : > { %v8412_v6 = vmax.bf16 %v8124_v7, %v7752_v31  ;;  %v14387_v63 = vmax.bf16 %v8597_v4, %v8411_v36  ;;  %v8895_v43 = vmax.bf16 %v8847_v53, %v14350_v16  ;;  %v8896_v34 = vmax.bf16 %v8848_v54, %v14353_v58  ;;  %v7815_v54 = vld [vmem:[#allocation2 + $0x100] sm:$0x1] }
 0x4b8   : > { %v8942_v2 = vmax.bf16 %v8894_v0, %v14371_v20  ;;  %v7205_v39 = vrot.slane %v7203_v41, 5  ;;  %v7209_v25 = vrot.slane %v7207_v15, 4  ;;  %v7213_v18 = vshll.u32 %v6889_v30, 16 }
 0x4b9   : > { %v14392_v5 = vmax.bf16 %v8600_v35, %v8412_v6  ;;  %v8943_v8 = vmax.bf16 %v8895_v43, %v14387_v63  ;;  %v7217_v57 = vshrl.u32 %v6889_v30, 16  ;;  %v7617_v51 = vrot.slane %v6854_v33, 5 }
 0x4ba   : > { %v10118_v48 = vrot.slane %v8942_v2, 11  ;;  %v7206_v22 = vsel %vm11245_vm2, %v7198_v19, %v7205_v39  ;;  %v7210_v9 = vor.u32 %v7209_v25, %v7205_v39  ;;  %v7215_v38 = vrot.slane %v7213_v18, 5  ;;  %v6856_v25 = vld [vmem:[#allocation2 + $0x108] sm:$0x8] }
 0x4bb   : > { %v8944_v46 = vmax.bf16 %v8896_v34, %v14392_v5  ;;  %v9100_v12 = vrot.slane %v8943_v8, 7  ;;  %v7219_v55 = vrot.slane %v7217_v57, 4  ;;  %v7493_v31 = vmax.bf16 %v7206_v22, %v6853_v29  ;;  %v8449_v29 = vld [vmem:[#allocation2 + $0xf8] sm:$0xe] }
 0x4bc   : > { %v7211_v26 = vrot.slane %v7210_v9, 4  ;;  %v7618_v52 = vrot.slane %v7617_v51, 4  ;;  %v7619_v37 = vrot.slane %v6889_v30, 5  ;;  %v8126_v28 = vshrl.u32 %v7813_v44, 16  ;;  %v6857_v9 = vld [vmem:[#allocation2 + $0x10c] sm:$0xf] }
 0x4bd   : > { %v9101_v50 = vsel %vm11875_vm14, %v10118_v48, %v9100_v12  ;;  %v9102_v21 = vrot.slane %v9100_v12, 4  ;;  %v9103_v60 = vrot.slane %v8944_v46, 7  ;;  %v7220_v23 = vor.u32 %v7219_v55, %v7215_v38 }
 0x4be   : > { %v7216_v13 = vsel %vm11245_vm2, %v7211_v26, %v7215_v38  ;;  %v7620_v4 = vsel %vm11300_vm5, %v7618_v52, %v7619_v37  ;;  %v7621_v59 = vrot.slane %v7619_v37, 4  ;;  %v7753_v14 = vmax.bf16 %v7617_v51, %v7493_v31 }
 0x4bf   : > { %v9104_v11 = vsel %vm11875_vm14, %v9102_v21, %v9103_v60  ;;  %v7221_v35 = vrot.slane %v7220_v23, 4  ;;  %v7494_v47 = vmax.bf16 %v7216_v13, %v6854_v33  ;;  %v8128_v36 = vrot.slane %v8126_v28, 5  ;;  %v6890_v21 = vld [vmem:[#allocation2 + $0x110] sm:$0xf] }
 0x4c0   : > { %v10150_v53 = vcombine.low %v9101_v50, %v9104_v11  ;;  %v8129_v30 = vshll.u32 %v7813_v44, 16  ;;  %v8135_v19 = vshrl.u32 %v7814_v32, 16  ;;  %v8138_v7 = vshll.u32 %v7814_v32, 16 }
 0x4c1   : > { %v7495_v0 = vmax.bf16 %v7221_v35, %v6855_v62  ;;  %v7754_v41 = vmax.bf16 %v7620_v4, %v7494_v47  ;;  %v8145_v15 = vshll.u32 %v7815_v54, 16  ;;  %v8601_v6 = vrot.slane %v8449_v29, 6 }
 0x4c2   : > { %10593 = vmatmul.mubr.bf16.gmra.mrb[28].mxu1 %v10150_v53  ;;  %v8131_v43 = vrot.slane %v8129_v30, 6  ;;  %v8137_v34 = vrot.slane %v8135_v19, 5  ;;  %v8140_v2 = vrot.slane %v8138_v7, 6  ;;  %v8603_v39 = vrot.slane %v7814_v32, 6 }
 0x4c3   : > { %v7755_v18 = vmax.bf16 %v7621_v59, %v7495_v0  ;;  %v8147_v8 = vrot.slane %v8145_v15, 6  ;;  %v8602_v57 = vrot.slane %v8601_v6, 4  ;;  %v8606_v33 = vrot.slane %v7815_v54, 6 }
 0x4c4   : > { %v8132_v51 = vor.u32 %v8131_v43, %v8128_v36  ;;  %v8141_v48 = vor.u32 %v8140_v2, %v8137_v34  ;;  %v8605_v22 = vrot.slane %v8603_v39, 4  ;;  %v8801_v44 = vmax.bf16 %v14306_v49, %v14267_v24 }
 0x4c5   : > { %v8604_v38 = vsel %vm11417_vm11, %v8602_v57, %v8603_v39  ;;  %v8802_v46 = vmax.bf16 %v14312_v56, %v14272_v42  ;;  %v8803_v12 = vmax.bf16 %v14314_v61, %v14274_v1  ;;  %v7223_v55 = vshrl.u32 %v6856_v25, 16 }
 0x4c6   : > { %v8133_v31 = vrot.slane %v8132_v51, 4  ;;  %v8143_v26 = vrot.slane %v8141_v48, 4  ;;  %v8413_v52 = vmax.bf16 %v8132_v51, %v7753_v14  ;;  %v8607_v37 = vsel %vm11417_vm11, %v8605_v22, %v8606_v33 }
 0x4c7   : > { %v8849_v28 = vmax.bf16 %v8801_v44, %v14342_v17  ;;  %v8850_v24 = vmax.bf16 %v8802_v46, %v14350_v16  ;;  %v8851_v50 = vmax.bf16 %v8803_v12, %v14353_v58  ;;  %v7228_v60 = vshll.u32 %v6857_v9, 16 }
 0x4c8   : > { %v8142_v42 = vsel %vm11329_vm8, %v8133_v31, %v8141_v48  ;;  %v8148_v1 = vsel %vm11329_vm8, %v8143_v26, %v8147_v8  ;;  %v14423_v23 = vmax.bf16 %v8601_v6, %v8413_v52  ;;  %v7232_v32 = vshrl.u32 %v6857_v9, 16  ;;  %v7817_v48 = vld [vmem:[#allocation2 + $0x110] sm:$0xf] }
 0x4c9   : > { %v8414_v13 = vmax.bf16 %v8142_v42, %v7754_v41  ;;  %v8415_v4 = vmax.bf16 %v8148_v1, %v7755_v18  ;;  %v8897_v59 = vmax.bf16 %v8849_v28, %v14371_v20  ;;  %v8898_v14 = vmax.bf16 %v8850_v24, %v14387_v63  ;;  %v7816_v41 = vld [vmem:[#allocation2 + $0x10c] sm:$0xf] }
 0x4ca   : > { %v8899_v29 = vmax.bf16 %v8851_v50, %v14392_v5  ;;  %v7230_v11 = vrot.slane %v7228_v60, 5  ;;  %v7234_v62 = vrot.slane %v7232_v32, 4  ;;  %v7238_v35 = vshll.u32 %v6890_v21, 16  ;;  %v8450_v60 = vld [vmem:[#allocation2 + $0x10c] sm:$0xe] }
 0x4cb   : > { %v14428_v47 = vmax.bf16 %v8604_v38, %v8414_v13  ;;  %v14430_v36 = vmax.bf16 %v8607_v37, %v8415_v4  ;;  %v8945_v53 = vmax.bf16 %v8897_v59, %v14423_v23  ;;  %v7242_v54 = vshrl.u32 %v6890_v21, 16  ;;  %v7818_v37 = vld [vmem:[#allocation2 + $0x114] sm:$0x1] }
 0x4cc   : > { %v7231_v30 = vsel %vm11245_vm2, %v7223_v55, %v7230_v11  ;;  %v7235_v19 = vor.u32 %v7234_v62, %v7230_v11  ;;  %v7240_v7 = vrot.slane %v7238_v35, 5  ;;  %v7622_v0 = vrot.slane %v6857_v9, 5 }
 0x4cd   : > { %v8946_v15 = vmax.bf16 %v8898_v14, %v14428_v47  ;;  %v8947_v6 = vmax.bf16 %v8899_v29, %v14430_v36  ;;  %v10119_v43 = vrot.slane %v8945_v53, 11  ;;  %v7244_v34 = vrot.slane %v7242_v54, 4 }
 0x4ce   : > { %v7236_v2 = vrot.slane %v7235_v19, 4  ;;  %v7496_v39 = vmax.bf16 %v7231_v30, %v6856_v25  ;;  %v7623_v18 = vrot.slane %v7622_v0, 4  ;;  %v7624_v8 = vrot.slane %v6890_v21, 5  ;;  %v6858_v25 = vld [vmem:[#allocation2 + $0x110] sm:$0x7] }
 0x4cf   : > { %v9107_v57 = vrot.slane %v8946_v15, 7  ;;  %v9110_v33 = vrot.slane %v8947_v6, 7  ;;  %v7245_v51 = vor.u32 %v7244_v34, %v7240_v7  ;;  %v8150_v22 = vshrl.u32 %v7816_v41, 16 }
 0x4d0   : > { %v7241_v44 = vsel %vm11245_vm2, %v7236_v2, %v7240_v7  ;;  %v7625_v38 = vsel %vm11300_vm5, %v7623_v18, %v7624_v8  ;;  %v7626_v46 = vrot.slane %v7624_v8, 4  ;;  %v7756_v12 = vmax.bf16 %v7622_v0, %v7496_v39  ;;  %v14447_v7 = vpop.f32.mrb[48].mxu0 }
 0x4d1   : > { %v9108_v55 = vsel %vm11875_vm14, %v10119_v43, %v9107_v57  ;;  %v9109_v31 = vrot.slane %v9107_v57, 4  ;;  %v7246_v26 = vrot.slane %v7245_v51, 4  ;;  %v7497_v52 = vmax.bf16 %v7241_v44, %v6857_v9  ;;  %15013 = vst [vmem:[#allocation6_spill] sm:$0xff] %v14447_v7  ;;  %v14453_v43 = vpop.f32.mrb[49].mxu0  ;;  %v14464_v51 = vld [vmem:[#allocation2 + $0x120] sm:$0xf] }
 0x4d2   : > { %v8152_v28 = vrot.slane %v8150_v22, 5  ;;  %v8153_v24 = vshll.u32 %v7816_v41, 16  ;;  %v8159_v50 = vshrl.u32 %v7817_v48, 16  ;;  %v8162_v21 = vshll.u32 %v7817_v48, 16  ;;  %15014 = vst [vmem:[#allocation9_spill] sm:$0xff] %v14453_v43  ;;  %v14456_v8 = vpop.f32.mrb[50].mxu0 }
 0x4d3   : > { %v9111_v42 = vsel %vm11875_vm14, %v9109_v31, %v9110_v33  ;;  %v7498_v1 = vmax.bf16 %v7246_v26, %v6858_v25  ;;  %v7757_v32 = vmax.bf16 %v7625_v38, %v7497_v52  ;;  %v8169_v13 = vshll.u32 %v7818_v37, 16  ;;  %15015 = vst [vmem:[#allocation11_spill] sm:$0xff] %v14456_v8 }
 0x4d4   : > { %v10151_v4 = vcombine.low %v9108_v55, %v9111_v42  ;;  %v8155_v59 = vrot.slane %v8153_v24, 6  ;;  %v8161_v14 = vrot.slane %v8159_v50, 5  ;;  %v8164_v29 = vrot.slane %v8162_v21, 6 }
 0x4d5   : > { %v7758_v11 = vmax.bf16 %v7626_v46, %v7498_v1  ;;  %v8171_v62 = vrot.slane %v8169_v13, 6  ;;  %v8608_v35 = vrot.slane %v8450_v60, 6  ;;  %v8610_v9 = vrot.slane %v7817_v48, 6  ;;  %v14466_v48 = vpop.f32.mrb[51].mxu0 }
 0x4d6   : > { %10596 = vmatprep.mubr.bf16.mxu1 %v10151_v4  ;;  %v8156_v53 = vor.u32 %v8155_v59, %v8152_v28  ;;  %v8165_v54 = vor.u32 %v8164_v29, %v8161_v14  ;;  %v8613_v30 = vrot.slane %v7818_v37, 6  ;;  %v8804_v19 = vmax.bf16 %v14342_v17, %v14306_v49  ;;  %15016 = vst [vmem:[#allocation10_spill] sm:$0xff] %v14466_v48  ;;  %v14475_v55 = vpop.f32.mrb[52].mxu0  ;;  %v7824_v48 = vld [vmem:[#allocation2 + $0x13c] sm:$0x1] }
 0x4d7   : > { %v8609_v0 = vrot.slane %v8608_v35, 4  ;;  %v8612_v41 = vrot.slane %v8610_v9, 4  ;;  %v8805_v15 = vmax.bf16 %v14350_v16, %v14312_v56  ;;  %v8806_v6 = vmax.bf16 %v14353_v58, %v14314_v61  ;;  %v6859_v61 = vld [vmem:[#allocation2 + $0x11c] sm:$0x8]  ;;  %15017 = vst [vmem:[#allocation4_spill] sm:$0xff] %v14475_v55  ;;  %v14479_v37 = vpop.f32.mrb[53].mxu0 }
 0x4d8   : > { %v8157_v34 = vrot.slane %v8156_v53, 4  ;;  %v8167_v2 = vrot.slane %v8165_v54, 4  ;;  %v8416_v39 = vmax.bf16 %v8156_v53, %v7756_v12  ;;  %v8852_v18 = vmax.bf16 %v8804_v19, %v14371_v20  ;;  %v6891_v12 = vld [vmem:[#allocation2 + $0x124] sm:$0xf]  ;;  %15018 = vst [vmem:[#allocation8_spill] sm:$0xff] %v14479_v37  ;;  %v14484_v60 = vpop.f32.mrb[54].mxu0 }
 0x4d9   : > { %v8611_v49 = vsel %vm11417_vm11, %v8609_v0, %v8610_v9  ;;  %v8614_v57 = vsel %vm11417_vm11, %v8612_v41, %v8613_v30  ;;  %v8853_v56 = vmax.bf16 %v8805_v15, %v14387_v63  ;;  %v8854_v33 = vmax.bf16 %v8806_v6, %v14392_v5  ;;  %15019 = vst [vmem:[#allocation5_spill] sm:$0xff] %v14484_v60  ;;  %v14490_v4 = vpop.f32.mrb[55].mxu0  ;;  %v7819_v30 = vld [vmem:[#allocation2 + $0x120] sm:$0xf] }
 0x4da   : > { %v8166_v22 = vsel %vm11329_vm8, %v8157_v34, %v8165_v54  ;;  %v8172_v44 = vsel %vm11329_vm8, %v8167_v2, %v8171_v62  ;;  %v14472_v38 = vmax.bf16 %v8608_v35, %v8416_v39  ;;  %v8900_v46 = vmax.bf16 %v8852_v18, %v14423_v23  ;;  %15020 = vst [vmem:[#allocation7_spill] sm:$0xff] %v14490_v4  ;;  %v14493_v62 = vpop.f32.mrb[56].mxu0 }
 0x4db   : > { %v8417_v31 = vmax.bf16 %v8166_v22, %v7757_v32  ;;  %v8418_v25 = vmax.bf16 %v8172_v44, %v7758_v11  ;;  %v8901_v26 = vmax.bf16 %v8853_v56, %v14428_v47  ;;  %v8902_v52 = vmax.bf16 %v8854_v33, %v14430_v36  ;;  %15021 = vst [vmem:[#allocation12_spill] sm:$0xff] %v14493_v62  ;;  %v14497_v19 = vpop.f32.mrb[57].mxu0 }
 0x4dc   : > { %v8948_v28 = vmax.bf16 %v8900_v46, %v14472_v38  ;;  %v7248_v24 = vshrl.u32 %v6859_v61, 16  ;;  %v7253_v50 = vshll.u32 %v14464_v51, 16  ;;  %v7257_v21 = vshrl.u32 %v14464_v51, 16  ;;  %15022 = vst [vmem:[#allocation13_spill] sm:$0xff] %v14497_v19  ;;  %v14501_v34 = vpop.f32.mrb[58].mxu0 }
 0x4dd   : > { %v14486_v42 = vmax.bf16 %v8611_v49, %v8417_v31  ;;  %v14488_v1 = vmax.bf16 %v8614_v57, %v8418_v25  ;;  %v7263_v32 = vshll.u32 %v6891_v12, 16  ;;  %v7267_v13 = vshrl.u32 %v6891_v12, 16  ;;  %15023 = vst [vmem:[#allocation14_spill] sm:$0xff] %v14501_v34  ;;  %v7820_v57 = vld [vmem:[#allocation2 + $0x124] sm:$0xf]  ;;  %v14503_v56 = vpop.f32.mrb[59].mxu0 }
 0x4de   : > { %v10120_v59 = vrot.slane %v8948_v28, 11  ;;  %v7255_v14 = vrot.slane %v7253_v50, 5  ;;  %v7259_v29 = vrot.slane %v7257_v21, 4  ;;  %v7627_v11 = vrot.slane %v14464_v51, 5  ;;  %15024 = vst [vmem:[#allocation15_spill] sm:$0xff] %v14503_v56  ;;  %v14509_v31 = vpop.f32.mrb[60].mxu0 }
 0x4df   : > { %v8949_v35 = vmax.bf16 %v8901_v26, %v14486_v42  ;;  %v8950_v9 = vmax.bf16 %v8902_v52, %v14488_v1  ;;  %v7265_v53 = vrot.slane %v7263_v32, 5  ;;  %v7269_v54 = vrot.slane %v7267_v13, 4  ;;  %15025 = vst [vmem:[#allocation16_spill] sm:$0xff] %v14509_v31  ;;  %v6861_v26 = vld [vmem:[#allocation2 + $0x124] sm:$0x7] }
 0x4e0   : > { %v7256_v0 = vsel %vm11245_vm2, %v7248_v24, %v7255_v14  ;;  %v7260_v41 = vor.u32 %v7259_v29, %v7255_v14  ;;  %v7628_v15 = vrot.slane %v7627_v11, 4  ;;  %v7629_v6 = vrot.slane %v6891_v12, 5  ;;  %v8451_v13 = vld [vmem:[#allocation2 + $0x120] sm:$0xe] }
 0x4e1   : > { %v9114_v2 = vrot.slane %v8949_v35, 7  ;;  %v9117_v39 = vrot.slane %v8950_v9, 7  ;;  %v7270_v18 = vor.u32 %v7269_v54, %v7265_v53  ;;  %v7499_v49 = vmax.bf16 %v7256_v0, %v6859_v61  ;;  %v14513_v61 = vpop.f32.mrb[61].mxu0  ;;  %v7821_v9 = vld [vmem:[#allocation2 + $0x128] sm:$0x1] }
 0x4e2   : > { %v7261_v33 = vrot.slane %v7260_v41, 4  ;;  %v14507_v22 = vsel %vm11300_vm5, %v7628_v15, %v7629_v6  ;;  %v7631_v44 = vrot.slane %v7629_v6, 4  ;;  %v8174_v46 = vshrl.u32 %v7819_v30, 16  ;;  %15026 = vst [vmem:[#allocation17_spill] sm:$0xff] %v14513_v61  ;;  %v14517_v14 = vpop.f32.mrb[62].mxu0 }
 0x4e3   : > { %v9115_v12 = vsel %vm11875_vm14, %v10120_v59, %v9114_v2  ;;  %v9116_v25 = vrot.slane %v9114_v2, 4  ;;  %v7271_v52 = vrot.slane %v7270_v18, 4  ;;  %v7759_v28 = vmax.bf16 %v7627_v11, %v7499_v49  ;;  %15027 = vst [vmem:[#allocation18_spill] sm:$0xff] %v14517_v14  ;;  %v14522_v11 = vpop.f32.mrb[63].mxu0 }
 0x4e4   : > { %v7266_v24 = vsel %vm11245_vm2, %v7261_v33, %v7265_v53  ;;  %v8176_v50 = vrot.slane %v8174_v46, 5  ;;  %v8177_v21 = vshll.u32 %v7819_v30, 16  ;;  %v8183_v32 = vshrl.u32 %v7820_v57, 16  ;;  %15028 = vst [vmem:[#allocation19_spill] sm:$0xff] %v14522_v11  ;;  %v14524_v6 = vpop.f32.mrb[32].mxu0 }
 0x4e5   : > { %v9118_v29 = vsel %vm11875_vm14, %v9116_v25, %v9117_v39  ;;  %v7500_v59 = vmax.bf16 %v7266_v24, %v14464_v51  ;;  %v7501_v35 = vmax.bf16 %v7271_v52, %v6861_v26  ;;  %v8186_v54 = vshll.u32 %v7820_v57, 16  ;;  %v14527_v33 = vpop.f32.mrb[33].mxu0  ;;  %v7822_v11 = vld [vmem:[#allocation2 + $0x134] sm:$0xf] }
 0x4e6   : > { %v10152_v0 = vcombine.low %v9115_v12, %v9118_v29  ;;  %v8179_v41 = vrot.slane %v8177_v21, 6  ;;  %v8185_v15 = vrot.slane %v8183_v32, 5  ;;  %v8193_v53 = vshll.u32 %v7821_v9, 16  ;;  %v14529_v26 = vpop.f32.mrb[34].mxu0 }
 0x4e7   : > { %v7760_v30 = vmax.bf16 %v14507_v22, %v7500_v59  ;;  %v7761_v2 = vmax.bf16 %v7631_v44, %v7501_v35  ;;  %v8188_v18 = vrot.slane %v8186_v54, 6  ;;  %v8615_v49 = vrot.slane %v8451_v13, 6  ;;  %v14535_v44 = vpop.f32.mrb[35].mxu0 }
 0x4e8   : > { %10597 = vmatmul.mubr.bf16.gmra.mrb[0].mxu1 %v10152_v0  ;;  %v8180_v51 = vor.u32 %v8179_v41, %v8176_v50  ;;  %v8195_v39 = vrot.slane %v8193_v53, 6  ;;  %v8617_v46 = vrot.slane %v7820_v57, 6  ;;  %v8620_v25 = vrot.slane %v7821_v9, 6  ;;  %v14539_v57 = vpop.f32.mrb[36].mxu0  ;;  %v6862_v9 = vld [vmem:[#allocation2 + $0x130] sm:$0x8] }
 0x4e9   : > { %v8189_v12 = vor.u32 %v8188_v18, %v8185_v15  ;;  %v8616_v52 = vrot.slane %v8615_v49, 4  ;;  %v8807_v24 = vmax.bf16 %v14371_v20, %v14342_v17  ;;  %v8808_v22 = vmax.bf16 %v14387_v63, %v14350_v16  ;;  %v14545_v16 = vld [vmem:[#allocation2 + $0x134] sm:$0xf]  ;;  %v14547_v54 = vpop.f32.mrb[37].mxu0  ;;  %v6892_v15 = vld [vmem:[#allocation2 + $0x138] sm:$0xf] }
 0x4ea   : > { %v8181_v21 = vrot.slane %v8180_v51, 4  ;;  %v8419_v32 = vmax.bf16 %v8180_v51, %v7759_v28  ;;  %v8619_v13 = vrot.slane %v8617_v46, 4  ;;  %v8809_v50 = vmax.bf16 %v14392_v5, %v14353_v58  ;;  %v14556_v53 = vpop.f32.mrb[38].mxu0 }
 0x4eb   : > { %v8191_v29 = vrot.slane %v8189_v12, 4  ;;  %v8618_v59 = vsel %vm11417_vm11, %v8616_v52, %v8617_v46  ;;  %v8855_v35 = vmax.bf16 %v8807_v24, %v14423_v23  ;;  %v8856_v17 = vmax.bf16 %v8808_v22, %v14428_v47  ;;  %v14562_v24 = vpop.f32.mrb[39].mxu0 }
 0x4ec   : > { %v8190_v28 = vsel %vm11329_vm8, %v8181_v21, %v8189_v12  ;;  %v8621_v58 = vsel %vm11417_vm11, %v8619_v13, %v8620_v25  ;;  %v14553_v0 = vmax.bf16 %v8615_v49, %v8419_v32  ;;  %v8857_v41 = vmax.bf16 %v8809_v50, %v14430_v36  ;;  %v14566_v21 = vpop.f32.mrb[40].mxu0 }
 0x4ed   : > { %v8196_v18 = vsel %vm11329_vm8, %v8191_v29, %v8195_v39  ;;  %v8420_v51 = vmax.bf16 %v8190_v28, %v7760_v30  ;;  %v8903_v46 = vmax.bf16 %v8855_v35, %v14472_v38  ;;  %v8904_v52 = vmax.bf16 %v8856_v17, %v14486_v42  ;;  %v14572_v50 = vpop.f32.mrb[41].mxu0 }
 0x4ee   : > { %v8421_v12 = vmax.bf16 %v8196_v18, %v7761_v2  ;;  %v8905_v25 = vmax.bf16 %v8857_v41, %v14488_v1  ;;  %v7273_v49 = vshrl.u32 %v6862_v9, 16  ;;  %v7278_v22 = vshll.u32 %v14545_v16, 16  ;;  %15029 = vst [vmem:[#allocation20_spill] sm:$0xff] %v14572_v50  ;;  %v14577_v28 = vpop.f32.mrb[42].mxu0 }
 0x4ef   : > { %v14568_v32 = vmax.bf16 %v8618_v59, %v8420_v51  ;;  %v8951_v13 = vmax.bf16 %v8903_v46, %v14553_v0  ;;  %v7282_v30 = vshrl.u32 %v14545_v16, 16  ;;  %v7288_v39 = vshll.u32 %v6892_v15, 16  ;;  %15030 = vst [vmem:[#allocation21_spill] sm:$0xff] %v14577_v28  ;;  %v14580_v46 = vpop.f32.mrb[43].mxu0 }
 0x4f0   : > { %v14574_v29 = vmax.bf16 %v8621_v58, %v8421_v12  ;;  %v7280_v35 = vrot.slane %v7278_v22, 5  ;;  %v7292_v2 = vshrl.u32 %v6892_v15, 16  ;;  %v7632_v17 = vrot.slane %v14545_v16, 5  ;;  %15031 = vst [vmem:[#allocation22_spill] sm:$0xff] %v14580_v46  ;;  %v14585_v61 = vpop.f32.mrb[44].mxu0 }
 0x4f1   : > { %v8952_v41 = vmax.bf16 %v8904_v52, %v14568_v32  ;;  %v10121_v18 = vrot.slane %v8951_v13, 11  ;;  %v7284_v59 = vrot.slane %v7282_v30, 4  ;;  %v7290_v51 = vrot.slane %v7288_v39, 5  ;;  %15032 = vst [vmem:[#allocation23_spill] sm:$0xff] %v14585_v61  ;;  %v14587_v52 = vpop.f32.mrb[45].mxu0 }
 0x4f2   : > { %v8953_v14 = vmax.bf16 %v8905_v25, %v14574_v29  ;;  %v7281_v58 = vsel %vm11245_vm2, %v7273_v49, %v7280_v35  ;;  %v7294_v12 = vrot.slane %v7292_v2, 4  ;;  %v7633_v22 = vrot.slane %v7632_v17, 4  ;;  %15033 = vst [vmem:[#allocation24_spill] sm:$0xff] %v14587_v52  ;;  %v7823_v39 = vld [vmem:[#allocation2 + $0x138] sm:$0xf]  ;;  %v14589_v60 = vpop.f32.mrb[46].mxu0 }
 0x4f3   : > { %v9121_v31 = vrot.slane %v8952_v41, 7  ;;  %v7285_v56 = vor.u32 %v7284_v59, %v7280_v35  ;;  %v7502_v34 = vmax.bf16 %v7281_v58, %v6862_v9  ;;  %v7634_v19 = vrot.slane %v6892_v15, 5  ;;  %15034 = vst [vmem:[#allocation25_spill] sm:$0xff] %v14589_v60  ;;  %v14595_v35 = vpop.f32.mrb[47].mxu0  ;;  %v8452_v58 = vld [vmem:[#allocation2 + $0x134] sm:$0xe] }
 0x4f4   : > { %v9124_v13 = vrot.slane %v8953_v14, 7  ;;  %v7295_v30 = vor.u32 %v7294_v12, %v7290_v51  ;;  %v8198_v62 = vshrl.u32 %v7822_v11, 16  ;;  %v8201_v4 = vshll.u32 %v7822_v11, 16  ;;  %15035 = vst [vmem:[#allocation26_spill] sm:$0xff] %v14595_v35  ;;  %v6864_v12 = vld [vmem:[#allocation2 + $0x138] sm:$0x7] }
 0x4f5   : > { %v9122_v25 = vsel %vm11875_vm14, %v10121_v18, %v9121_v31  ;;  %v9123_v49 = vrot.slane %v9121_v31, 4  ;;  %v7286_v2 = vrot.slane %v7285_v56, 4  ;;  %v7635_v41 = vsel %vm11300_vm5, %v7633_v22, %v7634_v19 }
 0x4f6   : > { %v7296_v9 = vrot.slane %v7295_v30, 4  ;;  %v7636_v15 = vrot.slane %v7634_v19, 4  ;;  %v7762_v59 = vmax.bf16 %v7632_v17, %v7502_v34  ;;  %v8200_v14 = vrot.slane %v8198_v62, 5 }
 0x4f7   : > { %v9125_v11 = vsel %vm11875_vm14, %v9123_v49, %v9124_v13  ;;  %v7291_v37 = vsel %vm11245_vm2, %v7286_v2, %v7290_v51  ;;  %v8203_v18 = vrot.slane %v8201_v4, 6  ;;  %v8207_v31 = vshrl.u32 %v7823_v39, 16 }
 0x4f8   : > { %v10153_v56 = vcombine.low %v9122_v25, %v9125_v11  ;;  %v7503_v55 = vmax.bf16 %v7291_v37, %v14545_v16  ;;  %v7504_v22 = vmax.bf16 %v7296_v9, %v6864_v12  ;;  %v8210_v8 = vshll.u32 %v7823_v39, 16  ;;  %v6865_v16 = vld [vmem:[#allocation2 + $0x144] sm:$0x8] }
 0x4f9   : > { %v8204_v30 = vor.u32 %v8203_v18, %v8200_v14  ;;  %v8209_v19 = vrot.slane %v8207_v31, 5  ;;  %v8217_v34 = vshll.u32 %v7824_v48, 16  ;;  %v8622_v62 = vrot.slane %v8452_v58, 6  ;;  %v6893_v18 = vld [vmem:[#allocation2 + $0x14c] sm:$0xf] }
 0x4fa   : > { %10600 = vmatprep.mubr.bf16.mxu1 %v10153_v56  ;;  %v7763_v17 = vmax.bf16 %v7635_v41, %v7503_v55  ;;  %v7764_v43 = vmax.bf16 %v7636_v15, %v7504_v22  ;;  %v8212_v13 = vrot.slane %v8210_v8, 6  ;;  %v8624_v49 = vrot.slane %v7823_v39, 6  ;;  %v6866_v39 = vld [vmem:[#allocation2 + $0x148] sm:$0xf] }
 0x4fb   : > { %v8205_v7 = vrot.slane %v8204_v30, 4  ;;  %v8219_v35 = vrot.slane %v8217_v34, 6  ;;  %v8422_v51 = vmax.bf16 %v8204_v30, %v7762_v59  ;;  %v8623_v4 = vrot.slane %v8622_v62, 4 }
 0x4fc   : > { %v8213_v2 = vor.u32 %v8212_v13, %v8209_v19  ;;  %v8626_v25 = vrot.slane %v8624_v49, 4  ;;  %v8627_v11 = vrot.slane %v7824_v48, 6  ;;  %v8810_v37 = vmax.bf16 %v14423_v23, %v14371_v20 }
 0x4fd   : > { %v8625_v9 = vsel %vm11417_vm11, %v8623_v4, %v8624_v49  ;;  %v14606_v14 = vmax.bf16 %v8622_v62, %v8422_v51  ;;  %v8811_v8 = vmax.bf16 %v14428_v47, %v14387_v63  ;;  %v8812_v55 = vmax.bf16 %v14430_v36, %v14392_v5 }
 0x4fe   : > { %v8214_v41 = vsel %vm11329_vm8, %v8205_v7, %v8213_v2  ;;  %v8215_v48 = vrot.slane %v8213_v2, 4  ;;  %v8628_v20 = vsel %vm11417_vm11, %v8626_v25, %v8627_v11  ;;  %v8858_v15 = vmax.bf16 %v8810_v37, %v14472_v38  ;;  %v7825_v25 = vld [vmem:[#allocation2 + $0x148] sm:$0xf] }
 0x4ff   : > { %v8423_v59 = vmax.bf16 %v8214_v41, %v7763_v17  ;;  %v8859_v58 = vmax.bf16 %v8811_v8, %v14486_v42  ;;  %v8860_v12 = vmax.bf16 %v8812_v55, %v14488_v1  ;;  %v7298_v63 = vshrl.u32 %v6865_v16, 16 }
 0x500   : > { %v8220_v5 = vsel %vm11329_vm8, %v8215_v48, %v8219_v35  ;;  %v8906_v31 = vmax.bf16 %v8858_v15, %v14553_v0  ;;  %v7303_v56 = vshll.u32 %v6866_v39, 16  ;;  %v7307_v7 = vshrl.u32 %v6866_v39, 16 }
 0x501   : > { %v8424_v22 = vmax.bf16 %v8220_v5, %v7764_v43  ;;  %v14622_v30 = vmax.bf16 %v8625_v9, %v8423_v59  ;;  %v8907_v19 = vmax.bf16 %v8859_v58, %v14568_v32  ;;  %v8908_v34 = vmax.bf16 %v8860_v12, %v14574_v29 }
 0x502   : > { %v8954_v62 = vmax.bf16 %v8906_v31, %v14606_v14  ;;  %v7305_v17 = vrot.slane %v7303_v56, 5  ;;  %v7309_v13 = vrot.slane %v7307_v7, 4  ;;  %v7313_v49 = vshll.u32 %v6893_v18, 16  ;;  %v7826_v7 = vld [vmem:[#allocation2 + $0x14c] sm:$0xf] }
 0x503   : > { %v14627_v51 = vmax.bf16 %v8628_v20, %v8424_v22  ;;  %v8955_v35 = vmax.bf16 %v8907_v19, %v14622_v30  ;;  %v7317_v4 = vshrl.u32 %v6893_v18, 16  ;;  %v7637_v2 = vrot.slane %v6866_v39, 5 }
 0x504   : > { %v10122_v11 = vrot.slane %v8954_v62, 11  ;;  %v7306_v43 = vsel %vm11245_vm2, %v7298_v63, %v7305_v17  ;;  %v7310_v37 = vor.u32 %v7309_v13, %v7305_v17  ;;  %v7315_v9 = vrot.slane %v7313_v49, 5  ;;  %v6867_v62 = vld [vmem:[#allocation2 + $0x14c] sm:$0x7] }
 0x505   : > { %v8956_v8 = vmax.bf16 %v8908_v34, %v14627_v51  ;;  %v9128_v55 = vrot.slane %v8955_v35, 7  ;;  %v7319_v41 = vrot.slane %v7317_v4, 4  ;;  %v7505_v48 = vmax.bf16 %v7306_v43, %v6865_v16  ;;  %v8453_v16 = vld [vmem:[#allocation2 + $0x148] sm:$0xe]  ;;  %v7827_v4 = vld [vmem:[#allocation2 + $0x150] sm:$0x1] }
 0x506   : > { %v7311_v15 = vrot.slane %v7310_v37, 4  ;;  %v7638_v59 = vrot.slane %v7637_v2, 4  ;;  %v7639_v20 = vrot.slane %v6893_v18, 5  ;;  %v8222_v58 = vshrl.u32 %v7825_v25, 16 }
 0x507   : > { %v9129_v12 = vsel %vm11875_vm14, %v10122_v11, %v9128_v55  ;;  %v9130_v5 = vrot.slane %v9128_v55, 4  ;;  %v9131_v31 = vrot.slane %v8956_v8, 7  ;;  %v7320_v56 = vor.u32 %v7319_v41, %v7315_v9 }
 0x508   : > { %v7316_v63 = vsel %vm11245_vm2, %v7311_v15, %v7315_v9  ;;  %v7640_v22 = vsel %vm11300_vm5, %v7638_v59, %v7639_v20  ;;  %v7641_v19 = vrot.slane %v7639_v20, 4  ;;  %v7765_v34 = vmax.bf16 %v7637_v2, %v7505_v48  ;;  %v6868_v20 = vld [vmem:[#allocation2 + $0x158] sm:$0x8] }
 0x509   : > { %v9132_v18 = vsel %vm11875_vm14, %v9130_v5, %v9131_v31  ;;  %v7321_v17 = vrot.slane %v7320_v56, 4  ;;  %v7506_v13 = vmax.bf16 %v7316_v63, %v6866_v39  ;;  %v8224_v49 = vrot.slane %v8222_v58, 5 }
 0x50a   : > { %v10154_v35 = vcombine.low %v9129_v12, %v9132_v18  ;;  %v8225_v11 = vshll.u32 %v7825_v25, 16  ;;  %v8231_v43 = vshrl.u32 %v7826_v7, 16  ;;  %v8234_v37 = vshll.u32 %v7826_v7, 16  ;;  %v6869_v18 = vld [vmem:[#allocation2 + $0x15c] sm:$0xf] }
 0x50b   : > { %v7507_v8 = vmax.bf16 %v7321_v17, %v6867_v62  ;;  %v7766_v9 = vmax.bf16 %v7640_v22, %v7506_v13  ;;  %v8241_v55 = vshll.u32 %v7827_v4, 16  ;;  %v8629_v41 = vrot.slane %v8453_v16, 6 }
 0x50c   : > { %10601 = vmatmul.mubr.bf16.gmra.mrb[4].mxu1 %v10154_v35  ;;  %v8227_v15 = vrot.slane %v8225_v11, 6  ;;  %v8233_v2 = vrot.slane %v8231_v43, 5  ;;  %v8236_v48 = vrot.slane %v8234_v37, 6  ;;  %v8631_v59 = vrot.slane %v7826_v7, 6  ;;  %v6894_v11 = vld [vmem:[#allocation2 + $0x160] sm:$0xf] }
 0x50d   : > { %v7767_v5 = vmax.bf16 %v7641_v19, %v7507_v8  ;;  %v8243_v31 = vrot.slane %v8241_v55, 6  ;;  %v8630_v56 = vrot.slane %v8629_v41, 4  ;;  %v8634_v39 = vrot.slane %v7827_v4, 6 }
 0x50e   : > { %v8228_v58 = vor.u32 %v8227_v15, %v8224_v49  ;;  %v8237_v12 = vor.u32 %v8236_v48, %v8233_v2  ;;  %v8633_v63 = vrot.slane %v8631_v59, 4  ;;  %v8813_v25 = vmax.bf16 %v14472_v38, %v14423_v23 }
 0x50f   : > { %v8632_v22 = vsel %vm11417_vm11, %v8630_v56, %v8631_v59  ;;  %v8814_v16 = vmax.bf16 %v14486_v42, %v14428_v47  ;;  %v8815_v7 = vmax.bf16 %v14488_v1, %v14430_v36  ;;  %v7323_v19 = vshrl.u32 %v6868_v20, 16 }
 0x510   : > { %v8229_v62 = vrot.slane %v8228_v58, 4  ;;  %v8239_v17 = vrot.slane %v8237_v12, 4  ;;  %v8425_v13 = vmax.bf16 %v8228_v58, %v7765_v34  ;;  %v8635_v49 = vsel %vm11417_vm11, %v8633_v63, %v8634_v39 }
 0x511   : > { %v8861_v35 = vmax.bf16 %v8813_v25, %v14553_v0  ;;  %v8862_v23 = vmax.bf16 %v8814_v16, %v14568_v32  ;;  %v8863_v4 = vmax.bf16 %v8815_v7, %v14574_v29  ;;  %v7328_v43 = vshll.u32 %v6869_v18, 16  ;;  %v7828_v16 = vld [vmem:[#allocation2 + $0x15c] sm:$0xf] }
 0x512   : > { %v8238_v47 = vsel %vm11329_vm8, %v8229_v62, %v8237_v12  ;;  %v8244_v36 = vsel %vm11329_vm8, %v8239_v17, %v8243_v31  ;;  %v14658_v37 = vmax.bf16 %v8629_v41, %v8425_v13  ;;  %v7332_v34 = vshrl.u32 %v6869_v18, 16 }
 0x513   : > { %v8426_v8 = vmax.bf16 %v8238_v47, %v7766_v9  ;;  %v8427_v55 = vmax.bf16 %v8244_v36, %v7767_v5  ;;  %v8909_v15 = vmax.bf16 %v8861_v35, %v14606_v14  ;;  %v8910_v2 = vmax.bf16 %v8862_v23, %v14622_v30  ;;  %v7829_v36 = vld [vmem:[#allocation2 + $0x160] sm:$0xf] }
 0x514   : > { %v8911_v48 = vmax.bf16 %v8863_v4, %v14627_v51  ;;  %v7330_v59 = vrot.slane %v7328_v43, 5  ;;  %v7334_v56 = vrot.slane %v7332_v34, 4  ;;  %v7338_v39 = vshll.u32 %v6894_v11, 16 }
 0x515   : > { %v14663_v58 = vmax.bf16 %v8632_v22, %v8426_v8  ;;  %v14665_v12 = vmax.bf16 %v8635_v49, %v8427_v55  ;;  %v8957_v31 = vmax.bf16 %v8909_v15, %v14658_v37  ;;  %v7342_v41 = vshrl.u32 %v6894_v11, 16 }
 0x516   : > { %v7331_v9 = vsel %vm11245_vm2, %v7323_v19, %v7330_v59  ;;  %v7335_v5 = vor.u32 %v7334_v56, %v7330_v59  ;;  %v7340_v63 = vrot.slane %v7338_v39, 5  ;;  %v7642_v25 = vrot.slane %v6869_v18, 5  ;;  %v7830_v56 = vld [vmem:[#allocation2 + $0x164] sm:$0x1] }
 0x517   : > { %v8958_v7 = vmax.bf16 %v8910_v2, %v14663_v58  ;;  %v8959_v62 = vmax.bf16 %v8911_v48, %v14665_v12  ;;  %v10123_v17 = vrot.slane %v8957_v31, 11  ;;  %v7344_v13 = vrot.slane %v7342_v41, 4 }
 0x518   : > { %v7336_v22 = vrot.slane %v7335_v5, 4  ;;  %v7508_v35 = vmax.bf16 %v7331_v9, %v6868_v20  ;;  %v7643_v49 = vrot.slane %v7642_v25, 4  ;;  %v7644_v23 = vrot.slane %v6894_v11, 5  ;;  %v6870_v20 = vld [vmem:[#allocation2 + $0x160] sm:$0x7] }
 0x519   : > { %v9135_v4 = vrot.slane %v8958_v7, 7  ;;  %v9138_v43 = vrot.slane %v8959_v62, 7  ;;  %v7345_v47 = vor.u32 %v7344_v13, %v7340_v63  ;;  %v8246_v34 = vshrl.u32 %v7828_v16, 16  ;;  %v8454_v5 = vld [vmem:[#allocation2 + $0x15c] sm:$0xe] }
 0x51a   : > { %v7341_v19 = vsel %vm11245_vm2, %v7336_v22, %v7340_v63  ;;  %v7645_v8 = vsel %vm11300_vm5, %v7643_v49, %v7644_v23  ;;  %v7646_v55 = vrot.slane %v7644_v23, 4  ;;  %v7768_v15 = vmax.bf16 %v7642_v25, %v7508_v35 }
 0x51b   : > { %v9136_v2 = vsel %vm11875_vm14, %v10123_v17, %v9135_v4  ;;  %v9137_v48 = vrot.slane %v9135_v4, 4  ;;  %v7346_v59 = vrot.slane %v7345_v47, 4  ;;  %v7509_v11 = vmax.bf16 %v7341_v19, %v6869_v18 }
 0x51c   : > { %v8248_v39 = vrot.slane %v8246_v34, 5  ;;  %v8249_v31 = vshll.u32 %v7828_v16, 16  ;;  %v8255_v41 = vshrl.u32 %v7829_v36, 16  ;;  %v8258_v9 = vshll.u32 %v7829_v36, 16 }
 0x51d   : > { %v9139_v63 = vsel %vm11875_vm14, %v9137_v48, %v9138_v43  ;;  %v7510_v7 = vmax.bf16 %v7346_v59, %v6870_v20  ;;  %v7769_v62 = vmax.bf16 %v7645_v8, %v7509_v11  ;;  %v8265_v13 = vshll.u32 %v7830_v56, 16 }
 0x51e   : > { %v10155_v25 = vcombine.low %v9136_v2, %v9139_v63  ;;  %v8251_v22 = vrot.slane %v8249_v31, 6  ;;  %v8257_v35 = vrot.slane %v8255_v41, 5  ;;  %v8260_v17 = vrot.slane %v8258_v9, 6 }
 0x51f   : > { %v7770_v49 = vmax.bf16 %v7646_v55, %v7510_v7  ;;  %v8267_v23 = vrot.slane %v8265_v13, 6  ;;  %v8636_v4 = vrot.slane %v8454_v5, 6  ;;  %v8638_v18 = vrot.slane %v7829_v36, 6 }
 0x520   : > { %10604 = vmatprep.mubr.bf16.mxu1 %v10155_v25  ;;  %v8252_v47 = vor.u32 %v8251_v22, %v8248_v39  ;;  %v8261_v16 = vor.u32 %v8260_v17, %v8257_v35  ;;  %v8641_v34 = vrot.slane %v7830_v56, 6  ;;  %v8816_v19 = vmax.bf16 %v14553_v0, %v14472_v38  ;;  %v6871_v39 = vld [vmem:[#allocation2 + $0x16c] sm:$0x8] }
 0x521   : > { %v8637_v60 = vrot.slane %v8636_v4, 4  ;;  %v8640_v43 = vrot.slane %v8638_v18, 4  ;;  %v8817_v8 = vmax.bf16 %v14568_v32, %v14486_v42  ;;  %v8818_v2 = vmax.bf16 %v14574_v29, %v14488_v1  ;;  %v6872_v42 = vld [vmem:[#allocation2 + $0x170] sm:$0xf] }
 0x522   : > { %v8253_v48 = vrot.slane %v8252_v47, 4  ;;  %v8263_v55 = vrot.slane %v8261_v16, 4  ;;  %v8428_v20 = vmax.bf16 %v8252_v47, %v7768_v15  ;;  %v8864_v36 = vmax.bf16 %v8816_v19, %v14606_v14 }
 0x523   : > { %v8639_v59 = vsel %vm11417_vm11, %v8637_v60, %v8638_v18  ;;  %v8642_v11 = vsel %vm11417_vm11, %v8640_v43, %v8641_v34  ;;  %v8865_v38 = vmax.bf16 %v8817_v8, %v14622_v30  ;;  %v8866_v56 = vmax.bf16 %v8818_v2, %v14627_v51  ;;  %v6895_v60 = vld [vmem:[#allocation2 + $0x174] sm:$0xf] }
 0x524   : > { %v8262_v1 = vsel %vm11329_vm8, %v8253_v48, %v8261_v16  ;;  %v8268_v15 = vsel %vm11329_vm8, %v8263_v55, %v8267_v23  ;;  %v14697_v31 = vmax.bf16 %v8636_v4, %v8428_v20  ;;  %v8912_v41 = vmax.bf16 %v8864_v36, %v14658_v37  ;;  %v7831_v55 = vld [vmem:[#allocation2 + $0x170] sm:$0xf] }
 0x525   : > { %v8429_v9 = vmax.bf16 %v8262_v1, %v7769_v62  ;;  %v8430_v5 = vmax.bf16 %v8268_v15, %v7770_v49  ;;  %v8913_v63 = vmax.bf16 %v8865_v38, %v14663_v58  ;;  %v8914_v7 = vmax.bf16 %v8866_v56, %v14665_v12 }
 0x526   : > { %v8960_v13 = vmax.bf16 %v8912_v41, %v14697_v31  ;;  %v7348_v25 = vshrl.u32 %v6871_v39, 16  ;;  %v7353_v22 = vshll.u32 %v6872_v42, 16  ;;  %v7357_v35 = vshrl.u32 %v6872_v42, 16 }
 0x527   : > { %v14703_v17 = vmax.bf16 %v8639_v59, %v8429_v9  ;;  %v14705_v18 = vmax.bf16 %v8642_v11, %v8430_v5  ;;  %v7363_v23 = vshll.u32 %v6895_v60, 16  ;;  %v7367_v4 = vshrl.u32 %v6895_v60, 16  ;;  %v14707_v47 = vpop.f32.mrb[16].mxu1  ;;  %v7832_v5 = vld [vmem:[#allocation2 + $0x174] sm:$0xf] }
 0x528   : > { %v10124_v16 = vrot.slane %v8960_v13, 11  ;;  %v7355_v62 = vrot.slane %v7353_v22, 5  ;;  %v7359_v49 = vrot.slane %v7357_v35, 4  ;;  %v7647_v34 = vrot.slane %v6872_v42, 5  ;;  %v14709_v19 = vpop.f32.mrb[17].mxu1 }
 0x529   : > { %v8961_v43 = vmax.bf16 %v8913_v63, %v14703_v17  ;;  %v8962_v8 = vmax.bf16 %v8914_v7, %v14705_v18  ;;  %v7365_v2 = vrot.slane %v7363_v23, 5  ;;  %v7369_v48 = vrot.slane %v7367_v4, 4  ;;  %v14713_v20 = vpop.f32.mrb[18].mxu1  ;;  %v6873_v63 = vld [vmem:[#allocation2 + $0x174] sm:$0x7] }
 0x52a   : > { %v7356_v36 = vsel %vm11245_vm2, %v7348_v25, %v7355_v62  ;;  %v7360_v59 = vor.u32 %v7359_v49, %v7355_v62  ;;  %v7648_v11 = vrot.slane %v7647_v34, 4  ;;  %v7649_v38 = vrot.slane %v6895_v60, 5  ;;  %v14717_v56 = vpop.f32.mrb[19].mxu1  ;;  %v7833_v62 = vld [vmem:[#allocation2 + $0x178] sm:$0x1] }
 0x52b   : > { %v9142_v1 = vrot.slane %v8961_v43, 7  ;;  %v9145_v15 = vrot.slane %v8962_v8, 7  ;;  %v7370_v41 = vor.u32 %v7369_v48, %v7365_v2  ;;  %v7511_v9 = vmax.bf16 %v7356_v36, %v6871_v39  ;;  %v8455_v48 = vld [vmem:[#allocation2 + $0x170] sm:$0xe] }
 0x52c   : > { %v7361_v7 = vrot.slane %v7360_v59, 4  ;;  %v7650_v13 = vsel %vm11300_vm5, %v7648_v11, %v7649_v38  ;;  %v7651_v22 = vrot.slane %v7649_v38, 4  ;;  %v8270_v35 = vshrl.u32 %v7831_v55, 16 }
 0x52d   : > { %v9143_v25 = vsel %vm11875_vm14, %v10124_v16, %v9142_v1  ;;  %v9144_v23 = vrot.slane %v9142_v1, 4  ;;  %v7371_v4 = vrot.slane %v7370_v41, 4  ;;  %v7771_v60 = vmax.bf16 %v7647_v34, %v7511_v9 }
 0x52e   : > { %v7366_v49 = vsel %vm11245_vm2, %v7361_v7, %v7365_v2  ;;  %v8272_v43 = vrot.slane %v8270_v35, 5  ;;  %v8273_v39 = vshll.u32 %v7831_v55, 16  ;;  %v8279_v8 = vshrl.u32 %v7832_v5, 16 }
 0x52f   : > { %v9146_v36 = vsel %vm11875_vm14, %v9144_v23, %v9145_v15  ;;  %v7512_v59 = vmax.bf16 %v7366_v49, %v6872_v42  ;;  %v7513_v11 = vmax.bf16 %v7371_v4, %v6873_v63  ;;  %v8282_v38 = vshll.u32 %v7832_v5, 16  ;;  %v6874_v4 = vld [vmem:[#allocation2 + $0x180] sm:$0x8]  ;;  %v6896_v49 = vld [vmem:[#allocation2 + $0x188] sm:$0xf] }
 0x530   : > { %v10156_v52 = vcombine.low %v9143_v25, %v9146_v36  ;;  %v8275_v61 = vrot.slane %v8273_v39, 6  ;;  %v8281_v16 = vrot.slane %v8279_v8, 5  ;;  %v8289_v1 = vshll.u32 %v7833_v62, 16 }
 0x531   : > { %v7772_v41 = vmax.bf16 %v7650_v13, %v7512_v59  ;;  %v7773_v34 = vmax.bf16 %v7651_v22, %v7513_v11  ;;  %v8284_v9 = vrot.slane %v8282_v38, 6  ;;  %v8643_v46 = vrot.slane %v8455_v48, 6 }
 0x532   : > { %10605 = vmatmul.mubr.bf16.gmra.mrb[8].mxu1 %v10156_v52  ;;  %v8276_v2 = vor.u32 %v8275_v61, %v8272_v43  ;;  %v8291_v7 = vrot.slane %v8289_v1, 6  ;;  %v8645_v55 = vrot.slane %v7832_v5, 6  ;;  %v8648_v35 = vrot.slane %v7833_v62, 6  ;;  %v6875_v62 = vld [vmem:[#allocation2 + $0x184] sm:$0xf] }
 0x533   : > { %v8285_v28 = vor.u32 %v8284_v9, %v8281_v16  ;;  %v8644_v50 = vrot.slane %v8643_v46, 4  ;;  %v8819_v42 = vmax.bf16 %v14606_v14, %v14553_v0  ;;  %v8820_v15 = vmax.bf16 %v14622_v30, %v14568_v32 }
 0x534   : > { %v8277_v63 = vrot.slane %v8276_v2, 4  ;;  %v8431_v25 = vmax.bf16 %v8276_v2, %v7771_v60  ;;  %v8647_v23 = vrot.slane %v8645_v55, 4  ;;  %v8821_v13 = vmax.bf16 %v14627_v51, %v14574_v29 }
 0x535   : > { %v8287_v22 = vrot.slane %v8285_v28, 4  ;;  %v8646_v61 = vsel %vm11417_vm11, %v8644_v50, %v8645_v55  ;;  %v8867_v52 = vmax.bf16 %v8819_v42, %v14658_v37  ;;  %v8868_v5 = vmax.bf16 %v8820_v15, %v14663_v58  ;;  %v7834_v42 = vld [vmem:[#allocation2 + $0x184] sm:$0xf] }
 0x536   : > { %v8286_v0 = vsel %vm11329_vm8, %v8277_v63, %v8285_v28  ;;  %v8649_v32 = vsel %vm11417_vm11, %v8647_v23, %v8648_v35  ;;  %v14741_v60 = vmax.bf16 %v8643_v46, %v8431_v25  ;;  %v8869_v29 = vmax.bf16 %v8821_v13, %v14665_v12 }
 0x537   : > { %v8292_v50 = vsel %vm11329_vm8, %v8287_v22, %v8291_v7  ;;  %v8432_v43 = vmax.bf16 %v8286_v0, %v7772_v41  ;;  %v8915_v39 = vmax.bf16 %v8867_v52, %v14697_v31  ;;  %v8916_v8 = vmax.bf16 %v8868_v5, %v14703_v17 }
 0x538   : > { %v8433_v48 = vmax.bf16 %v8292_v50, %v7773_v34  ;;  %v8917_v36 = vmax.bf16 %v8869_v29, %v14705_v18  ;;  %v7373_v28 = vshrl.u32 %v6874_v4, 16  ;;  %v7378_v59 = vshll.u32 %v6875_v62, 16 }
 0x539   : > { %v14749_v11 = vmax.bf16 %v8646_v61, %v8432_v43  ;;  %v8963_v46 = vmax.bf16 %v8915_v39, %v14741_v60  ;;  %v7382_v38 = vshrl.u32 %v6875_v62, 16  ;;  %v7388_v16 = vshll.u32 %v6896_v49, 16 }
 0x53a   : > { %v14752_v1 = vmax.bf16 %v8649_v32, %v8433_v48  ;;  %v7380_v9 = vrot.slane %v7378_v59, 5  ;;  %v7392_v2 = vshrl.u32 %v6896_v49, 16  ;;  %v7652_v41 = vrot.slane %v6875_v62, 5  ;;  %v7835_v32 = vld [vmem:[#allocation2 + $0x188] sm:$0xf] }
 0x53b   : > { %v8964_v7 = vmax.bf16 %v8916_v8, %v14749_v11  ;;  %v10125_v55 = vrot.slane %v8963_v46, 11  ;;  %v7384_v35 = vrot.slane %v7382_v38, 4  ;;  %v7390_v34 = vrot.slane %v7388_v16, 5  ;;  %v6876_v8 = vld [vmem:[#allocation2 + $0x188] sm:$0x7] }
 0x53c   : > { %v8965_v15 = vmax.bf16 %v8917_v36, %v14752_v1  ;;  %v7381_v63 = vsel %vm11245_vm2, %v7373_v28, %v7380_v9  ;;  %v7394_v25 = vrot.slane %v7392_v2, 4  ;;  %v7653_v23 = vrot.slane %v7652_v41, 4  ;;  %v7836_v28 = vld [vmem:[#allocation2 + $0x18c] sm:$0x1] }
 0x53d   : > { %v9149_v13 = vrot.slane %v8964_v7, 7  ;;  %v7385_v22 = vor.u32 %v7384_v35, %v7380_v9  ;;  %v7514_v61 = vmax.bf16 %v7381_v63, %v6874_v4  ;;  %v7654_v52 = vrot.slane %v6896_v49, 5  ;;  %v8456_v49 = vld [vmem:[#allocation2 + $0x184] sm:$0xe] }
 0x53e   : > { %v9152_v5 = vrot.slane %v8965_v15, 7  ;;  %v7395_v0 = vor.u32 %v7394_v25, %v7390_v34  ;;  %v8294_v29 = vshrl.u32 %v7834_v42, 16  ;;  %v8297_v50 = vshll.u32 %v7834_v42, 16 }
 0x53f   : > { %v9150_v43 = vsel %vm11875_vm14, %v10125_v55, %v9149_v13  ;;  %v9151_v39 = vrot.slane %v9149_v13, 4  ;;  %v7386_v48 = vrot.slane %v7385_v22, 4  ;;  %v7655_v36 = vsel %vm11300_vm5, %v7653_v23, %v7654_v52 }
 0x540   : > { %v7396_v59 = vrot.slane %v7395_v0, 4  ;;  %v7656_v46 = vrot.slane %v7654_v52, 4  ;;  %v7774_v38 = vmax.bf16 %v7652_v41, %v7514_v61  ;;  %v8296_v4 = vrot.slane %v8294_v29, 5 }
 0x541   : > { %v9153_v16 = vsel %vm11875_vm14, %v9151_v39, %v9152_v5  ;;  %v7391_v9 = vsel %vm11245_vm2, %v7386_v48, %v7390_v34  ;;  %v8299_v2 = vrot.slane %v8297_v50, 6  ;;  %v8303_v7 = vshrl.u32 %v7835_v32, 16 }
 0x542   : > { %v10157_v55 = vcombine.low %v9150_v43, %v9153_v16  ;;  %v7515_v35 = vmax.bf16 %v7391_v9, %v6875_v62  ;;  %v7516_v42 = vmax.bf16 %v7396_v59, %v6876_v8  ;;  %v8306_v15 = vshll.u32 %v7835_v32, 16 }
 0x543   : > { %v8300_v10 = vor.u32 %v8299_v2, %v8296_v4  ;;  %v8305_v63 = vrot.slane %v8303_v7, 5  ;;  %v8313_v25 = vshll.u32 %v7836_v28, 16  ;;  %v8650_v23 = vrot.slane %v8456_v49, 6 }
 0x544   : > { %10608 = vmatprep.mubr.bf16.mxu1 %v10157_v55  ;;  %v7775_v41 = vmax.bf16 %v7655_v36, %v7515_v35  ;;  %v7776_v13 = vmax.bf16 %v7656_v46, %v7516_v42  ;;  %v8308_v22 = vrot.slane %v8306_v15, 6  ;;  %v8652_v61 = vrot.slane %v7835_v32, 6 }
 0x545   : > { %v8301_v52 = vrot.slane %v8300_v10, 4  ;;  %v8315_v5 = vrot.slane %v8313_v25, 6  ;;  %v8434_v0 = vmax.bf16 %v8300_v10, %v7774_v38  ;;  %v8651_v3 = vrot.slane %v8650_v23, 4 }
 0x546   : > { %v8309_v34 = vor.u32 %v8308_v22, %v8305_v63  ;;  %v8654_v29 = vrot.slane %v8652_v61, 4  ;;  %v8655_v50 = vrot.slane %v7836_v28, 6  ;;  %v8822_v62 = vmax.bf16 %v14658_v37, %v14606_v14 }
 0x547   : > { %v8653_v43 = vsel %vm11417_vm11, %v8651_v3, %v8652_v61  ;;  %v8774_v39 = vmax.bf16 %v8650_v23, %v8434_v0  ;;  %v8823_v8 = vmax.bf16 %v14663_v58, %v14622_v30  ;;  %v8824_v32 = vmax.bf16 %v14665_v12, %v14627_v51  ;;  %v14786_v51 = vld [vmem:[%s14936_s4] ss:$0 sm:$0xff] }
 0x548   : > { %v8310_v48 = vsel %vm11329_vm8, %v8301_v52, %v8309_v34  ;;  %v8311_v36 = vrot.slane %v8309_v34, 4  ;;  %v8656_v28 = vsel %vm11417_vm11, %v8654_v29, %v8655_v50  ;;  %v8870_v59 = vmax.bf16 %v8822_v62, %v14697_v31 }
 0x549   : > { %v8435_v14 = vmax.bf16 %v8310_v48, %v7775_v41  ;;  %v8871_v37 = vmax.bf16 %v8823_v8, %v14703_v17  ;;  %v8872_v46 = vmax.bf16 %v8824_v32, %v14705_v18  ;;  %v10628_v30 = vadd.f32 %v14707_v47, %v14524_v6 }
 0x54a   : > { %v8316_v58 = vsel %vm11329_vm8, %v8311_v36, %v8315_v5  ;;  %v8918_v45 = vmax.bf16 %v8870_v59, %v14741_v60  ;;  %v10629_v12 = vadd.f32 %v14709_v19, %v14527_v33  ;;  %v10630_v31 = vadd.f32 %v14713_v20, %v14529_v26 }
 0x54b   : > { %v8436_v17 = vmax.bf16 %v8316_v58, %v7776_v13  ;;  %v8775_v18 = vmax.bf16 %v8653_v43, %v8435_v14  ;;  %v8919_v6 = vmax.bf16 %v8871_v37, %v14749_v11  ;;  %v8920_v47 = vmax.bf16 %v8872_v46, %v14752_v1  ;;  %v10586_v38 = vpop.f32.mrb[20].mxu1 }
 0x54c   : > { %v8966_v4 = vmax.bf16 %v8918_v45, %v8774_v39  ;;  %v14798_v49 = vadd.f32 %v10628_v30, %v14786_v51  ;;  %v14801_v27 = vadd.f32 %v10629_v12, %v14786_v51  ;;  %v14804_v60 = vadd.f32 %v10630_v31, %v14786_v51  ;;  %v9340_v33 = vpop.f32.mrb[21].mxu1 }
 0x54d   : > { %v8776_v19 = vmax.bf16 %v8656_v28, %v8436_v17  ;;  %v8967_v26 = vmax.bf16 %v8919_v6, %v8775_v18  ;;  %v10631_v20 = vadd.f32 %v14717_v56, %v14535_v44  ;;  %v10632_v11 = vadd.f32 %v10586_v38, %v14539_v57  ;;  %v10587_v1 = vpop.f32.mrb[22].mxu1 }
 0x54e   : > { %v10126_v16 = vrot.slane %v8966_v4, 11  ;;  %v9588_v9 = vsub.f32 0.0, %v14798_v49  ;;  %v9586_v2 = vsub.f32 0.0, %v14801_v27  ;;  %v9589_v7 = vsub.f32 0.0, %v14804_v60  ;;  %v9343_v55 = vpop.f32.mrb[23].mxu1 }
 0x54f   : > { %v8968_v35 = vmax.bf16 %v8920_v47, %v8776_v19  ;;  %v9156_v42 = vrot.slane %v8967_v26, 7  ;;  %v14813_v15 = vadd.f32 %v10631_v20, %v14786_v51  ;;  %v14816_v10 = vadd.f32 %v10632_v11, %v14786_v51 }
 0x550   : > { %v9622_v44 = vmul.f32 1.442695, %v9588_v9  ;;  %v9618_v56 = vmul.f32 1.442695, %v9586_v2  ;;  %v9624_v57 = vmul.f32 1.442695, %v9589_v7  ;;  %v10633_v63 = vadd.f32 %v9340_v33, %v14547_v54 }
 0x551   : > { %v9157_v25 = vsel %vm11875_vm14, %v10126_v16, %v9156_v42  ;;  %v9158_v23 = vrot.slane %v9156_v42, 4  ;;  %v9159_v41 = vrot.slane %v8968_v35, 7  ;;  %v9587_v13 = vsub.f32 0.0, %v14813_v15  ;;  %v15036_v35 = vld [vmem:[#allocation20_spill] sm:$0xff] }
 0x552   : > { %10917 = vpow2.f32 %v9622_v44  ;;  %v9592_v22 = vsub.f32 0.0, %v14816_v10  ;;  %v14824_v61 = vadd.f32 %v10633_v63, %v14786_v51  ;;  %v10634_v52 = vadd.f32 %v10587_v1, %v14556_v53 }
 0x553   : > { %v9160_v5 = vsel %vm11875_vm14, %v9158_v23, %v9159_v41  ;;  %10919 = vpow2.f32 %v9618_v56  ;;  %v9620_v54 = vmul.f32 1.442695, %v9587_v13  ;;  %v10635_v0 = vadd.f32 %v9343_v55, %v14562_v24  ;;  %v15037_v56 = vld [vmem:[#allocation21_spill] sm:$0xff]  ;;  %v15038_v23 = vld [vmem:[#allocation22_spill] sm:$0xff] }
 0x554   : > { %v10158_v3 = vcombine.low %v9157_v25, %v9160_v5  ;;  %10921 = vpow2.f32 %v9624_v57  ;;  %v9630_v34 = vmul.f32 1.442695, %v9592_v22  ;;  %v9590_v29 = vsub.f32 0.0, %v14824_v61 }
 0x555   : > { %10923 = vpow2.f32 %v9620_v54  ;;  %v9561_v50 = vadd.f32 %v10634_v52, %v14786_v51  ;;  %v14833_v62 = vadd.f32 %v10635_v0, %v14786_v51 }
 0x556   : > { %10609 = vmatmul.mubr.bf16.gmra.mrb[12].mxu1 %v10158_v3  ;;  %10925 = vpow2.f32 %v9630_v34  ;;  %v9626_v53 = vmul.f32 1.442695, %v9590_v29 }
 0x557   : > { %v9593_v40 = vsub.f32 0.0, %v9561_v50  ;;  %v9591_v43 = vsub.f32 0.0, %v14833_v62 }
 0x558   : > { %10927 = vpow2.f32 %v9626_v53 }
 0x559   : > { %v9632_v39 = vmul.f32 1.442695, %v9593_v40  ;;  %v9628_v24 = vmul.f32 1.442695, %v9591_v43 }
 0x55b   : > { %10929 = vpow2.f32 %v9632_v39 }
 0x55c   : > { %v10918_v8 = vpop.eup %10917  ;;  %10931 = vpow2.f32 %v9628_v24 }
 0x55d   : > { %v10920_v32 = vpop.eup %10919  ;;  %v9684_v48 = vadd.f32 1.0, %v10918_v8 }
 0x55e   : > { %v10922_v36 = vpop.eup %10921  ;;  %v9682_v28 = vadd.f32 1.0, %v10920_v32 }
 0x55f   : > { %v10924_v59 = vpop.eup %10923  ;;  %10933 = vrcp.f32 %v9684_v48  ;;  %v9685_v14 = vadd.f32 1.0, %v10922_v36 }
 0x560   : > { %v10926_v37 = vpop.eup %10925  ;;  %10935 = vrcp.f32 %v9682_v28  ;;  %v9683_v46 = vadd.f32 1.0, %v10924_v59 }
 0x561   : > { %10937 = vrcp.f32 %v9685_v14  ;;  %v9688_v30 = vadd.f32 1.0, %v10926_v37 }
 0x562   : > { %v10928_v58 = vpop.eup %10927  ;;  %10939 = vrcp.f32 %v9683_v46 }
 0x563   : > { %10941 = vrcp.f32 %v9688_v30  ;;  %v9686_v45 = vadd.f32 1.0, %v10928_v58  ;;  %v15039_v30 = vld [vmem:[#allocation23_spill] sm:$0xff] }
 0x565   : > { %v10930_v12 = vpop.eup %10929  ;;  %10943 = vrcp.f32 %v9686_v45 }
 0x566   : > { %v10932_v31 = vpop.eup %10931  ;;  %v9689_v17 = vadd.f32 1.0, %v10930_v12  ;;  %v15040_v12 = vld [vmem:[#allocation24_spill] sm:$0xff] }
 0x567   : > { %v9687_v18 = vadd.f32 1.0, %v10932_v31 }
 0x568   : > { %10945 = vrcp.f32 %v9689_v17 }
 0x569   : > { %v10934_v6 = vpop.eup %10933  ;;  %10947 = vrcp.f32 %v9687_v18 }
 0x56a   : > { %v10936_v47 = vpop.eup %10935  ;;  %v9748_v38 = vmul.f32 %v10934_v6, %v14798_v49  ;;  %v15041_v6 = vld [vmem:[#allocation25_spill] sm:$0xff] }
 0x56b   : > { %v10938_v4 = vpop.eup %10937  ;;  %v9746_v33 = vmul.f32 %v10936_v47, %v14801_v27 }
 0x56c   : > { %v10940_v19 = vpop.eup %10939  ;;  %9780 = vst [vmem:[%s14840_s23 + $0x10] sm:$0xff] %v9748_v38  ;;  %v9749_v26 = vmul.f32 %v10938_v4, %v14804_v60 }
 0x56d   : > { %v10942_v20 = vpop.eup %10941  ;;  %9778 = vst [vmem:[%s14840_s23] sm:$0xff] %v9746_v33  ;;  %v9747_v11 = vmul.f32 %v10940_v19, %v14813_v15  ;;  %v15042_v33 = vld [vmem:[#allocation26_spill] sm:$0xff] }
 0x56e   : > { %9781 = vst [vmem:[%s14840_s23 + $0x18] sm:$0xff] %v9749_v26  ;;  %v9752_v1 = vmul.f32 %v10942_v20, %v14816_v10 }
 0x56f   : > { %v10944_v16 = vpop.eup %10943  ;;  %9779 = vst [vmem:[%s14840_s23 + $0x8] sm:$0xff] %v9747_v11 }
 0x570   : > { %9784 = vst [vmem:[%s14840_s23 + $0x30] sm:$0xff] %v9752_v1  ;;  %v9750_v49 = vmul.f32 %v10944_v16, %v14824_v61 }
 0x571   : > { %v10590_v9 = vpop.f32.mrb[24].mxu1 }
 0x572   : > { %v10946_v27 = vpop.eup %10945  ;;  %9782 = vst [vmem:[%s14840_s23 + $0x20] sm:$0xff] %v9750_v49  ;;  %v10636_v2 = vadd.f32 %v10590_v9, %v14566_v21  ;;  %v9356_v60 = vpop.f32.mrb[25].mxu1 }
 0x573   : > { %v10948_v7 = vpop.eup %10947  ;;  %v9753_v55 = vmul.f32 %v10946_v27, %v9561_v50  ;;  %v10637_v42 = vadd.f32 %v9356_v60, %v15036_v35  ;;  %v10591_v15 = vpop.f32.mrb[26].mxu1 }
 0x574   : > { %v9751_v10 = vmul.f32 %v10948_v7, %v14833_v62  ;;  %v9564_v44 = vadd.f32 %v10636_v2, %v14786_v51  ;;  %v10638_v57 = vadd.f32 %v10591_v15, %v15037_v56  ;;  %v9359_v63 = vpop.f32.mrb[27].mxu1 }
 0x575   : > { %9785 = vst [vmem:[%s14840_s23 + $0x38] sm:$0xff] %v9753_v55  ;;  %v9562_v25 = vadd.f32 %v10637_v42, %v14786_v51  ;;  %v10639_v41 = vadd.f32 %v9359_v63, %v15038_v23 }
 0x576   : > { %9783 = vst [vmem:[%s14840_s23 + $0x28] sm:$0xff] %v9751_v10  ;;  %v9596_v21 = vsub.f32 0.0, %v9564_v44  ;;  %v9565_v13 = vadd.f32 %v10638_v57, %v14786_v51 }
 0x577   : > { %v9594_v22 = vsub.f32 0.0, %v9562_v25  ;;  %v9563_v61 = vadd.f32 %v10639_v41, %v14786_v51 }
 0x578   : > { %v9638_v52 = vmul.f32 1.442695, %v9596_v21  ;;  %v9597_v5 = vsub.f32 0.0, %v9565_v13 }
 0x579   : > { %v9634_v54 = vmul.f32 1.442695, %v9594_v22  ;;  %v9595_v0 = vsub.f32 0.0, %v9563_v61 }
 0x57a   : > { %10949 = vpow2.f32 %v9638_v52  ;;  %v9640_v3 = vmul.f32 1.442695, %v9597_v5  ;;  %v15043_v52 = vld [vmem:[#allocation6_spill] sm:$0xff] }
 0x57b   : > { %10951 = vpow2.f32 %v9634_v54  ;;  %v9636_v34 = vmul.f32 1.442695, %v9595_v0  ;;  %v15044_v0 = vld [vmem:[#allocation9_spill] sm:$0xff] }
 0x57c   : > { %10953 = vpow2.f32 %v9640_v3 }
 0x57d   : > { %10955 = vpow2.f32 %v9636_v34 }
 0x584   : > { %v10950_v29 = vpop.eup %10949 }
 0x585   : > { %v10952_v50 = vpop.eup %10951  ;;  %v9692_v62 = vadd.f32 1.0, %v10950_v29 }
 0x586   : > { %v10954_v53 = vpop.eup %10953  ;;  %v9690_v40 = vadd.f32 1.0, %v10952_v50  ;;  %v15045_v50 = vld [vmem:[#allocation11_spill] sm:$0xff] }
 0x587   : > { %v10956_v43 = vpop.eup %10955  ;;  %10957 = vrcp.f32 %v9692_v62  ;;  %v9693_v39 = vadd.f32 1.0, %v10954_v53 }
 0x588   : > { %10959 = vrcp.f32 %v9690_v40  ;;  %v9691_v24 = vadd.f32 1.0, %v10956_v43  ;;  %v15046_v43 = vld [vmem:[#allocation10_spill] sm:$0xff] }
 0x589   : > { %10961 = vrcp.f32 %v9693_v39 }
 0x58a   : > { %10963 = vrcp.f32 %v9691_v24 }
 0x591   : > { %v10958_v8 = vpop.eup %10957 }
 0x592   : > { %v10960_v32 = vpop.eup %10959  ;;  %v9756_v48 = vmul.f32 %v10958_v8, %v9564_v44 }
 0x593   : > { %v10962_v36 = vpop.eup %10961  ;;  %v9754_v28 = vmul.f32 %v10960_v32, %v9562_v25 }
 0x594   : > { %v10964_v59 = vpop.eup %10963  ;;  %9788 = vst [vmem:[%s14840_s23 + $0x50] sm:$0xff] %v9756_v48  ;;  %v9757_v14 = vmul.f32 %v10962_v36, %v9565_v13 }
 0x595   : > { %9786 = vst [vmem:[%s14840_s23 + $0x40] sm:$0xff] %v9754_v28  ;;  %v9755_v37 = vmul.f32 %v10964_v59, %v9563_v61  ;;  %v10594_v46 = vpop.f32.mrb[28].mxu1 }
 0x596   : > { %9789 = vst [vmem:[%s14840_s23 + $0x58] sm:$0xff] %v9757_v14  ;;  %v10640_v58 = vadd.f32 %v10594_v46, %v15039_v30  ;;  %v9372_v45 = vpop.f32.mrb[29].mxu1 }
 0x597   : > { %9787 = vst [vmem:[%s14840_s23 + $0x48] sm:$0xff] %v9755_v37  ;;  %v10641_v31 = vadd.f32 %v9372_v45, %v15040_v12  ;;  %v10595_v17 = vpop.f32.mrb[30].mxu1 }
 0x598   : > { %v9568_v18 = vadd.f32 %v10640_v58, %v14786_v51  ;;  %v10642_v47 = vadd.f32 %v10595_v17, %v15041_v6  ;;  %v9375_v38 = vpop.f32.mrb[31].mxu1 }
 0x599   : > { %v9566_v4 = vadd.f32 %v10641_v31, %v14786_v51  ;;  %v10643_v19 = vadd.f32 %v9375_v38, %v15042_v33 }
 0x59a   : > { %v9600_v26 = vsub.f32 0.0, %v9568_v18  ;;  %v9569_v20 = vadd.f32 %v10642_v47, %v14786_v51 }
 0x59b   : > { %v9598_v11 = vsub.f32 0.0, %v9566_v4  ;;  %v9567_v1 = vadd.f32 %v10643_v19, %v14786_v51 }
 0x59c   : > { %v9646_v16 = vmul.f32 1.442695, %v9600_v26  ;;  %v9601_v49 = vsub.f32 0.0, %v9569_v20 }
 0x59d   : > { %v9642_v9 = vmul.f32 1.442695, %v9598_v11  ;;  %v9599_v27 = vsub.f32 0.0, %v9567_v1 }
 0x59e   : > { %10965 = vpow2.f32 %v9646_v16  ;;  %v9648_v2 = vmul.f32 1.442695, %v9601_v49  ;;  %v15047_v16 = vld [vmem:[#allocation4_spill] sm:$0xff] }
 0x59f   : > { %10967 = vpow2.f32 %v9642_v9  ;;  %v9644_v60 = vmul.f32 1.442695, %v9599_v27  ;;  %v15048_v27 = vld [vmem:[#allocation8_spill] sm:$0xff] }
 0x5a0   : > { %10969 = vpow2.f32 %v9648_v2 }
 0x5a1   : > { %10971 = vpow2.f32 %v9644_v60 }
 0x5a8   : > { %v10966_v7 = vpop.eup %10965 }
 0x5a9   : > { %v10968_v55 = vpop.eup %10967  ;;  %v9696_v35 = vadd.f32 1.0, %v10966_v7 }
 0x5aa   : > { %v10970_v42 = vpop.eup %10969  ;;  %v9694_v15 = vadd.f32 1.0, %v10968_v55  ;;  %v15049_v55 = vld [vmem:[#allocation5_spill] sm:$0xff] }
 0x5ab   : > { %v10972_v10 = vpop.eup %10971  ;;  %10973 = vrcp.f32 %v9696_v35  ;;  %v9697_v44 = vadd.f32 1.0, %v10970_v42 }
 0x5ac   : > { %10975 = vrcp.f32 %v9694_v15  ;;  %v9695_v56 = vadd.f32 1.0, %v10972_v10  ;;  %v15050_v10 = vld [vmem:[#allocation7_spill] sm:$0xff] }
 0x5ad   : > { %10977 = vrcp.f32 %v9697_v44 }
 0x5ae   : > { %10979 = vrcp.f32 %v9695_v56 }
 0x5b5   : > { %v10974_v57 = vpop.eup %10973 }
 0x5b6   : > { %v10976_v63 = vpop.eup %10975  ;;  %v9760_v25 = vmul.f32 %v10974_v57, %v9568_v18 }
 0x5b7   : > { %v10978_v23 = vpop.eup %10977  ;;  %v9758_v41 = vmul.f32 %v10976_v63, %v9566_v4 }
 0x5b8   : > { %v10980_v21 = vpop.eup %10979  ;;  %9792 = vst [vmem:[%s14840_s23 + $0x70] sm:$0xff] %v9760_v25  ;;  %v9761_v13 = vmul.f32 %v10978_v23, %v9569_v20 }
 0x5b9   : > { %9790 = vst [vmem:[%s14840_s23 + $0x60] sm:$0xff] %v9758_v41  ;;  %v9759_v22 = vmul.f32 %v10980_v21, %v9567_v1 }
 0x5ba   : > { %9793 = vst [vmem:[%s14840_s23 + $0x78] sm:$0xff] %v9761_v13 }
 0x5bb   : > { %9791 = vst [vmem:[%s14840_s23 + $0x68] sm:$0xff] %v9759_v22  ;;  %v10598_v61 = vpop.f32.mrb[0].mxu1 }
 0x5bc   : > { %v10644_v5 = vadd.f32 %v10598_v61, %v15043_v52  ;;  %v9388_v54 = vpop.f32.mrb[1].mxu1 }
 0x5bd   : > { %v10645_v3 = vadd.f32 %v9388_v54, %v15044_v0  ;;  %v10599_v34 = vpop.f32.mrb[2].mxu1 }
 0x5be   : > { %v9572_v29 = vadd.f32 %v10644_v5, %v14786_v51  ;;  %v10646_v62 = vadd.f32 %v10599_v34, %v15045_v50  ;;  %v9391_v53 = vpop.f32.mrb[3].mxu1 }
 0x5bf   : > { %v9570_v40 = vadd.f32 %v10645_v3, %v14786_v51  ;;  %v10647_v39 = vadd.f32 %v9391_v53, %v15046_v43 }
 0x5c0   : > { %v9604_v24 = vsub.f32 0.0, %v9572_v29  ;;  %v9573_v8 = vadd.f32 %v10646_v62, %v14786_v51 }
 0x5c1   : > { %v9602_v32 = vsub.f32 0.0, %v9570_v40  ;;  %v9571_v48 = vadd.f32 %v10647_v39, %v14786_v51 }
 0x5c2   : > { %v9654_v36 = vmul.f32 1.442695, %v9604_v24  ;;  %v9605_v28 = vsub.f32 0.0, %v9573_v8 }
 0x5c3   : > { %v9650_v59 = vmul.f32 1.442695, %v9602_v32  ;;  %v9603_v14 = vsub.f32 0.0, %v9571_v48 }
 0x5c4   : > { %10981 = vpow2.f32 %v9654_v36  ;;  %v9656_v37 = vmul.f32 1.442695, %v9605_v28  ;;  %v15051_v36 = vld [vmem:[#allocation12_spill] sm:$0xff] }
 0x5c5   : > { %10983 = vpow2.f32 %v9650_v59  ;;  %v9652_v46 = vmul.f32 1.442695, %v9603_v14  ;;  %v15052_v14 = vld [vmem:[#allocation13_spill] sm:$0xff] }
 0x5c6   : > { %10985 = vpow2.f32 %v9656_v37 }
 0x5c7   : > { %10987 = vpow2.f32 %v9652_v46 }
 0x5ce   : > { %v10982_v30 = vpop.eup %10981 }
 0x5cf   : > { %v10984_v58 = vpop.eup %10983  ;;  %v9700_v45 = vadd.f32 1.0, %v10982_v30 }
 0x5d0   : > { %v10986_v12 = vpop.eup %10985  ;;  %v9698_v31 = vadd.f32 1.0, %v10984_v58  ;;  %v15053_v58 = vld [vmem:[#allocation14_spill] sm:$0xff] }
 0x5d1   : > { %v10988_v17 = vpop.eup %10987  ;;  %10989 = vrcp.f32 %v9700_v45  ;;  %v9701_v18 = vadd.f32 1.0, %v10986_v12 }
 0x5d2   : > { %10991 = vrcp.f32 %v9698_v31  ;;  %v9699_v6 = vadd.f32 1.0, %v10988_v17  ;;  %v15054_v17 = vld [vmem:[#allocation15_spill] sm:$0xff] }
 0x5d3   : > { %10993 = vrcp.f32 %v9701_v18 }
 0x5d4   : > { %10995 = vrcp.f32 %v9699_v6 }
 0x5db   : > { %v10990_v47 = vpop.eup %10989 }
 0x5dc   : > { %v10992_v38 = vpop.eup %10991  ;;  %v9764_v4 = vmul.f32 %v10990_v47, %v9572_v29 }
 0x5dd   : > { %v10994_v33 = vpop.eup %10993  ;;  %v9762_v19 = vmul.f32 %v10992_v38, %v9570_v40 }
 0x5de   : > { %v10996_v26 = vpop.eup %10995  ;;  %9796 = vst [vmem:[%s14840_s23 + $0x90] sm:$0xff] %v9764_v4  ;;  %v9765_v20 = vmul.f32 %v10994_v33, %v9573_v8 }
 0x5df   : > { %9794 = vst [vmem:[%s14840_s23 + $0x80] sm:$0xff] %v9762_v19  ;;  %v9763_v11 = vmul.f32 %v10996_v26, %v9571_v48  ;;  %v10602_v1 = vpop.f32.mrb[4].mxu1 }
 0x5e0   : > { %9797 = vst [vmem:[%s14840_s23 + $0x98] sm:$0xff] %v9765_v20  ;;  %v10648_v49 = vadd.f32 %v10602_v1, %v15047_v16  ;;  %v9404_v9 = vpop.f32.mrb[5].mxu1 }
 0x5e1   : > { %9795 = vst [vmem:[%s14840_s23 + $0x88] sm:$0xff] %v9763_v11  ;;  %v10649_v2 = vadd.f32 %v9404_v9, %v15048_v27  ;;  %v10603_v60 = vpop.f32.mrb[6].mxu1 }
 0x5e2   : > { %v9576_v7 = vadd.f32 %v10648_v49, %v14786_v51  ;;  %v10650_v35 = vadd.f32 %v10603_v60, %v15049_v55  ;;  %v9407_v42 = vpop.f32.mrb[7].mxu1 }
 0x5e3   : > { %v9574_v15 = vadd.f32 %v10649_v2, %v14786_v51  ;;  %v10651_v44 = vadd.f32 %v9407_v42, %v15050_v10 }
 0x5e4   : > { %v9608_v56 = vsub.f32 0.0, %v9576_v7  ;;  %v9577_v57 = vadd.f32 %v10650_v35, %v14786_v51 }
 0x5e5   : > { %v9606_v63 = vsub.f32 0.0, %v9574_v15  ;;  %v9575_v25 = vadd.f32 %v10651_v44, %v14786_v51 }
 0x5e6   : > { %v9662_v23 = vmul.f32 1.442695, %v9608_v56  ;;  %v9609_v41 = vsub.f32 0.0, %v9577_v57 }
 0x5e7   : > { %v9658_v21 = vmul.f32 1.442695, %v9606_v63  ;;  %v9607_v13 = vsub.f32 0.0, %v9575_v25 }
 0x5e8   : > { %10997 = vpow2.f32 %v9662_v23  ;;  %v9664_v22 = vmul.f32 1.442695, %v9609_v41  ;;  %v15055_v23 = vld [vmem:[#allocation16_spill] sm:$0xff] }
 0x5e9   : > { %10999 = vpow2.f32 %v9658_v21  ;;  %v9660_v61 = vmul.f32 1.442695, %v9607_v13  ;;  %v15056_v13 = vld [vmem:[#allocation17_spill] sm:$0xff] }
 0x5ea   : > { %11001 = vpow2.f32 %v9664_v22 }
 0x5eb   : > { %11003 = vpow2.f32 %v9660_v61 }
 0x5f2   : > { %v10998_v52 = vpop.eup %10997 }
 0x5f3   : > { %v11000_v5 = vpop.eup %10999  ;;  %v9704_v54 = vadd.f32 1.0, %v10998_v52 }
 0x5f4   : > { %v11002_v0 = vpop.eup %11001  ;;  %v9702_v3 = vadd.f32 1.0, %v11000_v5  ;;  %v15057_v5 = vld [vmem:[#allocation18_spill] sm:$0xff] }
 0x5f5   : > { %v11004_v34 = vpop.eup %11003  ;;  %11005 = vrcp.f32 %v9704_v54  ;;  %v9705_v29 = vadd.f32 1.0, %v11002_v0 }
 0x5f6   : > { %11007 = vrcp.f32 %v9702_v3  ;;  %v9703_v50 = vadd.f32 1.0, %v11004_v34  ;;  %v15058_v34 = vld [vmem:[#allocation19_spill] sm:$0xff] }
 0x5f7   : > { %11009 = vrcp.f32 %v9705_v29 }
 0x5f8   : > { %11011 = vrcp.f32 %v9703_v50 }
 0x5ff   : > { %v11006_v62 = vpop.eup %11005 }
 0x600   : > { %v11008_v53 = vpop.eup %11007  ;;  %v9768_v40 = vmul.f32 %v11006_v62, %v9576_v7 }
 0x601   : > { %v11010_v43 = vpop.eup %11009  ;;  %v9766_v39 = vmul.f32 %v11008_v53, %v9574_v15 }
 0x602   : > { %v11012_v24 = vpop.eup %11011  ;;  %9800 = vst [vmem:[%s14840_s23 + $0xb0] sm:$0xff] %v9768_v40  ;;  %v9769_v8 = vmul.f32 %v11010_v43, %v9577_v57 }
 0x603   : > { %9798 = vst [vmem:[%s14840_s23 + $0xa0] sm:$0xff] %v9766_v39  ;;  %v9767_v32 = vmul.f32 %v11012_v24, %v9575_v25 }
 0x604   : > { %9801 = vst [vmem:[%s14840_s23 + $0xb8] sm:$0xff] %v9769_v8 }
 0x605   : > { %9799 = vst [vmem:[%s14840_s23 + $0xa8] sm:$0xff] %v9767_v32  ;;  %v10606_v48 = vpop.f32.mrb[8].mxu1 }
 0x606   : > { %v10652_v28 = vadd.f32 %v10606_v48, %v15051_v36  ;;  %v9420_v59 = vpop.f32.mrb[9].mxu1 }
 0x607   : > { %v10653_v37 = vadd.f32 %v9420_v59, %v15052_v14  ;;  %v10607_v46 = vpop.f32.mrb[10].mxu1 }
 0x608   : > { %v9580_v30 = vadd.f32 %v10652_v28, %v14786_v51  ;;  %v10654_v45 = vadd.f32 %v10607_v46, %v15053_v58  ;;  %v9423_v12 = vpop.f32.mrb[11].mxu1 }
 0x609   : > { %v9578_v31 = vadd.f32 %v10653_v37, %v14786_v51  ;;  %v10655_v18 = vadd.f32 %v9423_v12, %v15054_v17 }
 0x60a   : > { %v9612_v6 = vsub.f32 0.0, %v9580_v30  ;;  %v9581_v47 = vadd.f32 %v10654_v45, %v14786_v51 }
 0x60b   : > { %v9610_v38 = vsub.f32 0.0, %v9578_v31  ;;  %v9579_v4 = vadd.f32 %v10655_v18, %v14786_v51 }
 0x60c   : > { %v9670_v33 = vmul.f32 1.442695, %v9612_v6  ;;  %v9613_v19 = vsub.f32 0.0, %v9581_v47 }
 0x60d   : > { %v9666_v26 = vmul.f32 1.442695, %v9610_v38  ;;  %v9611_v20 = vsub.f32 0.0, %v9579_v4 }
 0x60e   : > { %11013 = vpow2.f32 %v9670_v33  ;;  %v9672_v11 = vmul.f32 1.442695, %v9613_v19 }
 0x60f   : > { %11015 = vpow2.f32 %v9666_v26  ;;  %v9668_v1 = vmul.f32 1.442695, %v9611_v20 }
 0x610   : > { %11017 = vpow2.f32 %v9672_v11 }
 0x611   : > { %11019 = vpow2.f32 %v9668_v1 }
 0x618   : > { %v11014_v16 = vpop.eup %11013 }
 0x619   : > { %v11016_v49 = vpop.eup %11015  ;;  %v9708_v9 = vadd.f32 1.0, %v11014_v16 }
 0x61a   : > { %v11018_v27 = vpop.eup %11017  ;;  %v9706_v2 = vadd.f32 1.0, %v11016_v49 }
 0x61b   : > { %v11020_v60 = vpop.eup %11019  ;;  %11021 = vrcp.f32 %v9708_v9  ;;  %v9709_v7 = vadd.f32 1.0, %v11018_v27 }
 0x61c   : > { %11023 = vrcp.f32 %v9706_v2  ;;  %v9707_v55 = vadd.f32 1.0, %v11020_v60 }
 0x61d   : > { %11025 = vrcp.f32 %v9709_v7 }
 0x61e   : > { %11027 = vrcp.f32 %v9707_v55 }
 0x625   : > { %v11022_v35 = vpop.eup %11021 }
 0x626   : > { %v11024_v42 = vpop.eup %11023  ;;  %v9772_v15 = vmul.f32 %v11022_v35, %v9580_v30 }
 0x627   : > { %v11026_v10 = vpop.eup %11025  ;;  %v9770_v44 = vmul.f32 %v11024_v42, %v9578_v31 }
 0x628   : > { %v11028_v56 = vpop.eup %11027  ;;  %9804 = vst [vmem:[%s14840_s23 + $0xd0] sm:$0xff] %v9772_v15  ;;  %v9773_v57 = vmul.f32 %v11026_v10, %v9581_v47 }
 0x629   : > { %9802 = vst [vmem:[%s14840_s23 + $0xc0] sm:$0xff] %v9770_v44  ;;  %v9771_v63 = vmul.f32 %v11028_v56, %v9579_v4  ;;  %v10610_v25 = vpop.f32.mrb[12].mxu1 }
 0x62a   : > { %9805 = vst [vmem:[%s14840_s23 + $0xd8] sm:$0xff] %v9773_v57  ;;  %v10656_v41 = vadd.f32 %v10610_v25, %v15055_v23  ;;  %v9436_v21 = vpop.f32.mrb[13].mxu1 }
 0x62b   : > { %9803 = vst [vmem:[%s14840_s23 + $0xc8] sm:$0xff] %v9771_v63  ;;  %v10657_v22 = vadd.f32 %v9436_v21, %v15056_v13  ;;  %v10611_v61 = vpop.f32.mrb[14].mxu1 }
 0x62c   : > { %v9584_v52 = vadd.f32 %v10656_v41, %v14786_v51  ;;  %v10658_v54 = vadd.f32 %v10611_v61, %v15057_v5  ;;  %v9439_v0 = vpop.f32.mrb[15].mxu1 }
 0x62d   : > { %v9582_v3 = vadd.f32 %v10657_v22, %v14786_v51  ;;  %v10659_v29 = vadd.f32 %v9439_v0, %v15058_v34 }
 0x62e   : > { %v9616_v50 = vsub.f32 0.0, %v9584_v52  ;;  %v9585_v62 = vadd.f32 %v10658_v54, %v14786_v51 }
 0x62f   : > { %v9614_v53 = vsub.f32 0.0, %v9582_v3  ;;  %v9583_v40 = vadd.f32 %v10659_v29, %v14786_v51 }
 0x630   : > { %v9678_v43 = vmul.f32 1.442695, %v9616_v50  ;;  %v9617_v39 = vsub.f32 0.0, %v9585_v62 }
 0x631   : > { %v9674_v24 = vmul.f32 1.442695, %v9614_v53  ;;  %v9615_v8 = vsub.f32 0.0, %v9583_v40 }
 0x632   : > { %11029 = vpow2.f32 %v9678_v43  ;;  %v9680_v32 = vmul.f32 1.442695, %v9617_v39 }
 0x633   : > { %11031 = vpow2.f32 %v9674_v24  ;;  %v9676_v48 = vmul.f32 1.442695, %v9615_v8 }
 0x634   : > { %11033 = vpow2.f32 %v9680_v32 }
 0x635   : > { %11035 = vpow2.f32 %v9676_v48 }
 0x63c   : > { %v11030_v36 = vpop.eup %11029 }
 0x63d   : > { %v11032_v28 = vpop.eup %11031  ;;  %v9712_v59 = vadd.f32 1.0, %v11030_v36 }
 0x63e   : > { %v11034_v14 = vpop.eup %11033  ;;  %v9710_v37 = vadd.f32 1.0, %v11032_v28 }
 0x63f   : > { %v11036_v46 = vpop.eup %11035  ;;  %11037 = vrcp.f32 %v9712_v59  ;;  %v9713_v51 = vadd.f32 1.0, %v11034_v14 }
 0x640   : > { %11039 = vrcp.f32 %v9710_v37  ;;  %v9711_v30 = vadd.f32 1.0, %v11036_v46 }
 0x641   : > { %11041 = vrcp.f32 %v9713_v51 }
 0x642   : > { %11043 = vrcp.f32 %v9711_v30 }
 0x649   : > { %v11038_v58 = vpop.eup %11037 }
 0x64a   : > { %v11040_v45 = vpop.eup %11039  ;;  %v9776_v12 = vmul.f32 %v11038_v58, %v9584_v52 }
 0x64b   : > { %v11042_v31 = vpop.eup %11041  ;;  %v9774_v17 = vmul.f32 %v11040_v45, %v9582_v3 }
 0x64c   : > { %v11044_v18 = vpop.eup %11043  ;;  %9808 = vst [vmem:[%s14840_s23 + $0xf0] sm:$0xff] %v9776_v12  ;;  %v9777_v6 = vmul.f32 %v11042_v31, %v9585_v62 }
 0x64d   : > { %9806 = vst [vmem:[%s14840_s23 + $0xe0] sm:$0xff] %v9774_v17  ;;  %v9775_v47 = vmul.f32 %v11044_v18, %v9583_v40 }
 0x64e   : > { %9809 = vst [vmem:[%s14840_s23 + $0xf8] sm:$0xff] %v9777_v6 }
 0x64f   : > { %9807 = vst [vmem:[%s14840_s23 + $0xe8] sm:$0xff] %v9775_v47 }
 0x650 PF: > { %s15_s18 = sadd.s32 1, %s11059_s18  }
 0x651   : > { %p12_p4 = scmp.ge.s32.totalorder %s15_s18, 4  }
 0x653   :  { %14 = sbr.rel (!%p12_p4) target bundleno = 1 (0x1), region = 75 }

</bundles_post_ra>
